<compile_context>
chip_gen: v5e
topology: v5e:2x2
jax: 0.10.0
libtpu: 0.0.40
codegen_flags: <defaults>
</compile_context>

<pallas_src>
import jax
import jax.numpy as jnp
import numpy as np
from jax import lax
from jax.experimental import pallas as pl
from jax.experimental.pallas import tpu as pltpu

EPS = 1e-5  # BatchNorm2d default eps


# --------------------------- layout helpers (host) ----------------------------

def _flat_pad(x):
    """NCHW -> (B, C, (H+3)*(W+2)) bf16 flat zero-padded image.

    Pad H by (1,2), W by (1,1); the second bottom pad row keeps every tap
    slice of length H*(W+2) inside the flat buffer."""
    B, C, H, W = x.shape
    xp = jnp.pad(x, ((0, 0), (0, 0), (1, 2), (1, 1)))
    return xp.reshape(B, C, (H + 3) * (W + 2)).astype(jnp.bfloat16)


def _unflat(xf, H, W):
    """(B, C, (H+3)*(W+2)) -> NCHW (drop the zero padding)."""
    B, C, _ = xf.shape
    return xf.reshape(B, C, H + 3, W + 2)[:, :, 1:H + 1, 1:W + 1]


# ----------------------------- in-kernel helpers ------------------------------

def _gather_taps(x, Wp, M):
    """x: (C, L) bf16 flat padded image -> (9*C, M) bf16.

    Rows grouped by 3x3 tap (dh, dw) row-major (matches the (Cout, 9*Cin)
    weight layout); tap (dh, dw) is a constant lane shift of dh*Wp + dw."""
    parts = []
    for dh in range(3):
        for dw in range(3):
            s = dh * Wp + dw
            parts.append(x[:, s:s + M])
    return jnp.concatenate(parts, axis=0)


def _make_block_kernel(Wp, W, M, L, has_skip):
    """Whole ConvBlockRes: conv1+BN+ReLU -> re-pad inside the output block ->
    conv2+BN+ReLU -> + (1x1 shortcut | identity), bf16 flat in / bf16 flat out."""
    def kernel(*refs):
        if has_skip:
            (x_ref, s_ref, w1x_ref, w1s_ref, b1_ref, w2_ref, b2_ref,
             wsx_ref, wss_ref, bs_ref, o_ref) = refs
        else:
            (x_ref, w1x_ref, b1_ref, w2_ref, b2_ref, o_ref) = refs
        cout = o_ref.shape[0]

        # 1 at real-image lanes, 0 at the 2 inter-row pad columns (in-kernel).
        col = lax.broadcasted_iota(jnp.int32, (1, M), 1) % Wp
        mask = col < W

        # ---- conv1 + BN + ReLU: bf16 tap gather, one MXU matmul per input ----
        x = x_ref[...]                                           # (Cx, L) bf16
        h = jnp.dot(w1x_ref[...], _gather_taps(x, Wp, M),
                    preferred_element_type=jnp.float32)
        if has_skip:
            s = s_ref[...]                                       # (Cs, L) bf16
            h = h + jnp.dot(w1s_ref[...], _gather_taps(s, Wp, M),
                            preferred_element_type=jnp.float32)
        h = jnp.maximum(h + b1_ref[...], 0.0)                    # (Cout, M) f32
        h = jnp.where(mask, h, 0.0).astype(jnp.bfloat16)

        # ---- re-pad conv1's activation inside the output block (bf16) ----
        # Border lanes get their final zeros now; the interior holds h
        # temporarily and is overwritten with the final result below.
        o_ref[:, :Wp + 1] = jnp.zeros((cout, Wp + 1), o_ref.dtype)
        o_ref[:, Wp + 1 + M:] = jnp.zeros((cout, L - Wp - 1 - M), o_ref.dtype)
        o_ref[:, Wp + 1:Wp + 1 + M] = h

        # ---- conv2 + BN + ReLU ----
        taps2 = _gather_taps(o_ref[...], Wp, M)                  # (9Cout, M) bf16
        y = jnp.dot(w2_ref[...], taps2, preferred_element_type=jnp.float32)
        y = jnp.maximum(y + b2_ref[...], 0.0)

        # ---- residual (1x1 shortcut fused, or identity) ----
        xc = x[:, Wp + 1:Wp + 1 + M]                             # input at output pixels
        if has_skip:
            sc = s[:, Wp + 1:Wp + 1 + M]
            res = (jnp.dot(wsx_ref[...], xc, preferred_element_type=jnp.float32)
                   + jnp.dot(wss_ref[...], sc, preferred_element_type=jnp.float32)
                   + bs_ref[...])
        else:
            res = xc.astype(jnp.float32)
        out = jnp.where(mask, y + res, 0.0)
        o_ref[:, Wp + 1:Wp + 1 + M] = out.astype(o_ref.dtype)
    return kernel


def _make_transpose_kernel(Wp, M):
    """ConvTranspose2d(3x3, stride (2,2), pad 1, out_pad (1,1)) + BN + ReLU as
    a stride-2 phase decomposition: one (4Cout,4Cin)x(4Cin,M) MXU matmul on the
    compact input.  Output rows are phase-major: p = 2*ph + pw."""
    def kernel(x_ref, w_ref, b_ref, o_ref):
        x = x_ref[...]                                           # (Cin, L) bf16
        base = Wp + 1
        taps = jnp.concatenate(
            [x[:, base:base + M],                                # x[m,   n  ]
             x[:, base + 1:base + 1 + M],                        # x[m,   n+1]
             x[:, base + Wp:base + Wp + M],                      # x[m+1, n  ]
             x[:, base + Wp + 1:base + Wp + 1 + M]],             # x[m+1, n+1]
            axis=0)                                              # (4Cin, M)
        y = jnp.dot(w_ref[...], taps, preferred_element_type=jnp.float32)
        y = jnp.maximum(y + b_ref[...], 0.0)
        o_ref[...] = y.astype(o_ref.dtype)                       # (4Cout, M)
    return kernel


# ------------------------------ Pallas wrappers -------------------------------

def conv_block_res(x_flat, skip_flat, p, H, W):
    """ConvBlockRes fused in one pallas_call; bf16 flat-padded in and out."""
    B, Cx, L = x_flat.shape
    Wp, M = W + 2, H * (W + 2)
    assert L == (H + 3) * Wp
    Cout = p['k_w1x'].shape[0]
    has_skip = skip_flat is not None

    def wspec(shape):
        return pl.BlockSpec(shape, lambda b, _s=shape: (0,) * len(_s))

    in_specs = [pl.BlockSpec((None, Cx, L), lambda b: (b, 0, 0))]
    args = [x_flat]
    if has_skip:
        Cs = skip_flat.shape[1]
        in_specs.append(pl.BlockSpec((None, Cs, L), lambda b: (b, 0, 0)))
        args.append(skip_flat)
        in_specs += [wspec((Cout, 9 * Cx)), wspec((Cout, 9 * Cs)),
                     wspec((Cout, 1)), wspec((Cout, 9 * Cout)), wspec((Cout, 1)),
                     wspec((Cout, Cx)), wspec((Cout, Cs)), wspec((Cout, 1))]
        args += [p['k_w1x'], p['k_w1s'], p['k_b1'], p['k_w2'], p['k_b2'],
                 p['k_wsx'], p['k_wss'], p['k_bs']]
    else:
        in_specs += [wspec((Cout, 9 * Cx)), wspec((Cout, 1)),
                     wspec((Cout, 9 * Cout)), wspec((Cout, 1))]
        args += [p['k_w1x'], p['k_b1'], p['k_w2'], p['k_b2']]

    return pl.pallas_call(
        _make_block_kernel(Wp, W, M, L, has_skip),
        out_shape=jax.ShapeDtypeStruct((B, Cout, L), jnp.bfloat16),
        grid=(B,),
        in_specs=in_specs,
        out_specs=pl.BlockSpec((None, Cout, L), lambda b: (b, 0, 0)),
        compiler_params=pltpu.CompilerParams(
            dimension_semantics=("parallel",)),
    )(*args)


def conv_transpose_bn_relu(x_flat, p, H, W):
    """Phase-decomposed ConvTranspose2d(3x3, stride (2,2)) + BN + ReLU.
    x_flat: (B, Cin, L) bf16 flat-padded at (H, W).  Returns NCHW bf16
    (B, Cout, 2H, 2W)."""
    B, Cin, L = x_flat.shape
    Wp, M = W + 2, H * (W + 2)
    assert L == (H + 3) * Wp
    Cout4 = p['k_wt'].shape[0]
    Cout = Cout4 // 4
    y4 = pl.pallas_call(
        _make_transpose_kernel(Wp, M),
        out_shape=jax.ShapeDtypeStruct((B, Cout4, M), jnp.bfloat16),
        grid=(B,),
        in_specs=[pl.BlockSpec((None, Cin, L), lambda b: (b, 0, 0)),
                  pl.BlockSpec((Cout4, 4 * Cin), lambda b: (0, 0)),
                  pl.BlockSpec((Cout4, 1), lambda b: (0, 0))],
        out_specs=pl.BlockSpec((None, Cout4, M), lambda b: (b, 0, 0)),
        compiler_params=pltpu.CompilerParams(
            dimension_semantics=("parallel",)),
    )(x_flat, p['k_wt'], p['k_bt'])
    # Interleave the 4 phases: out[.., 2m+ph, 2n+pw] = phase(2*ph+pw)[m, n].
    y4 = y4.reshape(B, 2, 2, Cout, H, Wp)[..., :W]     # (B, ph, pw, C, H, W)
    return y4.transpose(0, 3, 4, 1, 5, 2).reshape(B, Cout, 2 * H, 2 * W)


# ------------------------------- Model (Pallas) -------------------------------

def res_decoder_block(x_flat, skip_flat, p, H, W):
    y = conv_transpose_bn_relu(x_flat, p, H, W)        # (B, Cout, 2H, 2W) bf16
    H2, W2 = 2 * H, 2 * W
    h = _flat_pad(y)                                   # single re-pad per stage
    h = conv_block_res(h, skip_flat, p['blocks'][0], H2, W2)   # fused concat
    for bp in p['blocks'][1:]:
        h = conv_block_res(h, None, bp, H2, W2)        # stays flat bf16
    return h, H2, W2


def decoder_forward(x, concat_tensors, params, stride):
    assert stride == (2, 2)  # TODO(synk): stride (1,2) path not implemented
    B, C, H, W = x.shape
    x_flat = _flat_pad(x)
    skips = [_flat_pad(t) for t in concat_tensors]
    for i, p in enumerate(params):
        x_flat, H, W = res_decoder_block(x_flat, skips[-1 - i], p, H, W)
    return _unflat(x_flat, H, W).astype(jnp.float32)


# ----------------------------- Pure-JAX reference -----------------------------

def _conv_ref(x, w_oihw, bias, lhs_dilation=(1, 1), padding=((1, 1), (1, 1))):
    y = lax.conv_general_dilated(
        x, w_oihw, (1, 1), padding, lhs_dilation=lhs_dilation,
        dimension_numbers=('NCHW', 'OIHW', 'NCHW'),
        precision=lax.Precision.HIGHEST)
    return jnp.maximum(y + bias.reshape(1, -1, 1, 1), 0.0)


def decoder_forward_ref(x, concat_tensors, params, stride):
    sh, sw = stride
    oph, opw = (0, 1) if stride == (1, 2) else (1, 1)
    for i, p in enumerate(params):
        skip = concat_tensors[-1 - i]
        h = _conv_ref(x, p['ref_wt'], p['bt'], lhs_dilation=(sh, sw),
                      padding=((1, 1 + oph), (1, 1 + opw)))
        h = jnp.concatenate([h, skip], axis=1)
        for bp in p['blocks']:
            r = _conv_ref(h, bp['ref_w1'], bp['b1'])
            r = _conv_ref(r, bp['ref_w2'], bp['b2'])
            if bp['ref_ws'] is not None:
                res = jnp.einsum('bchw,dc->bdhw', h, bp['ref_ws'],
                                 precision=lax.Precision.HIGHEST)
                res = res + bp['bs'].reshape(1, -1, 1, 1)
            else:
                res = h
            h = r + res
        x = h
    return x


# --------------------------------- Parameters ---------------------------------

def _fold_bn(gamma, beta, mean, var):
    scale = gamma / jnp.sqrt(var + EPS)
    return scale, beta - mean * scale


def _rand_bn(key, c):
    kg, kb, km, kv = jax.random.split(key, 4)
    gamma = 1.0 + 0.1 * jax.random.normal(kg, (c,), jnp.float32)
    beta = 0.1 * jax.random.normal(kb, (c,), jnp.float32)
    mean = 0.1 * jax.random.normal(km, (c,), jnp.float32)
    var = 1.0 + 0.1 * jax.random.uniform(kv, (c,), jnp.float32)
    return _fold_bn(gamma, beta, mean, var)


def _conv_w9(w_oihw):
    """OIHW -> (Cout, 9*Cin), columns ordered (kh, kw, ci) to match _gather_taps."""
    return w_oihw.transpose(0, 2, 3, 1).reshape(w_oihw.shape[0], -1)


# (phase p = 2*ph + pw, tap q in [x00, x01, x10, x11]) -> ConvTranspose (kh, kw)
_PHASE_TAPS = {(0, 0): (1, 1),
               (1, 0): (1, 2), (1, 1): (1, 0),
               (2, 0): (2, 1), (2, 2): (0, 1),
               (3, 0): (2, 2), (3, 1): (2, 0), (3, 2): (0, 2), (3, 3): (0, 0)}


def init_decoder_params(key, in_channels, n_decoders, n_blocks):
    """Weights stored both in reference form (OIHW f32) and kernel form (bf16,
    tap-grouped, BN scale folded in; biases as f32 column vectors)."""
    params = []
    c = in_channels
    for _ in range(n_decoders):
        oc = c // 2
        key, kt, kbn = jax.random.split(key, 3)
        # PyTorch ConvTranspose2d weight layout: (Cin, Cout, 3, 3).
        wt_torch = 0.1 * jax.random.normal(kt, (c, oc, 3, 3), jnp.float32)
        st, bt = _rand_bn(kbn, oc)
        # reference: equivalent forward conv (flipped kernel) over dilated input
        ref_wt = (jnp.flip(wt_torch, axis=(2, 3)).transpose(1, 0, 2, 3)
                  * st[:, None, None, None])
        # kernel: stride-(2,2) phase-decomposition weight (4*Cout, 4*Cin)
        wk = wt_torch.transpose(1, 0, 2, 3) * st[:, None, None, None]
        W4 = jnp.zeros((4, 4, oc, c), jnp.float32)
        for (pp, qq), (kh, kw) in _PHASE_TAPS.items():
            W4 = W4.at[pp, qq].set(wk[:, :, kh, kw])
        k_wt = W4.transpose(0, 2, 1, 3).reshape(4 * oc, 4 * c).astype(jnp.bfloat16)
        k_bt = jnp.tile(bt, 4).reshape(4 * oc, 1).astype(jnp.float32)

        blocks = []
        ic = oc * 2   # first block sees [transpose-out (oc), skip (oc)]
        for _ in range(n_blocks):
            key, k1, kbn1, k2, kbn2, ks, kbs = jax.random.split(key, 7)
            w1 = 0.1 * jax.random.normal(k1, (oc, ic, 3, 3), jnp.float32)  # OIHW
            s1, b1 = _rand_bn(kbn1, oc)
            ref_w1 = w1 * s1[:, None, None, None]
            w2 = 0.1 * jax.random.normal(k2, (oc, oc, 3, 3), jnp.float32)
            s2, b2 = _rand_bn(kbn2, oc)
            ref_w2 = w2 * s2[:, None, None, None]
            cx = oc if ic != oc else ic                       # x-path channels
            blk = dict(ref_w1=ref_w1, b1=b1, ref_w2=ref_w2, b2=b2,
                       k_w1x=_conv_w9(ref_w1[:, :cx]).astype(jnp.bfloat16),
                       k_w1s=(_conv_w9(ref_w1[:, cx:]).astype(jnp.bfloat16)
                              if ic != oc else None),
                       k_b1=b1.reshape(oc, 1).astype(jnp.float32),
                       k_w2=_conv_w9(ref_w2).astype(jnp.bfloat16),
                       k_b2=b2.reshape(oc, 1).astype(jnp.float32))
            if ic != oc:
                ws = 0.1 * jax.random.normal(ks, (oc, ic), jnp.float32)
                bs = 0.1 * jax.random.normal(kbs, (oc,), jnp.float32)
                blk.update(ref_ws=ws, bs=bs,
                           k_wsx=ws[:, :cx].astype(jnp.bfloat16),
                           k_wss=ws[:, cx:].astype(jnp.bfloat16),
                           k_bs=bs.reshape(oc, 1).astype(jnp.float32))
            else:
                blk.update(ref_ws=None, bs=None, k_wsx=None, k_wss=None,
                           k_bs=None)
            blocks.append(blk)
            ic = oc
        params.append(dict(ref_wt=ref_wt, bt=bt, k_wt=k_wt, k_bt=k_bt,
                           blocks=blocks))
        c = oc
    return params


# ------------------------------------ main ------------------------------------

if __name__ == "__main__":
    B = 2
    in_channels = 32
    n_decoders = 2
    n_blocks = 2
    stride = (2, 2)
    H = W = 8

    key = jax.random.PRNGKey(0)
    key, kx = jax.random.split(key)
    x = jax.random.normal(kx, (B, in_channels, H, W), jnp.float32)     # NCHW

    # Encoder skip tensors (NCHW), one per ResDecoderBlock.
    c, h, w = in_channels, H, W
    skips_for_decoder = []
    for _ in range(n_decoders):
        oc = c // 2
        h, w = 2 * h, 2 * w
        key, ks = jax.random.split(key)
        skips_for_decoder.append(
            jax.random.normal(ks, (B, oc, h, w), jnp.float32))
        c = oc
    concat_tensors = skips_for_decoder[::-1]   # Decoder uses concat_tensors[-1-i]

    params = init_decoder_params(jax.random.PRNGKey(1),
                                 in_channels, n_decoders, n_blocks)

    fwd = jax.jit(lambda xx, skips: decoder_forward(xx, skips, params, stride))
    out = jax.block_until_ready(fwd(x, concat_tensors))

    ref = decoder_forward_ref(x, concat_tensors, params, stride)
    np.testing.assert_allclose(np.asarray(out), np.asarray(ref),
                               rtol=5e-2, atol=5e-2)

    assert out.shape == (B, in_channels // (2 ** n_decoders),
                         H * 2 ** n_decoders, W * 2 ** n_decoders)
    print("KERNEL_OK")
</pallas_src>

<mosaic_0001>
module attributes {stable_mosaic.version = 11 : i64} {
  func.func @kernel(%arg0: i32, %arg1: memref<1x32x110xbf16, #tpu.memory_space<vmem>>, %arg2: memref<64x128xbf16, #tpu.memory_space<vmem>>, %arg3: memref<64x1xf32, #tpu.memory_space<vmem>>, %arg4: memref<1x64x80xbf16, #tpu.memory_space<vmem>>) attributes {dimension_semantics = [#tpu.dimension_semantics<parallel>], iteration_bounds = array<i64: 2>, scalar_prefetch = 0 : i64, scratch_operands = 0 : i64, tpu.core_type = #tpu.core_type<tc>, window_params = [{transform_indices = @transform_0, window_bounds = array<i64: 1, 32, 110>}, {pipeline_mode = #tpu.pipeline_mode<synchronous>, transform_indices = @transform_1, window_bounds = array<i64: 64, 128>}, {pipeline_mode = #tpu.pipeline_mode<synchronous>, transform_indices = @transform_2, window_bounds = array<i64: 64, 1>}, {transform_indices = @transform_3, window_bounds = array<i64: 1, 64, 80>}]} {
    %c0 = arith.constant 0 : index
    %c0_0 = arith.constant 0 : index
    %c0_1 = arith.constant 0 : index
    %0 = vector.load %arg1[%c0, %c0_0, %c0_1] : memref<1x32x110xbf16, #tpu.memory_space<vmem>>, vector<1x32x110xbf16>
    %1 = vector.shape_cast %0 : vector<1x32x110xbf16> to vector<32x110xbf16>
    %2 = vector.extract_strided_slice %1 {offsets = [0, 11], sizes = [32, 80], strides = [1, 1]} : vector<32x110xbf16> to vector<32x80xbf16>
    %3 = vector.extract_strided_slice %1 {offsets = [0, 12], sizes = [32, 80], strides = [1, 1]} : vector<32x110xbf16> to vector<32x80xbf16>
    %4 = vector.extract_strided_slice %1 {offsets = [0, 21], sizes = [32, 80], strides = [1, 1]} : vector<32x110xbf16> to vector<32x80xbf16>
    %5 = vector.extract_strided_slice %1 {offsets = [0, 22], sizes = [32, 80], strides = [1, 1]} : vector<32x110xbf16> to vector<32x80xbf16>
    %6 = tpu.concatenate %2, %3, %4, %5 in 0 : vector<32x80xbf16>, vector<32x80xbf16>, vector<32x80xbf16>, vector<32x80xbf16> -> vector<128x80xbf16>
    %c0_2 = arith.constant 0 : index
    %c0_3 = arith.constant 0 : index
    %7 = vector.load %arg2[%c0_2, %c0_3] : memref<64x128xbf16, #tpu.memory_space<vmem>>, vector<64x128xbf16>
    %cst = arith.constant dense<0.000000e+00> : vector<64x80xf32>
    %8 = tpu.matmul %7, %6, %cst {dimension_numbers = #tpu.dot_dimension_numbers<[1], [0], [0], [1], [0, 0, 1, 1], [], []>} : vector<64x128xbf16>, vector<128x80xbf16>, vector<64x80xf32> -> vector<64x80xf32>
    %c0_4 = arith.constant 0 : index
    %c0_5 = arith.constant 0 : index
    %9 = vector.load %arg3[%c0_4, %c0_5] : memref<64x1xf32, #tpu.memory_space<vmem>>, vector<64x1xf32>
    %10 = vector.broadcast %9 : vector<64x1xf32> to vector<64x80xf32>
    %11 = arith.addf %8, %10 : vector<64x80xf32>
    %cst_6 = arith.constant 0.000000e+00 : f32
    %12 = vector.broadcast %cst_6 : f32 to vector<64x80xf32>
    %13 = arith.maximumf %11, %12 : vector<64x80xf32>
    %14 = arith.truncf %13 : vector<64x80xf32> to vector<64x80xbf16>
    %c0_7 = arith.constant 0 : index
    %c0_8 = arith.constant 0 : index
    %c0_9 = arith.constant 0 : index
    %15 = vector.load %arg4[%c0_7, %c0_8, %c0_9] : memref<1x64x80xbf16, #tpu.memory_space<vmem>>, vector<1x64x80xbf16>
    %16 = vector.shape_cast %15 : vector<1x64x80xbf16> to vector<64x80xbf16>
    %17 = vector.shape_cast %14 : vector<64x80xbf16> to vector<1x64x80xbf16>
    tpu.vector_store %arg4[%c0_7, %c0_8, %c0_9], %17 {strides = array<i32>} : memref<1x64x80xbf16, #tpu.memory_space<vmem>>, vector<1x64x80xbf16>,
    return
  }
  func.func @transform_0(%arg0: i32) -> (i32, i32, i32) {
    %c0_i32 = arith.constant 0 : i32
    %c0_i32_0 = arith.constant 0 : i32
    %c0_i32_1 = arith.constant 0 : i32
    return %arg0, %c0_i32, %c0_i32_0 : i32, i32, i32
  }
  func.func @transform_1(%arg0: i32) -> (i32, i32) {
    %c0_i32 = arith.constant 0 : i32
    %c0_i32_0 = arith.constant 0 : i32
    %c0_i32_1 = arith.constant 0 : i32
    return %c0_i32, %c0_i32_0 : i32, i32
  }
  func.func @transform_2(%arg0: i32) -> (i32, i32) {
    %c0_i32 = arith.constant 0 : i32
    %c0_i32_0 = arith.constant 0 : i32
    %c0_i32_1 = arith.constant 0 : i32
    return %c0_i32, %c0_i32_0 : i32, i32
  }
  func.func @transform_3(%arg0: i32) -> (i32, i32, i32) {
    %c0_i32 = arith.constant 0 : i32
    %c0_i32_0 = arith.constant 0 : i32
    %c0_i32_1 = arith.constant 0 : i32
    return %arg0, %c0_i32, %c0_i32_0 : i32, i32, i32
  }
}

module attributes {stable_mosaic.version = 11 : i64} {
  func.func @kernel(%arg0: i32, %arg1: memref<1x16x342xbf16, #tpu.memory_space<vmem>>, %arg2: memref<16x144xbf16, #tpu.memory_space<vmem>>, %arg3: memref<16x1xf32, #tpu.memory_space<vmem>>, %arg4: memref<16x144xbf16, #tpu.memory_space<vmem>>, %arg5: memref<16x1xf32, #tpu.memory_space<vmem>>, %arg6: memref<1x16x342xbf16, #tpu.memory_space<vmem>>) attributes {dimension_semantics = [#tpu.dimension_semantics<parallel>], iteration_bounds = array<i64: 2>, scalar_prefetch = 0 : i64, scratch_operands = 0 : i64, tpu.core_type = #tpu.core_type<tc>, window_params = [{transform_indices = @transform_0, window_bounds = array<i64: 1, 16, 342>}, {pipeline_mode = #tpu.pipeline_mode<synchronous>, transform_indices = @transform_1, window_bounds = array<i64: 16, 144>}, {pipeline_mode = #tpu.pipeline_mode<synchronous>, transform_indices = @transform_2, window_bounds = array<i64: 16, 1>}, {pipeline_mode = #tpu.pipeline_mode<synchronous>, transform_indices = @transform_3, window_bounds = array<i64: 16, 144>}, {pipeline_mode = #tpu.pipeline_mode<synchronous>, transform_indices = @transform_4, window_bounds = array<i64: 16, 1>}, {transform_indices = @transform_5, window_bounds = array<i64: 1, 16, 342>}]} {
    %0 = tpu.iota {dimensions = array<i32: 1>} : vector<1x288xi32>
    %c18_i32 = arith.constant 18 : i32
    %c0_i32 = arith.constant 0 : i32
    %1 = arith.cmpi eq, %c18_i32, %c0_i32 : i32
    %c1_i32 = arith.constant 1 : i32
    %2 = arith.select %1, %c1_i32, %c18_i32 : i32
    %3 = vector.broadcast %2 : i32 to vector<1x288xi32>
    %4 = arith.remsi %0, %3 : vector<1x288xi32>
    %c0_i32_0 = arith.constant 0 : i32
    %5 = vector.broadcast %c0_i32_0 : i32 to vector<1x288xi32>
    %6 = arith.cmpi ne, %4, %5 : vector<1x288xi32>
    %c0_i32_1 = arith.constant 0 : i32
    %7 = vector.broadcast %c0_i32_1 : i32 to vector<1x288xi32>
    %8 = arith.cmpi slt, %4, %7 : vector<1x288xi32>
    %c0_i32_2 = arith.constant 0 : i32
    %9 = arith.cmpi slt, %2, %c0_i32_2 : i32
    %10 = vector.broadcast %9 : i1 to vector<1x288xi1>
    %11 = vector.broadcast %10 : vector<1x288xi1> to vector<1x288xi1>
    %12 = arith.xori %8, %11 : vector<1x288xi1>
    %13 = arith.andi %12, %6 : vector<1x288xi1>
    %14 = vector.broadcast %2 : i32 to vector<1x288xi32>
    %15 = arith.addi %4, %14 : vector<1x288xi32>
    %16 = arith.select %13, %15, %4 : vector<1x288xi1>, vector<1x288xi32>
    %c16_i32 = arith.constant 16 : i32
    %17 = vector.broadcast %c16_i32 : i32 to vector<1x288xi32>
    %18 = arith.cmpi slt, %16, %17 : vector<1x288xi32>
    %c0 = arith.constant 0 : index
    %c0_3 = arith.constant 0 : index
    %c0_4 = arith.constant 0 : index
    %19 = vector.load %arg1[%c0, %c0_3, %c0_4] : memref<1x16x342xbf16, #tpu.memory_space<vmem>>, vector<1x16x342xbf16>
    %20 = vector.shape_cast %19 : vector<1x16x342xbf16> to vector<16x342xbf16>
    %c0_5 = arith.constant 0 : index
    %c0_6 = arith.constant 0 : index
    %21 = vector.load %arg2[%c0_5, %c0_6] : memref<16x144xbf16, #tpu.memory_space<vmem>>, vector<16x144xbf16>
    %22 = vector.extract_strided_slice %20 {offsets = [0, 0], sizes = [16, 288], strides = [1, 1]} : vector<16x342xbf16> to vector<16x288xbf16>
    %23 = vector.extract_strided_slice %20 {offsets = [0, 1], sizes = [16, 288], strides = [1, 1]} : vector<16x342xbf16> to vector<16x288xbf16>
    %24 = vector.extract_strided_slice %20 {offsets = [0, 2], sizes = [16, 288], strides = [1, 1]} : vector<16x342xbf16> to vector<16x288xbf16>
    %25 = vector.extract_strided_slice %20 {offsets = [0, 18], sizes = [16, 288], strides = [1, 1]} : vector<16x342xbf16> to vector<16x288xbf16>
    %26 = vector.extract_strided_slice %20 {offsets = [0, 19], sizes = [16, 288], strides = [1, 1]} : vector<16x342xbf16> to vector<16x288xbf16>
    %27 = vector.extract_strided_slice %20 {offsets = [0, 20], sizes = [16, 288], strides = [1, 1]} : vector<16x342xbf16> to vector<16x288xbf16>
    %28 = vector.extract_strided_slice %20 {offsets = [0, 36], sizes = [16, 288], strides = [1, 1]} : vector<16x342xbf16> to vector<16x288xbf16>
    %29 = vector.extract_strided_slice %20 {offsets = [0, 37], sizes = [16, 288], strides = [1, 1]} : vector<16x342xbf16> to vector<16x288xbf16>
    %30 = vector.extract_strided_slice %20 {offsets = [0, 38], sizes = [16, 288], strides = [1, 1]} : vector<16x342xbf16> to vector<16x288xbf16>
    %31 = tpu.concatenate %22, %23, %24, %25, %26, %27, %28, %29, %30 in 0 : vector<16x288xbf16>, vector<16x288xbf16>, vector<16x288xbf16>, vector<16x288xbf16>, vector<16x288xbf16>, vector<16x288xbf16>, vector<16x288xbf16>, vector<16x288xbf16>, vector<16x288xbf16> -> vector<144x288xbf16>
    %cst = arith.constant dense<0.000000e+00> : vector<16x288xf32>
    %32 = tpu.matmul %21, %31, %cst {dimension_numbers = #tpu.dot_dimension_numbers<[1], [0], [0], [1], [0, 0, 1, 1], [], []>} : vector<16x144xbf16>, vector<144x288xbf16>, vector<16x288xf32> -> vector<16x288xf32>
    %c0_7 = arith.constant 0 : index
    %c0_8 = arith.constant 0 : index
    %33 = vector.load %arg3[%c0_7, %c0_8] : memref<16x1xf32, #tpu.memory_space<vmem>>, vector<16x1xf32>
    %34 = vector.broadcast %33 : vector<16x1xf32> to vector<16x288xf32>
    %35 = arith.addf %32, %34 : vector<16x288xf32>
    %cst_9 = arith.constant 0.000000e+00 : f32
    %36 = vector.broadcast %cst_9 : f32 to vector<16x288xf32>
    %37 = arith.maximumf %35, %36 : vector<16x288xf32>
    %cst_10 = arith.constant 0.000000e+00 : f32
    %38 = vector.shape_cast %18 : vector<1x288xi1> to vector<1x288xi1>
    %39 = vector.broadcast %38 : vector<1x288xi1> to vector<16x288xi1>
    %40 = vector.broadcast %cst_10 : f32 to vector<16x288xf32>
    %41 = arith.select %39, %37, %40 : vector<16x288xi1>, vector<16x288xf32>
    %42 = arith.truncf %41 : vector<16x288xf32> to vector<16x288xbf16>
    %cst_11 = arith.constant 0.000000e+00 : bf16
    %43 = vector.broadcast %cst_11 : bf16 to vector<16x19xbf16>
    %c0_12 = arith.constant 0 : index
    %c0_13 = arith.constant 0 : index
    %c0_14 = arith.constant 0 : index
    %44 = vector.load %arg6[%c0_12, %c0_13, %c0_14] : memref<1x16x342xbf16, #tpu.memory_space<vmem>>, vector<1x16x19xbf16>
    %45 = vector.shape_cast %44 : vector<1x16x19xbf16> to vector<16x19xbf16>
    %46 = vector.shape_cast %43 : vector<16x19xbf16> to vector<1x16x19xbf16>
    tpu.vector_store %arg6[%c0_12, %c0_13, %c0_14], %46 {strides = array<i32>} : memref<1x16x342xbf16, #tpu.memory_space<vmem>>, vector<1x16x19xbf16>,
    %cst_15 = arith.constant 0.000000e+00 : bf16
    %47 = vector.broadcast %cst_15 : bf16 to vector<16x35xbf16>
    %c0_16 = arith.constant 0 : index
    %c0_17 = arith.constant 0 : index
    %c307 = arith.constant 307 : index
    %48 = vector.load %arg6[%c0_16, %c0_17, %c307] : memref<1x16x342xbf16, #tpu.memory_space<vmem>>, vector<1x16x35xbf16>
    %49 = vector.shape_cast %48 : vector<1x16x35xbf16> to vector<16x35xbf16>
    %50 = vector.shape_cast %47 : vector<16x35xbf16> to vector<1x16x35xbf16>
    tpu.vector_store %arg6[%c0_16, %c0_17, %c307], %50 {strides = array<i32>} : memref<1x16x342xbf16, #tpu.memory_space<vmem>>, vector<1x16x35xbf16>,
    %c0_18 = arith.constant 0 : index
    %c0_19 = arith.constant 0 : index
    %c19 = arith.constant 19 : index
    %51 = vector.load %arg6[%c0_18, %c0_19, %c19] : memref<1x16x342xbf16, #tpu.memory_space<vmem>>, vector<1x16x288xbf16>
    %52 = vector.shape_cast %51 : vector<1x16x288xbf16> to vector<16x288xbf16>
    %53 = vector.shape_cast %42 : vector<16x288xbf16> to vector<1x16x288xbf16>
    tpu.vector_store %arg6[%c0_18, %c0_19, %c19], %53 {strides = array<i32>} : memref<1x16x342xbf16, #tpu.memory_space<vmem>>, vector<1x16x288xbf16>,
    %c0_20 = arith.constant 0 : index
    %c0_21 = arith.constant 0 : index
    %c0_22 = arith.constant 0 : index
    %54 = vector.load %arg6[%c0_20, %c0_21, %c0_22] : memref<1x16x342xbf16, #tpu.memory_space<vmem>>, vector<1x16x342xbf16>
    %55 = vector.shape_cast %54 : vector<1x16x342xbf16> to vector<16x342xbf16>
    %56 = vector.extract_strided_slice %55 {offsets = [0, 0], sizes = [16, 288], strides = [1, 1]} : vector<16x342xbf16> to vector<16x288xbf16>
    %57 = vector.extract_strided_slice %55 {offsets = [0, 1], sizes = [16, 288], strides = [1, 1]} : vector<16x342xbf16> to vector<16x288xbf16>
    %58 = vector.extract_strided_slice %55 {offsets = [0, 2], sizes = [16, 288], strides = [1, 1]} : vector<16x342xbf16> to vector<16x288xbf16>
    %59 = vector.extract_strided_slice %55 {offsets = [0, 18], sizes = [16, 288], strides = [1, 1]} : vector<16x342xbf16> to vector<16x288xbf16>
    %60 = vector.extract_strided_slice %55 {offsets = [0, 19], sizes = [16, 288], strides = [1, 1]} : vector<16x342xbf16> to vector<16x288xbf16>
    %61 = vector.extract_strided_slice %55 {offsets = [0, 20], sizes = [16, 288], strides = [1, 1]} : vector<16x342xbf16> to vector<16x288xbf16>
    %62 = vector.extract_strided_slice %55 {offsets = [0, 36], sizes = [16, 288], strides = [1, 1]} : vector<16x342xbf16> to vector<16x288xbf16>
    %63 = vector.extract_strided_slice %55 {offsets = [0, 37], sizes = [16, 288], strides = [1, 1]} : vector<16x342xbf16> to vector<16x288xbf16>
    %64 = vector.extract_strided_slice %55 {offsets = [0, 38], sizes = [16, 288], strides = [1, 1]} : vector<16x342xbf16> to vector<16x288xbf16>
    %65 = tpu.concatenate %56, %57, %58, %59, %60, %61, %62, %63, %64 in 0 : vector<16x288xbf16>, vector<16x288xbf16>, vector<16x288xbf16>, vector<16x288xbf16>, vector<16x288xbf16>, vector<16x288xbf16>, vector<16x288xbf16>, vector<16x288xbf16>, vector<16x288xbf16> -> vector<144x288xbf16>
    %c0_23 = arith.constant 0 : index
    %c0_24 = arith.constant 0 : index
    %66 = vector.load %arg4[%c0_23, %c0_24] : memref<16x144xbf16, #tpu.memory_space<vmem>>, vector<16x144xbf16>
    %cst_25 = arith.constant dense<0.000000e+00> : vector<16x288xf32>
    %67 = tpu.matmul %66, %65, %cst_25 {dimension_numbers = #tpu.dot_dimension_numbers<[1], [0], [0], [1], [0, 0, 1, 1], [], []>} : vector<16x144xbf16>, vector<144x288xbf16>, vector<16x288xf32> -> vector<16x288xf32>
    %c0_26 = arith.constant 0 : index
    %c0_27 = arith.constant 0 : index
    %68 = vector.load %arg5[%c0_26, %c0_27] : memref<16x1xf32, #tpu.memory_space<vmem>>, vector<16x1xf32>
    %69 = vector.broadcast %68 : vector<16x1xf32> to vector<16x288xf32>
    %70 = arith.addf %67, %69 : vector<16x288xf32>
    %cst_28 = arith.constant 0.000000e+00 : f32
    %71 = vector.broadcast %cst_28 : f32 to vector<16x288xf32>
    %72 = arith.maximumf %70, %71 : vector<16x288xf32>
    %73 = vector.extract_strided_slice %20 {offsets = [0, 19], sizes = [16, 288], strides = [1, 1]} : vector<16x342xbf16> to vector<16x288xbf16>
    %74 = arith.extf %73 : vector<16x288xbf16> to vector<16x288xf32>
    %75 = arith.addf %72, %74 : vector<16x288xf32>
    %cst_29 = arith.constant 0.000000e+00 : f32
    %76 = vector.shape_cast %18 : vector<1x288xi1> to vector<1x288xi1>
    %77 = vector.broadcast %76 : vector<1x288xi1> to vector<16x288xi1>
    %78 = vector.broadcast %cst_29 : f32 to vector<16x288xf32>
    %79 = arith.select %77, %75, %78 : vector<16x288xi1>, vector<16x288xf32>
    %80 = arith.truncf %79 : vector<16x288xf32> to vector<16x288xbf16>
    %c0_30 = arith.constant 0 : index
    %c0_31 = arith.constant 0 : index
    %c19_32 = arith.constant 19 : index
    %81 = vector.load %arg6[%c0_30, %c0_31, %c19_32] : memref<1x16x342xbf16, #tpu.memory_space<vmem>>, vector<1x16x288xbf16>
    %82 = vector.shape_cast %81 : vector<1x16x288xbf16> to vector<16x288xbf16>
    %83 = vector.shape_cast %80 : vector<16x288xbf16> to vector<1x16x288xbf16>
    tpu.vector_store %arg6[%c0_30, %c0_31, %c19_32], %83 {strides = array<i32>} : memref<1x16x342xbf16, #tpu.memory_space<vmem>>, vector<1x16x288xbf16>,
    return
  }
  func.func @transform_0(%arg0: i32) -> (i32, i32, i32) {
    %c0_i32 = arith.constant 0 : i32
    %c0_i32_0 = arith.constant 0 : i32
    %c0_i32_1 = arith.constant 0 : i32
    return %arg0, %c0_i32, %c0_i32_0 : i32, i32, i32
  }
  func.func @transform_1(%arg0: i32) -> (i32, i32) {
    %c0_i32 = arith.constant 0 : i32
    %c0_i32_0 = arith.constant 0 : i32
    %c0_i32_1 = arith.constant 0 : i32
    return %c0_i32, %c0_i32_0 : i32, i32
  }
  func.func @transform_2(%arg0: i32) -> (i32, i32) {
    %c0_i32 = arith.constant 0 : i32
    %c0_i32_0 = arith.constant 0 : i32
    %c0_i32_1 = arith.constant 0 : i32
    return %c0_i32, %c0_i32_0 : i32, i32
  }
  func.func @transform_3(%arg0: i32) -> (i32, i32) {
    %c0_i32 = arith.constant 0 : i32
    %c0_i32_0 = arith.constant 0 : i32
    %c0_i32_1 = arith.constant 0 : i32
    return %c0_i32, %c0_i32_0 : i32, i32
  }
  func.func @transform_4(%arg0: i32) -> (i32, i32) {
    %c0_i32 = arith.constant 0 : i32
    %c0_i32_0 = arith.constant 0 : i32
    %c0_i32_1 = arith.constant 0 : i32
    return %c0_i32, %c0_i32_0 : i32, i32
  }
  func.func @transform_5(%arg0: i32) -> (i32, i32, i32) {
    %c0_i32 = arith.constant 0 : i32
    %c0_i32_0 = arith.constant 0 : i32
    %c0_i32_1 = arith.constant 0 : i32
    return %arg0, %c0_i32, %c0_i32_0 : i32, i32, i32
  }
}

module attributes {stable_mosaic.version = 11 : i64} {
  func.func @kernel(%arg0: i32, %arg1: memref<1x16x342xbf16, #tpu.memory_space<vmem>>, %arg2: memref<1x16x342xbf16, #tpu.memory_space<vmem>>, %arg3: memref<16x144xbf16, #tpu.memory_space<vmem>>, %arg4: memref<16x144xbf16, #tpu.memory_space<vmem>>, %arg5: memref<16x1xf32, #tpu.memory_space<vmem>>, %arg6: memref<16x144xbf16, #tpu.memory_space<vmem>>, %arg7: memref<16x1xf32, #tpu.memory_space<vmem>>, %arg8: memref<16x16xbf16, #tpu.memory_space<vmem>>, %arg9: memref<16x16xbf16, #tpu.memory_space<vmem>>, %arg10: memref<16x1xf32, #tpu.memory_space<vmem>>, %arg11: memref<1x16x342xbf16, #tpu.memory_space<vmem>>) attributes {dimension_semantics = [#tpu.dimension_semantics<parallel>], iteration_bounds = array<i64: 2>, scalar_prefetch = 0 : i64, scratch_operands = 0 : i64, tpu.core_type = #tpu.core_type<tc>, window_params = [{transform_indices = @transform_0, window_bounds = array<i64: 1, 16, 342>}, {transform_indices = @transform_1, window_bounds = array<i64: 1, 16, 342>}, {pipeline_mode = #tpu.pipeline_mode<synchronous>, transform_indices = @transform_2, window_bounds = array<i64: 16, 144>}, {pipeline_mode = #tpu.pipeline_mode<synchronous>, transform_indices = @transform_3, window_bounds = array<i64: 16, 144>}, {pipeline_mode = #tpu.pipeline_mode<synchronous>, transform_indices = @transform_4, window_bounds = array<i64: 16, 1>}, {pipeline_mode = #tpu.pipeline_mode<synchronous>, transform_indices = @transform_5, window_bounds = array<i64: 16, 144>}, {pipeline_mode = #tpu.pipeline_mode<synchronous>, transform_indices = @transform_6, window_bounds = array<i64: 16, 1>}, {pipeline_mode = #tpu.pipeline_mode<synchronous>, transform_indices = @transform_7, window_bounds = array<i64: 16, 16>}, {pipeline_mode = #tpu.pipeline_mode<synchronous>, transform_indices = @transform_8, window_bounds = array<i64: 16, 16>}, {pipeline_mode = #tpu.pipeline_mode<synchronous>, transform_indices = @transform_9, window_bounds = array<i64: 16, 1>}, {transform_indices = @transform_10, window_bounds = array<i64: 1, 16, 342>}]} {
    %0 = tpu.iota {dimensions = array<i32: 1>} : vector<1x288xi32>
    %c18_i32 = arith.constant 18 : i32
    %c0_i32 = arith.constant 0 : i32
    %1 = arith.cmpi eq, %c18_i32, %c0_i32 : i32
    %c1_i32 = arith.constant 1 : i32
    %2 = arith.select %1, %c1_i32, %c18_i32 : i32
    %3 = vector.broadcast %2 : i32 to vector<1x288xi32>
    %4 = arith.remsi %0, %3 : vector<1x288xi32>
    %c0_i32_0 = arith.constant 0 : i32
    %5 = vector.broadcast %c0_i32_0 : i32 to vector<1x288xi32>
    %6 = arith.cmpi ne, %4, %5 : vector<1x288xi32>
    %c0_i32_1 = arith.constant 0 : i32
    %7 = vector.broadcast %c0_i32_1 : i32 to vector<1x288xi32>
    %8 = arith.cmpi slt, %4, %7 : vector<1x288xi32>
    %c0_i32_2 = arith.constant 0 : i32
    %9 = arith.cmpi slt, %2, %c0_i32_2 : i32
    %10 = vector.broadcast %9 : i1 to vector<1x288xi1>
    %11 = vector.broadcast %10 : vector<1x288xi1> to vector<1x288xi1>
    %12 = arith.xori %8, %11 : vector<1x288xi1>
    %13 = arith.andi %12, %6 : vector<1x288xi1>
    %14 = vector.broadcast %2 : i32 to vector<1x288xi32>
    %15 = arith.addi %4, %14 : vector<1x288xi32>
    %16 = arith.select %13, %15, %4 : vector<1x288xi1>, vector<1x288xi32>
    %c16_i32 = arith.constant 16 : i32
    %17 = vector.broadcast %c16_i32 : i32 to vector<1x288xi32>
    %18 = arith.cmpi slt, %16, %17 : vector<1x288xi32>
    %c0 = arith.constant 0 : index
    %c0_3 = arith.constant 0 : index
    %c0_4 = arith.constant 0 : index
    %19 = vector.load %arg1[%c0, %c0_3, %c0_4] : memref<1x16x342xbf16, #tpu.memory_space<vmem>>, vector<1x16x342xbf16>
    %20 = vector.shape_cast %19 : vector<1x16x342xbf16> to vector<16x342xbf16>
    %c0_5 = arith.constant 0 : index
    %c0_6 = arith.constant 0 : index
    %21 = vector.load %arg3[%c0_5, %c0_6] : memref<16x144xbf16, #tpu.memory_space<vmem>>, vector<16x144xbf16>
    %22 = vector.extract_strided_slice %20 {offsets = [0, 0], sizes = [16, 288], strides = [1, 1]} : vector<16x342xbf16> to vector<16x288xbf16>
    %23 = vector.extract_strided_slice %20 {offsets = [0, 1], sizes = [16, 288], strides = [1, 1]} : vector<16x342xbf16> to vector<16x288xbf16>
    %24 = vector.extract_strided_slice %20 {offsets = [0, 2], sizes = [16, 288], strides = [1, 1]} : vector<16x342xbf16> to vector<16x288xbf16>
    %25 = vector.extract_strided_slice %20 {offsets = [0, 18], sizes = [16, 288], strides = [1, 1]} : vector<16x342xbf16> to vector<16x288xbf16>
    %26 = vector.extract_strided_slice %20 {offsets = [0, 19], sizes = [16, 288], strides = [1, 1]} : vector<16x342xbf16> to vector<16x288xbf16>
    %27 = vector.extract_strided_slice %20 {offsets = [0, 20], sizes = [16, 288], strides = [1, 1]} : vector<16x342xbf16> to vector<16x288xbf16>
    %28 = vector.extract_strided_slice %20 {offsets = [0, 36], sizes = [16, 288], strides = [1, 1]} : vector<16x342xbf16> to vector<16x288xbf16>
    %29 = vector.extract_strided_slice %20 {offsets = [0, 37], sizes = [16, 288], strides = [1, 1]} : vector<16x342xbf16> to vector<16x288xbf16>
    %30 = vector.extract_strided_slice %20 {offsets = [0, 38], sizes = [16, 288], strides = [1, 1]} : vector<16x342xbf16> to vector<16x288xbf16>
    %31 = tpu.concatenate %22, %23, %24, %25, %26, %27, %28, %29, %30 in 0 : vector<16x288xbf16>, vector<16x288xbf16>, vector<16x288xbf16>, vector<16x288xbf16>, vector<16x288xbf16>, vector<16x288xbf16>, vector<16x288xbf16>, vector<16x288xbf16>, vector<16x288xbf16> -> vector<144x288xbf16>
    %cst = arith.constant dense<0.000000e+00> : vector<16x288xf32>
    %32 = tpu.matmul %21, %31, %cst {dimension_numbers = #tpu.dot_dimension_numbers<[1], [0], [0], [1], [0, 0, 1, 1], [], []>} : vector<16x144xbf16>, vector<144x288xbf16>, vector<16x288xf32> -> vector<16x288xf32>
    %c0_7 = arith.constant 0 : index
    %c0_8 = arith.constant 0 : index
    %c0_9 = arith.constant 0 : index
    %33 = vector.load %arg2[%c0_7, %c0_8, %c0_9] : memref<1x16x342xbf16, #tpu.memory_space<vmem>>, vector<1x16x342xbf16>
    %34 = vector.shape_cast %33 : vector<1x16x342xbf16> to vector<16x342xbf16>
    %c0_10 = arith.constant 0 : index
    %c0_11 = arith.constant 0 : index
    %35 = vector.load %arg4[%c0_10, %c0_11] : memref<16x144xbf16, #tpu.memory_space<vmem>>, vector<16x144xbf16>
    %36 = vector.extract_strided_slice %34 {offsets = [0, 0], sizes = [16, 288], strides = [1, 1]} : vector<16x342xbf16> to vector<16x288xbf16>
    %37 = vector.extract_strided_slice %34 {offsets = [0, 1], sizes = [16, 288], strides = [1, 1]} : vector<16x342xbf16> to vector<16x288xbf16>
    %38 = vector.extract_strided_slice %34 {offsets = [0, 2], sizes = [16, 288], strides = [1, 1]} : vector<16x342xbf16> to vector<16x288xbf16>
    %39 = vector.extract_strided_slice %34 {offsets = [0, 18], sizes = [16, 288], strides = [1, 1]} : vector<16x342xbf16> to vector<16x288xbf16>
    %40 = vector.extract_strided_slice %34 {offsets = [0, 19], sizes = [16, 288], strides = [1, 1]} : vector<16x342xbf16> to vector<16x288xbf16>
    %41 = vector.extract_strided_slice %34 {offsets = [0, 20], sizes = [16, 288], strides = [1, 1]} : vector<16x342xbf16> to vector<16x288xbf16>
    %42 = vector.extract_strided_slice %34 {offsets = [0, 36], sizes = [16, 288], strides = [1, 1]} : vector<16x342xbf16> to vector<16x288xbf16>
    %43 = vector.extract_strided_slice %34 {offsets = [0, 37], sizes = [16, 288], strides = [1, 1]} : vector<16x342xbf16> to vector<16x288xbf16>
    %44 = vector.extract_strided_slice %34 {offsets = [0, 38], sizes = [16, 288], strides = [1, 1]} : vector<16x342xbf16> to vector<16x288xbf16>
    %45 = tpu.concatenate %36, %37, %38, %39, %40, %41, %42, %43, %44 in 0 : vector<16x288xbf16>, vector<16x288xbf16>, vector<16x288xbf16>, vector<16x288xbf16>, vector<16x288xbf16>, vector<16x288xbf16>, vector<16x288xbf16>, vector<16x288xbf16>, vector<16x288xbf16> -> vector<144x288xbf16>
    %cst_12 = arith.constant dense<0.000000e+00> : vector<16x288xf32>
    %46 = tpu.matmul %35, %45, %cst_12 {dimension_numbers = #tpu.dot_dimension_numbers<[1], [0], [0], [1], [0, 0, 1, 1], [], []>} : vector<16x144xbf16>, vector<144x288xbf16>, vector<16x288xf32> -> vector<16x288xf32>
    %47 = arith.addf %32, %46 : vector<16x288xf32>
    %c0_13 = arith.constant 0 : index
    %c0_14 = arith.constant 0 : index
    %48 = vector.load %arg5[%c0_13, %c0_14] : memref<16x1xf32, #tpu.memory_space<vmem>>, vector<16x1xf32>
    %49 = vector.broadcast %48 : vector<16x1xf32> to vector<16x288xf32>
    %50 = arith.addf %47, %49 : vector<16x288xf32>
    %cst_15 = arith.constant 0.000000e+00 : f32
    %51 = vector.broadcast %cst_15 : f32 to vector<16x288xf32>
    %52 = arith.maximumf %50, %51 : vector<16x288xf32>
    %cst_16 = arith.constant 0.000000e+00 : f32
    %53 = vector.shape_cast %18 : vector<1x288xi1> to vector<1x288xi1>
    %54 = vector.broadcast %53 : vector<1x288xi1> to vector<16x288xi1>
    %55 = vector.broadcast %cst_16 : f32 to vector<16x288xf32>
    %56 = arith.select %54, %52, %55 : vector<16x288xi1>, vector<16x288xf32>
    %57 = arith.truncf %56 : vector<16x288xf32> to vector<16x288xbf16>
    %cst_17 = arith.constant 0.000000e+00 : bf16
    %58 = vector.broadcast %cst_17 : bf16 to vector<16x19xbf16>
    %c0_18 = arith.constant 0 : index
    %c0_19 = arith.constant 0 : index
    %c0_20 = arith.constant 0 : index
    %59 = vector.load %arg11[%c0_18, %c0_19, %c0_20] : memref<1x16x342xbf16, #tpu.memory_space<vmem>>, vector<1x16x19xbf16>
    %60 = vector.shape_cast %59 : vector<1x16x19xbf16> to vector<16x19xbf16>
    %61 = vector.shape_cast %58 : vector<16x19xbf16> to vector<1x16x19xbf16>
    tpu.vector_store %arg11[%c0_18, %c0_19, %c0_20], %61 {strides = array<i32>} : memref<1x16x342xbf16, #tpu.memory_space<vmem>>, vector<1x16x19xbf16>,
    %cst_21 = arith.constant 0.000000e+00 : bf16
    %62 = vector.broadcast %cst_21 : bf16 to vector<16x35xbf16>
    %c0_22 = arith.constant 0 : index
    %c0_23 = arith.constant 0 : index
    %c307 = arith.constant 307 : index
    %63 = vector.load %arg11[%c0_22, %c0_23, %c307] : memref<1x16x342xbf16, #tpu.memory_space<vmem>>, vector<1x16x35xbf16>
    %64 = vector.shape_cast %63 : vector<1x16x35xbf16> to vector<16x35xbf16>
    %65 = vector.shape_cast %62 : vector<16x35xbf16> to vector<1x16x35xbf16>
    tpu.vector_store %arg11[%c0_22, %c0_23, %c307], %65 {strides = array<i32>} : memref<1x16x342xbf16, #tpu.memory_space<vmem>>, vector<1x16x35xbf16>,
    %c0_24 = arith.constant 0 : index
    %c0_25 = arith.constant 0 : index
    %c19 = arith.constant 19 : index
    %66 = vector.load %arg11[%c0_24, %c0_25, %c19] : memref<1x16x342xbf16, #tpu.memory_space<vmem>>, vector<1x16x288xbf16>
    %67 = vector.shape_cast %66 : vector<1x16x288xbf16> to vector<16x288xbf16>
    %68 = vector.shape_cast %57 : vector<16x288xbf16> to vector<1x16x288xbf16>
    tpu.vector_store %arg11[%c0_24, %c0_25, %c19], %68 {strides = array<i32>} : memref<1x16x342xbf16, #tpu.memory_space<vmem>>, vector<1x16x288xbf16>,
    %c0_26 = arith.constant 0 : index
    %c0_27 = arith.constant 0 : index
    %c0_28 = arith.constant 0 : index
    %69 = vector.load %arg11[%c0_26, %c0_27, %c0_28] : memref<1x16x342xbf16, #tpu.memory_space<vmem>>, vector<1x16x342xbf16>
    %70 = vector.shape_cast %69 : vector<1x16x342xbf16> to vector<16x342xbf16>
    %71 = vector.extract_strided_slice %70 {offsets = [0, 0], sizes = [16, 288], strides = [1, 1]} : vector<16x342xbf16> to vector<16x288xbf16>
    %72 = vector.extract_strided_slice %70 {offsets = [0, 1], sizes = [16, 288], strides = [1, 1]} : vector<16x342xbf16> to vector<16x288xbf16>
    %73 = vector.extract_strided_slice %70 {offsets = [0, 2], sizes = [16, 288], strides = [1, 1]} : vector<16x342xbf16> to vector<16x288xbf16>
    %74 = vector.extract_strided_slice %70 {offsets = [0, 18], sizes = [16, 288], strides = [1, 1]} : vector<16x342xbf16> to vector<16x288xbf16>
    %75 = vector.extract_strided_slice %70 {offsets = [0, 19], sizes = [16, 288], strides = [1, 1]} : vector<16x342xbf16> to vector<16x288xbf16>
    %76 = vector.extract_strided_slice %70 {offsets = [0, 20], sizes = [16, 288], strides = [1, 1]} : vector<16x342xbf16> to vector<16x288xbf16>
    %77 = vector.extract_strided_slice %70 {offsets = [0, 36], sizes = [16, 288], strides = [1, 1]} : vector<16x342xbf16> to vector<16x288xbf16>
    %78 = vector.extract_strided_slice %70 {offsets = [0, 37], sizes = [16, 288], strides = [1, 1]} : vector<16x342xbf16> to vector<16x288xbf16>
    %79 = vector.extract_strided_slice %70 {offsets = [0, 38], sizes = [16, 288], strides = [1, 1]} : vector<16x342xbf16> to vector<16x288xbf16>
    %80 = tpu.concatenate %71, %72, %73, %74, %75, %76, %77, %78, %79 in 0 : vector<16x288xbf16>, vector<16x288xbf16>, vector<16x288xbf16>, vector<16x288xbf16>, vector<16x288xbf16>, vector<16x288xbf16>, vector<16x288xbf16>, vector<16x288xbf16>, vector<16x288xbf16> -> vector<144x288xbf16>
    %c0_29 = arith.constant 0 : index
    %c0_30 = arith.constant 0 : index
    %81 = vector.load %arg6[%c0_29, %c0_30] : memref<16x144xbf16, #tpu.memory_space<vmem>>, vector<16x144xbf16>
    %cst_31 = arith.constant dense<0.000000e+00> : vector<16x288xf32>
    %82 = tpu.matmul %81, %80, %cst_31 {dimension_numbers = #tpu.dot_dimension_numbers<[1], [0], [0], [1], [0, 0, 1, 1], [], []>} : vector<16x144xbf16>, vector<144x288xbf16>, vector<16x288xf32> -> vector<16x288xf32>
    %c0_32 = arith.constant 0 : index
    %c0_33 = arith.constant 0 : index
    %83 = vector.load %arg7[%c0_32, %c0_33] : memref<16x1xf32, #tpu.memory_space<vmem>>, vector<16x1xf32>
    %84 = vector.broadcast %83 : vector<16x1xf32> to vector<16x288xf32>
    %85 = arith.addf %82, %84 : vector<16x288xf32>
    %cst_34 = arith.constant 0.000000e+00 : f32
    %86 = vector.broadcast %cst_34 : f32 to vector<16x288xf32>
    %87 = arith.maximumf %85, %86 : vector<16x288xf32>
    %88 = vector.extract_strided_slice %20 {offsets = [0, 19], sizes = [16, 288], strides = [1, 1]} : vector<16x342xbf16> to vector<16x288xbf16>
    %89 = vector.extract_strided_slice %34 {offsets = [0, 19], sizes = [16, 288], strides = [1, 1]} : vector<16x342xbf16> to vector<16x288xbf16>
    %c0_35 = arith.constant 0 : index
    %c0_36 = arith.constant 0 : index
    %90 = vector.load %arg8[%c0_35, %c0_36] : memref<16x16xbf16, #tpu.memory_space<vmem>>, vector<16x16xbf16>
    %cst_37 = arith.constant dense<0.000000e+00> : vector<16x288xf32>
    %91 = tpu.matmul %90, %88, %cst_37 {dimension_numbers = #tpu.dot_dimension_numbers<[1], [0], [0], [1], [0, 0, 1, 1], [], []>} : vector<16x16xbf16>, vector<16x288xbf16>, vector<16x288xf32> -> vector<16x288xf32>
    %c0_38 = arith.constant 0 : index
    %c0_39 = arith.constant 0 : index
    %92 = vector.load %arg9[%c0_38, %c0_39] : memref<16x16xbf16, #tpu.memory_space<vmem>>, vector<16x16xbf16>
    %cst_40 = arith.constant dense<0.000000e+00> : vector<16x288xf32>
    %93 = tpu.matmul %92, %89, %cst_40 {dimension_numbers = #tpu.dot_dimension_numbers<[1], [0], [0], [1], [0, 0, 1, 1], [], []>} : vector<16x16xbf16>, vector<16x288xbf16>, vector<16x288xf32> -> vector<16x288xf32>
    %94 = arith.addf %91, %93 : vector<16x288xf32>
    %c0_41 = arith.constant 0 : index
    %c0_42 = arith.constant 0 : index
    %95 = vector.load %arg10[%c0_41, %c0_42] : memref<16x1xf32, #tpu.memory_space<vmem>>, vector<16x1xf32>
    %96 = vector.broadcast %95 : vector<16x1xf32> to vector<16x288xf32>
    %97 = arith.addf %94, %96 : vector<16x288xf32>
    %98 = arith.addf %87, %97 : vector<16x288xf32>
    %cst_43 = arith.constant 0.000000e+00 : f32
    %99 = vector.shape_cast %18 : vector<1x288xi1> to vector<1x288xi1>
    %100 = vector.broadcast %99 : vector<1x288xi1> to vector<16x288xi1>
    %101 = vector.broadcast %cst_43 : f32 to vector<16x288xf32>
    %102 = arith.select %100, %98, %101 : vector<16x288xi1>, vector<16x288xf32>
    %103 = arith.truncf %102 : vector<16x288xf32> to vector<16x288xbf16>
    %c0_44 = arith.constant 0 : index
    %c0_45 = arith.constant 0 : index
    %c19_46 = arith.constant 19 : index
    %104 = vector.load %arg11[%c0_44, %c0_45, %c19_46] : memref<1x16x342xbf16, #tpu.memory_space<vmem>>, vector<1x16x288xbf16>
    %105 = vector.shape_cast %104 : vector<1x16x288xbf16> to vector<16x288xbf16>
    %106 = vector.shape_cast %103 : vector<16x288xbf16> to vector<1x16x288xbf16>
    tpu.vector_store %arg11[%c0_44, %c0_45, %c19_46], %106 {strides = array<i32>} : memref<1x16x342xbf16, #tpu.memory_space<vmem>>, vector<1x16x288xbf16>,
    return
  }
  func.func @transform_0(%arg0: i32) -> (i32, i32, i32) {
    %c0_i32 = arith.constant 0 : i32
    %c0_i32_0 = arith.constant 0 : i32
    %c0_i32_1 = arith.constant 0 : i32
    return %arg0, %c0_i32, %c0_i32_0 : i32, i32, i32
  }
  func.func @transform_1(%arg0: i32) -> (i32, i32, i32) {
    %c0_i32 = arith.constant 0 : i32
    %c0_i32_0 = arith.constant 0 : i32
    %c0_i32_1 = arith.constant 0 : i32
    return %arg0, %c0_i32, %c0_i32_0 : i32, i32, i32
  }
  func.func @transform_2(%arg0: i32) -> (i32, i32) {
    %c0_i32 = arith.constant 0 : i32
    %c0_i32_0 = arith.constant 0 : i32
    %c0_i32_1 = arith.constant 0 : i32
    return %c0_i32, %c0_i32_0 : i32, i32
  }
  func.func @transform_3(%arg0: i32) -> (i32, i32) {
    %c0_i32 = arith.constant 0 : i32
    %c0_i32_0 = arith.constant 0 : i32
    %c0_i32_1 = arith.constant 0 : i32
    return %c0_i32, %c0_i32_0 : i32, i32
  }
  func.func @transform_4(%arg0: i32) -> (i32, i32) {
    %c0_i32 = arith.constant 0 : i32
    %c0_i32_0 = arith.constant 0 : i32
    %c0_i32_1 = arith.constant 0 : i32
    return %c0_i32, %c0_i32_0 : i32, i32
  }
  func.func @transform_5(%arg0: i32) -> (i32, i32) {
    %c0_i32 = arith.constant 0 : i32
    %c0_i32_0 = arith.constant 0 : i32
    %c0_i32_1 = arith.constant 0 : i32
    return %c0_i32, %c0_i32_0 : i32, i32
  }
  func.func @transform_6(%arg0: i32) -> (i32, i32) {
    %c0_i32 = arith.constant 0 : i32
    %c0_i32_0 = arith.constant 0 : i32
    %c0_i32_1 = arith.constant 0 : i32
    return %c0_i32, %c0_i32_0 : i32, i32
  }
  func.func @transform_7(%arg0: i32) -> (i32, i32) {
    %c0_i32 = arith.constant 0 : i32
    %c0_i32_0 = arith.constant 0 : i32
    %c0_i32_1 = arith.constant 0 : i32
    return %c0_i32, %c0_i32_0 : i32, i32
  }
  func.func @transform_8(%arg0: i32) -> (i32, i32) {
    %c0_i32 = arith.constant 0 : i32
    %c0_i32_0 = arith.constant 0 : i32
    %c0_i32_1 = arith.constant 0 : i32
    return %c0_i32, %c0_i32_0 : i32, i32
  }
  func.func @transform_9(%arg0: i32) -> (i32, i32) {
    %c0_i32 = arith.constant 0 : i32
    %c0_i32_0 = arith.constant 0 : i32
    %c0_i32_1 = arith.constant 0 : i32
    return %c0_i32, %c0_i32_0 : i32, i32
  }
  func.func @transform_10(%arg0: i32) -> (i32, i32, i32) {
    %c0_i32 = arith.constant 0 : i32
    %c0_i32_0 = arith.constant 0 : i32
    %c0_i32_1 = arith.constant 0 : i32
    return %arg0, %c0_i32, %c0_i32_0 : i32, i32, i32
  }
}

module attributes {stable_mosaic.version = 11 : i64} {
  func.func @kernel(%arg0: i32, %arg1: memref<1x16x342xbf16, #tpu.memory_space<vmem>>, %arg2: memref<32x64xbf16, #tpu.memory_space<vmem>>, %arg3: memref<32x1xf32, #tpu.memory_space<vmem>>, %arg4: memref<1x32x288xbf16, #tpu.memory_space<vmem>>) attributes {dimension_semantics = [#tpu.dimension_semantics<parallel>], iteration_bounds = array<i64: 2>, scalar_prefetch = 0 : i64, scratch_operands = 0 : i64, tpu.core_type = #tpu.core_type<tc>, window_params = [{transform_indices = @transform_0, window_bounds = array<i64: 1, 16, 342>}, {pipeline_mode = #tpu.pipeline_mode<synchronous>, transform_indices = @transform_1, window_bounds = array<i64: 32, 64>}, {pipeline_mode = #tpu.pipeline_mode<synchronous>, transform_indices = @transform_2, window_bounds = array<i64: 32, 1>}, {transform_indices = @transform_3, window_bounds = array<i64: 1, 32, 288>}]} {
    %c0 = arith.constant 0 : index
    %c0_0 = arith.constant 0 : index
    %c0_1 = arith.constant 0 : index
    %0 = vector.load %arg1[%c0, %c0_0, %c0_1] : memref<1x16x342xbf16, #tpu.memory_space<vmem>>, vector<1x16x342xbf16>
    %1 = vector.shape_cast %0 : vector<1x16x342xbf16> to vector<16x342xbf16>
    %2 = vector.extract_strided_slice %1 {offsets = [0, 19], sizes = [16, 288], strides = [1, 1]} : vector<16x342xbf16> to vector<16x288xbf16>
    %3 = vector.extract_strided_slice %1 {offsets = [0, 20], sizes = [16, 288], strides = [1, 1]} : vector<16x342xbf16> to vector<16x288xbf16>
    %4 = vector.extract_strided_slice %1 {offsets = [0, 37], sizes = [16, 288], strides = [1, 1]} : vector<16x342xbf16> to vector<16x288xbf16>
    %5 = vector.extract_strided_slice %1 {offsets = [0, 38], sizes = [16, 288], strides = [1, 1]} : vector<16x342xbf16> to vector<16x288xbf16>
    %6 = tpu.concatenate %2, %3, %4, %5 in 0 : vector<16x288xbf16>, vector<16x288xbf16>, vector<16x288xbf16>, vector<16x288xbf16> -> vector<64x288xbf16>
    %c0_2 = arith.constant 0 : index
    %c0_3 = arith.constant 0 : index
    %7 = vector.load %arg2[%c0_2, %c0_3] : memref<32x64xbf16, #tpu.memory_space<vmem>>, vector<32x64xbf16>
    %cst = arith.constant dense<0.000000e+00> : vector<32x288xf32>
    %8 = tpu.matmul %7, %6, %cst {dimension_numbers = #tpu.dot_dimension_numbers<[1], [0], [0], [1], [0, 0, 1, 1], [], []>} : vector<32x64xbf16>, vector<64x288xbf16>, vector<32x288xf32> -> vector<32x288xf32>
    %c0_4 = arith.constant 0 : index
    %c0_5 = arith.constant 0 : index
    %9 = vector.load %arg3[%c0_4, %c0_5] : memref<32x1xf32, #tpu.memory_space<vmem>>, vector<32x1xf32>
    %10 = vector.broadcast %9 : vector<32x1xf32> to vector<32x288xf32>
    %11 = arith.addf %8, %10 : vector<32x288xf32>
    %cst_6 = arith.constant 0.000000e+00 : f32
    %12 = vector.broadcast %cst_6 : f32 to vector<32x288xf32>
    %13 = arith.maximumf %11, %12 : vector<32x288xf32>
    %14 = arith.truncf %13 : vector<32x288xf32> to vector<32x288xbf16>
    %c0_7 = arith.constant 0 : index
    %c0_8 = arith.constant 0 : index
    %c0_9 = arith.constant 0 : index
    %15 = vector.load %arg4[%c0_7, %c0_8, %c0_9] : memref<1x32x288xbf16, #tpu.memory_space<vmem>>, vector<1x32x288xbf16>
    %16 = vector.shape_cast %15 : vector<1x32x288xbf16> to vector<32x288xbf16>
    %17 = vector.shape_cast %14 : vector<32x288xbf16> to vector<1x32x288xbf16>
    tpu.vector_store %arg4[%c0_7, %c0_8, %c0_9], %17 {strides = array<i32>} : memref<1x32x288xbf16, #tpu.memory_space<vmem>>, vector<1x32x288xbf16>,
    return
  }
  func.func @transform_0(%arg0: i32) -> (i32, i32, i32) {
    %c0_i32 = arith.constant 0 : i32
    %c0_i32_0 = arith.constant 0 : i32
    %c0_i32_1 = arith.constant 0 : i32
    return %arg0, %c0_i32, %c0_i32_0 : i32, i32, i32
  }
  func.func @transform_1(%arg0: i32) -> (i32, i32) {
    %c0_i32 = arith.constant 0 : i32
    %c0_i32_0 = arith.constant 0 : i32
    %c0_i32_1 = arith.constant 0 : i32
    return %c0_i32, %c0_i32_0 : i32, i32
  }
  func.func @transform_2(%arg0: i32) -> (i32, i32) {
    %c0_i32 = arith.constant 0 : i32
    %c0_i32_0 = arith.constant 0 : i32
    %c0_i32_1 = arith.constant 0 : i32
    return %c0_i32, %c0_i32_0 : i32, i32
  }
  func.func @transform_3(%arg0: i32) -> (i32, i32, i32) {
    %c0_i32 = arith.constant 0 : i32
    %c0_i32_0 = arith.constant 0 : i32
    %c0_i32_1 = arith.constant 0 : i32
    return %arg0, %c0_i32, %c0_i32_0 : i32, i32, i32
  }
}

module attributes {stable_mosaic.version = 11 : i64} {
  func.func @kernel(%arg0: i32, %arg1: memref<1x8x1190xbf16, #tpu.memory_space<vmem>>, %arg2: memref<1x8x1190xbf16, #tpu.memory_space<vmem>>, %arg3: memref<8x72xbf16, #tpu.memory_space<vmem>>, %arg4: memref<8x72xbf16, #tpu.memory_space<vmem>>, %arg5: memref<8x1xf32, #tpu.memory_space<vmem>>, %arg6: memref<8x72xbf16, #tpu.memory_space<vmem>>, %arg7: memref<8x1xf32, #tpu.memory_space<vmem>>, %arg8: memref<8x8xbf16, #tpu.memory_space<vmem>>, %arg9: memref<8x8xbf16, #tpu.memory_space<vmem>>, %arg10: memref<8x1xf32, #tpu.memory_space<vmem>>, %arg11: memref<1x8x1190xbf16, #tpu.memory_space<vmem>>) attributes {dimension_semantics = [#tpu.dimension_semantics<parallel>], iteration_bounds = array<i64: 2>, scalar_prefetch = 0 : i64, scratch_operands = 0 : i64, tpu.core_type = #tpu.core_type<tc>, window_params = [{transform_indices = @transform_0, window_bounds = array<i64: 1, 8, 1190>}, {transform_indices = @transform_1, window_bounds = array<i64: 1, 8, 1190>}, {pipeline_mode = #tpu.pipeline_mode<synchronous>, transform_indices = @transform_2, window_bounds = array<i64: 8, 72>}, {pipeline_mode = #tpu.pipeline_mode<synchronous>, transform_indices = @transform_3, window_bounds = array<i64: 8, 72>}, {pipeline_mode = #tpu.pipeline_mode<synchronous>, transform_indices = @transform_4, window_bounds = array<i64: 8, 1>}, {pipeline_mode = #tpu.pipeline_mode<synchronous>, transform_indices = @transform_5, window_bounds = array<i64: 8, 72>}, {pipeline_mode = #tpu.pipeline_mode<synchronous>, transform_indices = @transform_6, window_bounds = array<i64: 8, 1>}, {pipeline_mode = #tpu.pipeline_mode<synchronous>, transform_indices = @transform_7, window_bounds = array<i64: 8, 8>}, {pipeline_mode = #tpu.pipeline_mode<synchronous>, transform_indices = @transform_8, window_bounds = array<i64: 8, 8>}, {pipeline_mode = #tpu.pipeline_mode<synchronous>, transform_indices = @transform_9, window_bounds = array<i64: 8, 1>}, {transform_indices = @transform_10, window_bounds = array<i64: 1, 8, 1190>}]} {
    %0 = tpu.iota {dimensions = array<i32: 1>} : vector<1x1088xi32>
    %c34_i32 = arith.constant 34 : i32
    %c0_i32 = arith.constant 0 : i32
    %1 = arith.cmpi eq, %c34_i32, %c0_i32 : i32
    %c1_i32 = arith.constant 1 : i32
    %2 = arith.select %1, %c1_i32, %c34_i32 : i32
    %3 = vector.broadcast %2 : i32 to vector<1x1088xi32>
    %4 = arith.remsi %0, %3 : vector<1x1088xi32>
    %c0_i32_0 = arith.constant 0 : i32
    %5 = vector.broadcast %c0_i32_0 : i32 to vector<1x1088xi32>
    %6 = arith.cmpi ne, %4, %5 : vector<1x1088xi32>
    %c0_i32_1 = arith.constant 0 : i32
    %7 = vector.broadcast %c0_i32_1 : i32 to vector<1x1088xi32>
    %8 = arith.cmpi slt, %4, %7 : vector<1x1088xi32>
    %c0_i32_2 = arith.constant 0 : i32
    %9 = arith.cmpi slt, %2, %c0_i32_2 : i32
    %10 = vector.broadcast %9 : i1 to vector<1x1088xi1>
    %11 = vector.broadcast %10 : vector<1x1088xi1> to vector<1x1088xi1>
    %12 = arith.xori %8, %11 : vector<1x1088xi1>
    %13 = arith.andi %12, %6 : vector<1x1088xi1>
    %14 = vector.broadcast %2 : i32 to vector<1x1088xi32>
    %15 = arith.addi %4, %14 : vector<1x1088xi32>
    %16 = arith.select %13, %15, %4 : vector<1x1088xi1>, vector<1x1088xi32>
    %c32_i32 = arith.constant 32 : i32
    %17 = vector.broadcast %c32_i32 : i32 to vector<1x1088xi32>
    %18 = arith.cmpi slt, %16, %17 : vector<1x1088xi32>
    %c0 = arith.constant 0 : index
    %c0_3 = arith.constant 0 : index
    %c0_4 = arith.constant 0 : index
    %19 = vector.load %arg1[%c0, %c0_3, %c0_4] : memref<1x8x1190xbf16, #tpu.memory_space<vmem>>, vector<1x8x1190xbf16>
    %20 = vector.shape_cast %19 : vector<1x8x1190xbf16> to vector<8x1190xbf16>
    %c0_5 = arith.constant 0 : index
    %c0_6 = arith.constant 0 : index
    %21 = vector.load %arg3[%c0_5, %c0_6] : memref<8x72xbf16, #tpu.memory_space<vmem>>, vector<8x72xbf16>
    %22 = vector.extract_strided_slice %20 {offsets = [0, 0], sizes = [8, 1088], strides = [1, 1]} : vector<8x1190xbf16> to vector<8x1088xbf16>
    %23 = vector.extract_strided_slice %20 {offsets = [0, 1], sizes = [8, 1088], strides = [1, 1]} : vector<8x1190xbf16> to vector<8x1088xbf16>
    %24 = vector.extract_strided_slice %20 {offsets = [0, 2], sizes = [8, 1088], strides = [1, 1]} : vector<8x1190xbf16> to vector<8x1088xbf16>
    %25 = vector.extract_strided_slice %20 {offsets = [0, 34], sizes = [8, 1088], strides = [1, 1]} : vector<8x1190xbf16> to vector<8x1088xbf16>
    %26 = vector.extract_strided_slice %20 {offsets = [0, 35], sizes = [8, 1088], strides = [1, 1]} : vector<8x1190xbf16> to vector<8x1088xbf16>
    %27 = vector.extract_strided_slice %20 {offsets = [0, 36], sizes = [8, 1088], strides = [1, 1]} : vector<8x1190xbf16> to vector<8x1088xbf16>
    %28 = vector.extract_strided_slice %20 {offsets = [0, 68], sizes = [8, 1088], strides = [1, 1]} : vector<8x1190xbf16> to vector<8x1088xbf16>
    %29 = vector.extract_strided_slice %20 {offsets = [0, 69], sizes = [8, 1088], strides = [1, 1]} : vector<8x1190xbf16> to vector<8x1088xbf16>
    %30 = vector.extract_strided_slice %20 {offsets = [0, 70], sizes = [8, 1088], strides = [1, 1]} : vector<8x1190xbf16> to vector<8x1088xbf16>
    %31 = tpu.concatenate %22, %23, %24, %25, %26, %27, %28, %29, %30 in 0 : vector<8x1088xbf16>, vector<8x1088xbf16>, vector<8x1088xbf16>, vector<8x1088xbf16>, vector<8x1088xbf16>, vector<8x1088xbf16>, vector<8x1088xbf16>, vector<8x1088xbf16>, vector<8x1088xbf16> -> vector<72x1088xbf16>
    %cst = arith.constant dense<0.000000e+00> : vector<8x1088xf32>
    %32 = tpu.matmul %21, %31, %cst {dimension_numbers = #tpu.dot_dimension_numbers<[1], [0], [0], [1], [0, 0, 1, 1], [], []>} : vector<8x72xbf16>, vector<72x1088xbf16>, vector<8x1088xf32> -> vector<8x1088xf32>
    %c0_7 = arith.constant 0 : index
    %c0_8 = arith.constant 0 : index
    %c0_9 = arith.constant 0 : index
    %33 = vector.load %arg2[%c0_7, %c0_8, %c0_9] : memref<1x8x1190xbf16, #tpu.memory_space<vmem>>, vector<1x8x1190xbf16>
    %34 = vector.shape_cast %33 : vector<1x8x1190xbf16> to vector<8x1190xbf16>
    %c0_10 = arith.constant 0 : index
    %c0_11 = arith.constant 0 : index
    %35 = vector.load %arg4[%c0_10, %c0_11] : memref<8x72xbf16, #tpu.memory_space<vmem>>, vector<8x72xbf16>
    %36 = vector.extract_strided_slice %34 {offsets = [0, 0], sizes = [8, 1088], strides = [1, 1]} : vector<8x1190xbf16> to vector<8x1088xbf16>
    %37 = vector.extract_strided_slice %34 {offsets = [0, 1], sizes = [8, 1088], strides = [1, 1]} : vector<8x1190xbf16> to vector<8x1088xbf16>
    %38 = vector.extract_strided_slice %34 {offsets = [0, 2], sizes = [8, 1088], strides = [1, 1]} : vector<8x1190xbf16> to vector<8x1088xbf16>
    %39 = vector.extract_strided_slice %34 {offsets = [0, 34], sizes = [8, 1088], strides = [1, 1]} : vector<8x1190xbf16> to vector<8x1088xbf16>
    %40 = vector.extract_strided_slice %34 {offsets = [0, 35], sizes = [8, 1088], strides = [1, 1]} : vector<8x1190xbf16> to vector<8x1088xbf16>
    %41 = vector.extract_strided_slice %34 {offsets = [0, 36], sizes = [8, 1088], strides = [1, 1]} : vector<8x1190xbf16> to vector<8x1088xbf16>
    %42 = vector.extract_strided_slice %34 {offsets = [0, 68], sizes = [8, 1088], strides = [1, 1]} : vector<8x1190xbf16> to vector<8x1088xbf16>
    %43 = vector.extract_strided_slice %34 {offsets = [0, 69], sizes = [8, 1088], strides = [1, 1]} : vector<8x1190xbf16> to vector<8x1088xbf16>
    %44 = vector.extract_strided_slice %34 {offsets = [0, 70], sizes = [8, 1088], strides = [1, 1]} : vector<8x1190xbf16> to vector<8x1088xbf16>
    %45 = tpu.concatenate %36, %37, %38, %39, %40, %41, %42, %43, %44 in 0 : vector<8x1088xbf16>, vector<8x1088xbf16>, vector<8x1088xbf16>, vector<8x1088xbf16>, vector<8x1088xbf16>, vector<8x1088xbf16>, vector<8x1088xbf16>, vector<8x1088xbf16>, vector<8x1088xbf16> -> vector<72x1088xbf16>
    %cst_12 = arith.constant dense<0.000000e+00> : vector<8x1088xf32>
    %46 = tpu.matmul %35, %45, %cst_12 {dimension_numbers = #tpu.dot_dimension_numbers<[1], [0], [0], [1], [0, 0, 1, 1], [], []>} : vector<8x72xbf16>, vector<72x1088xbf16>, vector<8x1088xf32> -> vector<8x1088xf32>
    %47 = arith.addf %32, %46 : vector<8x1088xf32>
    %c0_13 = arith.constant 0 : index
    %c0_14 = arith.constant 0 : index
    %48 = vector.load %arg5[%c0_13, %c0_14] : memref<8x1xf32, #tpu.memory_space<vmem>>, vector<8x1xf32>
    %49 = vector.broadcast %48 : vector<8x1xf32> to vector<8x1088xf32>
    %50 = arith.addf %47, %49 : vector<8x1088xf32>
    %cst_15 = arith.constant 0.000000e+00 : f32
    %51 = vector.broadcast %cst_15 : f32 to vector<8x1088xf32>
    %52 = arith.maximumf %50, %51 : vector<8x1088xf32>
    %cst_16 = arith.constant 0.000000e+00 : f32
    %53 = vector.shape_cast %18 : vector<1x1088xi1> to vector<1x1088xi1>
    %54 = vector.broadcast %53 : vector<1x1088xi1> to vector<8x1088xi1>
    %55 = vector.broadcast %cst_16 : f32 to vector<8x1088xf32>
    %56 = arith.select %54, %52, %55 : vector<8x1088xi1>, vector<8x1088xf32>
    %57 = arith.truncf %56 : vector<8x1088xf32> to vector<8x1088xbf16>
    %cst_17 = arith.constant 0.000000e+00 : bf16
    %58 = vector.broadcast %cst_17 : bf16 to vector<8x35xbf16>
    %c0_18 = arith.constant 0 : index
    %c0_19 = arith.constant 0 : index
    %c0_20 = arith.constant 0 : index
    %59 = vector.load %arg11[%c0_18, %c0_19, %c0_20] : memref<1x8x1190xbf16, #tpu.memory_space<vmem>>, vector<1x8x35xbf16>
    %60 = vector.shape_cast %59 : vector<1x8x35xbf16> to vector<8x35xbf16>
    %61 = vector.shape_cast %58 : vector<8x35xbf16> to vector<1x8x35xbf16>
    tpu.vector_store %arg11[%c0_18, %c0_19, %c0_20], %61 {strides = array<i32>} : memref<1x8x1190xbf16, #tpu.memory_space<vmem>>, vector<1x8x35xbf16>,
    %cst_21 = arith.constant 0.000000e+00 : bf16
    %62 = vector.broadcast %cst_21 : bf16 to vector<8x67xbf16>
    %c0_22 = arith.constant 0 : index
    %c0_23 = arith.constant 0 : index
    %c1123 = arith.constant 1123 : index
    %63 = vector.load %arg11[%c0_22, %c0_23, %c1123] : memref<1x8x1190xbf16, #tpu.memory_space<vmem>>, vector<1x8x67xbf16>
    %64 = vector.shape_cast %63 : vector<1x8x67xbf16> to vector<8x67xbf16>
    %65 = vector.shape_cast %62 : vector<8x67xbf16> to vector<1x8x67xbf16>
    tpu.vector_store %arg11[%c0_22, %c0_23, %c1123], %65 {strides = array<i32>} : memref<1x8x1190xbf16, #tpu.memory_space<vmem>>, vector<1x8x67xbf16>,
    %c0_24 = arith.constant 0 : index
    %c0_25 = arith.constant 0 : index
    %c35 = arith.constant 35 : index
    %66 = vector.load %arg11[%c0_24, %c0_25, %c35] : memref<1x8x1190xbf16, #tpu.memory_space<vmem>>, vector<1x8x1088xbf16>
    %67 = vector.shape_cast %66 : vector<1x8x1088xbf16> to vector<8x1088xbf16>
    %68 = vector.shape_cast %57 : vector<8x1088xbf16> to vector<1x8x1088xbf16>
    tpu.vector_store %arg11[%c0_24, %c0_25, %c35], %68 {strides = array<i32>} : memref<1x8x1190xbf16, #tpu.memory_space<vmem>>, vector<1x8x1088xbf16>,
    %c0_26 = arith.constant 0 : index
    %c0_27 = arith.constant 0 : index
    %c0_28 = arith.constant 0 : index
    %69 = vector.load %arg11[%c0_26, %c0_27, %c0_28] : memref<1x8x1190xbf16, #tpu.memory_space<vmem>>, vector<1x8x1190xbf16>
    %70 = vector.shape_cast %69 : vector<1x8x1190xbf16> to vector<8x1190xbf16>
    %71 = vector.extract_strided_slice %70 {offsets = [0, 0], sizes = [8, 1088], strides = [1, 1]} : vector<8x1190xbf16> to vector<8x1088xbf16>
    %72 = vector.extract_strided_slice %70 {offsets = [0, 1], sizes = [8, 1088], strides = [1, 1]} : vector<8x1190xbf16> to vector<8x1088xbf16>
    %73 = vector.extract_strided_slice %70 {offsets = [0, 2], sizes = [8, 1088], strides = [1, 1]} : vector<8x1190xbf16> to vector<8x1088xbf16>
    %74 = vector.extract_strided_slice %70 {offsets = [0, 34], sizes = [8, 1088], strides = [1, 1]} : vector<8x1190xbf16> to vector<8x1088xbf16>
    %75 = vector.extract_strided_slice %70 {offsets = [0, 35], sizes = [8, 1088], strides = [1, 1]} : vector<8x1190xbf16> to vector<8x1088xbf16>
    %76 = vector.extract_strided_slice %70 {offsets = [0, 36], sizes = [8, 1088], strides = [1, 1]} : vector<8x1190xbf16> to vector<8x1088xbf16>
    %77 = vector.extract_strided_slice %70 {offsets = [0, 68], sizes = [8, 1088], strides = [1, 1]} : vector<8x1190xbf16> to vector<8x1088xbf16>
    %78 = vector.extract_strided_slice %70 {offsets = [0, 69], sizes = [8, 1088], strides = [1, 1]} : vector<8x1190xbf16> to vector<8x1088xbf16>
    %79 = vector.extract_strided_slice %70 {offsets = [0, 70], sizes = [8, 1088], strides = [1, 1]} : vector<8x1190xbf16> to vector<8x1088xbf16>
    %80 = tpu.concatenate %71, %72, %73, %74, %75, %76, %77, %78, %79 in 0 : vector<8x1088xbf16>, vector<8x1088xbf16>, vector<8x1088xbf16>, vector<8x1088xbf16>, vector<8x1088xbf16>, vector<8x1088xbf16>, vector<8x1088xbf16>, vector<8x1088xbf16>, vector<8x1088xbf16> -> vector<72x1088xbf16>
    %c0_29 = arith.constant 0 : index
    %c0_30 = arith.constant 0 : index
    %81 = vector.load %arg6[%c0_29, %c0_30] : memref<8x72xbf16, #tpu.memory_space<vmem>>, vector<8x72xbf16>
    %cst_31 = arith.constant dense<0.000000e+00> : vector<8x1088xf32>
    %82 = tpu.matmul %81, %80, %cst_31 {dimension_numbers = #tpu.dot_dimension_numbers<[1], [0], [0], [1], [0, 0, 1, 1], [], []>} : vector<8x72xbf16>, vector<72x1088xbf16>, vector<8x1088xf32> -> vector<8x1088xf32>
    %c0_32 = arith.constant 0 : index
    %c0_33 = arith.constant 0 : index
    %83 = vector.load %arg7[%c0_32, %c0_33] : memref<8x1xf32, #tpu.memory_space<vmem>>, vector<8x1xf32>
    %84 = vector.broadcast %83 : vector<8x1xf32> to vector<8x1088xf32>
    %85 = arith.addf %82, %84 : vector<8x1088xf32>
    %cst_34 = arith.constant 0.000000e+00 : f32
    %86 = vector.broadcast %cst_34 : f32 to vector<8x1088xf32>
    %87 = arith.maximumf %85, %86 : vector<8x1088xf32>
    %88 = vector.extract_strided_slice %20 {offsets = [0, 35], sizes = [8, 1088], strides = [1, 1]} : vector<8x1190xbf16> to vector<8x1088xbf16>
    %89 = vector.extract_strided_slice %34 {offsets = [0, 35], sizes = [8, 1088], strides = [1, 1]} : vector<8x1190xbf16> to vector<8x1088xbf16>
    %c0_35 = arith.constant 0 : index
    %c0_36 = arith.constant 0 : index
    %90 = vector.load %arg8[%c0_35, %c0_36] : memref<8x8xbf16, #tpu.memory_space<vmem>>, vector<8x8xbf16>
    %cst_37 = arith.constant dense<0.000000e+00> : vector<8x1088xf32>
    %91 = tpu.matmul %90, %88, %cst_37 {dimension_numbers = #tpu.dot_dimension_numbers<[1], [0], [0], [1], [0, 0, 1, 1], [], []>} : vector<8x8xbf16>, vector<8x1088xbf16>, vector<8x1088xf32> -> vector<8x1088xf32>
    %c0_38 = arith.constant 0 : index
    %c0_39 = arith.constant 0 : index
    %92 = vector.load %arg9[%c0_38, %c0_39] : memref<8x8xbf16, #tpu.memory_space<vmem>>, vector<8x8xbf16>
    %cst_40 = arith.constant dense<0.000000e+00> : vector<8x1088xf32>
    %93 = tpu.matmul %92, %89, %cst_40 {dimension_numbers = #tpu.dot_dimension_numbers<[1], [0], [0], [1], [0, 0, 1, 1], [], []>} : vector<8x8xbf16>, vector<8x1088xbf16>, vector<8x1088xf32> -> vector<8x1088xf32>
    %94 = arith.addf %91, %93 : vector<8x1088xf32>
    %c0_41 = arith.constant 0 : index
    %c0_42 = arith.constant 0 : index
    %95 = vector.load %arg10[%c0_41, %c0_42] : memref<8x1xf32, #tpu.memory_space<vmem>>, vector<8x1xf32>
    %96 = vector.broadcast %95 : vector<8x1xf32> to vector<8x1088xf32>
    %97 = arith.addf %94, %96 : vector<8x1088xf32>
    %98 = arith.addf %87, %97 : vector<8x1088xf32>
    %cst_43 = arith.constant 0.000000e+00 : f32
    %99 = vector.shape_cast %18 : vector<1x1088xi1> to vector<1x1088xi1>
    %100 = vector.broadcast %99 : vector<1x1088xi1> to vector<8x1088xi1>
    %101 = vector.broadcast %cst_43 : f32 to vector<8x1088xf32>
    %102 = arith.select %100, %98, %101 : vector<8x1088xi1>, vector<8x1088xf32>
    %103 = arith.truncf %102 : vector<8x1088xf32> to vector<8x1088xbf16>
    %c0_44 = arith.constant 0 : index
    %c0_45 = arith.constant 0 : index
    %c35_46 = arith.constant 35 : index
    %104 = vector.load %arg11[%c0_44, %c0_45, %c35_46] : memref<1x8x1190xbf16, #tpu.memory_space<vmem>>, vector<1x8x1088xbf16>
    %105 = vector.shape_cast %104 : vector<1x8x1088xbf16> to vector<8x1088xbf16>
    %106 = vector.shape_cast %103 : vector<8x1088xbf16> to vector<1x8x1088xbf16>
    tpu.vector_store %arg11[%c0_44, %c0_45, %c35_46], %106 {strides = array<i32>} : memref<1x8x1190xbf16, #tpu.memory_space<vmem>>, vector<1x8x1088xbf16>,
    return
  }
  func.func @transform_0(%arg0: i32) -> (i32, i32, i32) {
    %c0_i32 = arith.constant 0 : i32
    %c0_i32_0 = arith.constant 0 : i32
    %c0_i32_1 = arith.constant 0 : i32
    return %arg0, %c0_i32, %c0_i32_0 : i32, i32, i32
  }
  func.func @transform_1(%arg0: i32) -> (i32, i32, i32) {
    %c0_i32 = arith.constant 0 : i32
    %c0_i32_0 = arith.constant 0 : i32
    %c0_i32_1 = arith.constant 0 : i32
    return %arg0, %c0_i32, %c0_i32_0 : i32, i32, i32
  }
  func.func @transform_2(%arg0: i32) -> (i32, i32) {
    %c0_i32 = arith.constant 0 : i32
    %c0_i32_0 = arith.constant 0 : i32
    %c0_i32_1 = arith.constant 0 : i32
    return %c0_i32, %c0_i32_0 : i32, i32
  }
  func.func @transform_3(%arg0: i32) -> (i32, i32) {
    %c0_i32 = arith.constant 0 : i32
    %c0_i32_0 = arith.constant 0 : i32
    %c0_i32_1 = arith.constant 0 : i32
    return %c0_i32, %c0_i32_0 : i32, i32
  }
  func.func @transform_4(%arg0: i32) -> (i32, i32) {
    %c0_i32 = arith.constant 0 : i32
    %c0_i32_0 = arith.constant 0 : i32
    %c0_i32_1 = arith.constant 0 : i32
    return %c0_i32, %c0_i32_0 : i32, i32
  }
  func.func @transform_5(%arg0: i32) -> (i32, i32) {
    %c0_i32 = arith.constant 0 : i32
    %c0_i32_0 = arith.constant 0 : i32
    %c0_i32_1 = arith.constant 0 : i32
    return %c0_i32, %c0_i32_0 : i32, i32
  }
  func.func @transform_6(%arg0: i32) -> (i32, i32) {
    %c0_i32 = arith.constant 0 : i32
    %c0_i32_0 = arith.constant 0 : i32
    %c0_i32_1 = arith.constant 0 : i32
    return %c0_i32, %c0_i32_0 : i32, i32
  }
  func.func @transform_7(%arg0: i32) -> (i32, i32) {
    %c0_i32 = arith.constant 0 : i32
    %c0_i32_0 = arith.constant 0 : i32
    %c0_i32_1 = arith.constant 0 : i32
    return %c0_i32, %c0_i32_0 : i32, i32
  }
  func.func @transform_8(%arg0: i32) -> (i32, i32) {
    %c0_i32 = arith.constant 0 : i32
    %c0_i32_0 = arith.constant 0 : i32
    %c0_i32_1 = arith.constant 0 : i32
    return %c0_i32, %c0_i32_0 : i32, i32
  }
  func.func @transform_9(%arg0: i32) -> (i32, i32) {
    %c0_i32 = arith.constant 0 : i32
    %c0_i32_0 = arith.constant 0 : i32
    %c0_i32_1 = arith.constant 0 : i32
    return %c0_i32, %c0_i32_0 : i32, i32
  }
  func.func @transform_10(%arg0: i32) -> (i32, i32, i32) {
    %c0_i32 = arith.constant 0 : i32
    %c0_i32_0 = arith.constant 0 : i32
    %c0_i32_1 = arith.constant 0 : i32
    return %arg0, %c0_i32, %c0_i32_0 : i32, i32, i32
  }
}

module attributes {stable_mosaic.version = 11 : i64} {
  func.func @kernel(%arg0: i32, %arg1: memref<1x8x1190xbf16, #tpu.memory_space<vmem>>, %arg2: memref<8x72xbf16, #tpu.memory_space<vmem>>, %arg3: memref<8x1xf32, #tpu.memory_space<vmem>>, %arg4: memref<8x72xbf16, #tpu.memory_space<vmem>>, %arg5: memref<8x1xf32, #tpu.memory_space<vmem>>, %arg6: memref<1x8x1190xbf16, #tpu.memory_space<vmem>>) attributes {dimension_semantics = [#tpu.dimension_semantics<parallel>], iteration_bounds = array<i64: 2>, scalar_prefetch = 0 : i64, scratch_operands = 0 : i64, tpu.core_type = #tpu.core_type<tc>, window_params = [{transform_indices = @transform_0, window_bounds = array<i64: 1, 8, 1190>}, {pipeline_mode = #tpu.pipeline_mode<synchronous>, transform_indices = @transform_1, window_bounds = array<i64: 8, 72>}, {pipeline_mode = #tpu.pipeline_mode<synchronous>, transform_indices = @transform_2, window_bounds = array<i64: 8, 1>}, {pipeline_mode = #tpu.pipeline_mode<synchronous>, transform_indices = @transform_3, window_bounds = array<i64: 8, 72>}, {pipeline_mode = #tpu.pipeline_mode<synchronous>, transform_indices = @transform_4, window_bounds = array<i64: 8, 1>}, {transform_indices = @transform_5, window_bounds = array<i64: 1, 8, 1190>}]} {
    %0 = tpu.iota {dimensions = array<i32: 1>} : vector<1x1088xi32>
    %c34_i32 = arith.constant 34 : i32
    %c0_i32 = arith.constant 0 : i32
    %1 = arith.cmpi eq, %c34_i32, %c0_i32 : i32
    %c1_i32 = arith.constant 1 : i32
    %2 = arith.select %1, %c1_i32, %c34_i32 : i32
    %3 = vector.broadcast %2 : i32 to vector<1x1088xi32>
    %4 = arith.remsi %0, %3 : vector<1x1088xi32>
    %c0_i32_0 = arith.constant 0 : i32
    %5 = vector.broadcast %c0_i32_0 : i32 to vector<1x1088xi32>
    %6 = arith.cmpi ne, %4, %5 : vector<1x1088xi32>
    %c0_i32_1 = arith.constant 0 : i32
    %7 = vector.broadcast %c0_i32_1 : i32 to vector<1x1088xi32>
    %8 = arith.cmpi slt, %4, %7 : vector<1x1088xi32>
    %c0_i32_2 = arith.constant 0 : i32
    %9 = arith.cmpi slt, %2, %c0_i32_2 : i32
    %10 = vector.broadcast %9 : i1 to vector<1x1088xi1>
    %11 = vector.broadcast %10 : vector<1x1088xi1> to vector<1x1088xi1>
    %12 = arith.xori %8, %11 : vector<1x1088xi1>
    %13 = arith.andi %12, %6 : vector<1x1088xi1>
    %14 = vector.broadcast %2 : i32 to vector<1x1088xi32>
    %15 = arith.addi %4, %14 : vector<1x1088xi32>
    %16 = arith.select %13, %15, %4 : vector<1x1088xi1>, vector<1x1088xi32>
    %c32_i32 = arith.constant 32 : i32
    %17 = vector.broadcast %c32_i32 : i32 to vector<1x1088xi32>
    %18 = arith.cmpi slt, %16, %17 : vector<1x1088xi32>
    %c0 = arith.constant 0 : index
    %c0_3 = arith.constant 0 : index
    %c0_4 = arith.constant 0 : index
    %19 = vector.load %arg1[%c0, %c0_3, %c0_4] : memref<1x8x1190xbf16, #tpu.memory_space<vmem>>, vector<1x8x1190xbf16>
    %20 = vector.shape_cast %19 : vector<1x8x1190xbf16> to vector<8x1190xbf16>
    %c0_5 = arith.constant 0 : index
    %c0_6 = arith.constant 0 : index
    %21 = vector.load %arg2[%c0_5, %c0_6] : memref<8x72xbf16, #tpu.memory_space<vmem>>, vector<8x72xbf16>
    %22 = vector.extract_strided_slice %20 {offsets = [0, 0], sizes = [8, 1088], strides = [1, 1]} : vector<8x1190xbf16> to vector<8x1088xbf16>
    %23 = vector.extract_strided_slice %20 {offsets = [0, 1], sizes = [8, 1088], strides = [1, 1]} : vector<8x1190xbf16> to vector<8x1088xbf16>
    %24 = vector.extract_strided_slice %20 {offsets = [0, 2], sizes = [8, 1088], strides = [1, 1]} : vector<8x1190xbf16> to vector<8x1088xbf16>
    %25 = vector.extract_strided_slice %20 {offsets = [0, 34], sizes = [8, 1088], strides = [1, 1]} : vector<8x1190xbf16> to vector<8x1088xbf16>
    %26 = vector.extract_strided_slice %20 {offsets = [0, 35], sizes = [8, 1088], strides = [1, 1]} : vector<8x1190xbf16> to vector<8x1088xbf16>
    %27 = vector.extract_strided_slice %20 {offsets = [0, 36], sizes = [8, 1088], strides = [1, 1]} : vector<8x1190xbf16> to vector<8x1088xbf16>
    %28 = vector.extract_strided_slice %20 {offsets = [0, 68], sizes = [8, 1088], strides = [1, 1]} : vector<8x1190xbf16> to vector<8x1088xbf16>
    %29 = vector.extract_strided_slice %20 {offsets = [0, 69], sizes = [8, 1088], strides = [1, 1]} : vector<8x1190xbf16> to vector<8x1088xbf16>
    %30 = vector.extract_strided_slice %20 {offsets = [0, 70], sizes = [8, 1088], strides = [1, 1]} : vector<8x1190xbf16> to vector<8x1088xbf16>
    %31 = tpu.concatenate %22, %23, %24, %25, %26, %27, %28, %29, %30 in 0 : vector<8x1088xbf16>, vector<8x1088xbf16>, vector<8x1088xbf16>, vector<8x1088xbf16>, vector<8x1088xbf16>, vector<8x1088xbf16>, vector<8x1088xbf16>, vector<8x1088xbf16>, vector<8x1088xbf16> -> vector<72x1088xbf16>
    %cst = arith.constant dense<0.000000e+00> : vector<8x1088xf32>
    %32 = tpu.matmul %21, %31, %cst {dimension_numbers = #tpu.dot_dimension_numbers<[1], [0], [0], [1], [0, 0, 1, 1], [], []>} : vector<8x72xbf16>, vector<72x1088xbf16>, vector<8x1088xf32> -> vector<8x1088xf32>
    %c0_7 = arith.constant 0 : index
    %c0_8 = arith.constant 0 : index
    %33 = vector.load %arg3[%c0_7, %c0_8] : memref<8x1xf32, #tpu.memory_space<vmem>>, vector<8x1xf32>
    %34 = vector.broadcast %33 : vector<8x1xf32> to vector<8x1088xf32>
    %35 = arith.addf %32, %34 : vector<8x1088xf32>
    %cst_9 = arith.constant 0.000000e+00 : f32
    %36 = vector.broadcast %cst_9 : f32 to vector<8x1088xf32>
    %37 = arith.maximumf %35, %36 : vector<8x1088xf32>
    %cst_10 = arith.constant 0.000000e+00 : f32
    %38 = vector.shape_cast %18 : vector<1x1088xi1> to vector<1x1088xi1>
    %39 = vector.broadcast %38 : vector<1x1088xi1> to vector<8x1088xi1>
    %40 = vector.broadcast %cst_10 : f32 to vector<8x1088xf32>
    %41 = arith.select %39, %37, %40 : vector<8x1088xi1>, vector<8x1088xf32>
    %42 = arith.truncf %41 : vector<8x1088xf32> to vector<8x1088xbf16>
    %cst_11 = arith.constant 0.000000e+00 : bf16
    %43 = vector.broadcast %cst_11 : bf16 to vector<8x35xbf16>
    %c0_12 = arith.constant 0 : index
    %c0_13 = arith.constant 0 : index
    %c0_14 = arith.constant 0 : index
    %44 = vector.load %arg6[%c0_12, %c0_13, %c0_14] : memref<1x8x1190xbf16, #tpu.memory_space<vmem>>, vector<1x8x35xbf16>
    %45 = vector.shape_cast %44 : vector<1x8x35xbf16> to vector<8x35xbf16>
    %46 = vector.shape_cast %43 : vector<8x35xbf16> to vector<1x8x35xbf16>
    tpu.vector_store %arg6[%c0_12, %c0_13, %c0_14], %46 {strides = array<i32>} : memref<1x8x1190xbf16, #tpu.memory_space<vmem>>, vector<1x8x35xbf16>,
    %cst_15 = arith.constant 0.000000e+00 : bf16
    %47 = vector.broadcast %cst_15 : bf16 to vector<8x67xbf16>
    %c0_16 = arith.constant 0 : index
    %c0_17 = arith.constant 0 : index
    %c1123 = arith.constant 1123 : index
    %48 = vector.load %arg6[%c0_16, %c0_17, %c1123] : memref<1x8x1190xbf16, #tpu.memory_space<vmem>>, vector<1x8x67xbf16>
    %49 = vector.shape_cast %48 : vector<1x8x67xbf16> to vector<8x67xbf16>
    %50 = vector.shape_cast %47 : vector<8x67xbf16> to vector<1x8x67xbf16>
    tpu.vector_store %arg6[%c0_16, %c0_17, %c1123], %50 {strides = array<i32>} : memref<1x8x1190xbf16, #tpu.memory_space<vmem>>, vector<1x8x67xbf16>,
    %c0_18 = arith.constant 0 : index
    %c0_19 = arith.constant 0 : index
    %c35 = arith.constant 35 : index
    %51 = vector.load %arg6[%c0_18, %c0_19, %c35] : memref<1x8x1190xbf16, #tpu.memory_space<vmem>>, vector<1x8x1088xbf16>
    %52 = vector.shape_cast %51 : vector<1x8x1088xbf16> to vector<8x1088xbf16>
    %53 = vector.shape_cast %42 : vector<8x1088xbf16> to vector<1x8x1088xbf16>
    tpu.vector_store %arg6[%c0_18, %c0_19, %c35], %53 {strides = array<i32>} : memref<1x8x1190xbf16, #tpu.memory_space<vmem>>, vector<1x8x1088xbf16>,
    %c0_20 = arith.constant 0 : index
    %c0_21 = arith.constant 0 : index
    %c0_22 = arith.constant 0 : index
    %54 = vector.load %arg6[%c0_20, %c0_21, %c0_22] : memref<1x8x1190xbf16, #tpu.memory_space<vmem>>, vector<1x8x1190xbf16>
    %55 = vector.shape_cast %54 : vector<1x8x1190xbf16> to vector<8x1190xbf16>
    %56 = vector.extract_strided_slice %55 {offsets = [0, 0], sizes = [8, 1088], strides = [1, 1]} : vector<8x1190xbf16> to vector<8x1088xbf16>
    %57 = vector.extract_strided_slice %55 {offsets = [0, 1], sizes = [8, 1088], strides = [1, 1]} : vector<8x1190xbf16> to vector<8x1088xbf16>
    %58 = vector.extract_strided_slice %55 {offsets = [0, 2], sizes = [8, 1088], strides = [1, 1]} : vector<8x1190xbf16> to vector<8x1088xbf16>
    %59 = vector.extract_strided_slice %55 {offsets = [0, 34], sizes = [8, 1088], strides = [1, 1]} : vector<8x1190xbf16> to vector<8x1088xbf16>
    %60 = vector.extract_strided_slice %55 {offsets = [0, 35], sizes = [8, 1088], strides = [1, 1]} : vector<8x1190xbf16> to vector<8x1088xbf16>
    %61 = vector.extract_strided_slice %55 {offsets = [0, 36], sizes = [8, 1088], strides = [1, 1]} : vector<8x1190xbf16> to vector<8x1088xbf16>
    %62 = vector.extract_strided_slice %55 {offsets = [0, 68], sizes = [8, 1088], strides = [1, 1]} : vector<8x1190xbf16> to vector<8x1088xbf16>
    %63 = vector.extract_strided_slice %55 {offsets = [0, 69], sizes = [8, 1088], strides = [1, 1]} : vector<8x1190xbf16> to vector<8x1088xbf16>
    %64 = vector.extract_strided_slice %55 {offsets = [0, 70], sizes = [8, 1088], strides = [1, 1]} : vector<8x1190xbf16> to vector<8x1088xbf16>
    %65 = tpu.concatenate %56, %57, %58, %59, %60, %61, %62, %63, %64 in 0 : vector<8x1088xbf16>, vector<8x1088xbf16>, vector<8x1088xbf16>, vector<8x1088xbf16>, vector<8x1088xbf16>, vector<8x1088xbf16>, vector<8x1088xbf16>, vector<8x1088xbf16>, vector<8x1088xbf16> -> vector<72x1088xbf16>
    %c0_23 = arith.constant 0 : index
    %c0_24 = arith.constant 0 : index
    %66 = vector.load %arg4[%c0_23, %c0_24] : memref<8x72xbf16, #tpu.memory_space<vmem>>, vector<8x72xbf16>
    %cst_25 = arith.constant dense<0.000000e+00> : vector<8x1088xf32>
    %67 = tpu.matmul %66, %65, %cst_25 {dimension_numbers = #tpu.dot_dimension_numbers<[1], [0], [0], [1], [0, 0, 1, 1], [], []>} : vector<8x72xbf16>, vector<72x1088xbf16>, vector<8x1088xf32> -> vector<8x1088xf32>
    %c0_26 = arith.constant 0 : index
    %c0_27 = arith.constant 0 : index
    %68 = vector.load %arg5[%c0_26, %c0_27] : memref<8x1xf32, #tpu.memory_space<vmem>>, vector<8x1xf32>
    %69 = vector.broadcast %68 : vector<8x1xf32> to vector<8x1088xf32>
    %70 = arith.addf %67, %69 : vector<8x1088xf32>
    %cst_28 = arith.constant 0.000000e+00 : f32
    %71 = vector.broadcast %cst_28 : f32 to vector<8x1088xf32>
    %72 = arith.maximumf %70, %71 : vector<8x1088xf32>
    %73 = vector.extract_strided_slice %20 {offsets = [0, 35], sizes = [8, 1088], strides = [1, 1]} : vector<8x1190xbf16> to vector<8x1088xbf16>
    %74 = arith.extf %73 : vector<8x1088xbf16> to vector<8x1088xf32>
    %75 = arith.addf %72, %74 : vector<8x1088xf32>
    %cst_29 = arith.constant 0.000000e+00 : f32
    %76 = vector.shape_cast %18 : vector<1x1088xi1> to vector<1x1088xi1>
    %77 = vector.broadcast %76 : vector<1x1088xi1> to vector<8x1088xi1>
    %78 = vector.broadcast %cst_29 : f32 to vector<8x1088xf32>
    %79 = arith.select %77, %75, %78 : vector<8x1088xi1>, vector<8x1088xf32>
    %80 = arith.truncf %79 : vector<8x1088xf32> to vector<8x1088xbf16>
    %c0_30 = arith.constant 0 : index
    %c0_31 = arith.constant 0 : index
    %c35_32 = arith.constant 35 : index
    %81 = vector.load %arg6[%c0_30, %c0_31, %c35_32] : memref<1x8x1190xbf16, #tpu.memory_space<vmem>>, vector<1x8x1088xbf16>
    %82 = vector.shape_cast %81 : vector<1x8x1088xbf16> to vector<8x1088xbf16>
    %83 = vector.shape_cast %80 : vector<8x1088xbf16> to vector<1x8x1088xbf16>
    tpu.vector_store %arg6[%c0_30, %c0_31, %c35_32], %83 {strides = array<i32>} : memref<1x8x1190xbf16, #tpu.memory_space<vmem>>, vector<1x8x1088xbf16>,
    return
  }
  func.func @transform_0(%arg0: i32) -> (i32, i32, i32) {
    %c0_i32 = arith.constant 0 : i32
    %c0_i32_0 = arith.constant 0 : i32
    %c0_i32_1 = arith.constant 0 : i32
    return %arg0, %c0_i32, %c0_i32_0 : i32, i32, i32
  }
  func.func @transform_1(%arg0: i32) -> (i32, i32) {
    %c0_i32 = arith.constant 0 : i32
    %c0_i32_0 = arith.constant 0 : i32
    %c0_i32_1 = arith.constant 0 : i32
    return %c0_i32, %c0_i32_0 : i32, i32
  }
  func.func @transform_2(%arg0: i32) -> (i32, i32) {
    %c0_i32 = arith.constant 0 : i32
    %c0_i32_0 = arith.constant 0 : i32
    %c0_i32_1 = arith.constant 0 : i32
    return %c0_i32, %c0_i32_0 : i32, i32
  }
  func.func @transform_3(%arg0: i32) -> (i32, i32) {
    %c0_i32 = arith.constant 0 : i32
    %c0_i32_0 = arith.constant 0 : i32
    %c0_i32_1 = arith.constant 0 : i32
    return %c0_i32, %c0_i32_0 : i32, i32
  }
  func.func @transform_4(%arg0: i32) -> (i32, i32) {
    %c0_i32 = arith.constant 0 : i32
    %c0_i32_0 = arith.constant 0 : i32
    %c0_i32_1 = arith.constant 0 : i32
    return %c0_i32, %c0_i32_0 : i32, i32
  }
  func.func @transform_5(%arg0: i32) -> (i32, i32, i32) {
    %c0_i32 = arith.constant 0 : i32
    %c0_i32_0 = arith.constant 0 : i32
    %c0_i32_1 = arith.constant 0 : i32
    return %arg0, %c0_i32, %c0_i32_0 : i32, i32, i32
  }
}

</mosaic_0001>

<bundles_post_ra>
// kernel: _lambda_.6
= control target key start
LH: loop header
LB: loop body
LE: loop exit
PB: predicated region body
PF: predicated region fallthrough
CT: control target
= control target key end

     0   :  { %s520_s12 = smov 0   ;;  %s609_s0 = inlined_call_operand.vmem [shape: bf16[2,32,110], index: 0, kind: input, shape index: {}]   ;;  %s610_s1 = inlined_call_operand.vmem [shape: bf16[64,128], index: 1, kind: input, shape index: {}]   ;;  %s611_s2 = inlined_call_operand.vmem [shape: f32[64,1], index: 2, kind: input, shape index: {}]   ;;  %s612_s3 = inlined_call_operand.vmem [shape: bf16[2,64,80], index: 3, kind: output, shape index: {}]  }
   0x1 LB: > { %s406_s13 = sadd.s32 4294967295, %s494_s12   ;;  %p410_p0 = scmp.ge.s32.totalorder %s494_s12, 1  ;;  %s494_s12 = sphi %s520_s12, %s13_s12  }
   0x2   : > { %p137_p1 = scmp.lt.s32.totalorder %s494_s12, 3 }
   0x4   : > { %p138_p2 = pnand %p410_p0, %p137_p1 }
   0x5   : > { %p161_p3 = scmp.lt.s32.totalorder (!%p138_p2), %s406_s13, 1  ;;  %s496_s18 = smov (!%p138_p2), 117  }
   0x6   : > { %141 = sbr.rel (%p138_p2) target bundleno = 429 (0x1ad), region = 32  ;;  %s497_s19 = smov (!%p138_p2), 118  }
   0x7   : > { %s498_s20 = smov (!%p138_p2), 127  }
   0xb   : > { %s614_s13 = smov (!%p161_p3, %s406_s13), 1  ;;  %v206_v8 = vld [vmem:[%s611_s2 + $0x8] sm:$0xff]  ;;  %v499_v9 = vmov 0   ;;  %v208_v11 = vld [vmem:[%s611_s2 + $0x18] sm:$0xff]  ;;  %v205_v12 = vld [vmem:[%s611_s2] sm:$0xff]  ;;  %vm342_vm0 = vcmask 650240  }
   0xc   : > { %s441_s14 = sshll.u32 %s614_s13, 4  ;;  %486 = vset.pattern.permute.xlu1 %v499_v9  ;;  %485 = vset.pattern.permute.xlu0 %v499_v9  ;;  %v207_v13 = vld [vmem:[%s611_s2 + $0x10] sm:$0xff]  ;;  %v210_v17 = vld [vmem:[%s611_s2 + $0x28] sm:$0xff]  ;;  %v209_v18 = vld [vmem:[%s611_s2 + $0x20] sm:$0xff] }
   0xd   : > { %s165_s17 = scalar_lea.vmem %s609_s0, %s441_s14  ;;  %487 = vset.pattern.permute.xlu2 %v499_v9  ;;  %v211_v16 = vld [vmem:[%s611_s2 + $0x30] sm:$0xff]  ;;  %v212_v21 = vld [vmem:[%s611_s2 + $0x38] sm:$0xff]  ;;  %v445_v23 = vld [vmem:[%s610_s1] sm:$0xff] }
   0xe   : > { %v444_v0 = vld [vmem:[%s165_s17 + $0x8] sm:$0xff]  ;;  %v443_v1 = vld [vmem:[%s165_s17] sm:$0xff]  ;;  %v447_v25 = vld [vmem:[%s610_s1 + $0x10] sm:$0xff] }
   0xf   : > { %195 = vrot.lane.b32.xlu0 %v444_v0, %s496_s18  ;;  %191 = vrot.lane.b32.xlu1 %v444_v0, %s497_s19  ;;  %v446_v24 = vld [vmem:[%s610_s1 + $0x8] sm:$0xff]  ;;  %v448_v26 = vld [vmem:[%s610_s1 + $0x18] sm:$0xff] }
  0x10   : > { %187 = vrot.lane.b32.xlu2 %v444_v0, %s498_s20 }
  0x17   : > { %193 = vrot.lane.b32.xlu0 %v443_v1, %s496_s18  ;;  %189 = vrot.lane.b32.xlu1 %v443_v1, %s497_s19 }
  0x18   : > { %185 = vrot.lane.b32.xlu2 %v443_v1, %s498_s20  ;;  %s442_s20 = sshll.u32 %s614_s13, 5 }
  0x19   : > { %s588_s23 = scalar_lea.vmem %s612_s3, %s442_s20 }
  0x6a   : > { %v188_v2 = vpop.permute.xlu2 %187 }
  0x72   : > { %v186_v5 = vpop.permute.xlu2 %185 }
  0x81   : > { %v534_v3 = vpop.permute.xlu0 %195  ;;  %v192_v4 = vpop.permute.xlu1 %191 }
  0x82   : > { %287 = vrot.lane.b32.xlu0 %v534_v3, %s496_s18  ;;  %283 = vrot.lane.b32.xlu2 %v192_v4, %s496_s18 }
  0x89   : > { %v537_v6 = vpop.permute.xlu0 %193  ;;  %v190_v7 = vpop.permute.xlu1 %189 }
  0x8a   : > { %285 = vrot.lane.b32.xlu1 %v537_v6, %s496_s18  ;;  %281 = vrot.lane.b32.xlu0 %v190_v7, %s496_s18 }
  0x8b   : > { %277 = vrot.lane.b32.xlu2 %v186_v5, %s496_s18 }
  0x92   : > { %279 = vrot.lane.b32.xlu1 %v188_v2, %s496_s18  ;;  %215 = vperm.xlu0 %485, %v205_v12  }
  0x93   : > { %225 = vperm.xlu2 %487, %v207_v13  }
  0x9a   : > { %220 = vperm.xlu1 %486, %v206_v8   ;;  %240 = vperm.xlu0 %485, %v210_v17  }
  0x9b   : > { %235 = vperm.xlu2 %487, %v209_v18  }
  0xa2   : > { %230 = vperm.xlu1 %486, %v208_v11  }
  0xa3   : > { %250 = vperm.xlu2 %487, %v212_v21  }
  0xaa   : > { %245 = vperm.xlu1 %486, %v211_v16  }
  0xdc   : > { %v284_v15 = vpop.permute.xlu2 %283 }
  0xe5   : > { %v278_v22 = vpop.permute.xlu2 %277 }
  0xed   : > { %v226_v28 = vpop.permute.xlu2 %225 }
  0xf4   : > { %v288_v10 = vpop.permute.xlu0 %287 }
  0xf5   : > { %297 = vmatpush.bf16.msra.mxu0 %v288_v10  ;;  %449 = vmatpush.bf16.msra.mxu1 %v288_v10  ;;  %v236_v37 = vpop.permute.xlu2 %235 }
  0xf6   : > { %450 = vmatpush.bf16.msra.mxu2 %v288_v10  ;;  %451 = vmatpush.bf16.msra.mxu3 %v288_v10 }
  0xfc   : > { %v286_v14 = vpop.permute.xlu1 %285  ;;  %v282_v19 = vpop.permute.xlu0 %281 }
  0xfd   : > { %298 = vmatpush.bf16.msra.mxu0 %v286_v14  ;;  %452 = vmatpush.bf16.msra.mxu1 %v286_v14  ;;  %v251_v57 = vpop.permute.xlu2 %250 }
  0xfe   : > { %453 = vmatpush.bf16.msra.mxu2 %v286_v14  ;;  %454 = vmatpush.bf16.msra.mxu3 %v286_v14 }
 0x101   : > { %299 = vmatpush.bf16.msra.mxu0 %v284_v15  ;;  %455 = vmatpush.bf16.msra.mxu1 %v284_v15 }
 0x102   : > { %456 = vmatpush.bf16.msra.mxu2 %v284_v15  ;;  %457 = vmatpush.bf16.msra.mxu3 %v284_v15 }
 0x104   : > { %v280_v20 = vpop.permute.xlu1 %279  ;;  %v216_v30 = vpop.permute.xlu0 %215 }
 0x105   : > { %300 = vmatpush.bf16.msra.mxu0 %v282_v19  ;;  %458 = vmatpush.bf16.msra.mxu1 %v282_v19 }
 0x106   : > { %459 = vmatpush.bf16.msra.mxu2 %v282_v19  ;;  %460 = vmatpush.bf16.msra.mxu3 %v282_v19 }
 0x109   : > { %301 = vmatpush.bf16.msra.mxu0 %v280_v20  ;;  %461 = vmatpush.bf16.msra.mxu1 %v280_v20 }
 0x10a   : > { %462 = vmatpush.bf16.msra.mxu2 %v280_v20  ;;  %463 = vmatpush.bf16.msra.mxu3 %v280_v20 }
 0x10c   : > { %v221_v27 = vpop.permute.xlu1 %220  ;;  %v241_v58 = vpop.permute.xlu0 %240 }
 0x10d   : > { %302 = vmatpush.bf16.msra.mxu0 %v278_v22  ;;  %464 = vmatpush.bf16.msra.mxu1 %v278_v22 }
 0x10e   : > { %465 = vmatpush.bf16.msra.mxu2 %v278_v22  ;;  %466 = vmatpush.bf16.msra.mxu3 %v278_v22 }
 0x111   : > { %303 = vmatpush.bf16.msra.mxu0 %v534_v3  ;;  %467 = vmatpush.bf16.msra.mxu1 %v534_v3 }
 0x112   : > { %468 = vmatpush.bf16.msra.mxu2 %v534_v3  ;;  %469 = vmatpush.bf16.msra.mxu3 %v534_v3 }
 0x114   : > { %v231_v29 = vpop.permute.xlu1 %230 }
 0x115   : > { %304 = vmatpush.bf16.msra.mxu0 %v537_v6  ;;  %470 = vmatpush.bf16.msra.mxu1 %v537_v6 }
 0x116   : > { %471 = vmatpush.bf16.msra.mxu2 %v537_v6  ;;  %472 = vmatpush.bf16.msra.mxu3 %v537_v6 }
 0x118   : > { %305 = vmatmul.bf16.vlgmr.msra.gmra.mxu0 %v445_v23  ;;  %310 = vmatmul.bf16.vlgmr.msra.gmra.mxu1 %v446_v24 }
 0x119   : > { %315 = vmatmul.bf16.vlgmr.msra.gmra.mxu2 %v447_v25  ;;  %320 = vmatmul.bf16.vlgmr.msra.gmra.mxu3 %v448_v26 }
 0x11c   : > { %v246_v40 = vpop.permute.xlu1 %245 }
 0x195   : > { %v306_v31 = vpop.f32.mrf.mxu0  ;;  %v311_v32 = vpop.f32.mrf.mxu1 }
 0x196   : > { %v307_v33 = vadd.f32 %v306_v31, %v216_v30  ;;  %v312_v34 = vadd.f32 %v311_v32, %v226_v28 }
 0x198   : > { %v326_v35 = vmax.f32 %v307_v33, 0.0  ;;  %v328_v36 = vmax.f32 %v312_v34, 0.0 }
 0x19a   : > { %v334_v38 = vpack.c.bf16 %v326_v35, %v326_v35  ;;  %v336_v39 = vpack.c.bf16 %v328_v36, %v328_v36 }
 0x19c   : > { %343 = vst.msk [vmem:[%s588_s23] sm:$0xf] %vm342_vm0, %v334_v38  ;;  %v316_v41 = vpop.f32.mrf.mxu2  ;;  %v321_v42 = vpop.f32.mrf.mxu3 }
 0x19d   : > { %345 = vst.msk [vmem:[%s588_s23 + $0x8] sm:$0xf] %vm342_vm0, %v336_v39  ;;  %v317_v43 = vadd.f32 %v316_v41, %v236_v37  ;;  %v322_v44 = vadd.f32 %v321_v42, %v246_v40  ;;  %v308_v45 = vpop.f32.mrf.mxu0  ;;  %v313_v46 = vpop.f32.mrf.mxu1 }
 0x19e   : > { %v309_v47 = vadd.f32 %v308_v45, %v221_v27  ;;  %v314_v48 = vadd.f32 %v313_v46, %v231_v29 }
 0x19f   : > { %v330_v49 = vmax.f32 %v317_v43, 0.0  ;;  %v332_v50 = vmax.f32 %v322_v44, 0.0 }
 0x1a0   : > { %v327_v51 = vmax.f32 %v309_v47, 0.0  ;;  %v329_v52 = vmax.f32 %v314_v48, 0.0 }
 0x1a1   : > { %v338_v53 = vpack.c.bf16 %v330_v49, %v330_v49  ;;  %v340_v54 = vpack.c.bf16 %v332_v50, %v332_v50 }
 0x1a2   : > { %v335_v55 = vpack.c.bf16 %v327_v51, %v327_v51  ;;  %v337_v56 = vpack.c.bf16 %v329_v52, %v329_v52 }
 0x1a3   : > { %347 = vst.msk [vmem:[%s588_s23 + $0x10] sm:$0xf] %vm342_vm0, %v338_v53 }
 0x1a4   : > { %349 = vst.msk [vmem:[%s588_s23 + $0x18] sm:$0xf] %vm342_vm0, %v340_v54  ;;  %v318_v59 = vpop.f32.mrf.mxu2  ;;  %v323_v60 = vpop.f32.mrf.mxu3 }
 0x1a5   : > { %344 = vst.msk [vmem:[%s588_s23 + $0x4] sm:$0xf] %vm342_vm0, %v335_v55  ;;  %v319_v61 = vadd.f32 %v318_v59, %v241_v58  ;;  %v324_v62 = vadd.f32 %v323_v60, %v251_v57 }
 0x1a6   : > { %346 = vst.msk [vmem:[%s588_s23 + $0xc] sm:$0xf] %vm342_vm0, %v337_v56 }
 0x1a7   : > { %v331_v63 = vmax.f32 %v319_v61, 0.0  ;;  %v333_v0 = vmax.f32 %v324_v62, 0.0 }
 0x1a9   : > { %v339_v1 = vpack.c.bf16 %v331_v63, %v331_v63  ;;  %v341_v2 = vpack.c.bf16 %v333_v0, %v333_v0 }
 0x1ab   : > { %348 = vst.msk [vmem:[%s588_s23 + $0x14] sm:$0xf] %vm342_vm0, %v339_v1 }
 0x1ac   : > { %350 = vst.msk [vmem:[%s588_s23 + $0x1c] sm:$0xf] %vm342_vm0, %v341_v2 }
 0x1ad PF: > { %s13_s12 = sadd.s32 1, %s494_s12  }
 0x1ae   : > { %p10_p4 = scmp.ge.s32.totalorder %s13_s12, 4  }
 0x1b0   :  { %12 = sbr.rel (!%p10_p4) target bundleno = 1 (0x1), region = 62 }

// kernel: _lambda_.8
= control target key start
LH: loop header
LB: loop body
LE: loop exit
PB: predicated region body
PF: predicated region fallthrough
CT: control target
= control target key end

     0   :  { %s1127_s18 = smov 0   ;;  %s1480_s0 = inlined_call_operand.vmem [shape: bf16[2,16,342], index: 0, kind: input, shape index: {}]   ;;  %s1481_s1 = inlined_call_operand.vmem [shape: bf16[16,144], index: 1, kind: input, shape index: {}]   ;;  %s1482_s2 = inlined_call_operand.vmem [shape: f32[16,1], index: 2, kind: input, shape index: {}]   ;;  %s1483_s3 = inlined_call_operand.vmem [shape: bf16[16,144], index: 3, kind: input, shape index: {}]   ;;  %s1484_s4 = inlined_call_operand.vmem [shape: f32[16,1], index: 4, kind: input, shape index: {}]   ;;  %s1485_s5 = inlined_call_operand.vmem [shape: bf16[2,16,342], index: 5, kind: output, shape index: {}]  }
   0x1 LB: > { %s977_s19 = sadd.s32 4294967295, %s1085_s18   ;;  %p981_p0 = scmp.ge.s32.totalorder %s1085_s18, 1  ;;  %s1085_s18 = sphi %s1127_s18, %s15_s18  }
   0x2   : > { %p187_p1 = scmp.lt.s32.totalorder %s1085_s18, 3 }
   0x4   : > { %p188_p2 = pnand %p981_p0, %p187_p1 }
   0x5   : > { %p215_p3 = scmp.lt.s32.totalorder (!%p188_p2), %s977_s19, 1  ;;  %s1087_s24 = smov (!%p188_p2), 92  }
   0x6   : > { %191 = sbr.rel (%p188_p2) target bundleno = 924 (0x39c), region = 40  ;;  %s1088_s25 = smov (!%p188_p2), 91  }
   0x7   : > { %s1089_s26 = smov (!%p188_p2), 108   ;;  %s1090_s27 = smov (!%p188_p2), 109  }
   0x8   : > { %s1091_s28 = smov (!%p188_p2), 110   ;;  %s1092_s29 = smov (!%p188_p2), 126  }
   0x9   : > { %s1093_s30 = smov (!%p188_p2), 127   ;;  %s1094_s6 = smov (!%p188_p2), 90  }
   0xa   : > { %s1096_s9 = smov (!%p188_p2), 19  }
   0xb   : > { %s1499_s19 = smov (!%p215_p3, %s977_s19), 1  ;;  %vm435_vm0 = vcmask 744448   ;;  %vm423_vm1 = vcmask 752640   ;;  %vm411_vm2 = vcmask 883712   ;;  %vm399_vm3 = vcmask 891904   ;;  %v453_v39 = vld [vmem:[%s1482_s2] sm:$0xff] }
   0xc   : > { %s1042_s20 = smul.u32 24, %s1499_s19  ;;  %vm387_vm4 = vcmask 900096   ;;  %vm375_vm5 = vcmask 1031168   ;;  %v1095_v36 = vmov 0   ;;  %v454_v41 = vld [vmem:[%s1482_s2 + $0x8] sm:$0xff]  ;;  %vm363_vm6 = vcmask 1039360  }
   0xd   : > { %1061 = vset.pattern.permute.xlu0 %v1095_v36  ;;  %1062 = vset.pattern.permute.xlu1 %v1095_v36  ;;  %v998_v46 = vld [vmem:[%s1481_s1] sm:$0xf]  ;;  %v1036_v47 = vld [vmem:[%s1481_s1 + $0x4] sm:$0xf0]  ;;  %vm447_vm7 = vcmask 736256   ;;  %vm1486_vm8 = vcmask 130048   ;;  %v226_v58 = vlaneseq }
   0xe   : > { %s1143_s23 = scalar_lea.vmem %s1480_s0, %s1042_s20  ;;  %1063 = vset.pattern.permute.xlu2 %v1095_v36  ;;  %v999_v49 = vor.u32 %v1036_v47, %v998_v46  ;;  %v1035_v51 = vld [vmem:[%s1481_s1 + $0x4] sm:$0xf]  ;;  %v1000_v52 = vld [vmem:[%s1481_s1 + $0x8] sm:$0xf0]  ;;  %s1291_s8 = scalar_lea.vmem %s1485_s5, %s1042_s20 }
   0xf   : > { %v1032_v0 = vld [vmem:[%s1143_s23 + $0x4] sm:$0xf]  ;;  %v988_v1 = vld [vmem:[%s1143_s23 + $0xc] sm:$0xf0]  ;;  %v986_v3 = vld [vmem:[%s1143_s23] sm:$0xf]  ;;  %v1003_v57 = vor.u32 %v1035_v51, %v1000_v52 }
  0x10   : > { %v1147_v2 = vor.u32 %v1032_v0, %v988_v1  ;;  %v1033_v4 = vld [vmem:[%s1143_s23 + $0x8] sm:$0xf0]  ;;  %v994_v6 = vld [vmem:[%s1143_s23 + $0x8] sm:$0xf]  ;;  %v1034_v7 = vld [vmem:[%s1143_s23 + $0x10] sm:$0xf0] }
  0x11   : > { %v1151_v5 = vor.u32 %v1033_v4, %v986_v3  ;;  %v1161_v8 = vor.u32 %v1034_v7, %v994_v6  ;;  %v227_v59 = vand.u32 127, %v226_v58 }
  0x12   : > { %419 = vrot.lane.b32.xlu1 %v1147_v2, %s1087_s24  ;;  %431 = vrot.lane.b32.xlu0 %v1147_v2, %s1088_s25 }
  0x13   : > { %429 = vrot.lane.b32.xlu2 %v1151_v5, %s1088_s25  ;;  %v228_v60 = vadd.s32 128, %v227_v59  ;;  %v233_v62 = vand.u32 65535, %v227_v59  ;;  %v234_v63 = vshrl.u32 %v227_v59, 16 }
  0x15   : > { %v262_v61 = vand.u32 65535, %v228_v60  ;;  %v237_v0 = vmul.u32 58254, %v233_v62  ;;  %v263_v1 = vshrl.u32 %v228_v60, 16  ;;  %v236_v3 = vmul.u32 14564, %v233_v62 }
  0x16   : > { %v238_v4 = vmul.u32 14564, %v234_v63 }
  0x17   : > { %v265_v6 = vmul.u32 14564, %v262_v61  ;;  %v267_v7 = vmul.u32 14564, %v263_v1 }
  0x1a   : > { %421 = vrot.lane.b32.xlu1 %v1161_v8, %s1087_s24  ;;  %433 = vrot.lane.b32.xlu0 %v1161_v8, %s1088_s25 }
  0x1b   : > { %407 = vrot.lane.b32.xlu2 %v1147_v2, %s1089_s26 }
  0x22   : > { %417 = vrot.lane.b32.xlu1 %v1151_v5, %s1087_s24  ;;  %409 = vrot.lane.b32.xlu0 %v1161_v8, %s1089_s26 }
  0x23   : > { %395 = vrot.lane.b32.xlu2 %v1147_v2, %s1090_s27 }
  0x2a   : > { %405 = vrot.lane.b32.xlu1 %v1151_v5, %s1089_s26  ;;  %397 = vrot.lane.b32.xlu0 %v1161_v8, %s1090_s27 }
  0x2b   : > { %383 = vrot.lane.b32.xlu2 %v1147_v2, %s1091_s28 }
  0x32   : > { %393 = vrot.lane.b32.xlu1 %v1151_v5, %s1090_s27  ;;  %385 = vrot.lane.b32.xlu0 %v1161_v8, %s1091_s28 }
  0x33   : > { %371 = vrot.lane.b32.xlu2 %v1147_v2, %s1092_s29 }
  0x3a   : > { %381 = vrot.lane.b32.xlu1 %v1151_v5, %s1091_s28  ;;  %373 = vrot.lane.b32.xlu0 %v1161_v8, %s1092_s29 }
  0x3b   : > { %359 = vrot.lane.b32.xlu2 %v1147_v2, %s1093_s30 }
  0x42   : > { %369 = vrot.lane.b32.xlu1 %v1151_v5, %s1092_s29  ;;  %361 = vrot.lane.b32.xlu0 %v1161_v8, %s1093_s30 }
  0x43   : > { %357 = vrot.lane.b32.xlu2 %v1151_v5, %s1093_s30 }
  0x4a   : > { %445 = vrot.lane.b32.xlu1 %v1161_v8, %s1094_s6  ;;  %443 = vrot.lane.b32.xlu0 %v1147_v2, %s1094_s6 }
  0x4b   : > { %441 = vrot.lane.b32.xlu2 %v1151_v5, %s1094_s6 }
  0x52   : > { %457 = vperm.xlu0 %1061, %v453_v39   ;;  %462 = vperm.xlu1 %1062, %v454_v41  }
  0x6d   : > { %v430_v9 = vpop.permute.xlu2 %429 }
  0x75   : > { %v408_v10 = vpop.permute.xlu2 %407 }
  0x7d   : > { %v396_v14 = vpop.permute.xlu2 %395 }
  0x84   : > { %v420_v11 = vpop.permute.xlu1 %419  ;;  %v432_v12 = vpop.permute.xlu0 %431 }
  0x85   : > { %v436_v13 = vsel %vm435_vm0, %v430_v9, %v432_v12  ;;  %v384_v19 = vpop.permute.xlu2 %383 }
  0x86   : > { %478 = vmatpush.bf16.msra.mxu0 %v436_v13  ;;  %v239_v13 = vmul.u32 58254, %v234_v63 }
  0x8c   : > { %v1206_v15 = vpop.permute.xlu1 %421  ;;  %v1208_v16 = vpop.permute.xlu0 %433 }
  0x8d   : > { %v437_v17 = vsel %vm435_vm0, %v432_v12, %v1208_v16  ;;  %v425_v18 = vsel %vm423_vm1, %v420_v11, %v1206_v15  ;;  %v372_v28 = vpop.permute.xlu2 %371 }
  0x8e   : > { %506 = vmatpush.bf16.msra.mxu2 %v437_v17 }
  0x92   : > { %507 = vmatpush.bf16.msra.mxu2 %v425_v18 }
  0x94   : > { %v418_v20 = vpop.permute.xlu1 %417  ;;  %v1214_v21 = vpop.permute.xlu0 %409 }
  0x95   : > { %v424_v22 = vsel %vm423_vm1, %v418_v20, %v420_v11  ;;  %v413_v23 = vsel %vm411_vm2, %v408_v10, %v1214_v21  ;;  %v360_v33 = vpop.permute.xlu2 %359 }
  0x96   : > { %479 = vmatpush.bf16.msra.mxu0 %v424_v22  ;;  %508 = vmatpush.bf16.msra.mxu2 %v413_v23 }
  0x9c   : > { %v406_v24 = vpop.permute.xlu1 %405  ;;  %v1219_v25 = vpop.permute.xlu0 %397 }
  0x9d   : > { %v412_v26 = vsel %vm411_vm2, %v406_v24, %v408_v10  ;;  %v401_v27 = vsel %vm399_vm3, %v396_v14, %v1219_v25  ;;  %v358_v40 = vpop.permute.xlu2 %357  ;;  %v242_v10 = vshll.u32 %v238_v4, 16 }
  0x9e   : > { %480 = vmatpush.bf16.msra.mxu0 %v412_v26  ;;  %509 = vmatpush.bf16.msra.mxu2 %v401_v27  ;;  %v364_v48 = vsel %vm363_vm6, %v358_v40, %v360_v33  ;;  %v243_v26 = vshrl.u32 %v238_v4, 16 }
  0xa4   : > { %v394_v29 = vpop.permute.xlu1 %393  ;;  %v386_v30 = vpop.permute.xlu0 %385 }
  0xa5   : > { %v400_v31 = vsel %vm399_vm3, %v394_v29, %v396_v14  ;;  %v389_v32 = vsel %vm387_vm4, %v384_v19, %v386_v30  ;;  %v442_v50 = vpop.permute.xlu2 %441  ;;  %v268_v14 = vmul.u32 58254, %v263_v1 }
  0xa6   : > { %481 = vmatpush.bf16.msra.mxu0 %v400_v31  ;;  %510 = vmatpush.bf16.msra.mxu2 %v389_v32 }
  0xac   : > { %v382_v34 = vpop.permute.xlu1 %381  ;;  %v374_v35 = vpop.permute.xlu0 %373 }
  0xad   : > { %v388_v37 = vsel %vm387_vm4, %v382_v34, %v384_v19  ;;  %v377_v38 = vsel %vm375_vm5, %v372_v28, %v374_v35 }
  0xae   : > { %482 = vmatpush.bf16.msra.mxu0 %v388_v37  ;;  %511 = vmatpush.bf16.msra.mxu2 %v377_v38 }
  0xb4   : > { %v370_v42 = vpop.permute.xlu1 %369  ;;  %v362_v43 = vpop.permute.xlu0 %361 }
  0xb5   : > { %v376_v44 = vsel %vm375_vm5, %v370_v42, %v372_v28  ;;  %v365_v45 = vsel %vm363_vm6, %v360_v33, %v362_v43  ;;  %v272_v28 = vshrl.u32 %v267_v7, 16 }
  0xb6   : > { %483 = vmatpush.bf16.msra.mxu0 %v376_v44  ;;  %512 = vmatpush.bf16.msra.mxu2 %v365_v45 }
  0xba   : > { %484 = vmatpush.bf16.msra.mxu0 %v364_v48  ;;  %513 = vmatpush.bf16.msra.mxu2 %v1147_v2  ;;  %v266_v2 = vmul.u32 58254, %v262_v61 }
  0xbc   : > { %v446_v53 = vpop.permute.xlu1 %445  ;;  %v444_v54 = vpop.permute.xlu0 %443  ;;  %v269_v9 = vshll.u32 %v266_v2, 16  ;;  %v270_v23 = vshrl.u32 %v266_v2, 16 }
  0xbd   : > { %514 = vmatmul.bf16.vlgmr.msra.gmra.mxu2 %v999_v49  ;;  %v448_v55 = vsel %vm447_vm7, %v442_v50, %v444_v54  ;;  %v449_v56 = vsel %vm447_vm7, %v444_v54, %v446_v53 }
  0xbe   : > { %485 = vmatpush.bf16.msra.mxu0 %v1151_v5  ;;  %499 = vmatpush.bf16.msra.mxu1 %v448_v55  ;;  %v240_v5 = vshll.u32 %v237_v0, 16  ;;  %vm273_vm10 = vc.u32 %v265_v6, %v269_v9  ;;  %v275_v12 = vadd.s32 %v269_v9, %v265_v6 }
  0xbf   : > { %527 = vmatpush.bf16.msra.mxu3 %v449_v56 }
  0xc0   : > { %vm244_vm9 = vc.u32 %v236_v3, %v240_v5  ;;  %v246_v11 = vadd.s32 %v240_v5, %v236_v3 }
  0xc1   : > { %486 = vmatmul.bf16.vlgmr.msra.gmra.mxu0 %v999_v49  ;;  %1004 = vmatmul.msk.bf16.vlgmr.msra.gmra.mxu1 %vm1486_vm8, %v1003_v57 }
  0xc2   : > { %534 = vmatpush.bf16.msrb.mxu1 %v1208_v16  ;;  %1005 = vmatmul.msk.bf16.vlgmr.msra.gmra.mxu3 %vm1486_vm8, %v1003_v57  ;;  %v274_v16 = vsel %vm273_vm10, 1, %v1095_v36  ;;  %vm248_vm11 = vc.u32 %v246_v11, %v242_v10 }
  0xc3   : > { %555 = vmatpush.bf16.msrb.mxu3 %v446_v53  ;;  %v276_v18 = vadd.s32 %v274_v16, %v268_v14  ;;  %v249_v19 = vsel %vm248_vm11, 1, %v1095_v36 }
  0xc4   : > { %v458_v51 = vpop.permute.xlu0 %457  ;;  %v463_v3 = vpop.permute.xlu1 %462 }
  0xc6   : > { %535 = vmatpush.bf16.msrb.mxu1 %v1206_v15  ;;  %v245_v15 = vsel %vm244_vm9, 1, %v1095_v36 }
  0xc7   : > { %v247_v17 = vadd.s32 %v245_v15, %v239_v13 }
  0xc9   : > { %v251_v22 = vadd.s32 %v249_v19, %v247_v17 }
  0xca   : > { %536 = vmatpush.bf16.msrb.mxu1 %v1214_v21  ;;  %v241_v21 = vshrl.u32 %v237_v0, 16 }
  0xcc   : > { %v252_v27 = vadd.s32 %v251_v22, %v241_v21 }
  0xce   : > { %537 = vmatpush.bf16.msrb.mxu1 %v1219_v25  ;;  %v1268_v25 = vadd.s32 256, %v227_v59  ;;  %v253_v31 = vadd.s32 %v252_v27, %v243_v26 }
  0xd0   : > { %v292_v32 = vshrl.u32 %v1268_v25, 16 }
  0xd2   : > { %538 = vmatpush.bf16.msrb.mxu1 %v386_v30  ;;  %1006 = vmatmul.msk.bf16.vlgmr.msrb.gmra.mxu3 %vm1486_vm8, %v1003_v57  ;;  %v291_v30 = vand.u32 65535, %v1268_v25  ;;  %v296_v38 = vmul.u32 14564, %v292_v32  ;;  %v297_v45 = vmul.u32 58254, %v292_v32 }
  0xd4   : > { %v295_v33 = vmul.u32 58254, %v291_v30  ;;  %v294_v37 = vmul.u32 14564, %v291_v30  ;;  %v300_v42 = vshll.u32 %v296_v38, 16  ;;  %v301_v63 = vshrl.u32 %v296_v38, 16 }
  0xd6   : > { %539 = vmatpush.bf16.msrb.mxu1 %v374_v35  ;;  %v254_v35 = vshrl.u32 %v253_v31, 4  ;;  %v298_v39 = vshll.u32 %v295_v33, 16  ;;  %v299_v54 = vshrl.u32 %v295_v33, 16 }
  0xd8   : > { %v255_v41 = vmul.u32 18, %v254_v35  ;;  %vm302_vm13 = vc.u32 %v294_v37, %v298_v39 }
  0xd9   : > { %v303_v46 = vsel %vm302_vm13, 1, %v1095_v36 }
  0xda   : > { %540 = vmatpush.bf16.msrb.mxu1 %v362_v43  ;;  %v304_v43 = vadd.s32 %v298_v39, %v294_v37  ;;  %v256_v47 = vsub.s32 %v227_v59, %v255_v41 }
  0xdc   : > { %vm306_vm14 = vc.u32 %v304_v43, %v300_v42  ;;  %vm317_vm15 = vcmp.ne.s32.totalorder %v256_v47, 0  ;;  %vm320_vm9 = vcmp.lt.s32.totalorder %v256_v47, 0  ;;  %v326_v53 = vadd.s32 18, %v256_v47 }
  0xdd   : > { %v307_v50 = vsel %vm306_vm14, 1, %v1095_v36 }
  0xde   : > { %541 = vmatpush.bf16.msrb.mxu1 %v1161_v8  ;;  %v271_v8 = vshll.u32 %v267_v7, 16 }
  0xe0   : > { %vm277_vm12 = vc.u32 %v275_v12, %v271_v8 }
  0xe1   : > { %542 = vmatmul.bf16.vlgmr.msrb.gmra.mxu1 %v999_v49  ;;  %v278_v20 = vsel %vm277_vm12, 1, %v1095_v36  ;;  %v305_v49 = vadd.s32 %v303_v46, %v297_v45  ;;  %vm323_vm12 = vmand %vm320_vm9, %vm317_vm15  ;;  %vm584_vm9 = vcmask 150528  }
  0xe2   : > { %v280_v24 = vadd.s32 %v278_v20, %v276_v18  ;;  %v329_v62 = vsel %vm323_vm12, %v326_v53, %v256_v47  ;;  %585 = vst.msk [vmem:[%s1291_s8] sm:$0xf] %vm584_vm9, %v1095_v36 }
  0xe3   : > { %v309_v55 = vadd.s32 %v307_v50, %v305_v49  ;;  %vm1274_vm14 = vcmp.lt.s32.totalorder %v329_v62, 16  ;;  %586 = vst.msk [vmem:[%s1291_s8 + $0xc] sm:$0xf] %vm584_vm9, %v1095_v36  ;;  %vm587_vm9 = vcmask 699800  }
  0xe4   : > { %v281_v29 = vadd.s32 %v280_v24, %v270_v23  ;;  %588 = vst.msk [vmem:[%s1291_s8 + $0x8] sm:$0xf] %vm587_vm9, %v1095_v36 }
  0xe5   : > { %v310_v0 = vadd.s32 %v309_v55, %v299_v54  ;;  %589 = vst.msk [vmem:[%s1291_s8 + $0x14] sm:$0xf] %vm587_vm9, %v1095_v36  ;;  %vm617_vm9 = vcmask 412672  }
  0xe6   : > { %v282_v34 = vadd.s32 %v281_v29, %v272_v28 }
  0xe7   : > { %v311_v9 = vadd.s32 %v310_v0, %v301_v63 }
  0xe8   : > { %v283_v40 = vshrl.u32 %v282_v34, 4 }
  0xe9   : > { %v312_v17 = vshrl.u32 %v311_v9, 4 }
  0xea   : > { %v284_v44 = vmul.u32 18, %v283_v40 }
  0xeb   : > { %v313_v23 = vmul.u32 18, %v312_v17 }
  0xec   : > { %v285_v48 = vsub.s32 %v228_v60, %v284_v44 }
  0xed   : > { %v314_v28 = vsub.s32 %v1268_v25, %v313_v23 }
  0xee   : > { %vm318_vm10 = vcmp.ne.s32.totalorder %v285_v48, 0  ;;  %vm321_vm11 = vcmp.lt.s32.totalorder %v285_v48, 0  ;;  %v327_v61 = vadd.s32 18, %v285_v48 }
  0xef   : > { %vm324_vm13 = vmand %vm321_vm11, %vm318_vm10  ;;  %vm319_vm10 = vcmp.ne.s32.totalorder %v314_v28, 0  ;;  %vm322_vm11 = vcmp.lt.s32.totalorder %v314_v28, 0  ;;  %v328_v30 = vadd.s32 18, %v314_v28 }
  0xf0   : > { %v330_v2 = vsel %vm324_vm13, %v327_v61, %v285_v48  ;;  %vm325_vm12 = vmand %vm322_vm11, %vm319_vm10  ;;  %vm613_vm10 = vcmask 1043608   ;;  %vm614_vm11 = vcmask 1047556  }
  0xf1   : > { %vm1278_vm15 = vcmp.lt.s32.totalorder %v330_v2, 16  ;;  %v331_v34 = vsel %vm325_vm12, %v328_v30, %v314_v28  ;;  %vm604_vm12 = vcmask 154624   ;;  %vm1318_vm8 = vmor %vm614_vm11, %vm613_vm10  ;;  %v731_v2 = vld [vmem:[%s1484_s4] sm:$0xff] }
  0xf2   : > { %vm1304_vm13 = vcmp.lt.s32.totalorder %v331_v34, 16  ;;  %v1041_v34 = vld [vmem:[%s1483_s3 + $0x4] sm:$0xf0] }
 0x13e   : > { %v487_v52 = vpop.f32.mrf.mxu0  ;;  %v501_v56 = vpop.f32.mrf.mxu1 }
 0x13f   : > { %v488_v57 = vadd.f32 %v487_v52, %v458_v51 }
 0x140   : > { %v515_v58 = vpop.f32.mrf.mxu2 }
 0x141   : > { %v502_v59 = vadd.f32 %v501_v56, %v488_v57  ;;  %v516_v60 = vadd.f32 %v515_v58, %v458_v51 }
 0x143   : > { %v562_v1 = vmax.f32 %v502_v59, 0.0 }
 0x145   : > { %v529_v4 = vpop.f32.mrf.mxu3  ;;  %v574_v12 = vsel %vm1274_vm14, %v562_v1, 0.0 }
 0x146   : > { %v530_v6 = vadd.f32 %v529_v4, %v516_v60  ;;  %v489_v7 = vpop.f32.mrf.mxu0  ;;  %v503_v13 = vpop.f32.mrf.mxu1 }
 0x147   : > { %v490_v11 = vadd.f32 %v489_v7, %v463_v3 }
 0x148   : > { %v563_v8 = vmax.f32 %v530_v6, 0.0  ;;  %v517_v14 = vpop.f32.mrf.mxu2 }
 0x149   : > { %v504_v16 = vadd.f32 %v503_v13, %v490_v11  ;;  %v518_v19 = vadd.f32 %v517_v14, %v463_v3 }
 0x14a   : > { %v575_v15 = vsel %vm1278_vm15, %v563_v8, 0.0 }
 0x14b   : > { %v580_v18 = vpack.c.bf16 %v575_v15, %v574_v12  ;;  %v565_v21 = vmax.f32 %v504_v16, 0.0 }
 0x14d   : > { %v531_v20 = vpop.f32.mrf.mxu3  ;;  %594 = vrot.lane.b32.xlu2 %v580_v18, %s1096_s9  ;;  %v577_v26 = vsel %vm1274_vm14, %v565_v21, 0.0 }
 0x14e   : > { %v532_v22 = vadd.f32 %v531_v20, %v518_v19 }
 0x150   : > { %v566_v24 = vmax.f32 %v532_v22, 0.0 }
 0x152   : > { %v578_v27 = vsel %vm1278_vm15, %v566_v24, 0.0 }
 0x153   : > { %v582_v29 = vpack.c.bf16 %v578_v27, %v577_v26 }
 0x155   : > { %598 = vrot.lane.b32.xlu1 %v582_v29, %s1096_s9  ;;  %v557_v31 = vpop.f32.mrf.mxu3 }
 0x15d   : > { %v559_v42 = vpop.f32.mrf.mxu3 }
 0x15e   : > { %v543_v32 = vpop.f32.mrf.mxu1 }
 0x15f   : > { %v544_v33 = vadd.f32 %v543_v32, %v458_v51 }
 0x161   : > { %v558_v35 = vadd.f32 %v557_v31, %v544_v33  ;;  %v1021_v33 = vld [vmem:[%s1483_s3] sm:$0xf] }
 0x163   : > { %v564_v38 = vmax.f32 %v558_v35, 0.0  ;;  %v1022_v35 = vor.u32 %v1041_v34, %v1021_v33 }
 0x165   : > { %v576_v25 = vsel %vm1304_vm13, %v564_v38, 0.0  ;;  %v335_v38 = vld [vmem:[%s1143_s23] sm:$0xff] }
 0x166   : > { %v545_v39 = vpop.f32.mrf.mxu1  ;;  %v581_v40 = vpack.c.bf16 %v576_v25, %v576_v25  ;;  %v336_v25 = vld [vmem:[%s1143_s23 + $0x8] sm:$0xf] }
 0x167   : > { %v546_v41 = vadd.f32 %v545_v39, %v463_v3  ;;  %v337_v39 = vld [vmem:[%s1143_s23 + $0xc] sm:$0xff] }
 0x168   : > { %596 = vrot.lane.b32.xlu2 %v581_v40, %s1096_s9 }
 0x169   : > { %v560_v43 = vadd.f32 %v559_v42, %v546_v41  ;;  %v845_v42 = vunpack.c.l.bf16 %v335_v38 }
 0x16b   : > { %v567_v44 = vmax.f32 %v560_v43, 0.0  ;;  %v846_v43 = vunpack.c.h.bf16 %v335_v38 }
 0x16d   : > { %v579_v45 = vsel %vm1304_vm13, %v567_v44, 0.0  ;;  %v847_v44 = vunpack.c.l.bf16 %v336_v25 }
 0x16e   : > { %v583_v46 = vpack.c.bf16 %v579_v45, %v579_v45  ;;  %v848_v45 = vunpack.c.l.bf16 %v337_v39 }
 0x170   : > { %600 = vrot.lane.b32.xlu0 %v583_v46, %s1096_s9  ;;  %v732_v46 = vld [vmem:[%s1484_s4 + $0x8] sm:$0xff] }
 0x1a7   : > { %v595_v47 = vpop.permute.xlu2 %594 }
 0x1a8   : > { %v602_v49 = vrot.slane %v595_v47, 4 }
 0x1aa   : > { %v605_v50 = vsel %vm604_vm12, %v602_v49, %v595_v47  ;;  %v338_v47 = vld [vmem:[%s1143_s23 + $0x14] sm:$0xf] }
 0x1ab   : > { %616 = vst.msk [vmem:[%s1291_s8] sm:$0xff] %vm1318_vm8, %v605_v50  ;;  %v849_v50 = vunpack.c.h.bf16 %v337_v39 }
 0x1b2   : > { %v1037_v55 = vld [vmem:[%s1291_s8 + $0x4] sm:$0xf]  ;;  %v1009_v56 = vld [vmem:[%s1291_s8] sm:$0xf] }
 0x1c2   : > { %v597_v36 = vpop.permute.xlu2 %596 }
 0x1c3   : > { %v606_v51 = vsel %vm604_vm12, %v602_v49, %v597_v36  ;;  %v850_v36 = vunpack.c.l.bf16 %v338_v47 }
 0x1c4   : > { %618 = vst.msk [vmem:[%s1291_s8 + $0x8] sm:$0xf] %vm617_vm9, %v606_v51 }
 0x1c7   : > { %v599_v52 = vpop.permute.xlu1 %598 }
 0x1c8   : > { %v603_v53 = vrot.slane %v599_v52, 4 }
 0x1ca   : > { %v607_v54 = vsel %vm604_vm12, %v603_v53, %v599_v52  ;;  %v1064_v52 = vpack.i.bf16 %v846_v43, %v845_v42 }
 0x1cb   : > { %619 = vst.msk [vmem:[%s1291_s8 + $0xc] sm:$0xff] %vm1318_vm8, %v607_v54  ;;  %v1017_v63 = vld [vmem:[%s1291_s8 + $0x8] sm:$0xf] }
 0x1d2   : > { %v1011_v57 = vld [vmem:[%s1291_s8 + $0xc] sm:$0xf0]  ;;  %v1038_v58 = vld [vmem:[%s1291_s8 + $0x8] sm:$0xf0] }
 0x1d3   : > { %v1337_v61 = vor.u32 %v1038_v58, %v1009_v56  ;;  %v1339_v59 = vor.u32 %v1037_v55, %v1011_v57  ;;  %v1074_v55 = vpack.i.bf16 %v850_v36, %v849_v50  ;;  %v1040_v57 = vld [vmem:[%s1483_s3 + $0x4] sm:$0xf]  ;;  %v1023_v58 = vld [vmem:[%s1483_s3 + $0x8] sm:$0xf0] }
 0x1d5   : > { %696 = vrot.lane.b32.xlu0 %v1337_v61, %s1087_s24  ;;  %707 = vrot.lane.b32.xlu1 %v1337_v61, %s1088_s25 }
 0x1d6   : > { %709 = vrot.lane.b32.xlu2 %v1339_v59, %s1088_s25 }
 0x1dd   : > { %687 = vrot.lane.b32.xlu0 %v1339_v59, %s1089_s26  ;;  %698 = vrot.lane.b32.xlu1 %v1339_v59, %s1087_s24 }
 0x1de   : > { %685 = vrot.lane.b32.xlu2 %v1337_v61, %s1089_s26 }
 0x1e2   : > { %v601_v60 = vpop.permute.xlu0 %600 }
 0x1e3   : > { %v608_v62 = vsel %vm604_vm12, %v603_v53, %v601_v60  ;;  %v1069_v53 = vpack.i.bf16 %v848_v45, %v847_v44 }
 0x1e4   : > { %620 = vst.msk [vmem:[%s1291_s8 + $0x14] sm:$0xf] %vm617_vm9, %v608_v62 }
 0x1e5   : > { %674 = vrot.lane.b32.xlu1 %v1337_v61, %s1090_s27 }
 0x1e6   : > { %676 = vrot.lane.b32.xlu2 %v1339_v59, %s1090_s27 }
 0x1eb   : > { %v1039_v0 = vld [vmem:[%s1291_s8 + $0x10] sm:$0xf0] }
 0x1ec   : > { %v1362_v1 = vor.u32 %v1039_v0, %v1017_v63  ;;  %v1026_v0 = vor.u32 %v1040_v57, %v1023_v58 }
 0x1ed   : > { %663 = vrot.lane.b32.xlu1 %v1337_v61, %s1091_s28 }
 0x1ee   : > { %711 = vrot.lane.b32.xlu0 %v1362_v1, %s1088_s25  ;;  %665 = vrot.lane.b32.xlu2 %v1339_v59, %s1091_s28 }
 0x1f5   : > { %652 = vrot.lane.b32.xlu1 %v1337_v61, %s1092_s29 }
 0x1f6   : > { %700 = vrot.lane.b32.xlu0 %v1362_v1, %s1087_s24  ;;  %654 = vrot.lane.b32.xlu2 %v1339_v59, %s1092_s29 }
 0x1fd   : > { %641 = vrot.lane.b32.xlu1 %v1337_v61, %s1093_s30 }
 0x1fe   : > { %689 = vrot.lane.b32.xlu0 %v1362_v1, %s1089_s26  ;;  %643 = vrot.lane.b32.xlu2 %v1339_v59, %s1093_s30 }
 0x205   : > { %667 = vrot.lane.b32.xlu1 %v1362_v1, %s1091_s28 }
 0x206   : > { %678 = vrot.lane.b32.xlu0 %v1362_v1, %s1090_s27  ;;  %656 = vrot.lane.b32.xlu2 %v1362_v1, %s1092_s29 }
 0x20d   : > { %722 = vrot.lane.b32.xlu1 %v1362_v1, %s1094_s6 }
 0x20e   : > { %720 = vrot.lane.b32.xlu0 %v1339_v59, %s1094_s6  ;;  %645 = vrot.lane.b32.xlu2 %v1362_v1, %s1093_s30 }
 0x215   : > { %735 = vperm.xlu1 %1062, %v731_v2  }
 0x216   : > { %718 = vrot.lane.b32.xlu0 %v1337_v61, %s1094_s6  ;;  %740 = vperm.xlu2 %1063, %v732_v46  }
 0x21d   : > { %1070 = vrot.lane.b32.xlu1 %v1069_v53, %s1090_s27 }
 0x21e   : > { %1065 = vrot.lane.b32.xlu0 %v1064_v52, %s1090_s27  ;;  %1075 = vrot.lane.b32.xlu2 %v1074_v55, %s1090_s27 }
 0x230   : > { %v710_v3 = vpop.permute.xlu2 %709 }
 0x238   : > { %v686_v4 = vpop.permute.xlu2 %685 }
 0x240   : > { %v677_v11 = vpop.permute.xlu2 %676 }
 0x247   : > { %v708_v6 = vpop.permute.xlu1 %707  ;;  %v697_v7 = vpop.permute.xlu0 %696 }
 0x248   : > { %v713_v9 = vsel %vm435_vm0, %v708_v6, %v710_v3  ;;  %v666_v15 = vpop.permute.xlu2 %665 }
 0x249   : > { %755 = vmatpush.bf16.msra.mxu3 %v713_v9 }
 0x24f   : > { %v699_v8 = vpop.permute.xlu1 %698  ;;  %v688_v13 = vpop.permute.xlu0 %687 }
 0x250   : > { %v702_v12 = vsel %vm423_vm1, %v697_v7, %v699_v8  ;;  %v691_v14 = vsel %vm411_vm2, %v686_v4, %v688_v13  ;;  %v655_v22 = vpop.permute.xlu2 %654 }
 0x251   : > { %756 = vmatpush.bf16.msra.mxu3 %v702_v12 }
 0x255   : > { %757 = vmatpush.bf16.msra.mxu3 %v691_v14 }
 0x257   : > { %v675_v16 = vpop.permute.xlu1 %674 }
 0x258   : > { %v680_v17 = vsel %vm399_vm3, %v675_v16, %v677_v11  ;;  %v644_v28 = vpop.permute.xlu2 %643 }
 0x259   : > { %758 = vmatpush.bf16.msra.mxu3 %v680_v17 }
 0x25f   : > { %v664_v20 = vpop.permute.xlu1 %663 }
 0x260   : > { %v712_v18 = vpop.permute.xlu0 %711  ;;  %v669_v21 = vsel %vm387_vm4, %v664_v20, %v666_v15  ;;  %v657_v40 = vpop.permute.xlu2 %656 }
 0x261   : > { %811 = vmatpush.bf16.msrb.mxu0 %v712_v18  ;;  %v714_v19 = vsel %vm435_vm0, %v710_v3, %v712_v18  ;;  %759 = vmatpush.bf16.msra.mxu3 %v669_v21  ;;  %vm1495_vm0 = vcmask 130048  }
 0x262   : > { %783 = vmatpush.bf16.msrb.mxu2 %v714_v19 }
 0x267   : > { %v653_v26 = vpop.permute.xlu1 %652 }
 0x268   : > { %v701_v23 = vpop.permute.xlu0 %700  ;;  %v658_v27 = vsel %vm375_vm5, %v653_v26, %v655_v22  ;;  %v646_v60 = vpop.permute.xlu2 %645 }
 0x269   : > { %812 = vmatpush.bf16.msrb.mxu0 %v701_v23  ;;  %v703_v24 = vsel %vm423_vm1, %v699_v8, %v701_v23  ;;  %760 = vmatpush.bf16.msra.mxu3 %v658_v27  ;;  %v648_v2 = vsel %vm363_vm6, %v644_v28, %v646_v60  ;;  %vm1496_vm1 = vmmov %vm1495_vm0 }
 0x26a   : > { %784 = vmatpush.bf16.msrb.mxu2 %v703_v24 }
 0x26f   : > { %v642_v31 = vpop.permute.xlu1 %641 }
 0x270   : > { %v690_v29 = vpop.permute.xlu0 %689  ;;  %v647_v32 = vsel %vm363_vm6, %v642_v31, %v644_v28 }
 0x271   : > { %813 = vmatpush.bf16.msrb.mxu0 %v690_v29  ;;  %v692_v30 = vsel %vm411_vm2, %v688_v13, %v690_v29  ;;  %761 = vmatpush.bf16.msra.mxu3 %v647_v32  ;;  %vm1497_vm2 = vmmov %vm1495_vm0  ;;  %v741_v13 = vpop.permute.xlu2 %740 }
 0x272   : > { %785 = vmatpush.bf16.msrb.mxu2 %v692_v30 }
 0x275   : > { %762 = vmatpush.bf16.msra.mxu3 %v1337_v61  ;;  %v659_v61 = vsel %vm375_vm5, %v655_v22, %v657_v40 }
 0x277   : > { %v668_v51 = vpop.permute.xlu1 %667 }
 0x278   : > { %v679_v41 = vpop.permute.xlu0 %678  ;;  %763 = vmatmul.bf16.vlgmr.msra.gmra.mxu3 %v1022_v35  ;;  %v670_v54 = vsel %vm387_vm4, %v666_v15, %v668_v51 }
 0x279   : > { %814 = vmatpush.bf16.msrb.mxu0 %v679_v41  ;;  %v681_v49 = vsel %vm399_vm3, %v677_v11, %v679_v41  ;;  %v1076_v31 = vpop.permute.xlu2 %1075 }
 0x27a   : > { %786 = vmatpush.bf16.msrb.mxu2 %v681_v49  ;;  %v1078_v41 = vunpack.i.h.bf16 %v1076_v31  ;;  %v1077_v42 = vunpack.i.l.bf16 %v1076_v31 }
 0x27d   : > { %815 = vmatpush.bf16.msrb.mxu0 %v668_v51 }
 0x27e   : > { %787 = vmatpush.bf16.msrb.mxu2 %v670_v54  ;;  %v873_v54 = vsel %vm399_vm3, %v1077_v42, %v1078_v41 }
 0x27f   : > { %v723_v62 = vpop.permute.xlu1 %722 }
 0x280   : > { %v721_v56 = vpop.permute.xlu0 %720 }
 0x281   : > { %816 = vmatpush.bf16.msrb.mxu0 %v657_v40  ;;  %v725_v63 = vsel %vm447_vm7, %v721_v56, %v723_v62 }
 0x282   : > { %788 = vmatpush.bf16.msrb.mxu2 %v659_v61  ;;  %804 = vmatpush.bf16.msra.mxu1 %v725_v63 }
 0x285   : > { %817 = vmatpush.bf16.msrb.mxu0 %v646_v60  ;;  %1028 = vmatmul.msk.bf16.vlgmr.msra.gmra.mxu1 %vm1495_vm0, %v1026_v0 }
 0x286   : > { %832 = vmatpush.bf16.msrb.mxu1 %v723_v62  ;;  %789 = vmatpush.bf16.msrb.mxu2 %v648_v2 }
 0x287   : > { %v736_v9 = vpop.permute.xlu1 %735 }
 0x288   : > { %v719_v3 = vpop.permute.xlu0 %718 }
 0x289   : > { %v724_v4 = vsel %vm447_vm7, %v719_v3, %v721_v56  ;;  %818 = vmatpush.bf16.msrb.mxu0 %v1362_v1 }
 0x28a   : > { %776 = vmatpush.bf16.msrb.mxu3 %v724_v4  ;;  %790 = vmatpush.bf16.msrb.mxu2 %v1339_v59 }
 0x28c   : > { %819 = vmatmul.bf16.vlgmr.msrb.gmra.mxu0 %v1022_v35 }
 0x28d   : > { %1027 = vmatmul.msk.bf16.vlgmr.msrb.gmra.mxu3 %vm1496_vm1, %v1026_v0  ;;  %791 = vmatmul.bf16.vlgmr.msrb.gmra.mxu2 %v1022_v35 }
 0x28f   : > { %v1071_v15 = vpop.permute.xlu1 %1070 }
 0x290   : > { %v1066_v8 = vpop.permute.xlu0 %1065  ;;  %v1072_v19 = vunpack.i.l.bf16 %v1071_v15  ;;  %v1073_v25 = vunpack.i.h.bf16 %v1071_v15 }
 0x291   : > { %v1068_v16 = vunpack.i.h.bf16 %v1066_v8  ;;  %v1067_v1 = vunpack.i.l.bf16 %v1066_v8 }
 0x292   : > { %v872_v53 = vsel %vm399_vm3, %v1073_v25, %v1077_v42 }
 0x293   : > { %v870_v22 = vsel %vm399_vm3, %v1067_v1, %v1068_v16  ;;  %v871_v27 = vsel %vm399_vm3, %v1068_v16, %v1072_v19 }
 0x295   : > { %1029 = vmatmul.msk.bf16.vlgmr.msrb.gmra.mxu1 %vm1497_vm2, %v1026_v0 }
 0x2fb   : > { %v764_v6 = vpop.f32.mrf.mxu3 }
 0x2fc   : > { %v765_v17 = vadd.f32 %v764_v6, %v736_v9 }
 0x302   : > { %v806_v7 = vpop.f32.mrf.mxu1 }
 0x303   : > { %v766_v11 = vpop.f32.mrf.mxu3 }
 0x304   : > { %v767_v34 = vadd.f32 %v766_v11, %v741_v13 }
 0x309   : > { %v820_v14 = vpop.f32.mrf.mxu0 }
 0x30a   : > { %v808_v12 = vpop.f32.mrf.mxu1  ;;  %v821_v23 = vadd.f32 %v820_v14, %v736_v9 }
 0x310   : > { %v778_v18 = vpop.f32.mrf.mxu3  ;;  %v792_v59 = vpop.f32.mrf.mxu2 }
 0x311   : > { %v779_v20 = vadd.f32 %v778_v18, %v765_v17  ;;  %v793_v21 = vadd.f32 %v792_v59, %v736_v9  ;;  %v822_v35 = vpop.f32.mrf.mxu0 }
 0x312   : > { %v834_v28 = vpop.f32.mrf.mxu1  ;;  %v823_v51 = vadd.f32 %v822_v35, %v741_v13 }
 0x313   : > { %v839_v24 = vmax.f32 %v779_v20, 0.0  ;;  %v807_v26 = vadd.f32 %v806_v7, %v793_v21  ;;  %v835_v30 = vadd.f32 %v834_v28, %v821_v23 }
 0x315   : > { %v840_v29 = vmax.f32 %v807_v26, 0.0  ;;  %v880_v32 = vadd.f32 %v870_v22, %v839_v24  ;;  %v841_v33 = vmax.f32 %v835_v30, 0.0 }
 0x317   : > { %v881_v38 = vadd.f32 %v871_v27, %v840_v29  ;;  %v886_v43 = vsel %vm1274_vm14, %v880_v32, 0.0  ;;  %v882_v44 = vadd.f32 %v1072_v19, %v841_v33 }
 0x318   : > { %v780_v39 = vpop.f32.mrf.mxu3  ;;  %v794_v40 = vpop.f32.mrf.mxu2 }
 0x319   : > { %v781_v45 = vadd.f32 %v780_v39, %v767_v34  ;;  %v795_v46 = vadd.f32 %v794_v40, %v741_v13  ;;  %v887_v47 = vsel %vm1278_vm15, %v881_v38, 0.0  ;;  %v888_v52 = vsel %vm1304_vm13, %v882_v44, 0.0 }
 0x31a   : > { %v892_v49 = vpack.c.bf16 %v887_v47, %v886_v43  ;;  %v836_v55 = vpop.f32.mrf.mxu1  ;;  %v893_v56 = vpack.c.bf16 %v888_v52, %v888_v52 }
 0x31b   : > { %v842_v50 = vmax.f32 %v781_v45, 0.0  ;;  %v809_v36 = vadd.f32 %v808_v12, %v795_v46  ;;  %v837_v58 = vadd.f32 %v836_v55, %v823_v51 }
 0x31c   : > { %900 = vrot.lane.b32.xlu0 %v892_v49, %s1096_s9  ;;  %902 = vrot.lane.b32.xlu2 %v893_v56, %s1096_s9 }
 0x31d   : > { %v843_v57 = vmax.f32 %v809_v36, 0.0  ;;  %v883_v61 = vadd.f32 %v872_v53, %v842_v50  ;;  %v844_v60 = vmax.f32 %v837_v58, 0.0 }
 0x31f   : > { %v884_v62 = vadd.f32 %v873_v54, %v843_v57  ;;  %v885_v63 = vadd.f32 %v1078_v41, %v844_v60  ;;  %v889_v0 = vsel %vm1274_vm14, %v883_v61, 0.0 }
 0x321   : > { %v890_v2 = vsel %vm1278_vm15, %v884_v62, 0.0  ;;  %v891_v4 = vsel %vm1304_vm13, %v885_v63, 0.0 }
 0x322   : > { %v894_v3 = vpack.c.bf16 %v890_v2, %v889_v0  ;;  %v895_v6 = vpack.c.bf16 %v891_v4, %v891_v4 }
 0x324   : > { %904 = vrot.lane.b32.xlu1 %v894_v3, %s1096_s9  ;;  %906 = vrot.lane.b32.xlu0 %v895_v6, %s1096_s9 }
 0x376   : > { %v903_v11 = vpop.permute.xlu2 %902 }
 0x38e   : > { %v901_v7 = vpop.permute.xlu0 %900 }
 0x38f   : > { %v908_v9 = vrot.slane %v901_v7, 4 }
 0x391   : > { %v910_v5 = vsel %vm604_vm12, %v908_v9, %v901_v7  ;;  %v911_v8 = vsel %vm604_vm12, %v908_v9, %v903_v11 }
 0x392   : > { %918 = vst.msk [vmem:[%s1291_s8] sm:$0xff] %vm1318_vm8, %v910_v5 }
 0x393   : > { %919 = vst.msk [vmem:[%s1291_s8 + $0x8] sm:$0xf] %vm617_vm9, %v911_v8 }
 0x396   : > { %v905_v10 = vpop.permute.xlu1 %904  ;;  %v907_v12 = vpop.permute.xlu0 %906 }
 0x397   : > { %v909_v37 = vrot.slane %v905_v10, 4 }
 0x399   : > { %v912_v13 = vsel %vm604_vm12, %v909_v37, %v905_v10  ;;  %v913_v14 = vsel %vm604_vm12, %v909_v37, %v907_v12 }
 0x39a   : > { %920 = vst.msk [vmem:[%s1291_s8 + $0xc] sm:$0xff] %vm1318_vm8, %v912_v13 }
 0x39b   : > { %921 = vst.msk [vmem:[%s1291_s8 + $0x14] sm:$0xf] %vm617_vm9, %v913_v14 }
 0x39c PF: > { %s15_s18 = sadd.s32 1, %s1085_s18  }
 0x39d   : > { %p12_p4 = scmp.ge.s32.totalorder %s15_s18, 4  }
 0x39f   :  { %14 = sbr.rel (!%p12_p4) target bundleno = 1 (0x1), region = 70 }

// kernel: _lambda_.9
= control target key start
LH: loop header
LB: loop body
LE: loop exit
PB: predicated region body
PF: predicated region fallthrough
CT: control target
= control target key end

     0   :  { %s531_s12 = smov 0   ;;  %s610_s0 = inlined_call_operand.vmem [shape: bf16[2,16,342], index: 0, kind: input, shape index: {}]   ;;  %s611_s1 = inlined_call_operand.vmem [shape: bf16[32,64], index: 1, kind: input, shape index: {}]   ;;  %s612_s2 = inlined_call_operand.vmem [shape: f32[32,1], index: 2, kind: input, shape index: {}]   ;;  %s613_s3 = inlined_call_operand.vmem [shape: bf16[2,32,288], index: 3, kind: output, shape index: {}]  }
   0x1 LB: > { %s438_s13 = sadd.s32 4294967295, %s505_s12   ;;  %p442_p0 = scmp.ge.s32.totalorder %s505_s12, 1  ;;  %s505_s12 = sphi %s531_s12, %s13_s12  }
   0x2   : > { %p137_p1 = scmp.lt.s32.totalorder %s505_s12, 3 }
   0x4   : > { %p138_p2 = pnand %p442_p0, %p137_p1 }
   0x5   : > { %p161_p3 = scmp.lt.s32.totalorder (!%p138_p2), %s438_s13, 1  ;;  %s507_s18 = smov (!%p138_p2), 109  }
   0x6   : > { %141 = sbr.rel (%p138_p2) target bundleno = 434 (0x1b2), region = 32  ;;  %s508_s19 = smov (!%p138_p2), 110  }
   0x7   : > { %s509_s20 = smov (!%p138_p2), 127  }
   0xb   : > { %s615_s13 = smov (!%p161_p3, %s438_s13), 1  ;;  %vm213_vm0 = vcmask 891904   ;;  %vm195_vm1 = vcmask 1039360   ;;  %vm204_vm2 = vcmask 900096   ;;  %v220_v27 = vld [vmem:[%s612_s2] sm:$0xff]  ;;  %v221_v28 = vld [vmem:[%s612_s2 + $0x8] sm:$0xff] }
   0xc   : > { %s482_s14 = smul.u32 24, %s615_s13  ;;  %v510_v29 = vmov 0   ;;  %v223_v32 = vld [vmem:[%s612_s2 + $0x18] sm:$0xff]  ;;  %v222_v33 = vld [vmem:[%s612_s2 + $0x10] sm:$0xff]  ;;  %v476_v36 = vld [vmem:[%s611_s1] sm:$0xff]  ;;  %vm290_vm3 = vcmask 523264  }
   0xd   : > { %496 = vset.pattern.permute.xlu0 %v510_v29  ;;  %497 = vset.pattern.permute.xlu1 %v510_v29  ;;  %v477_v45 = vld [vmem:[%s611_s1 + $0x8] sm:$0xff]  ;;  %s483_s6 = smul.u32 48, %s615_s13  ;;  %vm375_vm4 = vcmask 257024  }
   0xe   : > { %s165_s17 = scalar_lea.vmem %s610_s0, %s482_s14  ;;  %498 = vset.pattern.permute.xlu2 %v510_v29 }
   0xf   : > { %v455_v0 = vld [vmem:[%s165_s17 + $0x8] sm:$0xf]  ;;  %v475_v1 = vld [vmem:[%s165_s17 + $0x10] sm:$0xf0]  ;;  %v473_v2 = vld [vmem:[%s165_s17 + $0x4] sm:$0xf]  ;;  %s593_s9 = scalar_lea.vmem %s613_s3, %s483_s6 }
  0x10   : > { %v456_v3 = vor.u32 %v475_v1, %v455_v0  ;;  %v449_v4 = vld [vmem:[%s165_s17 + $0xc] sm:$0xf0]  ;;  %v447_v6 = vld [vmem:[%s165_s17] sm:$0xf]  ;;  %v474_v7 = vld [vmem:[%s165_s17 + $0x8] sm:$0xf0] }
  0x11   : > { %v452_v5 = vor.u32 %v473_v2, %v449_v4  ;;  %v448_v8 = vor.u32 %v474_v7, %v447_v6 }
  0x12   : > { %211 = vrot.lane.b32.xlu0 %v456_v3, %s507_s18 }
  0x13   : > { %209 = vrot.lane.b32.xlu1 %v452_v5, %s507_s18  ;;  %200 = vrot.lane.b32.xlu2 %v452_v5, %s508_s19 }
  0x1a   : > { %202 = vrot.lane.b32.xlu0 %v456_v3, %s508_s19 }
  0x1b   : > { %193 = vrot.lane.b32.xlu1 %v456_v3, %s509_s20  ;;  %191 = vrot.lane.b32.xlu2 %v452_v5, %s509_s20 }
  0x22   : > { %207 = vrot.lane.b32.xlu0 %v448_v8, %s507_s18 }
  0x23   : > { %198 = vrot.lane.b32.xlu1 %v448_v8, %s508_s19  ;;  %189 = vrot.lane.b32.xlu2 %v448_v8, %s509_s20 }
  0x6d   : > { %v201_v9 = vpop.permute.xlu2 %200 }
  0x75   : > { %v192_v13 = vpop.permute.xlu2 %191 }
  0x7d   : > { %v190_v17 = vpop.permute.xlu2 %189 }
  0x7e   : > { %v196_v20 = vsel %vm195_vm1, %v190_v17, %v192_v13 }
  0x84   : > { %v212_v10 = vpop.permute.xlu0 %211 }
  0x85   : > { %v210_v11 = vpop.permute.xlu1 %209  ;;  %270 = vrot.lane.b32.xlu0 %v212_v10, %s507_s18 }
  0x86   : > { %v215_v12 = vsel %vm213_vm0, %v210_v11, %v212_v10 }
  0x87   : > { %268 = vrot.lane.b32.xlu2 %v215_v12, %s507_s18 }
  0x8c   : > { %v203_v14 = vpop.permute.xlu0 %202 }
  0x8d   : > { %v194_v15 = vpop.permute.xlu1 %193  ;;  %264 = vrot.lane.b32.xlu1 %v203_v14, %s507_s18  ;;  %v206_v19 = vsel %vm204_vm2, %v201_v9, %v203_v14 }
  0x8e   : > { %258 = vrot.lane.b32.xlu0 %v194_v15, %s507_s18  ;;  %v197_v16 = vsel %vm195_vm1, %v192_v13, %v194_v15 }
  0x8f   : > { %256 = vrot.lane.b32.xlu2 %v197_v16, %s507_s18 }
  0x94   : > { %v208_v18 = vpop.permute.xlu0 %207 }
  0x95   : > { %262 = vrot.lane.b32.xlu1 %v206_v19, %s507_s18  ;;  %v214_v21 = vsel %vm213_vm0, %v208_v18, %v210_v11  ;;  %v199_v22 = vpop.permute.xlu1 %198 }
  0x96   : > { %266 = vrot.lane.b32.xlu0 %v214_v21, %s507_s18  ;;  %v205_v23 = vsel %vm204_vm2, %v199_v22, %v201_v9 }
  0x97   : > { %254 = vrot.lane.b32.xlu2 %v196_v20, %s507_s18 }
  0x9d   : > { %260 = vrot.lane.b32.xlu1 %v205_v23, %s507_s18 }
  0x9e   : > { %226 = vperm.xlu0 %496, %v220_v27  }
  0x9f   : > { %236 = vperm.xlu2 %498, %v222_v33  }
  0xa5   : > { %231 = vperm.xlu1 %497, %v221_v28  }
  0xad   : > { %241 = vperm.xlu1 %497, %v223_v32  }
  0xe1   : > { %v269_v24 = vpop.permute.xlu2 %268 }
  0xe9   : > { %v257_v34 = vpop.permute.xlu2 %256 }
  0xf1   : > { %v255_v43 = vpop.permute.xlu2 %254 }
  0xf2   : > { %v272_v44 = vsel %vm213_vm0, %v255_v43, %v257_v34 }
  0xf7   : > { %v271_v25 = vpop.permute.xlu0 %270 }
  0xf8   : > { %339 = vmatpush.bf16.msra.mxu2 %v271_v25  ;;  %v277_v26 = vsel %vm213_vm0, %v269_v24, %v271_v25 }
  0xf9   : > { %320 = vmatpush.bf16.msra.mxu1 %v277_v26  ;;  %v237_v63 = vpop.permute.xlu2 %236 }
  0xff   : > { %v265_v30 = vpop.permute.xlu1 %264 }
 0x100   : > { %v259_v31 = vpop.permute.xlu0 %258  ;;  %340 = vmatpush.bf16.msra.mxu2 %v265_v30 }
 0x101   : > { %v273_v40 = vsel %vm213_vm0, %v257_v34, %v259_v31 }
 0x104   : > { %341 = vmatpush.bf16.msra.mxu2 %v259_v31 }
 0x107   : > { %v263_v35 = vpop.permute.xlu1 %262 }
 0x108   : > { %v267_v37 = vpop.permute.xlu0 %266  ;;  %342 = vmatpush.bf16.msra.mxu2 %v212_v10  ;;  %v275_v38 = vsel %vm213_vm0, %v263_v35, %v265_v30 }
 0x109   : > { %321 = vmatpush.bf16.msra.mxu1 %v275_v38  ;;  %v276_v39 = vsel %vm213_vm0, %v267_v37, %v269_v24 }
 0x10a   : > { %301 = vmatpush.bf16.msra.mxu0 %v276_v39  ;;  %478 = vmatpush.bf16.msra.mxu3 %v276_v39 }
 0x10b   : > { %469 = vmatmul.msk.bf16.vlgmr.msra.gmra.mxu2 %vm290_vm3, %v476_v36 }
 0x10d   : > { %322 = vmatpush.bf16.msra.mxu1 %v273_v40 }
 0x10f   : > { %v261_v41 = vpop.permute.xlu1 %260 }
 0x110   : > { %v274_v42 = vsel %vm213_vm0, %v261_v41, %v263_v35  ;;  %v227_v46 = vpop.permute.xlu0 %226 }
 0x111   : > { %302 = vmatpush.bf16.msra.mxu0 %v274_v42  ;;  %479 = vmatpush.bf16.msra.mxu3 %v274_v42 }
 0x112   : > { %323 = vmatpush.bf16.msra.mxu1 %v215_v12 }
 0x115   : > { %467 = vmatmul.msk.bf16.vlgmr.msra.gmra.mxu1 %vm290_vm3, %v476_v36  ;;  %303 = vmatpush.bf16.msra.mxu0 %v272_v44 }
 0x116   : > { %480 = vmatpush.bf16.msra.mxu3 %v272_v44 }
 0x117   : > { %v232_v52 = vpop.permute.xlu1 %231 }
 0x119   : > { %304 = vmatpush.bf16.msra.mxu0 %v214_v21 }
 0x11a   : > { %481 = vmatpush.bf16.msra.mxu3 %v214_v21 }
 0x11b   : > { %470 = vmatmul.msk.bf16.gmra.mxu2 %vm290_vm3, %v477_v45 }
 0x11c   : > { %465 = vmatmul.msk.bf16.vlgmr.msra.gmra.mxu0 %vm290_vm3, %v476_v36 }
 0x11d   : > { %466 = vmatmul.msk.bf16.vlgmr.msra.gmra.mxu3 %vm290_vm3, %v477_v45 }
 0x11f   : > { %v242_v17 = vpop.permute.xlu1 %241 }
 0x125   : > { %468 = vmatmul.msk.bf16.gmra.mxu1 %vm290_vm3, %v477_v45 }
 0x18e   : > { %v344_v47 = vpop.f32.mrf.mxu2 }
 0x18f   : > { %v345_v48 = vadd.f32 %v344_v47, %v227_v46 }
 0x191   : > { %v356_v49 = vmax.f32 %v345_v48, 0.0 }
 0x192   : > { %v325_v50 = vpop.f32.mrf.mxu1 }
 0x193   : > { %v367_v51 = vpack.c.bf16 %v356_v49, %v356_v49  ;;  %v326_v55 = vadd.f32 %v325_v50, %v227_v46 }
 0x195   : > { %376 = vst.msk [vmem:[%s593_s9 + $0x8] sm:$0xf] %vm375_vm4, %v367_v51  ;;  %v355_v61 = vmax.f32 %v326_v55, 0.0 }
 0x196   : > { %v346_v53 = vpop.f32.mrf.mxu2 }
 0x197   : > { %v347_v54 = vadd.f32 %v346_v53, %v232_v52 }
 0x199   : > { %v359_v56 = vmax.f32 %v347_v54, 0.0  ;;  %v306_v57 = vpop.f32.mrf.mxu0 }
 0x19a   : > { %v307_v58 = vadd.f32 %v306_v57, %v227_v46  ;;  %v327_v59 = vpop.f32.mrf.mxu1 }
 0x19b   : > { %v369_v60 = vpack.c.bf16 %v359_v56, %v359_v56  ;;  %v328_v3 = vadd.f32 %v327_v59, %v232_v52 }
 0x19c   : > { %v354_v62 = vmax.f32 %v307_v58, 0.0 }
 0x19d   : > { %378 = vst.msk [vmem:[%s593_s9 + $0x14] sm:$0xf] %vm375_vm4, %v369_v60  ;;  %v358_v13 = vmax.f32 %v328_v3, 0.0 }
 0x19e   : > { %v366_v0 = vpack.c.bf16 %v355_v61, %v354_v62  ;;  %v349_v1 = vpop.f32.mrf.mxu2 }
 0x19f   : > { %v350_v2 = vadd.f32 %v349_v1, %v237_v63 }
 0x1a0   : > { %374 = vst [vmem:[%s593_s9] sm:$0xff] %v366_v0  ;;  %v311_v4 = vpop.f32.mrf.mxu3 }
 0x1a1   : > { %v312_v5 = vadd.f32 %v311_v4, %v237_v63  ;;  %v362_v6 = vmax.f32 %v350_v2, 0.0  ;;  %v308_v7 = vpop.f32.mrf.mxu0 }
 0x1a2   : > { %v309_v8 = vadd.f32 %v308_v7, %v232_v52  ;;  %v330_v9 = vpop.f32.mrf.mxu1 }
 0x1a3   : > { %v360_v10 = vmax.f32 %v312_v5, 0.0  ;;  %v371_v11 = vpack.c.bf16 %v362_v6, %v362_v6  ;;  %v331_v12 = vadd.f32 %v330_v9, %v237_v63 }
 0x1a4   : > { %v357_v14 = vmax.f32 %v309_v8, 0.0 }
 0x1a5   : > { %380 = vst.msk [vmem:[%s593_s9 + $0x20] sm:$0xf] %vm375_vm4, %v371_v11  ;;  %v361_v15 = vmax.f32 %v331_v12, 0.0 }
 0x1a6   : > { %v368_v16 = vpack.c.bf16 %v358_v13, %v357_v14  ;;  %v351_v18 = vpop.f32.mrf.mxu2 }
 0x1a7   : > { %v370_v19 = vpack.c.bf16 %v361_v15, %v360_v10  ;;  %v352_v20 = vadd.f32 %v351_v18, %v242_v17 }
 0x1a8   : > { %377 = vst [vmem:[%s593_s9 + $0xc] sm:$0xff] %v368_v16  ;;  %v313_v21 = vpop.f32.mrf.mxu3 }
 0x1a9   : > { %379 = vst [vmem:[%s593_s9 + $0x18] sm:$0xff] %v370_v19  ;;  %v365_v22 = vmax.f32 %v352_v20, 0.0  ;;  %v314_v23 = vadd.f32 %v313_v21, %v242_v17 }
 0x1aa   : > { %v332_v24 = vpop.f32.mrf.mxu1 }
 0x1ab   : > { %v373_v25 = vpack.c.bf16 %v365_v22, %v365_v22  ;;  %v333_v26 = vadd.f32 %v332_v24, %v242_v17  ;;  %v363_v27 = vmax.f32 %v314_v23, 0.0 }
 0x1ad   : > { %382 = vst.msk [vmem:[%s593_s9 + $0x2c] sm:$0xf] %vm375_vm4, %v373_v25  ;;  %v364_v28 = vmax.f32 %v333_v26, 0.0 }
 0x1af   : > { %v372_v29 = vpack.c.bf16 %v364_v28, %v363_v27 }
 0x1b1   : > { %381 = vst [vmem:[%s593_s9 + $0x24] sm:$0xff] %v372_v29 }
 0x1b2 PF: > { %s13_s12 = sadd.s32 1, %s505_s12  }
 0x1b3   : > { %p10_p4 = scmp.ge.s32.totalorder %s13_s12, 4  }
 0x1b5   :  { %12 = sbr.rel (!%p10_p4) target bundleno = 1 (0x1), region = 62 }

// kernel: _lambda_.7
= control target key start
LH: loop header
LB: loop body
LE: loop exit
PB: predicated region body
PF: predicated region fallthrough
CT: control target
= control target key end

     0   :  { %s1648_s13 = smov 0   ;;  %s2168_s0 = inlined_call_operand.vmem [shape: bf16[2,16,342], index: 0, kind: input, shape index: {}]   ;;  %s2169_s1 = inlined_call_operand.vmem [shape: bf16[2,16,342], index: 1, kind: input, shape index: {}]   ;;  %s2170_s2 = inlined_call_operand.vmem [shape: bf16[16,144], index: 2, kind: input, shape index: {}]   ;;  %s2171_s3 = inlined_call_operand.vmem [shape: bf16[16,144], index: 3, kind: input, shape index: {}]   ;;  %s2172_s4 = inlined_call_operand.vmem [shape: f32[16,1], index: 4, kind: input, shape index: {}]   ;;  %s2173_s5 = inlined_call_operand.vmem [shape: bf16[16,144], index: 5, kind: input, shape index: {}]   ;;  %s2174_s6 = inlined_call_operand.vmem [shape: f32[16,1], index: 6, kind: input, shape index: {}]   ;;  %s2175_s7 = inlined_call_operand.vmem [shape: bf16[16,16], index: 7, kind: input, shape index: {}]   ;;  %s2176_s8 = inlined_call_operand.vmem [shape: bf16[16,16], index: 8, kind: input, shape index: {}]   ;;  %s2177_s9 = inlined_call_operand.vmem [shape: f32[16,1], index: 9, kind: input, shape index: {}]   ;;  %s2178_s10 = inlined_call_operand.vmem [shape: bf16[2,16,342], index: 10, kind: output, shape index: {}]  }
   0x1 LB: > { %s1443_s14 = sadd.s32 4294967295, %s1581_s13   ;;  %p1447_p0 = scmp.ge.s32.totalorder %s1581_s13, 1  ;;  %s1581_s13 = sphi %s1648_s13, %s20_s13  }
   0x2   : > { %p322_p1 = scmp.lt.s32.totalorder %s1581_s13, 3 }
   0x4   : > { %p323_p2 = pnand %p1447_p0, %p322_p1 }
   0x5   : > { %p365_p3 = scmp.lt.s32.totalorder (!%p323_p2), %s1443_s14, 1  ;;  %s1583_s19 = smov (!%p323_p2), 91  }
   0x6   : > { %326 = sbr.rel (%p323_p2) target bundleno = 1026 (0x402), region = 60  ;;  %s1584_s20 = smov (!%p323_p2), 92  }
   0x7   : > { %s1585_s21 = smov (!%p323_p2), 108   ;;  %s1586_s22 = smov (!%p323_p2), 109  }
   0x8   : > { %s1587_s23 = smov (!%p323_p2), 90   ;;  %s1588_s27 = smov (!%p323_p2), 110  }
   0x9   : > { %s1589_s28 = smov (!%p323_p2), 126   ;;  %s1590_s29 = smov (!%p323_p2), 127  }
   0xa   : > { %s1592_s30 = smov (!%p323_p2), 19  }
   0xb   : > { %s2202_s14 = smov (!%p365_p3, %s1443_s14), 1  ;;  %vm590_vm0 = vcmask 744448   ;;  %vm578_vm1 = vcmask 752640   ;;  %vm566_vm2 = vcmask 883712   ;;  %vm554_vm3 = vcmask 891904  }
   0xc   : > { %s1656_s15 = smul.u32 24, %s2202_s14  ;;  %vm602_vm4 = vcmask 736256   ;;  %v1544_v41 = vld [vmem:[%s2171_s3 + $0x4] sm:$0xf]  ;;  %v1479_v42 = vld [vmem:[%s2171_s3 + $0x8] sm:$0xf0] }
   0xd   : > { %v1482_v47 = vor.u32 %v1544_v41, %v1479_v42  ;;  %vm2179_vm5 = vcmask 130048   ;;  %vm542_vm6 = vcmask 900096   ;;  %vm530_vm7 = vcmask 1031168   ;;  %v1477_v63 = vld [vmem:[%s2171_s3] sm:$0xf] }
   0xe   : > { %s374_s18 = scalar_lea.vmem %s2169_s1, %s1656_s15  ;;  %s369_s26 = scalar_lea.vmem %s2168_s0, %s1656_s15  ;;  %vm518_vm8 = vcmask 1039360  }
   0xf   : > { %v1473_v0 = vld [vmem:[%s374_s18 + $0x8] sm:$0xf]  ;;  %v1543_v1 = vld [vmem:[%s374_s18 + $0x10] sm:$0xf0]  ;;  %v1465_v2 = vld [vmem:[%s374_s18] sm:$0xf]  ;;  %s1955_s14 = scalar_lea.vmem %s2178_s10, %s1656_s15 }
  0x10   : > { %v1662_v3 = vor.u32 %v1543_v1, %v1473_v0  ;;  %v1542_v4 = vld [vmem:[%s374_s18 + $0x8] sm:$0xf0]  ;;  %v1541_v5 = vld [vmem:[%s374_s18 + $0x4] sm:$0xf]  ;;  %v1467_v6 = vld [vmem:[%s374_s18 + $0xc] sm:$0xf0] }
  0x11   : > { %v1664_v7 = vor.u32 %v1542_v4, %v1465_v2  ;;  %v1666_v8 = vor.u32 %v1541_v5, %v1467_v6  ;;  %v1453_v9 = vld [vmem:[%s369_s26] sm:$0xf]  ;;  %v1537_v10 = vld [vmem:[%s369_s26 + $0x8] sm:$0xf0]  ;;  %v1461_v12 = vld [vmem:[%s369_s26 + $0x8] sm:$0xf] }
  0x12   : > { %700 = vrot.lane.b32.xlu1 %v1662_v3, %s1583_s19  ;;  %v1702_v11 = vor.u32 %v1537_v10, %v1453_v9  ;;  %v1538_v13 = vld [vmem:[%s369_s26 + $0x10] sm:$0xf0]  ;;  %v1536_v14 = vld [vmem:[%s369_s26 + $0x4] sm:$0xf]  ;;  %v1455_v15 = vld [vmem:[%s369_s26 + $0xc] sm:$0xf0] }
  0x13   : > { %696 = vrot.lane.b32.xlu0 %v1664_v7, %s1583_s19  ;;  %687 = vrot.lane.b32.xlu2 %v1666_v8, %s1584_s20  ;;  %v1710_v16 = vor.u32 %v1538_v13, %v1461_v12  ;;  %v1712_v17 = vor.u32 %v1536_v14, %v1455_v15  ;;  %v1545_v0 = vld [vmem:[%s2171_s3 + $0x4] sm:$0xf0] }
  0x14   : > { %v1478_v4 = vor.u32 %v1545_v0, %v1477_v63 }
  0x1a   : > { %685 = vrot.lane.b32.xlu1 %v1664_v7, %s1584_s20 }
  0x1b   : > { %698 = vrot.lane.b32.xlu0 %v1666_v8, %s1583_s19  ;;  %689 = vrot.lane.b32.xlu2 %v1662_v3, %s1584_s20 }
  0x22   : > { %676 = vrot.lane.b32.xlu1 %v1666_v8, %s1585_s21 }
  0x23   : > { %674 = vrot.lane.b32.xlu0 %v1664_v7, %s1585_s21  ;;  %678 = vrot.lane.b32.xlu2 %v1662_v3, %s1585_s21 }
  0x2a   : > { %665 = vrot.lane.b32.xlu1 %v1666_v8, %s1586_s22 }
  0x2b   : > { %663 = vrot.lane.b32.xlu0 %v1664_v7, %s1586_s22  ;;  %667 = vrot.lane.b32.xlu2 %v1662_v3, %s1586_s22 }
  0x32   : > { %709 = vrot.lane.b32.xlu1 %v1666_v8, %s1587_s23 }
  0x33   : > { %707 = vrot.lane.b32.xlu0 %v1664_v7, %s1587_s23  ;;  %711 = vrot.lane.b32.xlu2 %v1662_v3, %s1587_s23 }
  0x3a   : > { %654 = vrot.lane.b32.xlu1 %v1666_v8, %s1588_s27 }
  0x3b   : > { %652 = vrot.lane.b32.xlu0 %v1664_v7, %s1588_s27  ;;  %584 = vrot.lane.b32.xlu2 %v1702_v11, %s1583_s19 }
  0x42   : > { %588 = vrot.lane.b32.xlu1 %v1710_v16, %s1583_s19 }
  0x43   : > { %586 = vrot.lane.b32.xlu0 %v1712_v17, %s1583_s19  ;;  %656 = vrot.lane.b32.xlu2 %v1662_v3, %s1588_s27 }
  0x4a   : > { %643 = vrot.lane.b32.xlu1 %v1666_v8, %s1589_s28 }
  0x4b   : > { %641 = vrot.lane.b32.xlu0 %v1664_v7, %s1589_s28  ;;  %572 = vrot.lane.b32.xlu2 %v1702_v11, %s1584_s20 }
  0x52   : > { %576 = vrot.lane.b32.xlu1 %v1710_v16, %s1584_s20 }
  0x53   : > { %574 = vrot.lane.b32.xlu0 %v1712_v17, %s1584_s20  ;;  %645 = vrot.lane.b32.xlu2 %v1662_v3, %s1589_s28 }
  0x5a   : > { %632 = vrot.lane.b32.xlu1 %v1666_v8, %s1590_s29 }
  0x5b   : > { %630 = vrot.lane.b32.xlu0 %v1664_v7, %s1590_s29  ;;  %560 = vrot.lane.b32.xlu2 %v1702_v11, %s1585_s21 }
  0x62   : > { %564 = vrot.lane.b32.xlu1 %v1710_v16, %s1585_s21 }
  0x63   : > { %562 = vrot.lane.b32.xlu0 %v1712_v17, %s1585_s21  ;;  %634 = vrot.lane.b32.xlu2 %v1662_v3, %s1590_s29 }
  0x6a   : > { %550 = vrot.lane.b32.xlu1 %v1712_v17, %s1586_s22 }
  0x6b   : > { %548 = vrot.lane.b32.xlu0 %v1702_v11, %s1586_s22  ;;  %552 = vrot.lane.b32.xlu2 %v1710_v16, %s1586_s22 }
  0x6d   : > { %v688_v18 = vpop.permute.xlu2 %687 }
  0x72   : > { %538 = vrot.lane.b32.xlu1 %v1712_v17, %s1588_s27 }
  0x73   : > { %536 = vrot.lane.b32.xlu0 %v1702_v11, %s1588_s27  ;;  %540 = vrot.lane.b32.xlu2 %v1710_v16, %s1588_s27 }
  0x75   : > { %v690_v19 = vpop.permute.xlu2 %689 }
  0x76   : > { %v692_v30 = vsel %vm578_vm1, %v688_v18, %v690_v19 }
  0x7a   : > { %526 = vrot.lane.b32.xlu1 %v1712_v17, %s1589_s28 }
  0x7b   : > { %524 = vrot.lane.b32.xlu0 %v1702_v11, %s1589_s28  ;;  %528 = vrot.lane.b32.xlu2 %v1710_v16, %s1589_s28 }
  0x7d   : > { %v1762_v20 = vpop.permute.xlu2 %678 }
  0x82   : > { %514 = vrot.lane.b32.xlu1 %v1712_v17, %s1590_s29 }
  0x83   : > { %512 = vrot.lane.b32.xlu0 %v1702_v11, %s1590_s29  ;;  %516 = vrot.lane.b32.xlu2 %v1710_v16, %s1590_s29 }
  0x84   : > { %v701_v21 = vpop.permute.xlu1 %700 }
  0x85   : > { %v697_v22 = vpop.permute.xlu0 %696  ;;  %v1770_v23 = vpop.permute.xlu2 %667 }
  0x8a   : > { %598 = vrot.lane.b32.xlu1 %v1712_v17, %s1587_s23 }
  0x8b   : > { %596 = vrot.lane.b32.xlu0 %v1702_v11, %s1587_s23  ;;  %600 = vrot.lane.b32.xlu2 %v1710_v16, %s1587_s23 }
  0x8c   : > { %v686_v24 = vpop.permute.xlu1 %685 }
  0x8d   : > { %v699_v25 = vpop.permute.xlu0 %698  ;;  %v712_v26 = vpop.permute.xlu2 %711  ;;  %v691_v29 = vsel %vm578_vm1, %v686_v24, %v688_v18 }
  0x8e   : > { %v702_v27 = vsel %vm590_vm0, %v697_v22, %v699_v25  ;;  %v703_v28 = vsel %vm590_vm0, %v699_v25, %v701_v21 }
  0x8f   : > { %731 = vmatpush.bf16.msra.mxu0 %v702_v27  ;;  %759 = vmatpush.bf16.msra.mxu2 %v703_v28 }
  0x93   : > { %732 = vmatpush.bf16.msra.mxu0 %v691_v29  ;;  %760 = vmatpush.bf16.msra.mxu2 %v692_v30 }
  0x94   : > { %v677_v31 = vpop.permute.xlu1 %676 }
  0x95   : > { %v675_v32 = vpop.permute.xlu0 %674  ;;  %v681_v33 = vsel %vm566_vm2, %v677_v31, %v1762_v20  ;;  %v585_v34 = vpop.permute.xlu2 %584 }
  0x96   : > { %v680_v35 = vsel %vm566_vm2, %v675_v32, %v677_v31 }
  0x97   : > { %733 = vmatpush.bf16.msra.mxu0 %v680_v35  ;;  %761 = vmatpush.bf16.msra.mxu2 %v681_v33  ;;  %v911_v35 = vld [vmem:[%s2172_s4] sm:$0xff] }
  0x9c   : > { %v666_v36 = vpop.permute.xlu1 %665 }
  0x9d   : > { %v664_v37 = vpop.permute.xlu0 %663  ;;  %v1787_v38 = vsel %vm554_vm3, %v666_v36, %v1770_v23  ;;  %v657_v39 = vpop.permute.xlu2 %656 }
  0x9e   : > { %v1790_v40 = vsel %vm554_vm3, %v664_v37, %v666_v36  ;;  %762 = vmatpush.bf16.msra.mxu2 %v1787_v38  ;;  %v1591_v36 = vmov 0  }
  0x9f   : > { %734 = vmatpush.bf16.msra.mxu0 %v1790_v40  ;;  %1572 = vset.pattern.permute.xlu0 %v1591_v36 }
  0xa0   : > { %1573 = vset.pattern.permute.xlu1 %v1591_v36  ;;  %915 = vperm.xlu0 %1572, %v911_v35  }
  0xa1   : > { %1574 = vset.pattern.permute.xlu2 %v1591_v36 }
  0xa4   : > { %v710_v43 = vpop.permute.xlu1 %709 }
  0xa5   : > { %v708_v44 = vpop.permute.xlu0 %707  ;;  %v714_v45 = vsel %vm602_vm4, %v710_v43, %v712_v26  ;;  %v573_v46 = vpop.permute.xlu2 %572 }
  0xa6   : > { %v713_v48 = vsel %vm602_vm4, %v708_v44, %v710_v43  ;;  %780 = vmatpush.bf16.msra.mxu3 %v714_v45  ;;  %v1488_v43 = vld [vmem:[%s2170_s2] sm:$0xf]  ;;  %v1540_v44 = vld [vmem:[%s2170_s2 + $0x4] sm:$0xf0] }
  0xa7   : > { %752 = vmatpush.bf16.msra.mxu1 %v713_v48  ;;  %v912_v45 = vld [vmem:[%s2172_s4 + $0x8] sm:$0xff]  ;;  %v1539_v48 = vld [vmem:[%s2170_s2 + $0x4] sm:$0xf] }
  0xa8   : > { %920 = vperm.xlu1 %1573, %v912_v45  }
  0xa9   : > { %1484 = vmatmul.msk.bf16.vlgmr.msra.gmra.mxu3 %vm2179_vm5, %v1482_v47 }
  0xaa   : > { %808 = vmatpush.bf16.msrb.mxu3 %v712_v26  ;;  %1483 = vmatmul.msk.bf16.vlgmr.msra.gmra.mxu1 %vm2179_vm5, %v1482_v47 }
  0xab   : > { %787 = vmatpush.bf16.msrb.mxu1 %v701_v21 }
  0xac   : > { %v655_v49 = vpop.permute.xlu1 %654 }
  0xad   : > { %v653_v50 = vpop.permute.xlu0 %652  ;;  %v659_v51 = vsel %vm542_vm6, %v655_v49, %v657_v39  ;;  %v646_v52 = vpop.permute.xlu2 %645 }
  0xae   : > { %v658_v53 = vsel %vm542_vm6, %v653_v50, %v655_v49  ;;  %763 = vmatpush.bf16.msra.mxu2 %v659_v51  ;;  %v1490_v49 = vld [vmem:[%s2170_s2 + $0x8] sm:$0xf0] }
  0xaf   : > { %788 = vmatpush.bf16.msrb.mxu1 %v690_v19  ;;  %735 = vmatpush.bf16.msra.mxu0 %v658_v53  ;;  %v1493_v53 = vor.u32 %v1539_v48, %v1490_v49 }
  0xb3   : > { %789 = vmatpush.bf16.msrb.mxu1 %v1762_v20 }
  0xb4   : > { %v1808_v54 = vpop.permute.xlu1 %588 }
  0xb5   : > { %v587_v55 = vpop.permute.xlu0 %586  ;;  %v561_v56 = vpop.permute.xlu2 %560 }
  0xb6   : > { %v591_v57 = vsel %vm590_vm0, %v585_v34, %v587_v55 }
  0xb7   : > { %790 = vmatpush.bf16.msrb.mxu1 %v1770_v23  ;;  %827 = vmatpush.bf16.msra.mxu3 %v591_v57 }
  0xb9   : > { %1485 = vmatmul.msk.bf16.vlgmr.msrb.gmra.mxu3 %vm2179_vm5, %v1482_v47 }
  0xbb   : > { %791 = vmatpush.bf16.msrb.mxu1 %v657_v39 }
  0xbc   : > { %v644_v58 = vpop.permute.xlu1 %643 }
  0xbd   : > { %v642_v59 = vpop.permute.xlu0 %641  ;;  %v648_v60 = vsel %vm530_vm7, %v644_v58, %v646_v52  ;;  %v635_v62 = vpop.permute.xlu2 %634 }
  0xbe   : > { %v647_v61 = vsel %vm530_vm7, %v642_v59, %v644_v58  ;;  %764 = vmatpush.bf16.msra.mxu2 %v648_v60 }
  0xbf   : > { %792 = vmatpush.bf16.msrb.mxu1 %v646_v52  ;;  %736 = vmatpush.bf16.msra.mxu0 %v647_v61 }
  0xc3   : > { %793 = vmatpush.bf16.msrb.mxu1 %v635_v62 }
  0xc4   : > { %v1820_v1 = vpop.permute.xlu1 %576 }
  0xc5   : > { %v575_v2 = vpop.permute.xlu0 %574  ;;  %v1829_v13 = vpop.permute.xlu2 %552 }
  0xc6   : > { %v579_v5 = vsel %vm578_vm1, %v573_v46, %v575_v2  ;;  %v580_v19 = vsel %vm578_vm1, %v575_v2, %v1820_v1  ;;  %v1489_v46 = vor.u32 %v1540_v44, %v1488_v43 }
  0xc7   : > { %794 = vmatpush.bf16.msrb.mxu1 %v1662_v3  ;;  %828 = vmatpush.bf16.msra.mxu3 %v579_v5  ;;  %v592_v3 = vsel %vm590_vm0, %v587_v55, %v1808_v54 }
  0xca   : > { %795 = vmatmul.bf16.vlgmr.msrb.gmra.mxu1 %v1478_v4 }
  0xcc   : > { %v633_v6 = vpop.permute.xlu1 %632 }
  0xcd   : > { %v631_v9 = vpop.permute.xlu0 %630  ;;  %v637_v10 = vsel %vm518_vm8, %v633_v6, %v635_v62  ;;  %v541_v21 = vpop.permute.xlu2 %540 }
  0xce   : > { %v636_v12 = vsel %vm518_vm8, %v631_v9, %v633_v6  ;;  %765 = vmatpush.bf16.msra.mxu2 %v637_v10 }
  0xcf   : > { %737 = vmatpush.bf16.msra.mxu0 %v636_v12 }
  0xd2   : > { %766 = vmatpush.bf16.msra.mxu2 %v1666_v8 }
  0xd3   : > { %738 = vmatpush.bf16.msra.mxu0 %v1664_v7 }
  0xd4   : > { %v1832_v14 = vpop.permute.xlu1 %564 }
  0xd5   : > { %v563_v15 = vpop.permute.xlu0 %562  ;;  %767 = vmatmul.bf16.vlgmr.msra.gmra.mxu2 %v1478_v4  ;;  %v529_v29 = vpop.permute.xlu2 %528 }
  0xd6   : > { %855 = vmatpush.bf16.msrb.mxu2 %v592_v3  ;;  %v567_v18 = vsel %vm566_vm2, %v561_v56, %v563_v15  ;;  %739 = vmatmul.bf16.vlgmr.msra.gmra.mxu0 %v1478_v4  ;;  %v568_v8 = vsel %vm566_vm2, %v563_v15, %v1832_v14 }
  0xd7   : > { %829 = vmatpush.bf16.msra.mxu3 %v567_v18 }
  0xda   : > { %856 = vmatpush.bf16.msrb.mxu2 %v580_v19 }
  0xdc   : > { %v551_v20 = vpop.permute.xlu1 %550 }
  0xdd   : > { %v549_v22 = vpop.permute.xlu0 %548  ;;  %v1841_v7 = vsel %vm554_vm3, %v551_v20, %v1829_v13  ;;  %v517_v34 = vpop.permute.xlu2 %516 }
  0xde   : > { %857 = vmatpush.bf16.msrb.mxu2 %v568_v8  ;;  %v1844_v24 = vsel %vm554_vm3, %v549_v22, %v551_v20 }
  0xdf   : > { %830 = vmatpush.bf16.msra.mxu3 %v1844_v24 }
  0xe2   : > { %858 = vmatpush.bf16.msrb.mxu2 %v1841_v7 }
  0xe4   : > { %v539_v25 = vpop.permute.xlu1 %538 }
  0xe5   : > { %v537_v26 = vpop.permute.xlu0 %536  ;;  %v544_v27 = vsel %vm542_vm6, %v539_v25, %v541_v21  ;;  %v601_v47 = vpop.permute.xlu2 %600 }
  0xe6   : > { %v543_v28 = vsel %vm542_vm6, %v537_v26, %v539_v25  ;;  %859 = vmatpush.bf16.msrb.mxu2 %v544_v27 }
  0xe7   : > { %831 = vmatpush.bf16.msra.mxu3 %v543_v28 }
  0xec   : > { %v527_v30 = vpop.permute.xlu1 %526 }
  0xed   : > { %v525_v31 = vpop.permute.xlu0 %524  ;;  %v532_v32 = vsel %vm530_vm7, %v527_v30, %v529_v29 }
  0xee   : > { %v531_v33 = vsel %vm530_vm7, %v525_v31, %v527_v30  ;;  %860 = vmatpush.bf16.msrb.mxu2 %v532_v32 }
  0xef   : > { %832 = vmatpush.bf16.msra.mxu3 %v531_v33 }
  0xf4   : > { %v515_v37 = vpop.permute.xlu1 %514 }
  0xf5   : > { %v513_v39 = vpop.permute.xlu0 %512  ;;  %v520_v41 = vsel %vm518_vm8, %v515_v37, %v517_v34 }
  0xf6   : > { %v519_v42 = vsel %vm518_vm8, %v513_v39, %v515_v37  ;;  %861 = vmatpush.bf16.msrb.mxu2 %v520_v41 }
  0xf7   : > { %833 = vmatpush.bf16.msra.mxu3 %v519_v42 }
  0xfa   : > { %862 = vmatpush.bf16.msrb.mxu2 %v1712_v17 }
  0xfb   : > { %834 = vmatpush.bf16.msra.mxu3 %v1702_v11  ;;  %v381_v11 = vlaneseq }
  0xfc   : > { %v599_v50 = vpop.permute.xlu1 %598 }
  0xfd   : > { %v604_v51 = vsel %vm602_vm4, %v599_v50, %v601_v47  ;;  %v597_v52 = vpop.permute.xlu0 %596  ;;  %863 = vmatmul.bf16.vlgmr.msrb.gmra.mxu2 %v1489_v46 }
  0xfe   : > { %835 = vmatmul.bf16.vlgmr.msra.gmra.mxu3 %v1489_v46  ;;  %v603_v17 = vsel %vm602_vm4, %v597_v52, %v599_v50  ;;  %876 = vmatpush.bf16.msra.mxu1 %v604_v51 }
  0xff   : > { %848 = vmatpush.bf16.msrb.mxu0 %v603_v17 }
 0x101   : > { %1495 = vmatmul.msk.bf16.vlgmr.msra.gmra.mxu1 %vm2179_vm5, %v1493_v53 }
 0x102   : > { %904 = vmatpush.bf16.msrb.mxu1 %v601_v47  ;;  %1494 = vmatmul.msk.bf16.vlgmr.msrb.gmra.mxu0 %vm2179_vm5, %v1493_v53 }
 0x103   : > { %883 = vmatpush.bf16.msra.mxu0 %v1808_v54  ;;  %v1887_v54 = vand.u32 127, %v381_v11 }
 0x105   : > { %v1890_v55 = vadd.s32 128, %v1887_v54  ;;  %v388_v56 = vand.u32 65535, %v1887_v54  ;;  %v389_v60 = vshrl.u32 %v1887_v54, 16 }
 0x107   : > { %884 = vmatpush.bf16.msra.mxu0 %v1820_v1  ;;  %v417_v57 = vand.u32 65535, %v1890_v55  ;;  %v418_v58 = vshrl.u32 %v1890_v55, 16  ;;  %v392_v61 = vmul.u32 58254, %v388_v56  ;;  %v391_v0 = vmul.u32 14564, %v388_v56 }
 0x108   : > { %v393_v1 = vmul.u32 14564, %v389_v60 }
 0x109   : > { %v421_v59 = vmul.u32 58254, %v417_v57  ;;  %v420_v62 = vmul.u32 14564, %v417_v57  ;;  %v422_v63 = vmul.u32 14564, %v418_v58  ;;  %v395_v2 = vshll.u32 %v392_v61, 16 }
 0x10a   : > { %v397_v10 = vshll.u32 %v393_v1, 16  ;;  %v423_v3 = vmul.u32 58254, %v418_v58  ;;  %v396_v28 = vshrl.u32 %v392_v61, 16  ;;  %v398_v32 = vshrl.u32 %v393_v1, 16 }
 0x10b   : > { %885 = vmatpush.bf16.msra.mxu0 %v1832_v14  ;;  %v426_v6 = vshll.u32 %v422_v63, 16  ;;  %vm399_vm10 = vc.u32 %v391_v0, %v395_v2  ;;  %v401_v12 = vadd.s32 %v395_v2, %v391_v0  ;;  %v394_v14 = vmul.u32 58254, %v389_v60 }
 0x10c   : > { %v400_v18 = vsel %vm399_vm10, 1, %v1591_v36  ;;  %v425_v26 = vshrl.u32 %v421_v59, 16  ;;  %v427_v30 = vshrl.u32 %v422_v63, 16 }
 0x10d   : > { %vm403_vm12 = vc.u32 %v401_v12, %v397_v10  ;;  %v402_v8 = vadd.s32 %v400_v18, %v394_v14 }
 0x10f   : > { %886 = vmatpush.bf16.msra.mxu0 %v1829_v13 }
 0x111   : > { %1496 = vmatmul.msk.bf16.vlgmr.msrb.gmra.mxu1 %vm2179_vm5, %v1493_v53 }
 0x113   : > { %887 = vmatpush.bf16.msra.mxu0 %v541_v21  ;;  %v404_v21 = vsel %vm403_vm12, 1, %v1591_v36 }
 0x117   : > { %888 = vmatpush.bf16.msra.mxu0 %v529_v29  ;;  %v406_v29 = vadd.s32 %v404_v21, %v402_v8  ;;  %v916_v8 = vpop.permute.xlu0 %915 }
 0x119   : > { %v407_v33 = vadd.s32 %v406_v29, %v396_v28 }
 0x11b   : > { %889 = vmatpush.bf16.msra.mxu0 %v517_v34  ;;  %v1907_v34 = vadd.s32 256, %v1887_v54  ;;  %v408_v42 = vadd.s32 %v407_v33, %v398_v32 }
 0x11d   : > { %v446_v35 = vand.u32 65535, %v1907_v34  ;;  %v447_v45 = vshrl.u32 %v1907_v34, 16  ;;  %v409_v48 = vshrl.u32 %v408_v42, 4 }
 0x11f   : > { %890 = vmatpush.bf16.msra.mxu0 %v1710_v16  ;;  %v424_v16 = vshll.u32 %v421_v59, 16  ;;  %v449_v49 = vmul.u32 14564, %v446_v35  ;;  %v451_v50 = vmul.u32 14564, %v447_v45  ;;  %v410_v53 = vmul.u32 18, %v409_v48 }
 0x120   : > { %v452_v61 = vmul.u32 58254, %v447_v45 }
 0x121   : > { %vm428_vm9 = vc.u32 %v420_v62, %v424_v16  ;;  %v430_v9 = vadd.s32 %v424_v16, %v420_v62  ;;  %v455_v17 = vshll.u32 %v451_v50, 16  ;;  %v411_v62 = vsub.s32 %v1887_v54, %v410_v53 }
 0x122   : > { %891 = vmatmul.bf16.vlgmr.msra.gmra.mxu0 %v1489_v46  ;;  %v429_v15 = vsel %vm428_vm9, 1, %v1591_v36  ;;  %v450_v46 = vmul.u32 58254, %v446_v35  ;;  %v456_v28 = vshrl.u32 %v451_v50, 16  ;;  %v921_v50 = vpop.permute.xlu1 %920 }
 0x123   : > { %vm432_vm11 = vc.u32 %v430_v9, %v426_v6  ;;  %v431_v19 = vadd.s32 %v429_v15, %v423_v3  ;;  %vm472_vm10 = vcmp.ne.s32.totalorder %v411_v62, 0  ;;  %v481_v54 = vadd.s32 18, %v411_v62 }
 0x124   : > { %v433_v20 = vsel %vm432_vm11, 1, %v1591_v36  ;;  %v453_v51 = vshll.u32 %v450_v46, 16  ;;  %vm475_vm11 = vcmp.lt.s32.totalorder %v411_v62, 0  ;;  %v454_v18 = vshrl.u32 %v450_v46, 16 }
 0x125   : > { %v435_v27 = vadd.s32 %v433_v20, %v431_v19 }
 0x126   : > { %vm457_vm13 = vc.u32 %v449_v49, %v453_v51  ;;  %v459_v11 = vadd.s32 %v453_v51, %v449_v49 }
 0x127   : > { %v1896_v4 = vpop.f32.mrf.mxu1  ;;  %v436_v31 = vadd.s32 %v435_v27, %v425_v26  ;;  %v458_v63 = vsel %vm457_vm13, 1, %v1591_v36  ;;  %vm1928_vm13 = vmand %vm475_vm11, %vm472_vm10 }
 0x128   : > { %vm461_vm14 = vc.u32 %v459_v11, %v455_v17  ;;  %v460_v16 = vadd.s32 %v458_v63, %v452_v61  ;;  %v484_v26 = vsel %vm1928_vm13, %v481_v54, %v411_v62 }
 0x129   : > { %v437_v37 = vadd.s32 %v436_v31, %v427_v30  ;;  %v462_v0 = vsel %vm461_vm14, 1, %v1591_v36 }
 0x12a   : > { %v464_v19 = vadd.s32 %v462_v0, %v460_v16 }
 0x12b   : > { %v438_v47 = vshrl.u32 %v437_v37, 4 }
 0x12c   : > { %v782_v5 = vpop.f32.mrf.mxu3  ;;  %v465_v29 = vadd.s32 %v464_v19, %v454_v18 }
 0x12d   : > { %v439_v52 = vmul.u32 18, %v438_v47 }
 0x12e   : > { %v466_v47 = vadd.s32 %v465_v29, %v456_v28 }
 0x12f   : > { %v1902_v22 = vpop.f32.mrf.mxu1  ;;  %v440_v60 = vsub.s32 %v1890_v55, %v439_v52 }
 0x130   : > { %v467_v11 = vshrl.u32 %v466_v47, 4 }
 0x131   : > { %vm473_vm15 = vcmp.ne.s32.totalorder %v440_v60, 0  ;;  %vm476_vm9 = vcmp.lt.s32.totalorder %v440_v60, 0  ;;  %v482_v2 = vadd.s32 18, %v440_v60 }
 0x132   : > { %vm1924_vm12 = vmand %vm476_vm9, %vm473_vm15  ;;  %vm1941_vm15 = vcmp.lt.s32.totalorder %v484_v26, 16  ;;  %vm951_vm9 = vcmask 150528   ;;  %v468_v62 = vmul.u32 18, %v467_v11 }
 0x133   : > { %952 = vst.msk [vmem:[%s1955_s14] sm:$0xf] %vm951_vm9, %v1591_v36 }
 0x134   : > { %v1904_v25 = vpop.f32.mrf.mxu3  ;;  %953 = vst.msk [vmem:[%s1955_s14 + $0xc] sm:$0xf] %vm951_vm9, %v1591_v36  ;;  %v469_v0 = vsub.s32 %v1907_v34, %v468_v62  ;;  %vm954_vm9 = vcmask 699800  }
 0x135   : > { %955 = vst.msk [vmem:[%s1955_s14 + $0x8] sm:$0xf] %vm954_vm9, %v1591_v36 }
 0x136   : > { %vm474_vm10 = vcmp.ne.s32.totalorder %v469_v0, 0  ;;  %vm477_vm11 = vcmp.lt.s32.totalorder %v469_v0, 0  ;;  %956 = vst.msk [vmem:[%s1955_s14 + $0x14] sm:$0xf] %vm954_vm9, %v1591_v36  ;;  %vm984_vm9 = vcmask 412672  }
 0x13c   : > { %v1912_v44 = vpop.f32.mrf.mxu3 }
 0x144   : > { %v1917_v59 = vpop.f32.mrf.mxu3 }
 0x147   : > { %v1910_v41 = vpop.f32.mrf.mxu1 }
 0x14f   : > { %v1915_v57 = vpop.f32.mrf.mxu1 }
 0x150   : > { %v813_v34 = vadd.f32 %v1917_v59, %v1915_v57 }
 0x153   : > { %v740_v43 = vpop.f32.mrf.mxu0 }
 0x154   : > { %v755_v6 = vadd.f32 %v1896_v4, %v740_v43  ;;  %v485_v4 = vsel %vm1924_vm12, %v482_v2, %v440_v60  ;;  %v811_v2 = vadd.f32 %v1912_v44, %v1910_v41  ;;  %vm480_vm12 = vmand %vm477_vm11, %vm474_vm10  ;;  %vm980_vm10 = vcmask 1043608  }
 0x155   : > { %vm1936_vm14 = vcmp.lt.s32.totalorder %v485_v4, 16  ;;  %vm981_vm11 = vcmask 1047556  }
 0x156   : > { %vm1985_vm5 = vmor %vm981_vm11, %vm980_vm10 }
 0x158   : > { %v768_v39 = vpop.f32.mrf.mxu2 }
 0x159   : > { %v783_v1 = vadd.f32 %v782_v5, %v768_v39 }
 0x15b   : > { %v742_v58 = vpop.f32.mrf.mxu0 }
 0x15c   : > { %v757_v37 = vadd.f32 %v1902_v22, %v742_v58 }
 0x160   : > { %v770_v56 = vpop.f32.mrf.mxu2 }
 0x161   : > { %v785_v32 = vadd.f32 %v1904_v25, %v770_v56 }
 0x17e   : > { %v878_v9 = vpop.f32.mrf.mxu1 }
 0x17f   : > { %v850_v12 = vpop.f32.mrf.mxu0 }
 0x180   : > { %v864_v10 = vpop.f32.mrf.mxu2 }
 0x181   : > { %v836_v3 = vpop.f32.mrf.mxu3  ;;  %v865_v14 = vadd.f32 %v864_v10, %v783_v1 }
 0x182   : > { %v837_v5 = vadd.f32 %v836_v3, %v755_v6  ;;  %v483_v6 = vadd.s32 18, %v469_v0 }
 0x183   : > { %v879_v20 = vadd.f32 %v878_v9, %v865_v14 }
 0x184   : > { %v851_v21 = vadd.f32 %v850_v12, %v837_v5  ;;  %v486_v54 = vsel %vm480_vm12, %v483_v6, %v469_v0  ;;  %vm971_vm12 = vcmask 154624  }
 0x185   : > { %v924_v27 = vadd.f32 %v916_v8, %v879_v20  ;;  %vm1969_vm13 = vcmp.lt.s32.totalorder %v486_v54, 16 }
 0x186   : > { %v923_v30 = vadd.f32 %v916_v8, %v851_v21  ;;  %v880_v48 = vpop.f32.mrf.mxu1 }
 0x187   : > { %v930_v33 = vmax.f32 %v924_v27, 0.0  ;;  %v852_v51 = vpop.f32.mrf.mxu0 }
 0x188   : > { %v929_v39 = vmax.f32 %v923_v30, 0.0  ;;  %v866_v42 = vpop.f32.mrf.mxu2 }
 0x189   : > { %v838_v43 = vpop.f32.mrf.mxu3  ;;  %v867_v45 = vadd.f32 %v866_v42, %v785_v32  ;;  %v942_v46 = vsel %vm1936_vm14, %v930_v33, 0.0 }
 0x18a   : > { %v839_v49 = vadd.f32 %v838_v43, %v757_v37  ;;  %v941_v25 = vsel %vm1941_vm15, %v929_v39, 0.0 }
 0x18b   : > { %v881_v52 = vadd.f32 %v880_v48, %v867_v45  ;;  %v947_v53 = vpack.c.bf16 %v942_v46, %v941_v25  ;;  %v1098_v25 = vld [vmem:[%s2174_s6] sm:$0xff] }
 0x18c   : > { %v853_v17 = vadd.f32 %v852_v51, %v839_v49  ;;  %v1316_v51 = vld [vmem:[%s2177_s9] sm:$0xff] }
 0x18d   : > { %v927_v22 = vadd.f32 %v921_v50, %v881_v52  ;;  %961 = vrot.lane.b32.xlu2 %v947_v53, %s1592_s30  ;;  %v1317_v52 = vld [vmem:[%s2177_s9 + $0x8] sm:$0xff] }
 0x18e   : > { %v926_v56 = vadd.f32 %v921_v50, %v853_v17  ;;  %v906_v1 = vpop.f32.mrf.mxu1 }
 0x18f   : > { %v933_v58 = vmax.f32 %v927_v22, 0.0 }
 0x190   : > { %v932_v60 = vmax.f32 %v926_v56, 0.0 }
 0x191   : > { %v945_v61 = vsel %vm1936_vm14, %v933_v58, 0.0 }
 0x192   : > { %v944_v63 = vsel %vm1941_vm15, %v932_v60, 0.0 }
 0x193   : > { %v949_v16 = vpack.c.bf16 %v945_v61, %v944_v63 }
 0x195   : > { %965 = vrot.lane.b32.xlu1 %v949_v16, %s1592_s30 }
 0x196   : > { %v908_v18 = vpop.f32.mrf.mxu1 }
 0x19f   : > { %v892_v9 = vpop.f32.mrf.mxu0 }
 0x1a0   : > { %v893_v10 = vadd.f32 %v892_v9, %v811_v2 }
 0x1a2   : > { %v907_v55 = vadd.f32 %v906_v1, %v893_v10 }
 0x1a4   : > { %v925_v12 = vadd.f32 %v916_v8, %v907_v55 }
 0x1a6   : > { %v931_v14 = vmax.f32 %v925_v12, 0.0 }
 0x1a7   : > { %v894_v15 = vpop.f32.mrf.mxu0 }
 0x1a8   : > { %v895_v41 = vadd.f32 %v894_v15, %v813_v34  ;;  %v943_v44 = vsel %vm1969_vm13, %v931_v14, 0.0 }
 0x1a9   : > { %v948_v19 = vpack.c.bf16 %v943_v44, %v943_v44 }
 0x1aa   : > { %v909_v5 = vadd.f32 %v908_v18, %v895_v41 }
 0x1ab   : > { %963 = vrot.lane.b32.xlu2 %v948_v19, %s1592_s30 }
 0x1ac   : > { %v928_v8 = vadd.f32 %v921_v50, %v909_v5 }
 0x1ae   : > { %v934_v20 = vmax.f32 %v928_v8, 0.0 }
 0x1b0   : > { %v946_v4 = vsel %vm1969_vm13, %v934_v20, 0.0 }
 0x1b1   : > { %v950_v21 = vpack.c.bf16 %v946_v4, %v946_v4 }
 0x1b3   : > { %967 = vrot.lane.b32.xlu0 %v950_v21, %s1592_s30 }
 0x1e7   : > { %v962_v57 = vpop.permute.xlu2 %961 }
 0x1e8   : > { %v969_v26 = vrot.slane %v962_v57, 4 }
 0x1ea   : > { %v972_v27 = vsel %vm971_vm12, %v969_v26, %v962_v57 }
 0x1eb   : > { %983 = vst.msk [vmem:[%s1955_s14] sm:$0xff] %vm1985_vm5, %v972_v27 }
 0x1f2   : > { %v1546_v33 = vld [vmem:[%s1955_s14 + $0x4] sm:$0xf]  ;;  %v1499_v37 = vld [vmem:[%s1955_s14] sm:$0xf] }
 0x205   : > { %v964_v36 = vpop.permute.xlu2 %963 }
 0x206   : > { %v973_v28 = vsel %vm971_vm12, %v969_v26, %v964_v36 }
 0x207   : > { %985 = vst.msk [vmem:[%s1955_s14 + $0x8] sm:$0xf] %vm984_vm9, %v973_v28  ;;  %v966_v29 = vpop.permute.xlu1 %965  ;;  %v1511_v28 = vld [vmem:[%s2173_s5] sm:$0xf] }
 0x208   : > { %v970_v30 = vrot.slane %v966_v29, 4 }
 0x20a   : > { %v974_v32 = vsel %vm971_vm12, %v970_v30, %v966_v29  ;;  %v1550_v29 = vld [vmem:[%s2173_s5 + $0x4] sm:$0xf0] }
 0x20b   : > { %986 = vst.msk [vmem:[%s1955_s14 + $0xc] sm:$0xff] %vm1985_vm5, %v974_v32  ;;  %v1549_v32 = vld [vmem:[%s2173_s5 + $0x4] sm:$0xf] }
 0x20e   : > { %v1507_v48 = vld [vmem:[%s1955_s14 + $0x8] sm:$0xf] }
 0x212   : > { %v1501_v39 = vld [vmem:[%s1955_s14 + $0xc] sm:$0xf0]  ;;  %v1547_v42 = vld [vmem:[%s1955_s14 + $0x8] sm:$0xf0] }
 0x213   : > { %v2004_v43 = vor.u32 %v1547_v42, %v1499_v37  ;;  %v2006_v45 = vor.u32 %v1546_v33, %v1501_v39  ;;  %v1513_v33 = vld [vmem:[%s2173_s5 + $0x8] sm:$0xf0] }
 0x215   : > { %1063 = vrot.lane.b32.xlu0 %v2004_v43, %s1584_s20  ;;  %1074 = vrot.lane.b32.xlu1 %v2004_v43, %s1583_s19 }
 0x216   : > { %1076 = vrot.lane.b32.xlu2 %v2006_v45, %s1583_s19 }
 0x21d   : > { %1052 = vrot.lane.b32.xlu0 %v2004_v43, %s1585_s21  ;;  %1065 = vrot.lane.b32.xlu1 %v2006_v45, %s1584_s20 }
 0x225   : > { %v968_v46 = vpop.permute.xlu0 %967  ;;  %1041 = vrot.lane.b32.xlu0 %v2004_v43, %s1586_s22  ;;  %1054 = vrot.lane.b32.xlu1 %v2006_v45, %s1585_s21 }
 0x226   : > { %v975_v47 = vsel %vm971_vm12, %v970_v30, %v968_v46  ;;  %v1512_v30 = vor.u32 %v1550_v29, %v1511_v28 }
 0x227   : > { %987 = vst.msk [vmem:[%s1955_s14 + $0x14] sm:$0xf] %vm984_vm9, %v975_v47 }
 0x22d   : > { %1030 = vrot.lane.b32.xlu0 %v2004_v43, %s1588_s27  ;;  %1043 = vrot.lane.b32.xlu1 %v2006_v45, %s1586_s22 }
 0x22e   : > { %v1548_v49 = vld [vmem:[%s1955_s14 + $0x10] sm:$0xf0] }
 0x22f   : > { %v2027_v50 = vor.u32 %v1548_v49, %v1507_v48 }
 0x231   : > { %1078 = vrot.lane.b32.xlu2 %v2027_v50, %s1583_s19 }
 0x235   : > { %1019 = vrot.lane.b32.xlu0 %v2004_v43, %s1589_s28  ;;  %1032 = vrot.lane.b32.xlu1 %v2006_v45, %s1588_s27 }
 0x239   : > { %1067 = vrot.lane.b32.xlu2 %v2027_v50, %s1584_s20 }
 0x23d   : > { %1008 = vrot.lane.b32.xlu0 %v2004_v43, %s1590_s29  ;;  %1021 = vrot.lane.b32.xlu1 %v2006_v45, %s1589_s28 }
 0x241   : > { %1056 = vrot.lane.b32.xlu2 %v2027_v50, %s1585_s21 }
 0x245   : > { %1085 = vrot.lane.b32.xlu0 %v2004_v43, %s1587_s23  ;;  %1010 = vrot.lane.b32.xlu1 %v2006_v45, %s1590_s29 }
 0x249   : > { %1045 = vrot.lane.b32.xlu2 %v2027_v50, %s1586_s22 }
 0x24d   : > { %1087 = vrot.lane.b32.xlu1 %v2006_v45, %s1587_s23  ;;  %1089 = vrot.lane.b32.xlu0 %v2027_v50, %s1587_s23 }
 0x251   : > { %1034 = vrot.lane.b32.xlu2 %v2027_v50, %s1588_s27 }
 0x255   : > { %1102 = vperm.xlu1 %1573, %v1098_v25   ;;  %1320 = vperm.xlu0 %1572, %v1316_v51  }
 0x259   : > { %1023 = vrot.lane.b32.xlu2 %v2027_v50, %s1589_s28 }
 0x25d   : > { %1325 = vperm.xlu1 %1573, %v1317_v52  }
 0x261   : > { %1012 = vrot.lane.b32.xlu2 %v2027_v50, %s1590_s29 }
 0x270   : > { %v1077_v53 = vpop.permute.xlu2 %1076 }
 0x287   : > { %v1075_v17 = vpop.permute.xlu1 %1074  ;;  %v1064_v22 = vpop.permute.xlu0 %1063 }
 0x288   : > { %v1080_v11 = vsel %vm590_vm0, %v1075_v17, %v1077_v53 }
 0x289   : > { %1122 = vmatpush.bf16.msrb.mxu3 %v1080_v11 }
 0x28b   : > { %v2073_v56 = vpop.permute.xlu2 %1078 }
 0x28c   : > { %v1081_v58 = vsel %vm590_vm0, %v1077_v53, %v2073_v56  ;;  %vm2192_vm0 = vcmask 130048  }
 0x28d   : > { %1150 = vmatpush.bf16.msra.mxu1 %v1081_v58  ;;  %vm2200_vm10 = vmmov %vm2192_vm0 }
 0x28f   : > { %v1066_v60 = vpop.permute.xlu1 %1065  ;;  %v1053_v61 = vpop.permute.xlu0 %1052 }
 0x290   : > { %v1069_v63 = vsel %vm578_vm1, %v1064_v22, %v1066_v60 }
 0x291   : > { %1123 = vmatpush.bf16.msrb.mxu3 %v1069_v63 }
 0x293   : > { %v2077_v62 = vpop.permute.xlu2 %1067 }
 0x294   : > { %v1070_v16 = vsel %vm578_vm1, %v1066_v60, %v2077_v62  ;;  %vm2193_vm1 = vmmov %vm2192_vm0 }
 0x295   : > { %1151 = vmatpush.bf16.msra.mxu1 %v1070_v16 }
 0x297   : > { %v1055_v0 = vpop.permute.xlu1 %1054  ;;  %v1042_v1 = vpop.permute.xlu0 %1041 }
 0x298   : > { %v1058_v6 = vsel %vm566_vm2, %v1053_v61, %v1055_v0 }
 0x299   : > { %1124 = vmatpush.bf16.msrb.mxu3 %v1058_v6 }
 0x29b   : > { %v1057_v2 = vpop.permute.xlu2 %1056 }
 0x29c   : > { %v1059_v9 = vsel %vm566_vm2, %v1055_v0, %v1057_v2  ;;  %vm2194_vm2 = vmmov %vm2192_vm0 }
 0x29d   : > { %1152 = vmatpush.bf16.msra.mxu1 %v1059_v9 }
 0x29f   : > { %v1044_v10 = vpop.permute.xlu1 %1043  ;;  %v1031_v55 = vpop.permute.xlu0 %1030 }
 0x2a0   : > { %v1047_v12 = vsel %vm554_vm3, %v1042_v1, %v1044_v10 }
 0x2a1   : > { %1125 = vmatpush.bf16.msrb.mxu3 %v1047_v12 }
 0x2a3   : > { %v1046_v54 = vpop.permute.xlu2 %1045 }
 0x2a4   : > { %v1048_v34 = vsel %vm554_vm3, %v1044_v10, %v1046_v54  ;;  %vm2195_vm3 = vmmov %vm2192_vm0 }
 0x2a5   : > { %1153 = vmatpush.bf16.msra.mxu1 %v1048_v34 }
 0x2a7   : > { %v1033_v14 = vpop.permute.xlu1 %1032  ;;  %v1020_v15 = vpop.permute.xlu0 %1019 }
 0x2a8   : > { %v1036_v41 = vsel %vm542_vm6, %v1031_v55, %v1033_v14 }
 0x2a9   : > { %1126 = vmatpush.bf16.msrb.mxu3 %v1036_v41 }
 0x2ab   : > { %v1035_v18 = vpop.permute.xlu2 %1034 }
 0x2ac   : > { %v1037_v44 = vsel %vm542_vm6, %v1033_v14, %v1035_v18  ;;  %vm2197_vm6 = vmmov %vm2192_vm0 }
 0x2ad   : > { %1154 = vmatpush.bf16.msra.mxu1 %v1037_v44 }
 0x2af   : > { %v1022_v19 = vpop.permute.xlu1 %1021  ;;  %v1009_v5 = vpop.permute.xlu0 %1008 }
 0x2b0   : > { %v1025_v20 = vsel %vm530_vm7, %v1020_v15, %v1022_v19 }
 0x2b1   : > { %1127 = vmatpush.bf16.msrb.mxu3 %v1025_v20 }
 0x2b3   : > { %v1024_v8 = vpop.permute.xlu2 %1023 }
 0x2b4   : > { %v1026_v4 = vsel %vm530_vm7, %v1022_v19, %v1024_v8  ;;  %vm2198_vm7 = vmmov %vm2192_vm0 }
 0x2b5   : > { %1155 = vmatpush.bf16.msra.mxu1 %v1026_v4 }
 0x2b7   : > { %v1011_v21 = vpop.permute.xlu1 %1010  ;;  %v1086_v57 = vpop.permute.xlu0 %1085 }
 0x2b8   : > { %v1014_v27 = vsel %vm518_vm8, %v1009_v5, %v1011_v21 }
 0x2b9   : > { %1128 = vmatpush.bf16.msrb.mxu3 %v1014_v27 }
 0x2bb   : > { %v1013_v26 = vpop.permute.xlu2 %1012 }
 0x2bc   : > { %v1015_v36 = vsel %vm518_vm8, %v1011_v21, %v1013_v26  ;;  %vm2199_vm8 = vmmov %vm2192_vm0 }
 0x2bd   : > { %1156 = vmatpush.bf16.msra.mxu1 %v1015_v36  ;;  %1129 = vmatpush.bf16.msrb.mxu3 %v2004_v43  ;;  %v1516_v43 = vor.u32 %v1549_v32, %v1513_v33 }
 0x2bf   : > { %v1088_v37 = vpop.permute.xlu1 %1087  ;;  %v1090_v39 = vpop.permute.xlu0 %1089 }
 0x2c0   : > { %v1091_v42 = vsel %vm602_vm4, %v1086_v57, %v1088_v37  ;;  %v1092_v46 = vsel %vm602_vm4, %v1088_v37, %v1090_v39  ;;  %1130 = vmatmul.bf16.vlgmr.msrb.gmra.mxu3 %v1512_v30  ;;  %vm2196_vm4 = vmmov %vm2192_vm0 }
 0x2c1   : > { %1157 = vmatpush.bf16.msra.mxu1 %v2006_v45  ;;  %1199 = vmatpush.bf16.msra.mxu3 %v1090_v39 }
 0x2c2   : > { %1143 = vmatpush.bf16.msra.mxu2 %v1091_v42  ;;  %1171 = vmatpush.bf16.msrb.mxu0 %v1092_v46 }
 0x2c4   : > { %1158 = vmatmul.bf16.vlgmr.msra.gmra.mxu1 %v1512_v30 }
 0x2c5   : > { %1245 = vmatpush.bf16.msrb.mxu1 %v1787_v38  ;;  %1259 = vmatpush.bf16.msrb.mxu3 %v1770_v23  ;;  %v1552_v23 = vld [vmem:[%s2176_s8] sm:$0xff]  ;;  %v1099_v38 = vld [vmem:[%s2174_s6 + $0x8] sm:$0xff] }
 0x2c6   : > { %1178 = vmatpush.bf16.msrb.mxu2 %v2073_v56  ;;  %1231 = vmatpush.bf16.msra.mxu0 %v1790_v40  ;;  %v1551_v40 = vld [vmem:[%s2175_s7] sm:$0xff] }
 0x2c7   : > { %1517 = vmatmul.msk.bf16.vlgmr.msra.gmra.mxu2 %vm2192_vm0, %v1516_v43  ;;  %1518 = vmatmul.msk.bf16.vlgmr.msrb.gmra.mxu0 %vm2193_vm1, %v1516_v43  ;;  %v1103_v58 = vpop.permute.xlu1 %1102  ;;  %v1321_v16 = vpop.permute.xlu0 %1320 }
 0x2c8   : > { %1107 = vperm.xlu2 %1574, %v1099_v38  }
 0x2c9   : > { %1309 = vmatpush.bf16.msra.mxu1 %v1829_v13 }
 0x2ca   : > { %1281 = vmatpush.bf16.msrb.mxu0 %v1844_v24  ;;  %1179 = vmatpush.bf16.msrb.mxu2 %v2077_v62 }
 0x2ce   : > { %1180 = vmatpush.bf16.msrb.mxu2 %v1057_v2 }
 0x2cf   : > { %v1326_v42 = vpop.permute.xlu1 %1325 }
 0x2d0   : > { %1519 = vmatmul.msk.bf16.vlgmr.msra.gmra.mxu3 %vm2194_vm2, %v1516_v43 }
 0x2d2   : > { %1181 = vmatpush.bf16.msrb.mxu2 %v1046_v54 }
 0x2d4   : > { %1525 = vmatmul.msk.bf16.vlgmr.msrb.gmra.mxu1 %vm2195_vm3, %v1552_v23 }
 0x2d6   : > { %1182 = vmatpush.bf16.msrb.mxu2 %v1035_v18 }
 0x2d7   : > { %1524 = vmatmul.msk.bf16.vlgmr.msra.gmra.mxu0 %vm2196_vm4, %v1552_v23 }
 0x2da   : > { %1183 = vmatpush.bf16.msrb.mxu2 %v1024_v8 }
 0x2de   : > { %1184 = vmatpush.bf16.msrb.mxu2 %v1013_v26 }
 0x2e0   : > { %1526 = vmatmul.msk.bf16.vlgmr.msrb.gmra.mxu3 %vm2197_vm6, %v1552_v23 }
 0x2e2   : > { %1185 = vmatpush.bf16.msrb.mxu2 %v2027_v50 }
 0x2e4   : > { %1533 = vmatmul.msk.bf16.vlgmr.msra.gmra.mxu1 %vm2198_vm7, %v1551_v40 }
 0x2e5   : > { %1186 = vmatmul.bf16.vlgmr.msrb.gmra.mxu2 %v1512_v30 }
 0x2e6   : > { %1295 = vmatpush.bf16.msra.mxu2 %v1841_v7 }
 0x2e7   : > { %1531 = vmatmul.msk.bf16.vlgmr.msrb.gmra.mxu0 %vm2199_vm8, %v1551_v40 }
 0x2f5   : > { %1532 = vmatmul.msk.bf16.vlgmr.msra.gmra.mxu2 %vm2200_vm10, %v1551_v40 }
 0x322   : > { %v1108_v14 = vpop.permute.xlu2 %1107 }
 0x341   : > { %v1159_v13 = vpop.f32.mrf.mxu1 }
 0x342   : > { %v1160_v55 = vadd.f32 %v1159_v13, %v1103_v58 }
 0x343   : > { %v1131_v45 = vpop.f32.mrf.mxu3 }
 0x344   : > { %v1173_v24 = vpop.f32.mrf.mxu0  ;;  %v1132_v12 = vadd.f32 %v1131_v45, %v1103_v58 }
 0x345   : > { %v1174_v41 = vadd.f32 %v1173_v24, %v1160_v55 }
 0x347   : > { %v1207_v27 = vmax.f32 %v1174_v41, 0.0 }
 0x349   : > { %v1161_v47 = vpop.f32.mrf.mxu1 }
 0x34a   : > { %v1145_v25 = vpop.f32.mrf.mxu2  ;;  %v1162_v36 = vadd.f32 %v1161_v47, %v1108_v14 }
 0x34b   : > { %v1133_v48 = vpop.f32.mrf.mxu3  ;;  %v1146_v15 = vadd.f32 %v1145_v25, %v1132_v12 }
 0x34c   : > { %v1175_v49 = vpop.f32.mrf.mxu0  ;;  %v1134_v21 = vadd.f32 %v1133_v48, %v1108_v14 }
 0x34d   : > { %v1206_v4 = vmax.f32 %v1146_v15, 0.0  ;;  %v1176_v46 = vadd.f32 %v1175_v49, %v1162_v36 }
 0x351   : > { %v1247_v7 = vpop.f32.mrf.mxu1 }
 0x352   : > { %v1147_v17 = vpop.f32.mrf.mxu2 }
 0x353   : > { %v1201_v50 = vpop.f32.mrf.mxu3  ;;  %v1148_v33 = vadd.f32 %v1147_v17, %v1134_v21 }
 0x354   : > { %v1233_v51 = vpop.f32.mrf.mxu0 }
 0x355   : > { %v1209_v45 = vmax.f32 %v1148_v33, 0.0 }
 0x359   : > { %v1249_v52 = vpop.f32.mrf.mxu1 }
 0x35b   : > { %v1203_v53 = vpop.f32.mrf.mxu3 }
 0x35c   : > { %v1235_v22 = vpop.f32.mrf.mxu0 }
 0x361   : > { %v1311_v56 = vpop.f32.mrf.mxu1 }
 0x363   : > { %v1261_v11 = vpop.f32.mrf.mxu3 }
 0x364   : > { %v1312_v61 = vadd.f32 %v1311_v56, %v1261_v11  ;;  %v1283_v0 = vpop.f32.mrf.mxu0 }
 0x365   : > { %v1284_v34 = vadd.f32 %v1283_v0, %v1233_v51 }
 0x366   : > { %v1330_v1 = vadd.f32 %v1321_v16, %v1312_v61 }
 0x367   : > { %v1328_v44 = vadd.f32 %v1321_v16, %v1284_v34 }
 0x368   : > { %v1187_v60 = vpop.f32.mrf.mxu2 }
 0x369   : > { %v1188_v62 = vadd.f32 %v1187_v60, %v1103_v58  ;;  %v1313_v5 = vpop.f32.mrf.mxu1  ;;  %v1334_v28 = vadd.f32 %v1328_v44, %v1206_v4 }
 0x36b   : > { %v1202_v63 = vadd.f32 %v1201_v50, %v1188_v62  ;;  %v1263_v8 = vpop.f32.mrf.mxu3  ;;  %v1340_v38 = vsel %vm1941_vm15, %v1334_v28, 0.0 }
 0x36c   : > { %v1285_v19 = vpop.f32.mrf.mxu0  ;;  %v1314_v30 = vadd.f32 %v1313_v5, %v1263_v8 }
 0x36d   : > { %v1208_v2 = vmax.f32 %v1202_v63, 0.0  ;;  %v1286_v29 = vadd.f32 %v1285_v19, %v1235_v22 }
 0x36e   : > { %v1333_v23 = vadd.f32 %v1326_v42, %v1314_v30 }
 0x36f   : > { %v1336_v6 = vadd.f32 %v1330_v1, %v1208_v2  ;;  %v1331_v43 = vadd.f32 %v1326_v42, %v1286_v29 }
 0x370   : > { %v1189_v9 = vpop.f32.mrf.mxu2 }
 0x371   : > { %v1342_v10 = vsel %vm1969_vm13, %v1336_v6, 0.0  ;;  %v1190_v18 = vadd.f32 %v1189_v9, %v1108_v14  ;;  %v1337_v50 = vadd.f32 %v1331_v43, %v1209_v45 }
 0x372   : > { %v1347_v54 = vpack.c.bf16 %v1342_v10, %v1342_v10 }
 0x373   : > { %v1204_v57 = vadd.f32 %v1203_v53, %v1190_v18  ;;  %v1343_v53 = vsel %vm1941_vm15, %v1337_v50, 0.0 }
 0x374   : > { %1356 = vrot.lane.b32.xlu1 %v1347_v54, %s1592_s30 }
 0x375   : > { %v1211_v37 = vmax.f32 %v1204_v57, 0.0 }
 0x377   : > { %v1339_v47 = vadd.f32 %v1333_v23, %v1211_v37 }
 0x378   : > { %v1297_v20 = vpop.f32.mrf.mxu2 }
 0x379   : > { %v1298_v26 = vadd.f32 %v1297_v20, %v1247_v7  ;;  %v1210_v7 = vmax.f32 %v1176_v46, 0.0  ;;  %v1345_v51 = vsel %vm1969_vm13, %v1339_v47, 0.0 }
 0x37b   : > { %v1329_v32 = vadd.f32 %v1321_v16, %v1298_v26 }
 0x37d   : > { %v1335_v39 = vadd.f32 %v1329_v32, %v1207_v27 }
 0x37f   : > { %v1341_v40 = vsel %vm1936_vm14, %v1335_v39, 0.0 }
 0x380   : > { %v1299_v13 = vpop.f32.mrf.mxu2  ;;  %v1346_v24 = vpack.c.bf16 %v1341_v40, %v1340_v38 }
 0x381   : > { %v1300_v48 = vadd.f32 %v1299_v13, %v1249_v52  ;;  %v1349_v52 = vpack.c.bf16 %v1345_v51, %v1345_v51 }
 0x382   : > { %1354 = vrot.lane.b32.xlu2 %v1346_v24, %s1592_s30 }
 0x383   : > { %v1332_v49 = vadd.f32 %v1326_v42, %v1300_v48 }
 0x385   : > { %v1338_v25 = vadd.f32 %v1332_v49, %v1210_v7 }
 0x387   : > { %v1344_v17 = vsel %vm1936_vm14, %v1338_v25, 0.0 }
 0x388   : > { %v1348_v22 = vpack.c.bf16 %v1344_v17, %v1343_v53 }
 0x38a   : > { %1358 = vrot.lane.b32.xlu0 %v1348_v22, %s1592_s30  ;;  %1360 = vrot.lane.b32.xlu2 %v1349_v52, %s1592_s30 }
 0x3dc   : > { %v1355_v11 = vpop.permute.xlu2 %1354 }
 0x3dd   : > { %v1362_v56 = vrot.slane %v1355_v11, 4 }
 0x3df   : > { %v1364_v58 = vsel %vm971_vm12, %v1362_v56, %v1355_v11 }
 0x3e0   : > { %1372 = vst.msk [vmem:[%s1955_s14] sm:$0xff] %vm1985_vm5, %v1364_v58 }
 0x3e4   : > { %v1361_v61 = vpop.permute.xlu2 %1360 }
 0x3e6   : > { %v1357_v35 = vpop.permute.xlu1 %1356 }
 0x3e7   : > { %v1365_v3 = vsel %vm971_vm12, %v1362_v56, %v1357_v35 }
 0x3e8   : > { %1373 = vst.msk [vmem:[%s1955_s14 + $0x8] sm:$0xf] %vm984_vm9, %v1365_v3 }
 0x3fc   : > { %v1359_v31 = vpop.permute.xlu0 %1358 }
 0x3fd   : > { %v1363_v60 = vrot.slane %v1359_v31, 4 }
 0x3ff   : > { %v1366_v62 = vsel %vm971_vm12, %v1363_v60, %v1359_v31  ;;  %v1367_v63 = vsel %vm971_vm12, %v1363_v60, %v1361_v61 }
 0x400   : > { %1374 = vst.msk [vmem:[%s1955_s14 + $0xc] sm:$0xff] %vm1985_vm5, %v1366_v62 }
 0x401   : > { %1375 = vst.msk [vmem:[%s1955_s14 + $0x14] sm:$0xf] %vm984_vm9, %v1367_v63 }
 0x402 PF: > { %s20_s13 = sadd.s32 1, %s1581_s13  }
 0x403   : > { %p17_p4 = scmp.ge.s32.totalorder %s20_s13, 4  }
 0x405   :  { %19 = sbr.rel (!%p17_p4) target bundleno = 1 (0x1), region = 93 }

// kernel: _lambda_.10
= control target key start
LH: loop header
LB: loop body
LE: loop exit
PB: predicated region body
PF: predicated region fallthrough
CT: control target
= control target key end

     0   :  { %s3024_s13 = smov 0   ;;  %s4827_s0 = inlined_call_operand.vmem [shape: bf16[2,8,1190], index: 0, kind: input, shape index: {}]   ;;  %s4828_s1 = inlined_call_operand.vmem [shape: bf16[2,8,1190], index: 1, kind: input, shape index: {}]   ;;  %s4829_s2 = inlined_call_operand.vmem [shape: bf16[8,72], index: 2, kind: input, shape index: {}]   ;;  %s4830_s3 = inlined_call_operand.vmem [shape: bf16[8,72], index: 3, kind: input, shape index: {}]   ;;  %s4831_s4 = inlined_call_operand.vmem [shape: f32[8,1], index: 4, kind: input, shape index: {}]   ;;  %s4832_s5 = inlined_call_operand.vmem [shape: bf16[8,72], index: 5, kind: input, shape index: {}]   ;;  %s4833_s6 = inlined_call_operand.vmem [shape: f32[8,1], index: 6, kind: input, shape index: {}]   ;;  %s4834_s7 = inlined_call_operand.vmem [shape: bf16[8,8], index: 7, kind: input, shape index: {}]   ;;  %s4835_s8 = inlined_call_operand.vmem [shape: bf16[8,8], index: 8, kind: input, shape index: {}]   ;;  %s4836_s9 = inlined_call_operand.vmem [shape: f32[8,1], index: 9, kind: input, shape index: {}]   ;;  %s4837_s10 = inlined_call_operand.vmem [shape: bf16[2,8,1190], index: 10, kind: output, shape index: {}]  }
   0x1 LB: > { %s2874_s14 = sadd.s32 4294967295, %s2957_s13   ;;  %p2878_p0 = scmp.ge.s32.totalorder %s2957_s13, 1  ;;  %s2957_s13 = sphi %s3024_s13, %s20_s13  }
   0x2   : > { %p322_p1 = scmp.lt.s32.totalorder %s2957_s13, 3 }
   0x4   : > { %p323_p2 = pnand %p2878_p0, %p322_p1 }
   0x6   : > { %326 = sbr.rel (%p323_p2) target bundleno = 1378 (0x562), region = 60 }
   0xb   : > { %p365_p3 = scmp.lt.s32.totalorder %s2874_s14, 1  ;;  %s2959_s19 = smov 127   ;;  %vm4856_vm0 = vcmask 474112   ;;  %vm962_vm1 = vcmask 1043456   ;;  %vm4849_vm2 = vcmask 482304   ;;  %vm4848_vm3 = vcmask 490496  }
   0xc   : > { %s2960_s20 = smov 126   ;;  %s2961_s21 = smov 94   ;;  %vm4847_vm4 = vcmask 760832   ;;  %vm4846_vm5 = vcmask 752640   ;;  %vm4845_vm6 = vcmask 1031168   ;;  %vm4844_vm7 = vcmask 769024  }
   0xd   : > { %s5003_s14 = smov (!%p365_p3, %s2874_s14), 1  ;;  %s2962_s25 = smov 60   ;;  %vm4843_vm8 = vcmask 1039360   ;;  %vm4842_vm9 = vcmask 588800  }
   0xe   : > { %s3032_s15 = smul.u32 40, %s5003_s14  ;;  %s2963_s26 = smov 58  }
   0xf   : > { %s2964_s27 = smov 59   ;;  %s2965_s28 = smov 92  }
  0x10   : > { %s369_s18 = scalar_lea.vmem %s4827_s0, %s3032_s15  ;;  %s3105_s24 = scalar_lea.vmem %s4828_s1, %s3032_s15 }
  0x11   : > { %v708_v0 = vld [vmem:[%s369_s18 + $0x10] sm:$0xff]  ;;  %v707_v1 = vld [vmem:[%s369_s18 + $0x8] sm:$0xff]  ;;  %v706_v2 = vld [vmem:[%s369_s18] sm:$0xff]  ;;  %s2966_s29 = smov 93  }
  0x12   : > { %v721_v3 = vunpack.c.l.b16 %v708_v0  ;;  %v719_v4 = vunpack.c.l.b16 %v707_v1  ;;  %v717_v5 = vunpack.c.l.b16 %v706_v2  ;;  %v722_v9 = vunpack.c.h.b16 %v708_v0  ;;  %v3056_v15 = vld [vmem:[%s369_s18 + $0x20] sm:$0xff]  ;;  %v709_v16 = vld [vmem:[%s369_s18 + $0x18] sm:$0xff]  ;;  %v1108_v28 = vld [vmem:[%s3105_s24 + $0x8] sm:$0xff]  ;;  %s2968_s18 = smov 35  }
  0x13   : > { %v720_v10 = vunpack.c.h.b16 %v707_v1  ;;  %v718_v11 = vunpack.c.h.b16 %v706_v2  ;;  %v725_v17 = vunpack.c.l.b16 %v3056_v15  ;;  %v724_v18 = vunpack.c.h.b16 %v709_v16  ;;  %v1107_v23 = vld [vmem:[%s3105_s24] sm:$0xff]  ;;  %v1109_v33 = vld [vmem:[%s3105_s24 + $0x10] sm:$0xff]  ;;  %v1110_v2 = vld [vmem:[%s3105_s24 + $0x18] sm:$0xff] }
  0x14   : > { %v3038_v6 = vpack.c.b16 %v721_v3, %v721_v3  ;;  %v3040_v7 = vpack.c.b16 %v719_v4, %v719_v4  ;;  %v3042_v8 = vpack.c.b16 %v717_v5, %v717_v5  ;;  %v3050_v12 = vpack.c.b16 %v722_v9, %v722_v9  ;;  %v3263_v1 = vld [vmem:[%s3105_s24 + $0x20] sm:$0xff]  ;;  %s4193_s24 = scalar_lea.vmem %s4837_s10, %s3032_s15 }
  0x15   : > { %v3052_v13 = vpack.c.b16 %v720_v10, %v720_v10  ;;  %v3054_v14 = vpack.c.b16 %v718_v11, %v718_v11  ;;  %v723_v19 = vunpack.c.l.b16 %v709_v16  ;;  %v3065_v20 = vpack.c.b16 %v725_v17, %v725_v17 }
  0x16   : > { %743 = vrot.lane.b32.xlu2 %v3038_v6, %s2959_s19  ;;  %739 = vrot.lane.b32.xlu1 %v3040_v7, %s2959_s19  ;;  %v3067_v21 = vpack.c.b16 %v724_v18, %v724_v18  ;;  %v1118_v24 = vunpack.c.l.b16 %v1107_v23  ;;  %v1119_v25 = vunpack.c.h.b16 %v1107_v23  ;;  %v1121_v29 = vunpack.c.h.b16 %v1108_v28 }
  0x17   : > { %735 = vrot.lane.b32.xlu0 %v3042_v8, %s2959_s19  ;;  %v3069_v22 = vpack.c.b16 %v723_v19, %v723_v19  ;;  %v1120_v30 = vunpack.c.l.b16 %v1108_v28  ;;  %v1122_v34 = vunpack.c.l.b16 %v1109_v33  ;;  %v1123_v42 = vunpack.c.h.b16 %v1109_v33 }
  0x18   : > { %v3114_v26 = vpack.c.b16 %v1118_v24, %v1118_v24  ;;  %v3116_v27 = vpack.c.b16 %v1119_v25, %v1119_v25  ;;  %v3137_v31 = vpack.c.b16 %v1121_v29, %v1121_v29  ;;  %v1126_v3 = vunpack.c.l.b16 %v3263_v1 }
  0x19   : > { %v3139_v32 = vpack.c.b16 %v1120_v30, %v1120_v30  ;;  %v3150_v36 = vpack.c.b16 %v1122_v34, %v1122_v34  ;;  %v3192_v46 = vpack.c.b16 %v1123_v42, %v1123_v42  ;;  %v1125_v4 = vunpack.c.h.b16 %v1110_v2 }
  0x1a   : > { %v1124_v5 = vunpack.c.l.b16 %v1110_v2  ;;  %v3274_v17 = vpack.c.b16 %v1126_v3, %v1126_v3 }
  0x1b   : > { %v3276_v18 = vpack.c.b16 %v1125_v4, %v1125_v4 }
  0x1c   : > { %v3279_v23 = vpack.c.b16 %v1124_v5, %v1124_v5 }
  0x1e   : > { %745 = vrot.lane.b32.xlu2 %v3050_v12, %s2959_s19  ;;  %741 = vrot.lane.b32.xlu1 %v3052_v13, %s2959_s19 }
  0x1f   : > { %737 = vrot.lane.b32.xlu0 %v3054_v14, %s2959_s19 }
  0x26   : > { %751 = vrot.lane.b32.xlu2 %v3065_v20, %s2959_s19  ;;  %749 = vrot.lane.b32.xlu1 %v3067_v21, %s2959_s19 }
  0x27   : > { %747 = vrot.lane.b32.xlu0 %v3069_v22, %s2959_s19 }
  0x2e   : > { %766 = vrot.lane.b32.xlu2 %v3040_v7, %s2960_s20  ;;  %764 = vrot.lane.b32.xlu1 %v3054_v14, %s2960_s20 }
  0x2f   : > { %762 = vrot.lane.b32.xlu0 %v3042_v8, %s2960_s20 }
  0x36   : > { %772 = vrot.lane.b32.xlu2 %v3050_v12, %s2960_s20  ;;  %770 = vrot.lane.b32.xlu1 %v3038_v6, %s2960_s20 }
  0x37   : > { %768 = vrot.lane.b32.xlu0 %v3052_v13, %s2960_s20 }
  0x3e   : > { %778 = vrot.lane.b32.xlu2 %v3065_v20, %s2960_s20  ;;  %776 = vrot.lane.b32.xlu1 %v3067_v21, %s2960_s20 }
  0x3f   : > { %774 = vrot.lane.b32.xlu0 %v3069_v22, %s2960_s20 }
  0x46   : > { %793 = vrot.lane.b32.xlu2 %v3040_v7, %s2961_s21  ;;  %791 = vrot.lane.b32.xlu1 %v3054_v14, %s2961_s21 }
  0x47   : > { %789 = vrot.lane.b32.xlu0 %v3042_v8, %s2961_s21 }
  0x4e   : > { %799 = vrot.lane.b32.xlu2 %v3050_v12, %s2961_s21  ;;  %797 = vrot.lane.b32.xlu1 %v3038_v6, %s2961_s21 }
  0x4f   : > { %795 = vrot.lane.b32.xlu0 %v3052_v13, %s2961_s21 }
  0x56   : > { %1268 = vrot.lane.b32.xlu2 %v3114_v26, %s2962_s25  ;;  %1328 = vrot.lane.b32.xlu1 %v3116_v27, %s2963_s26 }
  0x57   : > { %1326 = vrot.lane.b32.xlu0 %v3114_v26, %s2963_s26 }
  0x5e   : > { %1299 = vrot.lane.b32.xlu2 %v3116_v27, %s2964_s27  ;;  %1297 = vrot.lane.b32.xlu1 %v3114_v26, %s2964_s27 }
  0x5f   : > { %1270 = vrot.lane.b32.xlu0 %v3116_v27, %s2962_s25 }
  0x66   : > { %1240 = vrot.lane.b32.xlu2 %v3114_v26, %s2965_s28  ;;  %1216 = vrot.lane.b32.xlu1 %v3116_v27, %s2966_s29 }
  0x67   : > { %1214 = vrot.lane.b32.xlu0 %v3114_v26, %s2966_s29 }
  0x6e   : > { %1332 = vrot.lane.b32.xlu2 %v3137_v31, %s2963_s26  ;;  %1330 = vrot.lane.b32.xlu1 %v3139_v32, %s2963_s26 }
  0x6f   : > { %1242 = vrot.lane.b32.xlu0 %v3116_v27, %s2965_s28 }
  0x70   : > { %v3148_v35 = vpop.permute.xlu2 %743 }
  0x76   : > { %1164 = vrot.lane.b32.xlu2 %v3116_v27, %s2960_s20  ;;  %1162 = vrot.lane.b32.xlu1 %v3114_v26, %s2960_s20 }
  0x77   : > { %1334 = vrot.lane.b32.xlu0 %v3150_v36, %s2963_s26 }
  0x78   : > { %v3158_v37 = vpop.permute.xlu2 %745 }
  0x7e   : > { %1272 = vrot.lane.b32.xlu2 %v3139_v32, %s2962_s25  ;;  %1190 = vrot.lane.b32.xlu1 %v3116_v27, %s2961_s21 }
  0x7f   : > { %1188 = vrot.lane.b32.xlu0 %v3114_v26, %s2961_s21 }
  0x80   : > { %v3166_v38 = vpop.permute.xlu2 %751 }
  0x86   : > { %1301 = vrot.lane.b32.xlu2 %v3139_v32, %s2964_s27  ;;  %1276 = vrot.lane.b32.xlu1 %v3150_v36, %s2962_s25 }
  0x87   : > { %1274 = vrot.lane.b32.xlu0 %v3137_v31, %s2962_s25 }
  0x88   : > { %v3174_v39 = vpop.permute.xlu2 %766  ;;  %v3176_v40 = vpop.permute.xlu1 %739 }
  0x89   : > { %v3178_v41 = vpop.permute.xlu0 %735 }
  0x8e   : > { %1136 = vrot.lane.b32.xlu2 %v3114_v26, %s2959_s19  ;;  %1305 = vrot.lane.b32.xlu1 %v3150_v36, %s2964_s27 }
  0x8f   : > { %1303 = vrot.lane.b32.xlu0 %v3137_v31, %s2964_s27 }
  0x90   : > { %v3186_v43 = vpop.permute.xlu2 %772  ;;  %v3188_v44 = vpop.permute.xlu1 %741 }
  0x91   : > { %v3190_v45 = vpop.permute.xlu0 %737 }
  0x96   : > { %1218 = vrot.lane.b32.xlu2 %v3139_v32, %s2966_s29  ;;  %1336 = vrot.lane.b32.xlu1 %v3192_v46, %s2963_s26 }
  0x97   : > { %1138 = vrot.lane.b32.xlu0 %v3116_v27, %s2959_s19 }
  0x98   : > { %v3200_v47 = vpop.permute.xlu2 %778  ;;  %v3202_v48 = vpop.permute.xlu1 %749 }
  0x99   : > { %v3204_v49 = vpop.permute.xlu0 %747 }
  0x9e   : > { %1244 = vrot.lane.b32.xlu2 %v3139_v32, %s2965_s28  ;;  %1222 = vrot.lane.b32.xlu1 %v3150_v36, %s2966_s29 }
  0x9f   : > { %1220 = vrot.lane.b32.xlu0 %v3137_v31, %s2966_s29 }
  0xa0   : > { %v3212_v50 = vpop.permute.xlu2 %793  ;;  %v3214_v51 = vpop.permute.xlu1 %764 }
  0xa1   : > { %v3216_v52 = vpop.permute.xlu0 %762 }
  0xa6   : > { %1278 = vrot.lane.b32.xlu2 %v3192_v46, %s2962_s25  ;;  %1248 = vrot.lane.b32.xlu1 %v3150_v36, %s2965_s28 }
  0xa7   : > { %1246 = vrot.lane.b32.xlu0 %v3137_v31, %s2965_s28 }
  0xa8   : > { %v3224_v53 = vpop.permute.xlu2 %799  ;;  %v3226_v54 = vpop.permute.xlu1 %770 }
  0xa9   : > { %v3228_v55 = vpop.permute.xlu0 %768 }
  0xae   : > { %1168 = vrot.lane.b32.xlu2 %v3137_v31, %s2960_s20  ;;  %1166 = vrot.lane.b32.xlu1 %v3139_v32, %s2960_s20 }
  0xaf   : > { %1307 = vrot.lane.b32.xlu0 %v3192_v46, %s2964_s27 }
  0xb0   : > { %v1269_v56 = vpop.permute.xlu2 %1268  ;;  %v3236_v57 = vpop.permute.xlu1 %776 }
  0xb1   : > { %v3238_v58 = vpop.permute.xlu0 %774 }
  0xb6   : > { %1194 = vrot.lane.b32.xlu2 %v3137_v31, %s2961_s21  ;;  %1192 = vrot.lane.b32.xlu1 %v3139_v32, %s2961_s21 }
  0xb7   : > { %1170 = vrot.lane.b32.xlu0 %v3150_v36, %s2960_s20 }
  0xb8   : > { %v3246_v59 = vpop.permute.xlu2 %1299  ;;  %v3248_v60 = vpop.permute.xlu1 %791 }
  0xb9   : > { %v3250_v61 = vpop.permute.xlu0 %789 }
  0xbe   : > { %1250 = vrot.lane.b32.xlu2 %v3192_v46, %s2965_s28  ;;  %1224 = vrot.lane.b32.xlu1 %v3192_v46, %s2966_s29 }
  0xbf   : > { %1196 = vrot.lane.b32.xlu0 %v3150_v36, %s2961_s21 }
  0xc0   : > { %v1241_v62 = vpop.permute.xlu2 %1240  ;;  %v3258_v63 = vpop.permute.xlu1 %797 }
  0xc1   : > { %v3260_v0 = vpop.permute.xlu0 %795 }
  0xc6   : > { %1144 = vrot.lane.b32.xlu2 %v3150_v36, %s2959_s19  ;;  %1142 = vrot.lane.b32.xlu1 %v3137_v31, %s2959_s19 }
  0xc7   : > { %1140 = vrot.lane.b32.xlu0 %v3139_v32, %s2959_s19 }
  0xc8   : > { %v1333_v9 = vpop.permute.xlu2 %1332  ;;  %v1329_v10 = vpop.permute.xlu1 %1328 }
  0xc9   : > { %v1327_v11 = vpop.permute.xlu0 %1326 }
  0xca   : > { %v1346_v16 = vsel %vm4856_vm0, %v1327_v11, %v1329_v10 }
  0xcb   : > { %v1504_v19 = vsel %vm962_vm1, %v1346_v16, 0 }
  0xcc   : > { %1533 = vmatpush.bf16.msra.mxu0 %v1504_v19 }
  0xce   : > { %1342 = vrot.lane.b32.xlu2 %v3274_v17, %s2963_s26  ;;  %1340 = vrot.lane.b32.xlu1 %v3276_v18, %s2963_s26 }
  0xcf   : > { %1338 = vrot.lane.b32.xlu0 %v3279_v23, %s2963_s26 }
  0xd0   : > { %v3287_v24 = vpop.permute.xlu2 %1164  ;;  %v1298_v25 = vpop.permute.xlu1 %1297 }
  0xd1   : > { %v1317_v28 = vsel %vm4849_vm2, %v1298_v25, %v3246_v59  ;;  %v1271_v29 = vpop.permute.xlu0 %1270 }
  0xd2   : > { %v1288_v30 = vsel %vm4848_vm3, %v1269_v56, %v1271_v29 }
  0xd3   : > { %v1465_v33 = vsel %vm962_vm1, %v1288_v30, %v1317_v28 }
  0xd4   : > { %1534 = vmatpush.bf16.msra.mxu0 %v1465_v33 }
  0xd6   : > { %1280 = vrot.lane.b32.xlu2 %v3279_v23, %s2962_s25  ;;  %1198 = vrot.lane.b32.xlu1 %v3192_v46, %s2961_s21 }
  0xd7   : > { %1172 = vrot.lane.b32.xlu0 %v3192_v46, %s2960_s20 }
  0xd8   : > { %v3299_v34 = vpop.permute.xlu2 %1272  ;;  %v1217_v42 = vpop.permute.xlu1 %1216 }
  0xd9   : > { %v1215_v2 = vpop.permute.xlu0 %1214 }
  0xda   : > { %v3310_v16 = vsel %vm4847_vm4, %v1215_v2, %v1217_v42  ;;  %v1266_v2 = vunpack.c.h.b16 %v3263_v1 }
  0xdb   : > { %4859 = vst [vmem:[#allocation2_spill] sm:$0xff] %v3310_v16 }
  0xde   : > { %1309 = vrot.lane.b32.xlu2 %v3279_v23, %s2964_s27  ;;  %1284 = vrot.lane.b32.xlu1 %v3274_v17, %s2962_s25 }
  0xdf   : > { %1282 = vrot.lane.b32.xlu0 %v3276_v18, %s2962_s25 }
  0xe0   : > { %v1302_v56 = vpop.permute.xlu2 %1301  ;;  %v1331_v3 = vpop.permute.xlu1 %1330 }
  0xe1   : > { %v1243_v4 = vpop.permute.xlu0 %1242  ;;  %v1347_v5 = vsel %vm4856_vm0, %v1329_v10, %v1331_v3  ;;  %v1348_v11 = vsel %vm4856_vm0, %v1331_v3, %v1333_v9  ;;  %v1318_v33 = vsel %vm4849_vm2, %v3246_v59, %v1302_v56  ;;  %v1289_v10 = vsel %vm4848_vm3, %v1271_v29, %v3299_v34 }
  0xe2   : > { %v1258_v19 = vsel %vm4846_vm5, %v1241_v62, %v1243_v4  ;;  %v1507_v25 = vsel %vm962_vm1, %v1347_v5, 0  ;;  %v1510_v28 = vsel %vm962_vm1, %v1348_v11, 0  ;;  %v1469_v62 = vsel %vm962_vm1, %v1289_v10, %v1318_v33 }
  0xe3   : > { %v1429_v30 = vsel %vm962_vm1, %v3310_v16, %v1258_v19  ;;  %1546 = vmatpush.bf16.msra.mxu1 %v1507_v25  ;;  %1559 = vmatpush.bf16.msra.mxu2 %v1510_v28  ;;  %v1267_v29 = vpack.c.b16 %v1266_v2, %v1266_v2 }
  0xe4   : > { %1535 = vmatpush.bf16.msra.mxu0 %v1429_v30 }
  0xe6   : > { %1146 = vrot.lane.b32.xlu2 %v3192_v46, %s2959_s19  ;;  %1313 = vrot.lane.b32.xlu1 %v3274_v17, %s2964_s27 }
  0xe7   : > { %1311 = vrot.lane.b32.xlu0 %v3276_v18, %s2964_s27  ;;  %1547 = vmatpush.bf16.msra.mxu1 %v1469_v62 }
  0xe8   : > { %v1137_v3 = vpop.permute.xlu2 %1136  ;;  %v1163_v59 = vpop.permute.xlu1 %1162 }
  0xe9   : > { %v1335_v5 = vpop.permute.xlu0 %1334 }
  0xea   : > { %v1349_v11 = vsel %vm4856_vm0, %v1333_v9, %v1335_v5  ;;  %v1180_v9 = vsel %vm4845_vm6, %v1163_v59, %v3287_v24 }
  0xeb   : > { %v1513_v19 = vsel %vm962_vm1, %v1349_v11, 0 }
  0xec   : > { %1572 = vmatpush.bf16.msra.mxu3 %v1513_v19 }
  0xee   : > { %1228 = vrot.lane.b32.xlu2 %v3276_v18, %s2966_s29  ;;  %1226 = vrot.lane.b32.xlu1 %v3279_v23, %s2966_s29 }
  0xef   : > { %1344 = vrot.lane.b32.xlu0 %v1267_v29, %s2963_s26 }
  0xf0   : > { %v1219_v25 = vpop.permute.xlu2 %1218  ;;  %v3336_v28 = vpop.permute.xlu1 %1190 }
  0xf1   : > { %v1189_v1 = vpop.permute.xlu0 %1188  ;;  %v3350_v59 = vsel %vm4847_vm4, %v1217_v42, %v1219_v25 }
  0xf2   : > { %v1206_v30 = vsel %vm4844_vm7, %v1189_v1, %v3336_v28  ;;  %4860 = vst [vmem:[#allocation3_spill] sm:$0xff] %v3350_v59 }
  0xf3   : > { %v1393_v33 = vsel %vm962_vm1, %v1180_v9, %v1206_v30 }
  0xf4   : > { %1536 = vmatpush.bf16.msra.mxu0 %v1393_v33 }
  0xf6   : > { %1254 = vrot.lane.b32.xlu2 %v3276_v18, %s2965_s28  ;;  %1252 = vrot.lane.b32.xlu1 %v3279_v23, %s2965_s28 }
  0xf7   : > { %1230 = vrot.lane.b32.xlu0 %v3274_v17, %s2966_s29 }
  0xf8   : > { %v1245_v10 = vpop.permute.xlu2 %1244  ;;  %v1277_v62 = vpop.permute.xlu1 %1276 }
  0xf9   : > { %v1275_v2 = vpop.permute.xlu0 %1274  ;;  %v1259_v11 = vsel %vm4846_vm5, %v1243_v4, %v1245_v10 }
  0xfa   : > { %v1433_v19 = vsel %vm962_vm1, %v3350_v59, %v1259_v11  ;;  %v1290_v42 = vsel %vm4848_vm3, %v3299_v34, %v1275_v2  ;;  %v1291_v33 = vsel %vm4848_vm3, %v1275_v2, %v1277_v62 }
  0xfb   : > { %1548 = vmatpush.bf16.msra.mxu1 %v1433_v19 }
  0xfe   : > { %1315 = vrot.lane.b32.xlu2 %v1267_v29, %s2964_s27  ;;  %1286 = vrot.lane.b32.xlu1 %v1267_v29, %s2962_s25 }
  0xff   : > { %1256 = vrot.lane.b32.xlu0 %v3274_v17, %s2965_s28 }
 0x100   : > { %v3359_v1 = vpop.permute.xlu2 %1278  ;;  %v1306_v9 = vpop.permute.xlu1 %1305 }
 0x101   : > { %v1304_v30 = vpop.permute.xlu0 %1303 }
 0x102   : > { %v1319_v4 = vsel %vm4849_vm2, %v1302_v56, %v1304_v30  ;;  %v1320_v11 = vsel %vm4849_vm2, %v1304_v30, %v1306_v9 }
 0x103   : > { %v1473_v19 = vsel %vm962_vm1, %v1290_v42, %v1319_v4  ;;  %v1477_v29 = vsel %vm962_vm1, %v1291_v33, %v1320_v11 }
 0x104   : > { %1560 = vmatpush.bf16.msra.mxu2 %v1473_v19  ;;  %1573 = vmatpush.bf16.msra.mxu3 %v1477_v29 }
 0x106   : > { %1178 = vrot.lane.b32.xlu2 %v3274_v17, %s2960_s20  ;;  %1176 = vrot.lane.b32.xlu1 %v3276_v18, %s2960_s20 }
 0x107   : > { %1174 = vrot.lane.b32.xlu0 %v3279_v23, %s2960_s20 }
 0x108   : > { %v3374_v34 = vpop.permute.xlu2 %1168  ;;  %v3376_v56 = vpop.permute.xlu1 %1336 }
 0x109   : > { %v3378_v2 = vpop.permute.xlu0 %1138  ;;  %v1350_v30 = vsel %vm4856_vm0, %v1335_v5, %v3376_v56 }
 0x10a   : > { %v1154_v42 = vsel %vm4843_vm8, %v1137_v3, %v3378_v2  ;;  %v1516_v4 = vsel %vm962_vm1, %v1350_v30, 0 }
 0x10b   : > { %v1357_v33 = vsel %vm962_vm1, %v3114_v26, %v1154_v42 }
 0x10c   : > { %1537 = vmatpush.bf16.msra.mxu0 %v1357_v33 }
 0x10e   : > { %1204 = vrot.lane.b32.xlu2 %v3274_v17, %s2961_s21  ;;  %1202 = vrot.lane.b32.xlu1 %v3276_v18, %s2961_s21 }
 0x10f   : > { %1200 = vrot.lane.b32.xlu0 %v3279_v23, %s2961_s21 }
 0x110   : > { %1585 = vmatpush.bf16.msrb.mxu0 %v1516_v4  ;;  %v1195_v5 = vpop.permute.xlu2 %1194  ;;  %v1223_v11 = vpop.permute.xlu1 %1222 }
 0x111   : > { %v1221_v19 = vpop.permute.xlu0 %1220 }
 0x112   : > { %v3402_v30 = vsel %vm4847_vm4, %v1219_v25, %v1221_v19  ;;  %v3406_v4 = vsel %vm4847_vm4, %v1221_v19, %v1223_v11 }
 0x113   : > { %4861 = vst [vmem:[#allocation4_spill] sm:$0xff] %v3402_v30 }
 0x114   : > { %4862 = vst [vmem:[#allocation5_spill] sm:$0xff] %v3406_v4 }
 0x116   : > { %938 = vrot.lane.b32.xlu2 %v3052_v13, %s2963_s26  ;;  %936 = vrot.lane.b32.xlu1 %v3040_v7, %s2963_s26 }
 0x117   : > { %934 = vrot.lane.b32.xlu0 %v3054_v14, %s2963_s26 }
 0x118   : > { %v3399_v26 = vpop.permute.xlu2 %1250  ;;  %v1249_v3 = vpop.permute.xlu1 %1248 }
 0x119   : > { %v1247_v29 = vpop.permute.xlu0 %1246 }
 0x11a   : > { %v1260_v42 = vsel %vm4846_vm5, %v1245_v10, %v1247_v29  ;;  %v1261_v33 = vsel %vm4846_vm5, %v1247_v29, %v1249_v3  ;;  %v1292_v29 = vsel %vm4848_vm3, %v1277_v62, %v3359_v1 }
 0x11b   : > { %v1437_v59 = vsel %vm962_vm1, %v3402_v30, %v1260_v42  ;;  %v1441_v16 = vsel %vm962_vm1, %v3406_v4, %v1261_v33 }
 0x11c   : > { %1561 = vmatpush.bf16.msra.mxu2 %v1437_v59  ;;  %1574 = vmatpush.bf16.msra.mxu3 %v1441_v16 }
 0x11e   : > { %1152 = vrot.lane.b32.xlu2 %v3274_v17, %s2959_s19  ;;  %1150 = vrot.lane.b32.xlu1 %v3276_v18, %s2959_s19 }
 0x11f   : > { %1148 = vrot.lane.b32.xlu0 %v3279_v23, %s2959_s19 }
 0x120   : > { %v3419_v25 = vpop.permute.xlu2 %1144  ;;  %v1167_v10 = vpop.permute.xlu1 %1166 }
 0x121   : > { %v3421_v19 = vpop.permute.xlu0 %1307  ;;  %v1181_v62 = vsel %vm4845_vm6, %v3287_v24, %v1167_v10 }
 0x122   : > { %v1321_v16 = vsel %vm4849_vm2, %v1306_v9, %v3421_v19 }
 0x123   : > { %v1481_v59 = vsel %vm962_vm1, %v1292_v29, %v1321_v16  ;;  %v1182_v29 = vsel %vm4845_vm6, %v1167_v10, %v3374_v34 }
 0x124   : > { %1586 = vmatpush.bf16.msrb.mxu0 %v1481_v59 }
 0x126   : > { %878 = vrot.lane.b32.xlu2 %v3052_v13, %s2962_s25  ;;  %876 = vrot.lane.b32.xlu1 %v3040_v7, %s2962_s25 }
 0x127   : > { %874 = vrot.lane.b32.xlu0 %v3054_v14, %s2962_s25 }
 0x128   : > { %v3434_v42 = vpop.permute.xlu2 %1342  ;;  %v1193_v33 = vpop.permute.xlu1 %1192 }
 0x129   : > { %v3436_v4 = vpop.permute.xlu0 %1170  ;;  %v1207_v9 = vsel %vm4844_vm7, %v3336_v28, %v1193_v33  ;;  %v1208_v16 = vsel %vm4844_vm7, %v1193_v33, %v1195_v5 }
 0x12a   : > { %v1397_v59 = vsel %vm962_vm1, %v1181_v62, %v1207_v9  ;;  %v1401_v30 = vsel %vm962_vm1, %v1182_v29, %v1208_v16  ;;  %v1183_v62 = vsel %vm4845_vm6, %v3374_v34, %v3436_v4 }
 0x12b   : > { %1549 = vmatpush.bf16.msra.mxu1 %v1397_v59  ;;  %1562 = vmatpush.bf16.msra.mxu2 %v1401_v30  ;;  %v1262_v30 = vsel %vm4846_vm5, %v1249_v3, %v3399_v26 }
 0x12e   : > { %908 = vrot.lane.b32.xlu2 %v3052_v13, %s2964_s27  ;;  %906 = vrot.lane.b32.xlu1 %v3040_v7, %s2964_s27 }
 0x12f   : > { %904 = vrot.lane.b32.xlu0 %v3054_v14, %s2964_s27 }
 0x130   : > { %v3453_v24 = vpop.permute.xlu2 %1280  ;;  %v3455_v28 = vpop.permute.xlu1 %1224 }
 0x131   : > { %v1197_v10 = vpop.permute.xlu0 %1196  ;;  %v3459_v33 = vsel %vm4847_vm4, %v1223_v11, %v3455_v28 }
 0x132   : > { %v1209_v9 = vsel %vm4844_vm7, %v1195_v5, %v1197_v10  ;;  %v1445_v29 = vsel %vm962_vm1, %v3459_v33, %v1262_v30 }
 0x133   : > { %v1405_v16 = vsel %vm962_vm1, %v1183_v62, %v1209_v9  ;;  %1587 = vmatpush.bf16.msrb.mxu0 %v1445_v29 }
 0x134   : > { %1575 = vmatpush.bf16.msra.mxu3 %v1405_v16 }
 0x136   : > { %818 = vrot.lane.b32.xlu2 %v3054_v14, %s2966_s29  ;;  %940 = vrot.lane.b32.xlu1 %v3038_v6, %s2963_s26 }
 0x137   : > { %932 = vrot.lane.b32.xlu0 %v3042_v8, %s2963_s26 }
 0x138   : > { %v3476_v11 = vpop.permute.xlu2 %1309  ;;  %v1143_v34 = vpop.permute.xlu1 %1142 }
 0x139   : > { %v1141_v5 = vpop.permute.xlu0 %1140  ;;  %v1157_v3 = vsel %vm4843_vm8, %v1143_v34, %v3419_v25 }
 0x13a   : > { %v1155_v59 = vsel %vm4843_vm8, %v3378_v2, %v1141_v5  ;;  %v1156_v30 = vsel %vm4843_vm8, %v1141_v5, %v1143_v34  ;;  %v1369_v62 = vsel %vm962_vm1, %v3137_v31, %v1157_v3 }
 0x13b   : > { %v1361_v9 = vsel %vm962_vm1, %v3116_v27, %v1155_v59  ;;  %v1365_v29 = vsel %vm962_vm1, %v3139_v32, %v1156_v30  ;;  %1576 = vmatpush.bf16.msra.mxu3 %v1369_v62  ;;  %v3508_v30 = vld [vmem:[%s4830_s3] sm:$0xf]  ;;  %v1293_v62 = vsel %vm4848_vm3, %v3359_v1, %v3453_v24 }
 0x13c   : > { %1550 = vmatpush.bf16.msra.mxu1 %v1361_v9  ;;  %1563 = vmatpush.bf16.msra.mxu2 %v1365_v29 }
 0x13d   : > { %2882 = vmatmul.msk.bf16.vlgmr.msra.gmra.mxu0 %vm4842_vm9, %v3508_v30 }
 0x13e   : > { %845 = vrot.lane.b32.xlu2 %v3054_v14, %s2965_s28  ;;  %822 = vrot.lane.b32.xlu1 %v3052_v13, %s2966_s29 }
 0x13f   : > { %820 = vrot.lane.b32.xlu0 %v3040_v7, %s2966_s29  ;;  %2884 = vmatmul.msk.bf16.vlgmr.msra.gmra.mxu2 %vm4842_vm9, %v3508_v30 }
 0x140   : > { %v3495_v2 = vpop.permute.xlu2 %1146  ;;  %v1341_v31 = vpop.permute.xlu1 %1340  ;;  %2885 = vmatmul.msk.bf16.vlgmr.msra.gmra.mxu3 %vm4842_vm9, %v3508_v30  ;;  %2883 = vmatmul.msk.bf16.vlgmr.msra.gmra.mxu1 %vm4842_vm9, %v3508_v30 }
 0x141   : > { %v1339_v16 = vpop.permute.xlu0 %1338  ;;  %v1353_v27 = vsel %vm4856_vm0, %v1341_v31, %v3434_v42 }
 0x142   : > { %v1351_v32 = vsel %vm4856_vm0, %v3376_v56, %v1339_v16  ;;  %v1352_v34 = vsel %vm4856_vm0, %v1339_v16, %v1341_v31  ;;  %v1525_v5 = vsel %vm962_vm1, %v1353_v27, 0  ;;  %v1322_v56 = vsel %vm4849_vm2, %v3421_v19, %v3476_v11 }
 0x143   : > { %v1519_v3 = vsel %vm962_vm1, %v1351_v32, 0  ;;  %v1522_v59 = vsel %vm962_vm1, %v1352_v34, 0  ;;  %1624 = vmatpush.bf16.msrb.mxu3 %v1525_v5  ;;  %v1485_v19 = vsel %vm962_vm1, %v1293_v62, %v1322_v56  ;;  %v1158_v32 = vsel %vm4843_vm8, %v3419_v25, %v3495_v2 }
 0x144   : > { %1598 = vmatpush.bf16.msrb.mxu1 %v1519_v3  ;;  %1611 = vmatpush.bf16.msrb.mxu2 %v1522_v59 }
 0x146   : > { %849 = vrot.lane.b32.xlu1 %v3052_v13, %s2965_s28  ;;  %872 = vrot.lane.b32.xlu2 %v3042_v8, %s2962_s25 }
 0x147   : > { %847 = vrot.lane.b32.xlu0 %v3040_v7, %s2965_s28 }
 0x148   : > { %1599 = vmatpush.bf16.msrb.mxu1 %v1485_v19  ;;  %v3529_v9 = vpop.permute.xlu2 %1228  ;;  %v3531_v29 = vpop.permute.xlu1 %1198 }
 0x149   : > { %v3533_v31 = vpop.permute.xlu0 %1172  ;;  %v1210_v16 = vsel %vm4844_vm7, %v1197_v10, %v3531_v29  ;;  %v1373_v10 = vsel %vm962_vm1, %v3150_v36, %v1158_v32 }
 0x14a   : > { %v1184_v1 = vsel %vm4845_vm6, %v3436_v4, %v3533_v31 }
 0x14b   : > { %v1409_v27 = vsel %vm962_vm1, %v1184_v1, %v1210_v16 }
 0x14c   : > { %1588 = vmatpush.bf16.msrb.mxu0 %v1409_v27 }
 0x14e   : > { %902 = vrot.lane.b32.xlu1 %v3042_v8, %s2964_s27  ;;  %910 = vrot.lane.b32.xlu2 %v3038_v6, %s2964_s27 }
 0x14f   : > { %880 = vrot.lane.b32.xlu0 %v3038_v6, %s2962_s25 }
 0x150   : > { %1589 = vmatpush.bf16.msrb.mxu0 %v1373_v10  ;;  %v1255_v4 = vpop.permute.xlu2 %1254  ;;  %v1285_v34 = vpop.permute.xlu1 %1284 }
 0x151   : > { %v1283_v5 = vpop.permute.xlu0 %1282 }
 0x152   : > { %v1294_v36 = vsel %vm4848_vm3, %v3453_v24, %v1283_v5  ;;  %v1295_v62 = vsel %vm4848_vm3, %v1283_v5, %v1285_v34 }
 0x153   : > { %2886 = vmatmul.msk.bf16.vlgmr.msrb.gmra.mxu0 %vm4842_vm9, %v3508_v30 }
 0x156   : > { %824 = vrot.lane.b32.xlu1 %v3038_v6, %s2966_s29  ;;  %843 = vrot.lane.b32.xlu2 %v3042_v8, %s2965_s28 }
 0x157   : > { %816 = vrot.lane.b32.xlu0 %v3042_v8, %s2966_s29 }
 0x158   : > { %v1316_v25 = vpop.permute.xlu2 %1315  ;;  %v1314_v3 = vpop.permute.xlu1 %1313 }
 0x159   : > { %v1312_v59 = vpop.permute.xlu0 %1311 }
 0x15a   : > { %v1323_v56 = vsel %vm4849_vm2, %v3476_v11, %v1312_v59  ;;  %v1324_v19 = vsel %vm4849_vm2, %v1312_v59, %v1314_v3 }
 0x15b   : > { %v1489_v16 = vsel %vm962_vm1, %v1294_v36, %v1323_v56  ;;  %v1493_v1 = vsel %vm962_vm1, %v1295_v62, %v1324_v19 }
 0x15c   : > { %1612 = vmatpush.bf16.msrb.mxu2 %v1489_v16  ;;  %1625 = vmatpush.bf16.msrb.mxu3 %v1493_v1 }
 0x15e   : > { %942 = vrot.lane.b32.xlu1 %v3050_v12, %s2963_s26  ;;  %944 = vrot.lane.b32.xlu2 %v3069_v22, %s2963_s26 }
 0x15f   : > { %851 = vrot.lane.b32.xlu0 %v3038_v6, %s2965_s28 }
 0x160   : > { %v1179_v24 = vpop.permute.xlu2 %1178  ;;  %v1227_v11 = vpop.permute.xlu1 %1226 }
 0x161   : > { %v1345_v27 = vpop.permute.xlu0 %1344  ;;  %v3589_v56 = vsel %vm4847_vm4, %v3455_v28, %v1227_v11  ;;  %v3595_v62 = vsel %vm4847_vm4, %v1227_v11, %v3529_v9  ;;  %v1325_v11 = vsel %vm4849_vm2, %v1314_v3, %v1316_v25 }
 0x162   : > { %v1354_v32 = vsel %vm4856_vm0, %v3434_v42, %v1345_v27 }
 0x163   : > { %v1528_v10 = vsel %vm962_vm1, %v1354_v32, 0 }
 0x164   : > { %1637 = vmatpush.bf16.msra.mxu0 %v1528_v10 }
 0x166   : > { %882 = vrot.lane.b32.xlu1 %v3050_v12, %s2962_s25  ;;  %884 = vrot.lane.b32.xlu2 %v3069_v22, %s2962_s25 }
 0x167   : > { %946 = vrot.lane.b32.xlu0 %v3067_v21, %s2963_s26 }
 0x168   : > { %v1205_v5 = vpop.permute.xlu2 %1204  ;;  %v1253_v59 = vpop.permute.xlu1 %1252 }
 0x169   : > { %v3585_v36 = vpop.permute.xlu0 %1230  ;;  %v1263_v42 = vsel %vm4846_vm5, %v3399_v26, %v1253_v59  ;;  %v1264_v19 = vsel %vm4846_vm5, %v1253_v59, %v1255_v4  ;;  %v1425_v25 = vsel %vm962_vm1, %v1179_v24, %v1205_v5 }
 0x16a   : > { %v1449_v16 = vsel %vm962_vm1, %v3589_v56, %v1263_v42  ;;  %v1453_v1 = vsel %vm962_vm1, %v3595_v62, %v1264_v19  ;;  %v3615_v10 = vsel %vm4847_vm4, %v3529_v9, %v3585_v36 }
 0x16b   : > { %1600 = vmatpush.bf16.msrb.mxu1 %v1449_v16  ;;  %1613 = vmatpush.bf16.msrb.mxu2 %v1453_v1 }
 0x16e   : > { %912 = vrot.lane.b32.xlu1 %v3050_v12, %s2964_s27  ;;  %914 = vrot.lane.b32.xlu2 %v3069_v22, %s2964_s27 }
 0x16f   : > { %886 = vrot.lane.b32.xlu0 %v3067_v21, %s2962_s25 }
 0x170   : > { %v3608_v26 = vpop.permute.xlu2 %938  ;;  %v1287_v28 = vpop.permute.xlu1 %1286 }
 0x171   : > { %v1296_v27 = vsel %vm4848_vm3, %v1285_v34, %v1287_v28  ;;  %v1257_v32 = vpop.permute.xlu0 %1256 }
 0x172   : > { %v1265_v59 = vsel %vm4846_vm5, %v1255_v4, %v1257_v32  ;;  %v1497_v42 = vsel %vm962_vm1, %v1296_v27, %v1325_v11  ;;  %v1461_v34 = vsel %vm962_vm1, %v3585_v36, %v1257_v32 }
 0x173   : > { %v1457_v19 = vsel %vm962_vm1, %v3615_v10, %v1265_v59  ;;  %1638 = vmatpush.bf16.msra.mxu0 %v1497_v42 }
 0x174   : > { %1626 = vmatpush.bf16.msrb.mxu3 %v1457_v19 }
 0x176   : > { %948 = vrot.lane.b32.xlu1 %v3065_v20, %s2963_s26  ;;  %826 = vrot.lane.b32.xlu2 %v3050_v12, %s2966_s29 }
 0x177   : > { %916 = vrot.lane.b32.xlu0 %v3067_v21, %s2964_s27  ;;  %1639 = vmatpush.bf16.msra.mxu0 %v1461_v34 }
 0x178   : > { %v1153_v9 = vpop.permute.xlu2 %1152  ;;  %v1177_v4 = vpop.permute.xlu1 %1176 }
 0x179   : > { %v1175_v3 = vpop.permute.xlu0 %1174  ;;  %v1389_v16 = vsel %vm962_vm1, %v3274_v17, %v1153_v9  ;;  %v1187_v17 = vsel %vm4845_vm6, %v1177_v4, %v1179_v24 }
 0x17a   : > { %v1185_v11 = vsel %vm4845_vm6, %v3533_v31, %v1175_v3  ;;  %v1186_v59 = vsel %vm4845_vm6, %v1175_v3, %v1177_v4 }
 0x17b   : > { %1640 = vmatpush.bf16.msra.mxu0 %v1425_v25 }
 0x17e   : > { %830 = vrot.lane.b32.xlu1 %v3067_v21, %s2966_s29  ;;  %853 = vrot.lane.b32.xlu2 %v3050_v12, %s2965_s28 }
 0x17f   : > { %828 = vrot.lane.b32.xlu0 %v3069_v22, %s2966_s29  ;;  %1641 = vmatpush.bf16.msra.mxu0 %v1389_v16 }
 0x180   : > { %v3638_v1 = vpop.permute.xlu2 %878  ;;  %v1203_v28 = vpop.permute.xlu1 %1202 }
 0x181   : > { %v1213_v27 = vsel %vm4844_vm7, %v1203_v28, %v1205_v5  ;;  %v1201_v32 = vpop.permute.xlu0 %1200 }
 0x182   : > { %v1211_v42 = vsel %vm4844_vm7, %v3531_v29, %v1201_v32  ;;  %v1212_v19 = vsel %vm4844_vm7, %v1201_v32, %v1203_v28  ;;  %v1421_v34 = vsel %vm962_vm1, %v1187_v17, %v1213_v27  ;;  %2890 = vmatmul.msk.bf16.vlgmr.msra.gmra.mxu0 %vm4842_vm9, %v3508_v30 }
 0x183   : > { %v1413_v25 = vsel %vm962_vm1, %v1185_v11, %v1211_v42  ;;  %v1417_v31 = vsel %vm962_vm1, %v1186_v59, %v1212_v19  ;;  %1627 = vmatpush.bf16.msrb.mxu3 %v1421_v34 }
 0x184   : > { %1601 = vmatpush.bf16.msrb.mxu1 %v1413_v25  ;;  %1614 = vmatpush.bf16.msrb.mxu2 %v1417_v31 }
 0x186   : > { %857 = vrot.lane.b32.xlu1 %v3067_v21, %s2965_s28  ;;  %888 = vrot.lane.b32.xlu2 %v3065_v20, %s2962_s25 }
 0x187   : > { %855 = vrot.lane.b32.xlu0 %v3069_v22, %s2965_s28 }
 0x188   : > { %v3659_v29 = vpop.permute.xlu2 %908  ;;  %v937_v24 = vpop.permute.xlu1 %936 }
 0x189   : > { %v935_v5 = vpop.permute.xlu0 %934  ;;  %v955_v16 = vsel %vm4856_vm0, %v937_v24, %v3608_v26 }
 0x18a   : > { %v954_v28 = vsel %vm4856_vm0, %v935_v5, %v937_v24  ;;  %v1657_v34 = vsel %vm962_vm1, %v955_v16, 0 }
 0x18e   : > { %801 = vrot.lane.b32.xlu1 %v3069_v22, %s2961_s21  ;;  %803 = vrot.lane.b32.xlu2 %v3067_v21, %s2961_s21 }
 0x18f   : > { %918 = vrot.lane.b32.xlu0 %v3065_v20, %s2964_s27 }
 0x190   : > { %v3667_v4 = vpop.permute.xlu2 %818  ;;  %v1151_v3 = vpop.permute.xlu1 %1150 }
 0x191   : > { %v1161_v11 = vsel %vm4843_vm8, %v1151_v3, %v1153_v9  ;;  %v1149_v27 = vpop.permute.xlu0 %1148  ;;  %v1654_v9 = vsel %vm962_vm1, %v954_v28, 0 }
 0x192   : > { %v1159_v32 = vsel %vm4843_vm8, %v3495_v2, %v1149_v27  ;;  %v1160_v17 = vsel %vm4843_vm8, %v1149_v27, %v1151_v3  ;;  %v1385_v59 = vsel %vm962_vm1, %v3276_v18, %v1161_v11 }
 0x193   : > { %v1377_v42 = vsel %vm962_vm1, %v3192_v46, %v1159_v32  ;;  %v1381_v19 = vsel %vm962_vm1, %v3279_v23, %v1160_v17  ;;  %1628 = vmatpush.bf16.msrb.mxu3 %v1385_v59  ;;  %v870_v46 = vunpack.c.h.b16 %v3056_v15 }
 0x194   : > { %1602 = vmatpush.bf16.msrb.mxu1 %v1377_v42  ;;  %1615 = vmatpush.bf16.msrb.mxu2 %v1381_v19 }
 0x195   : > { %v871_v25 = vpack.c.b16 %v870_v46, %v870_v46 }
 0x196   : > { %859 = vrot.lane.b32.xlu1 %v3065_v20, %s2965_s28  ;;  %805 = vrot.lane.b32.xlu2 %v3065_v20, %s2961_s21 }
 0x197   : > { %1706 = vmatpush.bf16.msra.mxu3 %v1657_v34  ;;  %832 = vrot.lane.b32.xlu0 %v3065_v20, %s2966_s29 }
 0x198   : > { %1693 = vmatpush.bf16.msra.mxu2 %v1654_v9  ;;  %v3693_v18 = vpop.permute.xlu2 %845  ;;  %v877_v23 = vpop.permute.xlu1 %876  ;;  %2889 = vmatmul.msk.bf16.vlgmr.msrb.gmra.mxu3 %vm4842_vm9, %v3508_v30 }
 0x199   : > { %2888 = vmatmul.msk.bf16.vlgmr.msrb.gmra.mxu2 %vm4842_vm9, %v3508_v30  ;;  %2887 = vmatmul.msk.bf16.vlgmr.msrb.gmra.mxu1 %vm4842_vm9, %v3508_v30  ;;  %v875_v2 = vpop.permute.xlu0 %874  ;;  %v895_v24 = vsel %vm4848_vm3, %v877_v23, %v3638_v1 }
 0x19a   : > { %v894_v28 = vsel %vm4848_vm3, %v875_v2, %v877_v23 }
 0x19e   : > { %890 = vrot.lane.b32.xlu1 %v871_v25, %s2962_s25  ;;  %920 = vrot.lane.b32.xlu2 %v871_v25, %s2964_s27 }
 0x19f   : > { %950 = vrot.lane.b32.xlu0 %v871_v25, %s2963_s26 }
 0x1a0   : > { %v907_v15 = vpop.permute.xlu1 %906  ;;  %v873_v31 = vpop.permute.xlu2 %872 }
 0x1a1   : > { %v925_v3 = vsel %vm4849_vm2, %v907_v15, %v3659_v29  ;;  %v905_v16 = vpop.permute.xlu0 %904 }
 0x1a2   : > { %v924_v30 = vsel %vm4849_vm2, %v905_v16, %v907_v15  ;;  %v1081_v11 = vsel %vm962_vm1, %v895_v24, %v925_v3 }
 0x1a3   : > { %v1077_v27 = vsel %vm962_vm1, %v894_v28, %v924_v30  ;;  %1707 = vmatpush.bf16.msra.mxu3 %v1081_v11  ;;  %v2967_v28 = vmov 0  }
 0x1a4   : > { %1694 = vmatpush.bf16.msra.mxu2 %v1077_v27  ;;  %2948 = vset.pattern.permute.xlu0 %v2967_v28  ;;  %v1794_v27 = vld [vmem:[%s4831_s4] sm:$0xff] }
 0x1a5   : > { %2949 = vset.pattern.permute.xlu1 %v2967_v28  ;;  %2950 = vset.pattern.permute.xlu2 %v2967_v28 }
 0x1a7   : > { %1797 = vperm.xlu0 %2948, %v1794_v27  }
 0x1a8   : > { %v3710_v32 = vpop.permute.xlu1 %940  ;;  %v3712_v17 = vpop.permute.xlu2 %910 }
 0x1a9   : > { %v956_v59 = vsel %vm4856_vm0, %v3608_v26, %v3710_v32  ;;  %v933_v42 = vpop.permute.xlu0 %932 }
 0x1aa   : > { %v1660_v19 = vsel %vm962_vm1, %v956_v59, 0  ;;  %v953_v34 = vsel %vm4856_vm0, %v933_v42, %v935_v5 }
 0x1ab   : > { %v1651_v9 = vsel %vm962_vm1, %v953_v34, 0  ;;  %1719 = vmatpush.bf16.msrb.mxu0 %v1660_v19  ;;  %v809_v19 = vsel %vm4844_vm7, %v3248_v60, %v3212_v50  ;;  %v810_v34 = vsel %vm4844_vm7, %v3212_v50, %v3260_v0  ;;  %v755_v50 = vsel %vm4843_vm8, %v3190_v45, %v3176_v40 }
 0x1ac   : > { %1680 = vmatpush.bf16.msra.mxu1 %v1651_v9  ;;  %v782_v9 = vsel %vm4845_vm6, %v3214_v51, %v3174_v39 }
 0x1b0   : > { %v3720_v46 = vpop.permute.xlu1 %822  ;;  %v844_v23 = vpop.permute.xlu2 %843 }
 0x1b1   : > { %v821_v25 = vpop.permute.xlu0 %820 }
 0x1b2   : > { %v3730_v26 = vsel %vm4847_vm4, %v3667_v4, %v821_v25  ;;  %v3734_v5 = vsel %vm4847_vm4, %v821_v25, %v3720_v46  ;;  %v783_v25 = vsel %vm4845_vm6, %v3174_v39, %v3228_v55 }
 0x1b8   : > { %v3722_v15 = vpop.permute.xlu1 %849  ;;  %v3724_v24 = vpop.permute.xlu2 %944 }
 0x1b9   : > { %v848_v3 = vpop.permute.xlu0 %847 }
 0x1ba   : > { %v863_v30 = vsel %vm4846_vm5, %v3693_v18, %v848_v3  ;;  %v864_v11 = vsel %vm4846_vm5, %v848_v3, %v3722_v15  ;;  %v1005_v3 = vsel %vm962_vm1, %v782_v9, %v809_v19  ;;  %v926_v19 = vsel %vm4849_vm2, %v3659_v29, %v3712_v17  ;;  %v3786_v29 = vld [vmem:[%s4829_s2] sm:$0xf] }
 0x1bb   : > { %v1041_v59 = vsel %vm962_vm1, %v3730_v26, %v863_v30  ;;  %v1045_v42 = vsel %vm962_vm1, %v3734_v5, %v864_v11  ;;  %v1009_v30 = vsel %vm962_vm1, %v783_v25, %v810_v34  ;;  %v756_v11 = vsel %vm4843_vm8, %v3176_v40, %v3188_v44 }
 0x1bc   : > { %1695 = vmatpush.bf16.msra.mxu2 %v1041_v59  ;;  %1708 = vmatpush.bf16.msra.mxu3 %v1045_v42  ;;  %v893_v59 = vsel %vm4848_vm3, %v873_v31, %v875_v2  ;;  %v969_v40 = vsel %vm962_vm1, %v3054_v14, %v755_v50  ;;  %v973_v2 = vsel %vm962_vm1, %v3040_v7, %v756_v11 }
 0x1bd   : > { %v862_v7 = vsel %vm4846_vm5, %v844_v23, %v3693_v18  ;;  %v781_v50 = vsel %vm4845_vm6, %v3216_v52, %v3214_v51 }
 0x1c0   : > { %1696 = vmatpush.bf16.msra.mxu2 %v1005_v3  ;;  %1709 = vmatpush.bf16.msra.mxu3 %v1009_v30  ;;  %v903_v27 = vpop.permute.xlu1 %902  ;;  %v3773_v34 = vpop.permute.xlu2 %884  ;;  %v808_v30 = vsel %vm4844_vm7, %v3250_v61, %v3248_v60 }
 0x1c1   : > { %v923_v42 = vsel %vm4849_vm2, %v903_v27, %v905_v16  ;;  %v881_v39 = vpop.permute.xlu0 %880  ;;  %v1001_v27 = vsel %vm962_vm1, %v781_v50, %v808_v30 }
 0x1c2   : > { %v896_v9 = vsel %vm4848_vm3, %v3638_v1, %v881_v39  ;;  %v1073_v25 = vsel %vm962_vm1, %v893_v59, %v923_v42  ;;  %v811_v42 = vsel %vm4844_vm7, %v3260_v0, %v3258_v63 }
 0x1c3   : > { %1681 = vmatpush.bf16.msra.mxu1 %v1073_v25  ;;  %v1085_v31 = vsel %vm962_vm1, %v896_v9, %v926_v19 }
 0x1c4   : > { %1697 = vmatpush.bf16.msra.mxu2 %v969_v40  ;;  %1710 = vmatpush.bf16.msra.mxu3 %v973_v2 }
 0x1c5   : > { %1720 = vmatpush.bf16.msrb.mxu0 %v1085_v31 }
 0x1c7   : > { %2892 = vmatmul.msk.bf16.vlgmr.msra.gmra.mxu2 %vm4842_vm9, %v3786_v29  ;;  %2893 = vmatmul.msk.bf16.vlgmr.msra.gmra.mxu3 %vm4842_vm9, %v3786_v29 }
 0x1c8   : > { %v825_v14 = vpop.permute.xlu1 %824  ;;  %v915_v11 = vpop.permute.xlu2 %914 }
 0x1c9   : > { %v817_v1 = vpop.permute.xlu0 %816  ;;  %v3816_v59 = vsel %vm4847_vm4, %v3720_v46, %v825_v14  ;;  %v784_v46 = vsel %vm4845_vm6, %v3228_v55, %v3226_v54 }
 0x1ca   : > { %v3796_v16 = vsel %vm4847_vm4, %v817_v1, %v3667_v4  ;;  %v754_v4 = vsel %vm4843_vm8, %v3178_v41, %v3190_v45 }
 0x1cb   : > { %v1037_v3 = vsel %vm962_vm1, %v3796_v16, %v862_v7  ;;  %v965_v45 = vsel %vm962_vm1, %v3042_v8, %v754_v4  ;;  %v1013_v8 = vsel %vm962_vm1, %v784_v46, %v811_v42 }
 0x1cc   : > { %1682 = vmatpush.bf16.msra.mxu1 %v1037_v3 }
 0x1d0   : > { %1683 = vmatpush.bf16.msra.mxu1 %v1001_v27  ;;  %v943_v18 = vpop.permute.xlu1 %942  ;;  %v827_v19 = vpop.permute.xlu2 %826 }
 0x1d1   : > { %v957_v23 = vsel %vm4856_vm0, %v3710_v32, %v943_v18  ;;  %v958_v60 = vsel %vm4856_vm0, %v943_v18, %v3724_v24  ;;  %v852_v61 = vpop.permute.xlu0 %851  ;;  %v3855_v27 = vsel %vm4847_vm4, %v825_v14, %v827_v19  ;;  %v785_v18 = vsel %vm4845_vm6, %v3226_v54, %v3186_v43 }
 0x1d2   : > { %v1663_v51 = vsel %vm962_vm1, %v957_v23, 0  ;;  %v1666_v52 = vsel %vm962_vm1, %v958_v60, 0  ;;  %v865_v41 = vsel %vm4846_vm5, %v3722_v15, %v852_v61  ;;  %v757_v15 = vsel %vm4843_vm8, %v3188_v44, %v3148_v35 }
 0x1d3   : > { %v1049_v32 = vsel %vm962_vm1, %v3816_v59, %v865_v41  ;;  %1745 = vmatpush.bf16.msrb.mxu2 %v1666_v52  ;;  %v977_v55 = vsel %vm962_vm1, %v3052_v13, %v757_v15  ;;  %v758_v52 = vsel %vm4843_vm8, %v3148_v35, %v3158_v37 }
 0x1d4   : > { %1684 = vmatpush.bf16.msra.mxu1 %v965_v45  ;;  %1721 = vmatpush.bf16.msrb.mxu0 %v1049_v32  ;;  %v981_v41 = vsel %vm962_vm1, %v3038_v6, %v758_v52 }
 0x1d7   : > { %2891 = vmatmul.msk.bf16.vlgmr.msra.gmra.mxu1 %vm4842_vm9, %v3786_v29 }
 0x1d8   : > { %1732 = vmatpush.bf16.msrb.mxu1 %v1663_v51  ;;  %1722 = vmatpush.bf16.msrb.mxu0 %v1013_v8  ;;  %v883_v9 = vpop.permute.xlu1 %882  ;;  %v854_v2 = vpop.permute.xlu2 %853 }
 0x1d9   : > { %v947_v0 = vpop.permute.xlu0 %946  ;;  %v897_v44 = vsel %vm4848_vm3, %v881_v39, %v883_v9  ;;  %v898_v1 = vsel %vm4848_vm3, %v883_v9, %v3773_v34  ;;  %v866_v50 = vsel %vm4846_vm5, %v852_v61, %v854_v2 }
 0x1da   : > { %v959_v25 = vsel %vm4856_vm0, %v3724_v24, %v947_v0  ;;  %v1053_v39 = vsel %vm962_vm1, %v3855_v27, %v866_v50  ;;  %v3918_v50 = vpop.f32.mrf.mxu2 }
 0x1db   : > { %v1669_v40 = vsel %vm962_vm1, %v959_v25, 0 }
 0x1dc   : > { %1723 = vmatpush.bf16.msrb.mxu0 %v977_v55  ;;  %1758 = vmatpush.bf16.msrb.mxu3 %v1669_v40  ;;  %v787_v40 = vsel %vm4845_vm6, %v3238_v58, %v3236_v57 }
 0x1df   : > { %2894 = vmatmul.msk.bf16.vlgmr.msrb.gmra.mxu0 %vm4842_vm9, %v3786_v29 }
 0x1e0   : > { %v913_v31 = vpop.permute.xlu1 %912  ;;  %v889_v32 = vpop.permute.xlu2 %888 }
 0x1e1   : > { %v927_v24 = vsel %vm4849_vm2, %v3712_v17, %v913_v31  ;;  %v928_v7 = vsel %vm4849_vm2, %v913_v31, %v915_v11  ;;  %v887_v3 = vpop.permute.xlu0 %886  ;;  %v812_v17 = vsel %vm4844_vm7, %v3258_v63, %v3224_v53 }
 0x1e2   : > { %v1089_v13 = vsel %vm962_vm1, %v897_v44, %v927_v24  ;;  %v1093_v30 = vsel %vm962_vm1, %v898_v1, %v928_v7  ;;  %v899_v14 = vsel %vm4848_vm3, %v3773_v34, %v887_v3  ;;  %v1017_v63 = vsel %vm962_vm1, %v785_v18, %v812_v17 }
 0x1e3   : > { %1733 = vmatpush.bf16.msrb.mxu1 %v1089_v13  ;;  %1746 = vmatpush.bf16.msrb.mxu2 %v1093_v30  ;;  %v900_v44 = vsel %vm4848_vm3, %v887_v3, %v889_v32 }
 0x1e7   : > { %1734 = vmatpush.bf16.msrb.mxu1 %v1053_v39 }
 0x1e8   : > { %v3862_v4 = vpop.permute.xlu1 %948 }
 0x1e9   : > { %v960_v23 = vsel %vm4856_vm0, %v947_v0, %v3862_v4  ;;  %v917_v60 = vpop.permute.xlu0 %916  ;;  %v804_v0 = vpop.permute.xlu2 %803 }
 0x1ea   : > { %v1672_v61 = vsel %vm962_vm1, %v960_v23, 0  ;;  %v929_v51 = vsel %vm4849_vm2, %v915_v11, %v917_v60  ;;  %v3927_v23 = vpop.f32.mrf.mxu1 }
 0x1eb   : > { %1735 = vmatpush.bf16.msrb.mxu1 %v1017_v63  ;;  %v1097_v54 = vsel %vm962_vm1, %v899_v14, %v929_v51  ;;  %1771 = vmatpush.bf16.msra.mxu0 %v1672_v61  ;;  %v788_v14 = vsel %vm4845_vm6, %v3236_v57, %v3200_v47  ;;  %v1567_v63 = vpop.f32.mrf.mxu2 }
 0x1ec   : > { %1759 = vmatpush.bf16.msrb.mxu3 %v1097_v54  ;;  %v761_v54 = vsel %vm4843_vm8, %v3202_v48, %v3166_v38 }
 0x1ef   : > { %1736 = vmatpush.bf16.msrb.mxu1 %v981_v41 }
 0x1f0   : > { %v831_v34 = vpop.permute.xlu1 %830 }
 0x1f1   : > { %v829_v45 = vpop.permute.xlu0 %828  ;;  %v806_v3 = vpop.permute.xlu2 %805 }
 0x1f2   : > { %2895 = vmatmul.msk.bf16.vlgmr.msrb.gmra.mxu1 %vm4842_vm9, %v3786_v29  ;;  %v3883_v46 = vsel %vm4847_vm4, %v827_v19, %v829_v45  ;;  %v3886_v35 = vsel %vm4847_vm4, %v829_v45, %v831_v34  ;;  %v786_v19 = vsel %vm4845_vm6, %v3186_v43, %v3238_v58  ;;  %v759_v43 = vsel %vm4843_vm8, %v3158_v37, %v3204_v49  ;;  %v3920_v37 = vpop.f32.mrf.mxu3 }
 0x1f3   : > { %v760_v58 = vsel %vm4843_vm8, %v3204_v49, %v3202_v48  ;;  %v985_v13 = vsel %vm962_vm1, %v3050_v12, %v759_v43  ;;  %v3922_v49 = vpop.f32.mrf.mxu0 }
 0x1f4   : > { %v989_v30 = vsel %vm962_vm1, %v3069_v22, %v760_v58 }
 0x1f8   : > { %v858_v11 = vpop.permute.xlu1 %857 }
 0x1f9   : > { %v856_v42 = vpop.permute.xlu0 %855  ;;  %v921_v61 = vpop.permute.xlu2 %920 }
 0x1fa   : > { %v867_v8 = vsel %vm4846_vm5, %v854_v2, %v856_v42  ;;  %v868_v15 = vsel %vm4846_vm5, %v856_v42, %v858_v11  ;;  %v1580_v52 = vpop.f32.mrf.mxu3 }
 0x1fb   : > { %v1057_v6 = vsel %vm962_vm1, %v3883_v46, %v867_v8  ;;  %v1061_v9 = vsel %vm962_vm1, %v3886_v35, %v868_v15 }
 0x1fc   : > { %1747 = vmatpush.bf16.msrb.mxu2 %v1057_v6  ;;  %1760 = vmatpush.bf16.msrb.mxu3 %v1061_v9  ;;  %v993_v6 = vsel %vm962_vm1, %v3067_v21, %v761_v54  ;;  %v381_v9 = vlaneseq }
 0x200   : > { %v802_v25 = vpop.permute.xlu1 %801 }
 0x201   : > { %v813_v55 = vsel %vm4844_vm7, %v3224_v53, %v802_v25  ;;  %v814_v2 = vsel %vm4844_vm7, %v802_v25, %v804_v0  ;;  %v919_v31 = vpop.permute.xlu0 %918 }
 0x202   : > { %v930_v1 = vsel %vm4849_vm2, %v917_v60, %v919_v31  ;;  %v1021_v24 = vsel %vm962_vm1, %v786_v19, %v813_v55  ;;  %v1025_v7 = vsel %vm962_vm1, %v787_v40, %v814_v2  ;;  %v815_v60 = vsel %vm4844_vm7, %v804_v0, %v806_v3 }
 0x203   : > { %1748 = vmatpush.bf16.msrb.mxu2 %v1021_v24  ;;  %1761 = vmatpush.bf16.msrb.mxu3 %v1025_v7  ;;  %v1101_v53 = vsel %vm962_vm1, %v900_v44, %v930_v1  ;;  %v1029_v51 = vsel %vm962_vm1, %v788_v14, %v815_v60  ;;  %v931_v57 = vsel %vm4849_vm2, %v919_v31, %v921_v61  ;;  %v3957_v0 = vand.u32 127, %v381_v9 }
 0x204   : > { %1772 = vmatpush.bf16.msra.mxu0 %v1101_v53  ;;  %v1033_v55 = vsel %vm962_vm1, %v3200_v47, %v806_v3  ;;  %v997_v7 = vsel %vm962_vm1, %v3065_v20, %v3166_v38 }
 0x205   : > { %v3970_v40 = vadd.s32 128, %v3957_v0  ;;  %v394_v24 = vand.u32 65535, %v3957_v0  ;;  %v395_v47 = vshrl.u32 %v3957_v0, 16  ;;  %v3990_v14 = vadd.s32 384, %v3957_v0 }
 0x207   : > { %1749 = vmatpush.bf16.msrb.mxu2 %v985_v13  ;;  %1762 = vmatpush.bf16.msrb.mxu3 %v989_v30  ;;  %v423_v2 = vand.u32 65535, %v3970_v40  ;;  %v424_v58 = vshrl.u32 %v3970_v40, 16  ;;  %v3981_v13 = vadd.s32 256, %v3957_v0  ;;  %v398_v3 = vmul.u32 61680, %v394_v24 }
 0x208   : > { %v860_v39 = vpop.permute.xlu1 %859  ;;  %v397_v38 = vmul.u32 61681, %v394_v24  ;;  %v481_v54 = vand.u32 65535, %v3990_v14 }
 0x209   : > { %v869_v17 = vsel %vm4846_vm5, %v858_v11, %v860_v39  ;;  %v3925_v18 = vpop.permute.xlu0 %832  ;;  %v1554_v11 = vpop.f32.mrf.mxu1  ;;  %v427_v53 = vmul.u32 61680, %v423_v2  ;;  %v426_v30 = vmul.u32 61681, %v423_v2  ;;  %v452_v20 = vand.u32 65535, %v3981_v13 }
 0x20a   : > { %v3931_v12 = vsel %vm4847_vm4, %v831_v34, %v3925_v18  ;;  %2896 = vmatmul.msk.bf16.vlgmr.msrb.gmra.mxu2 %vm4842_vm9, %v3786_v29  ;;  %2897 = vmatmul.msk.bf16.vlgmr.msrb.gmra.mxu3 %vm4842_vm9, %v3786_v29  ;;  %v1541_v34 = vpop.f32.mrf.mxu0  ;;  %v401_v60 = vshll.u32 %v398_v3, 16  ;;  %v453_v61 = vshrl.u32 %v3981_v13, 16  ;;  %v429_v11 = vmul.u32 61680, %v424_v58 }
 0x20b   : > { %v1065_v22 = vsel %vm962_vm1, %v3931_v12, %v869_v17  ;;  %v430_v17 = vshll.u32 %v427_v53, 16 }
 0x20c   : > { %1773 = vmatpush.bf16.msra.mxu0 %v1065_v22  ;;  %v399_v22 = vmul.u32 61681, %v395_v47  ;;  %vm405_vm11 = vc.u32 %v397_v38, %v401_v60 }
 0x20d   : > { %v436_v52 = vadd.s32 %v430_v17, %v426_v30  ;;  %vm434_vm10 = vc.u32 %v426_v30, %v430_v17  ;;  %v458_v17 = vmul.u32 61680, %v453_v61 }
 0x20e   : > { %v403_v34 = vshll.u32 %v399_v22, 16 }
 0x210   : > { %1774 = vmatpush.bf16.msra.mxu0 %v1029_v51  ;;  %v891_v41 = vpop.permute.xlu1 %890 }
 0x211   : > { %v951_v45 = vpop.permute.xlu0 %950  ;;  %v901_v8 = vsel %vm4848_vm3, %v889_v32, %v891_v41  ;;  %v1069_v32 = vsel %vm962_vm1, %v3925_v18, %v860_v39  ;;  %v3986_v39 = vmul.u32 61681, %v424_v58  ;;  %v482_v41 = vshrl.u32 %v3990_v14, 16 }
 0x212   : > { %v961_v42 = vsel %vm4856_vm0, %v3862_v4, %v951_v45  ;;  %v1105_v48 = vsel %vm962_vm1, %v901_v8, %v931_v57  ;;  %v3959_v4 = vpop.f32.mrf.mxu0  ;;  %v407_v45 = vadd.s32 %v401_v60, %v397_v38  ;;  %v457_v8 = vmul.u32 61681, %v453_v61 }
 0x213   : > { %v1675_v15 = vsel %vm962_vm1, %v961_v42, 0  ;;  %v432_v63 = vshll.u32 %v3986_v39, 16  ;;  %v455_v42 = vmul.u32 61681, %v452_v20  ;;  %v485_v57 = vmul.u32 61680, %v481_v54 }
 0x214   : > { %1775 = vmatpush.bf16.msra.mxu0 %v993_v6  ;;  %1784 = vmatpush.bf16.msra.mxu1 %v1675_v15  ;;  %v400_v15 = vmul.u32 61680, %v395_v47  ;;  %v435_v6 = vsel %vm434_vm10, 1, %v2967_v28  ;;  %vm409_vm13 = vc.u32 %v407_v45, %v403_v34 }
 0x215   : > { %vm438_vm12 = vc.u32 %v436_v52, %v432_v63  ;;  %v488_v2 = vshll.u32 %v485_v57, 16  ;;  %v410_v58 = vsel %vm409_vm13, 1, %v2967_v28  ;;  %v487_v63 = vmul.u32 61680, %v482_v41 }
 0x216   : > { %v3963_v25 = vpop.f32.mrf.mxu1  ;;  %v402_v52 = vshrl.u32 %v398_v3, 16  ;;  %v489_v3 = vshrl.u32 %v485_v57, 16 }
 0x217   : > { %2898 = vmatmul.msk.bf16.vlgmr.msra.gmra.mxu0 %vm4842_vm9, %v3786_v29 }
 0x218   : > { %1785 = vmatpush.bf16.msra.mxu1 %v1105_v48  ;;  %v406_v48 = vsel %vm405_vm11, 1, %v2967_v28 }
 0x219   : > { %v408_v24 = vadd.s32 %v406_v48, %v400_v15 }
 0x21a   : > { %v1593_v31 = vpop.f32.mrf.mxu0 }
 0x21b   : > { %v3967_v21 = vpop.f32.mrf.mxu3  ;;  %v437_v31 = vadd.s32 %v435_v6, %v429_v11  ;;  %v433_v11 = vshrl.u32 %v3986_v39, 16 }
 0x21c   : > { %v3965_v19 = vpop.f32.mrf.mxu2  ;;  %1786 = vmatpush.bf16.msra.mxu1 %v1069_v32  ;;  %v484_v32 = vmul.u32 61681, %v481_v54  ;;  %v412_v54 = vadd.s32 %v410_v58, %v408_v24 }
 0x21e   : > { %v1606_v44 = vpop.f32.mrf.mxu1  ;;  %vm492_vm15 = vc.u32 %v484_v32, %v488_v2  ;;  %v494_v30 = vadd.s32 %v488_v2, %v484_v32  ;;  %v413_v61 = vadd.s32 %v412_v54, %v402_v52  ;;  %v4010_v52 = vpop.permute.xlu0 %1797 }
 0x21f   : > { %v461_v44 = vshll.u32 %v457_v8, 16  ;;  %v493_v34 = vsel %vm492_vm15, 1, %v2967_v28 }
 0x220   : > { %1787 = vmatpush.bf16.msra.mxu1 %v1033_v55  ;;  %v486_v55 = vmul.u32 61681, %v482_v41  ;;  %v495_v6 = vadd.s32 %v493_v34, %v487_v63 }
 0x222   : > { %v3993_v51 = vpop.f32.mrf.mxu0  ;;  %v490_v47 = vshll.u32 %v486_v55, 16 }
 0x223   : > { %v1632_v43 = vpop.f32.mrf.mxu3 }
 0x224   : > { %v1619_v1 = vpop.f32.mrf.mxu2  ;;  %1788 = vmatpush.bf16.msra.mxu1 %v997_v7  ;;  %v439_v7 = vsel %vm438_vm12, 1, %v2967_v28  ;;  %vm496_vm11 = vc.u32 %v494_v30, %v490_v47 }
 0x225   : > { %v441_v38 = vadd.s32 %v439_v7, %v437_v31  ;;  %v491_v7 = vshrl.u32 %v486_v55, 16 }
 0x227   : > { %2899 = vmatmul.msk.bf16.vlgmr.msra.gmra.mxu1 %vm4842_vm9, %v3786_v29  ;;  %v456_v29 = vmul.u32 61680, %v452_v20  ;;  %v431_v20 = vshrl.u32 %v427_v53, 16  ;;  %v497_v53 = vsel %vm496_vm11, 1, %v2967_v28 }
 0x228   : > { %v499_v2 = vadd.s32 %v497_v53, %v495_v6 }
 0x229   : > { %v459_v9 = vshll.u32 %v456_v29, 16  ;;  %v460_v48 = vshrl.u32 %v456_v29, 16 }
 0x22a   : > { %v1645_v1 = vpop.f32.mrf.mxu0 }
 0x22b   : > { %vm463_vm14 = vc.u32 %v455_v42, %v459_v9  ;;  %v465_v43 = vadd.s32 %v459_v9, %v455_v42  ;;  %v442_v42 = vadd.s32 %v441_v38, %v431_v20  ;;  %v404_v9 = vshrl.u32 %v399_v22, 16 }
 0x22c   : > { %v464_v60 = vsel %vm463_vm14, 1, %v2967_v28 }
 0x22d   : > { %vm467_vm10 = vc.u32 %v465_v43, %v461_v44  ;;  %v466_v45 = vadd.s32 %v464_v60, %v458_v17  ;;  %v443_v41 = vadd.s32 %v442_v42, %v433_v11  ;;  %v414_v31 = vadd.s32 %v413_v61, %v404_v9 }
 0x22e   : > { %v468_v15 = vsel %vm467_vm10, 1, %v2967_v28  ;;  %v462_v44 = vshrl.u32 %v457_v8, 16  ;;  %v500_v43 = vadd.s32 %v499_v2, %v489_v3  ;;  %v4035_v2 = vadd.s32 640, %v3957_v0 }
 0x22f   : > { %v470_v32 = vadd.s32 %v468_v15, %v466_v45  ;;  %v444_v24 = vshrl.u32 %v443_v41, 5  ;;  %v415_v39 = vshrl.u32 %v414_v31, 5 }
 0x230   : > { %v501_v30 = vadd.s32 %v500_v43, %v491_v7 }
 0x231   : > { %v471_v1 = vadd.s32 %v470_v32, %v460_v48  ;;  %v445_v47 = vmul.u32 34, %v444_v24  ;;  %v416_v17 = vmul.u32 34, %v415_v39  ;;  %v539_v39 = vand.u32 65535, %v4035_v2 }
 0x232   : > { %v502_v60 = vshrl.u32 %v501_v30, 5 }
 0x233   : > { %v472_v58 = vadd.s32 %v471_v1, %v462_v44  ;;  %v446_v29 = vsub.s32 %v3970_v40, %v445_v47  ;;  %v417_v57 = vsub.s32 %v3957_v0, %v416_v17  ;;  %v4074_v54 = vmul.u32 61680, %v539_v39 }
 0x234   : > { %v503_v8 = vmul.u32 34, %v502_v60 }
 0x235   : > { %v473_v22 = vshrl.u32 %v472_v58, 5  ;;  %vm653_vm12 = vcmp.ne.s32.totalorder %v446_v29, 0  ;;  %vm662_vm13 = vcmp.lt.s32.totalorder %v446_v29, 0  ;;  %vm652_vm14 = vcmp.ne.s32.totalorder %v417_v57, 0 }
 0x236   : > { %vm661_vm15 = vcmp.lt.s32.totalorder %v417_v57, 0  ;;  %vm4012_vm10 = vmand %vm662_vm13, %vm653_vm12  ;;  %v679_v34 = vadd.s32 34, %v417_v57  ;;  %v680_v45 = vadd.s32 34, %v446_v29  ;;  %v504_v42 = vsub.s32 %v3990_v14, %v503_v8 }
 0x237   : > { %v474_v63 = vmul.u32 34, %v473_v22  ;;  %vm4017_vm11 = vmand %vm661_vm15, %vm652_vm14 }
 0x238   : > { %v688_v53 = vsel %vm4017_vm11, %v679_v34, %v417_v57  ;;  %vm655_vm13 = vcmp.ne.s32.totalorder %v504_v42, 0  ;;  %vm664_vm15 = vcmp.lt.s32.totalorder %v504_v42, 0  ;;  %v682_v24 = vadd.s32 34, %v504_v42 }
 0x239   : > { %v475_v40 = vsub.s32 %v3981_v13, %v474_v63  ;;  %v689_v13 = vsel %vm4012_vm10, %v680_v45, %v446_v29  ;;  %vm4037_vm11 = vcmp.lt.s32.totalorder %v688_v53, 32  ;;  %vm4049_vm8 = vmand %vm664_vm15, %vm655_vm13  ;;  %v4063_v29 = vadd.s32 768, %v3957_v0 }
 0x23a   : > { %vm4041_vm10 = vcmp.lt.s32.totalorder %v689_v13, 32  ;;  %v691_v57 = vsel %vm4049_vm8, %v682_v24, %v504_v42  ;;  %v542_v53 = vmul.u32 61681, %v539_v39 }
 0x23b   : > { %vm654_vm12 = vcmp.ne.s32.totalorder %v475_v40, 0  ;;  %vm663_vm14 = vcmp.lt.s32.totalorder %v475_v40, 0  ;;  %vm4082_vm8 = vcmp.lt.s32.totalorder %v691_v57, 32  ;;  %v568_v42 = vand.u32 65535, %v4063_v29 }
 0x23c   : > { %vm4045_vm9 = vmand %vm663_vm14, %vm654_vm12  ;;  %v569_v1 = vshrl.u32 %v4063_v29, 16 }
 0x24a   : > { %v1699_v20 = vpop.f32.mrf.mxu2  ;;  %v1712_v38 = vpop.f32.mrf.mxu3 }
 0x24b   : > { %v1700_v55 = vadd.f32 %v1699_v20, %v3927_v23  ;;  %v4023_v23 = vadd.s32 512, %v3957_v0  ;;  %v1713_v32 = vadd.f32 %v1712_v38, %v3918_v50  ;;  %v681_v50 = vadd.s32 34, %v475_v40 }
 0x24d   : > { %v1801_v9 = vadd.f32 %v4010_v52, %v1700_v55  ;;  %v510_v14 = vand.u32 65535, %v4023_v23  ;;  %v511_v43 = vshrl.u32 %v4023_v23, 16  ;;  %v1802_v30 = vadd.f32 %v4010_v52, %v1713_v32 }
 0x24e   : > { %v690_v60 = vsel %vm4045_vm9, %v681_v50, %v475_v40  ;;  %v540_v55 = vshrl.u32 %v4035_v2, 16  ;;  %v4099_v50 = vmul.u32 61680, %v568_v42 }
 0x24f   : > { %v1810_v3 = vmax.f32 %v1801_v9, 0.0  ;;  %v4060_v17 = vmul.u32 61680, %v510_v14  ;;  %v4071_v8 = vmul.u32 61681, %v511_v43  ;;  %v1811_v45 = vmax.f32 %v1802_v30, 0.0 }
 0x250   : > { %v513_v11 = vmul.u32 61681, %v510_v14  ;;  %vm4078_vm9 = vcmp.lt.s32.totalorder %v690_v60, 32  ;;  %v4088_v9 = vadd.s32 896, %v3957_v0  ;;  %v4091_v13 = vmul.u32 61681, %v540_v55 }
 0x251   : > { %v1837_v47 = vsel %vm4041_vm10, %v1810_v3, 0.0  ;;  %v517_v40 = vshll.u32 %v4060_v17, 16  ;;  %v1838_v14 = vsel %vm4078_vm9, %v1811_v45, 0.0  ;;  %v516_v7 = vmul.u32 61680, %v511_v43 }
 0x252   : > { %v1701_v15 = vpop.f32.mrf.mxu2  ;;  %v1714_v6 = vpop.f32.mrf.mxu3  ;;  %v597_v24 = vand.u32 65535, %v4088_v9  ;;  %v598_v39 = vshrl.u32 %v4088_v9, 16  ;;  %v573_v60 = vmul.u32 61681, %v569_v1  ;;  %v575_v57 = vshll.u32 %v4099_v50, 16 }
 0x253   : > { %vm521_vm12 = vc.u32 %v513_v11, %v517_v40 }
 0x254   : > { %v1686_v61 = vpop.f32.mrf.mxu1  ;;  %v601_v30 = vmul.u32 61680, %v597_v24  ;;  %v600_v43 = vmul.u32 61681, %v597_v24 }
 0x255   : > { %v1687_v48 = vadd.f32 %v1686_v61, %v3922_v49  ;;  %v519_v61 = vshll.u32 %v4071_v8, 16 }
 0x256   : > { %v604_v45 = vshll.u32 %v601_v30, 16 }
 0x257   : > { %v1800_v41 = vadd.f32 %v4010_v52, %v1687_v48  ;;  %v546_v48 = vshll.u32 %v4074_v54, 16 }
 0x259   : > { %v1809_v44 = vmax.f32 %v1800_v41, 0.0  ;;  %v523_v41 = vadd.s32 %v517_v40, %v513_v11  ;;  %vm550_vm13 = vc.u32 %v542_v53, %v546_v48 }
 0x25b   : > { %v1836_v58 = vsel %vm4037_vm11, %v1809_v44, 0.0  ;;  %vm525_vm14 = vc.u32 %v523_v41, %v519_v61  ;;  %v574_v41 = vmul.u32 61680, %v569_v1 }
 0x25c   : > { %v1845_v22 = vpack.c.bf16 %v1837_v47, %v1836_v58  ;;  %v1725_v20 = vpop.f32.mrf.mxu0  ;;  %v1688_v38 = vpop.f32.mrf.mxu1  ;;  %v548_v58 = vshll.u32 %v4091_v13, 16  ;;  %v552_v47 = vadd.s32 %v546_v48, %v542_v53  ;;  %v526_v40 = vsel %vm525_vm14, 1, %v2967_v28 }
 0x25d   : > { %v1726_v63 = vadd.f32 %v1725_v20, %v3920_v37  ;;  %v545_v20 = vmul.u32 61680, %v540_v55  ;;  %v571_v38 = vmul.u32 61681, %v568_v42  ;;  %v577_v53 = vshll.u32 %v573_v60, 16 }
 0x25e   : > { %1861 = vrot.lane.b32.xlu1 %v1845_v22, %s2968_s18  ;;  %v522_v22 = vsel %vm521_vm12, 1, %v2967_v28  ;;  %vm554_vm15 = vc.u32 %v552_v47, %v548_v58  ;;  %vm608_vm12 = vc.u32 %v600_v43, %v604_v45  ;;  %v610_v42 = vadd.s32 %v604_v45, %v600_v43 }
 0x25f   : > { %v1803_v34 = vadd.f32 %v4010_v52, %v1726_v63  ;;  %v551_v63 = vsel %vm550_vm13, 1, %v2967_v28  ;;  %v524_v11 = vadd.s32 %v522_v22, %v516_v7  ;;  %vm579_vm7 = vc.u32 %v571_v38, %v575_v57 }
 0x260   : > { %v581_v48 = vadd.s32 %v575_v57, %v571_v38  ;;  %v555_v61 = vsel %vm554_vm15, 1, %v2967_v28  ;;  %v580_v24 = vsel %vm579_vm7, 1, %v2967_v28  ;;  %v603_v7 = vmul.u32 61680, %v598_v39 }
 0x261   : > { %v1812_v6 = vmax.f32 %v1803_v34, 0.0  ;;  %v602_v34 = vmul.u32 61681, %v598_v39  ;;  %v609_v47 = vsel %vm608_vm12, 1, %v2967_v28  ;;  %v4115_v22 = vadd.s32 1024, %v3957_v0 }
 0x262   : > { %vm583_vm13 = vc.u32 %v581_v48, %v577_v53  ;;  %v605_v53 = vshrl.u32 %v601_v30, 16 }
 0x263   : > { %v1839_v32 = vsel %vm4082_vm8, %v1812_v6, 0.0  ;;  %v553_v6 = vadd.s32 %v551_v63, %v545_v20  ;;  %v606_v55 = vshll.u32 %v602_v34, 16  ;;  %v520_v20 = vshrl.u32 %v4071_v8, 16 }
 0x264   : > { %v1846_v3 = vpack.c.bf16 %v1839_v32, %v1838_v14  ;;  %v1727_v44 = vpop.f32.mrf.mxu0  ;;  %v518_v14 = vshrl.u32 %v4060_v17, 16  ;;  %v528_v32 = vadd.s32 %v526_v40, %v524_v11  ;;  %v582_v17 = vadd.s32 %v580_v24, %v574_v41 }
 0x265   : > { %v547_v44 = vshrl.u32 %v4074_v54, 16  ;;  %v557_v58 = vadd.s32 %v555_v61, %v553_v6  ;;  %vm612_vm14 = vc.u32 %v610_v42, %v606_v55  ;;  %v626_v1 = vand.u32 65535, %v4115_v22 }
 0x266   : > { %1863 = vrot.lane.b32.xlu2 %v1846_v3, %s2968_s18  ;;  %v529_v38 = vadd.s32 %v528_v32, %v518_v14  ;;  %v584_v57 = vsel %vm583_vm13, 1, %v2967_v28  ;;  %v611_v54 = vadd.s32 %v609_v47, %v603_v7  ;;  %v549_v63 = vshrl.u32 %v4091_v13, 16 }
 0x267   : > { %v558_v39 = vadd.s32 %v557_v58, %v547_v44  ;;  %v613_v43 = vsel %vm612_vm14, 1, %v2967_v28  ;;  %v627_v45 = vshrl.u32 %v4115_v22, 16  ;;  %v630_v11 = vmul.u32 61680, %v626_v1 }
 0x268   : > { %v530_v0 = vadd.s32 %v529_v38, %v520_v20  ;;  %v576_v40 = vshrl.u32 %v4099_v50, 16  ;;  %v586_v6 = vadd.s32 %v584_v57, %v582_v17  ;;  %v615_v48 = vadd.s32 %v613_v43, %v611_v54 }
 0x269   : > { %v559_v61 = vadd.s32 %v558_v39, %v549_v63  ;;  %v629_v55 = vmul.u32 61681, %v626_v1  ;;  %v631_v42 = vmul.u32 61681, %v627_v45  ;;  %v633_v14 = vshll.u32 %v630_v11, 16 }
 0x26a   : > { %v531_v32 = vshrl.u32 %v530_v0, 5  ;;  %v578_v41 = vshrl.u32 %v573_v60, 16  ;;  %v587_v13 = vadd.s32 %v586_v6, %v576_v40  ;;  %v607_v44 = vshrl.u32 %v602_v34, 16 }
 0x26b   : > { %v616_v24 = vadd.s32 %v615_v48, %v605_v53  ;;  %v560_v7 = vshrl.u32 %v559_v61, 5  ;;  %v635_v58 = vshll.u32 %v631_v42, 16  ;;  %vm637_vm7 = vc.u32 %v629_v55, %v633_v14 }
 0x26c   : > { %v639_v47 = vadd.s32 %v633_v14, %v629_v55  ;;  %v532_v20 = vmul.u32 34, %v531_v32  ;;  %v588_v38 = vadd.s32 %v587_v13, %v578_v41  ;;  %v632_v17 = vmul.u32 61680, %v627_v45 }
 0x26d   : > { %v617_v50 = vadd.s32 %v616_v24, %v607_v44  ;;  %v561_v57 = vmul.u32 34, %v560_v7  ;;  %v638_v30 = vsel %vm637_vm7, 1, %v2967_v28  ;;  %v634_v40 = vshrl.u32 %v630_v11, 16 }
 0x26e   : > { %vm641_vm15 = vc.u32 %v639_v47, %v635_v58  ;;  %v533_v1 = vsub.s32 %v4023_v23, %v532_v20  ;;  %v589_v54 = vshrl.u32 %v588_v38, 5  ;;  %v640_v60 = vadd.s32 %v638_v30, %v632_v17 }
 0x26f   : > { %v1738_v3 = vpop.f32.mrf.mxu1  ;;  %v618_v63 = vshrl.u32 %v617_v50, 5  ;;  %v562_v34 = vsub.s32 %v4035_v2, %v561_v57  ;;  %v642_v39 = vsel %vm641_vm15, 1, %v2967_v28  ;;  %v636_v11 = vshrl.u32 %v631_v42, 16 }
 0x270   : > { %vm656_vm12 = vcmp.ne.s32.totalorder %v533_v1, 0  ;;  %v590_v43 = vmul.u32 34, %v589_v54  ;;  %vm665_vm13 = vcmp.lt.s32.totalorder %v533_v1, 0  ;;  %v644_v6 = vadd.s32 %v642_v39, %v640_v60 }
 0x271   : > { %v619_v0 = vmul.u32 34, %v618_v63  ;;  %v1739_v45 = vadd.f32 %v1738_v3, %v3959_v4  ;;  %vm657_vm14 = vcmp.ne.s32.totalorder %v562_v34, 0  ;;  %vm666_vm7 = vcmp.lt.s32.totalorder %v562_v34, 0  ;;  %vm4129_vm6 = vmand %vm665_vm13, %vm656_vm12 }
 0x272   : > { %v684_v53 = vadd.s32 34, %v562_v34  ;;  %v591_v2 = vsub.s32 %v4063_v29, %v590_v43  ;;  %vm4134_vm5 = vmand %vm666_vm7, %vm657_vm14  ;;  %v645_v55 = vadd.s32 %v644_v6, %v634_v40  ;;  %v4885_v7 = vmov 0 }
 0x273   : > { %v620_v61 = vsub.s32 %v4088_v9, %v619_v0  ;;  %v1804_v4 = vadd.f32 %v4010_v52, %v1739_v45  ;;  %v4892_v6 = vmov 0  ;;  %v4895_v45 = vmov 0 }
 0x274   : > { %v693_v41 = vsel %vm4134_vm5, %v684_v53, %v562_v34  ;;  %vm658_vm15 = vcmp.ne.s32.totalorder %v591_v2, 0  ;;  %vm667_vm12 = vcmp.lt.s32.totalorder %v591_v2, 0  ;;  %v646_v9 = vadd.s32 %v645_v55, %v636_v11 }
 0x275   : > { %vm659_vm13 = vcmp.ne.s32.totalorder %v620_v61, 0  ;;  %vm668_vm14 = vcmp.lt.s32.totalorder %v620_v61, 0  ;;  %v1813_v42 = vmax.f32 %v1804_v4, 0.0  ;;  %vm4155_vm5 = vmand %vm667_vm12, %vm658_vm15  ;;  %v685_v58 = vadd.s32 34, %v591_v2 }
 0x276   : > { %vm4159_vm4 = vmand %vm668_vm14, %vm659_vm13  ;;  %v647_v50 = vshrl.u32 %v646_v9, 5  ;;  %vm1850_vm14 = vcmask 281600  }
 0x277   : > { %v1740_v8 = vpop.f32.mrf.mxu1  ;;  %v694_v54 = vsel %vm4155_vm5, %v685_v58, %v591_v2  ;;  %1851 = vst.msk [vmem:[%s4193_s24] sm:$0xf] %vm1850_vm14, %v2967_v28  ;;  %vm4851_vm14 = vcmask 285696  }
 0x278   : > { %v683_v8 = vadd.s32 34, %v533_v1  ;;  %v648_v40 = vmul.u32 34, %v647_v50  ;;  %vm4175_vm15 = vcmp.lt.s32.totalorder %v694_v54, 32 }
 0x279   : > { %v4893_v6 = vsel %vm4175_vm15, 4294967295, %v4892_v6 }
 0x27a   : > { %v692_v3 = vsel %vm4129_vm6, %v683_v8, %v533_v1  ;;  %vm4151_vm6 = vcmp.lt.s32.totalorder %v693_v41, 32  ;;  %4894 = vst [vmem:[#allocation7_spill] sm:$0xff] %v4893_v6  ;;  %v649_v53 = vsub.s32 %v4115_v22, %v648_v40 }
 0x27b   : > { %vm4147_vm7 = vcmp.lt.s32.totalorder %v692_v3, 32  ;;  %v4886_v7 = vsel %vm4151_vm6, 4294967295, %v4885_v7 }
 0x27c   : > { %4887 = vst [vmem:[#allocation6_spill] sm:$0xff] %v4886_v7  ;;  %v1840_v17 = vsel %vm4147_vm7, %v1813_v42, 0.0  ;;  %vm669_vm13 = vcmp.lt.s32.totalorder %v649_v53, 0 }
 0x28d   : > { %v1751_v14 = vpop.f32.mrf.mxu2  ;;  %v1764_v32 = vpop.f32.mrf.mxu3 }
 0x28e   : > { %v1752_v29 = vadd.f32 %v1751_v14, %v3963_v25  ;;  %v1765_v13 = vadd.f32 %v1764_v32, %v3965_v19  ;;  %v686_v19 = vadd.s32 34, %v620_v61 }
 0x290   : > { %v1805_v44 = vadd.f32 %v4010_v52, %v1752_v29  ;;  %v1806_v38 = vadd.f32 %v4010_v52, %v1765_v13  ;;  %v695_v63 = vsel %vm4159_vm4, %v686_v19, %v620_v61  ;;  %vm660_vm4 = vcmp.ne.s32.totalorder %v649_v53, 0 }
 0x291   : > { %vm4179_vm12 = vcmp.lt.s32.totalorder %v695_v63, 32  ;;  %v687_v61 = vadd.s32 34, %v649_v53  ;;  %vm678_vm5 = vmand %vm669_vm13, %vm660_vm4  ;;  %vm1890_vm4 = vcmask 1043736   ;;  %vm1891_vm13 = vcmask 1047556  }
 0x292   : > { %v1814_v47 = vmax.f32 %v1805_v44, 0.0  ;;  %v1815_v43 = vmax.f32 %v1806_v38, 0.0  ;;  %v4896_v45 = vsel %vm4179_vm12, 4294967295, %v4895_v45 }
 0x293   : > { %4897 = vst [vmem:[#allocation8_spill] sm:$0xff] %v4896_v45  ;;  %v696_v55 = vsel %vm678_vm5, %v687_v61, %v649_v53  ;;  %vm4206_vm5 = vmor %vm1891_vm13, %vm1890_vm4  ;;  %vm1852_vm4 = vcmask 1044248   ;;  %vm1853_vm13 = vcmask 310276  }
 0x294   : > { %v1841_v57 = vsel %vm4151_vm6, %v1814_v47, 0.0  ;;  %v1777_v30 = vpop.f32.mrf.mxu0  ;;  %vm4199_vm3 = vcmp.lt.s32.totalorder %v696_v55, 32  ;;  %vm1854_vm2 = vmor %vm1853_vm13, %vm1852_vm4  ;;  %vm4903_vm4 = vcmask 482304   ;;  %vm4904_vm13 = vcmask 490496  }
 0x295   : > { %v1847_v1 = vpack.c.bf16 %v1841_v57, %v1840_v17  ;;  %v1778_v60 = vadd.f32 %v1777_v30, %v3967_v21  ;;  %v1753_v34 = vpop.f32.mrf.mxu2  ;;  %v1766_v39 = vpop.f32.mrf.mxu3  ;;  %v1842_v21 = vsel %vm4175_vm15, %v1815_v43, 0.0  ;;  %1855 = vst.msk [vmem:[%s4193_s24 + $0x20] sm:$0xff] %vm1854_vm2, %v2967_v28  ;;  %vm4850_vm2 = vcmask 805888  }
 0x297   : > { %v1807_v0 = vadd.f32 %v4010_v52, %v1778_v60  ;;  %1865 = vrot.lane.b32.xlu1 %v1847_v1, %s2968_s18 }
 0x299   : > { %v1816_v8 = vmax.f32 %v1807_v0, 0.0 }
 0x29b   : > { %v1843_v23 = vsel %vm4179_vm12, %v1816_v8, 0.0 }
 0x29c   : > { %v1848_v2 = vpack.c.bf16 %v1843_v23, %v1842_v21  ;;  %v1779_v48 = vpop.f32.mrf.mxu0 }
 0x29e   : > { %1867 = vrot.lane.b32.xlu2 %v1848_v2, %s2968_s18 }
 0x2a4   : > { %v1790_v11 = vpop.f32.mrf.mxu1 }
 0x2a5   : > { %v1791_v22 = vadd.f32 %v1790_v11, %v3993_v51  ;;  %v4900_v51 = vmov 0 }
 0x2a6   : > { %v4901_v51 = vsel %vm4206_vm5, 4294967295, %v4900_v51 }
 0x2a7   : > { %v1808_v4 = vadd.f32 %v4010_v52, %v1791_v22  ;;  %4902 = vst [vmem:[#allocation9_spill] sm:$0xff] %v4901_v51 }
 0x2a9   : > { %v1817_v14 = vmax.f32 %v1808_v4, 0.0 }
 0x2ab   : > { %v1844_v32 = vsel %vm4199_vm3, %v1817_v14, 0.0 }
 0x2ac   : > { %v1849_v41 = vpack.c.bf16 %v1844_v32, %v1844_v32  ;;  %v1792_v29 = vpop.f32.mrf.mxu1 }
 0x2ae   : > { %1869 = vrot.lane.b32.xlu0 %v1849_v41, %s2968_s18 }
 0x2c0   : > { %v1864_v58 = vpop.permute.xlu2 %1863 }
 0x2c1   : > { %v1872_v19 = vrot.slane %v1864_v58, 4 }
 0x2d0   : > { %v1862_v13 = vpop.permute.xlu1 %1861 }
 0x2d1   : > { %v1871_v52 = vrot.slane %v1862_v13, 4 }
 0x2d3   : > { %v1876_v9 = vsel %vm4851_vm14, %v1871_v52, %v1862_v13  ;;  %v1878_v47 = vsel %vm962_vm1, %v1871_v52, %v1872_v19 }
 0x2d4   : > { %1893 = vst.msk [vmem:[%s4193_s24] sm:$0xff] %vm4206_vm5, %v1876_v9  ;;  %v4225_v20 = vsel %vm4851_vm14, %v1878_v47, %v1864_v58 }
 0x2d5   : > { %v1911_v50 = vunpack.c.l.b16 %v4225_v20  ;;  %v1912_v55 = vunpack.c.h.b16 %v4225_v20 }
 0x2d7   : > { %v4234_v17 = vpack.c.b16 %v1911_v50, %v1911_v50  ;;  %v4333_v22 = vpack.c.b16 %v1912_v55, %v1912_v55 }
 0x2db   : > { %v1899_v42 = vld [vmem:[%s4193_s24] sm:$0xff] }
 0x2dc   : > { %v1910_v44 = vunpack.c.h.b16 %v1899_v42  ;;  %v1909_v38 = vunpack.c.l.b16 %v1899_v42 }
 0x2de   : > { %v4215_v25 = vpack.c.b16 %v1910_v44, %v1910_v44  ;;  %v4236_v57 = vpack.c.b16 %v1909_v38, %v1909_v38 }
 0x2e0   : > { %2090 = vrot.lane.b32.xlu2 %v4215_v25, %s2964_s27  ;;  %2061 = vrot.lane.b32.xlu0 %v4215_v25, %s2962_s25 }
 0x2e1   : > { %2119 = vrot.lane.b32.xlu1 %v4215_v25, %s2963_s26 }
 0x2e8   : > { %1955 = vrot.lane.b32.xlu2 %v4215_v25, %s2960_s20  ;;  %2033 = vrot.lane.b32.xlu0 %v4215_v25, %s2965_s28 }
 0x2e9   : > { %2007 = vrot.lane.b32.xlu1 %v4215_v25, %s2966_s29 }
 0x2f0   : > { %2121 = vrot.lane.b32.xlu2 %v4234_v17, %s2963_s26  ;;  %2117 = vrot.lane.b32.xlu0 %v4236_v57, %s2963_s26 }
 0x2f1   : > { %1981 = vrot.lane.b32.xlu1 %v4215_v25, %s2961_s21 }
 0x2f8   : > { %2009 = vrot.lane.b32.xlu2 %v4234_v17, %s2966_s29  ;;  %2092 = vrot.lane.b32.xlu0 %v4234_v17, %s2964_s27  ;;  %v1868_v30 = vpop.permute.xlu2 %1867 }
 0x2f9   : > { %1929 = vrot.lane.b32.xlu1 %v4215_v25, %s2959_s19  ;;  %v1874_v54 = vrot.slane %v1868_v30, 4 }
 0x300   : > { %1983 = vrot.lane.b32.xlu2 %v4234_v17, %s2961_s21  ;;  %1957 = vrot.lane.b32.xlu0 %v4234_v17, %s2960_s20 }
 0x301   : > { %2063 = vrot.lane.b32.xlu1 %v4234_v17, %s2962_s25 }
 0x308   : > { %1931 = vrot.lane.b32.xlu2 %v4234_v17, %s2959_s19 }
 0x309   : > { %2035 = vrot.lane.b32.xlu1 %v4234_v17, %s2965_s28  ;;  %v1866_v1 = vpop.permute.xlu1 %1865 }
 0x30a   : > { %v1873_v63 = vrot.slane %v1866_v1, 4 }
 0x30c   : > { %v1880_v28 = vsel %vm962_vm1, %v1872_v19, %v1873_v63  ;;  %v1882_v60 = vsel %vm962_vm1, %v1873_v63, %v1874_v54 }
 0x30d   : > { %v1881_v34 = vsel %vm4851_vm14, %v1880_v28, %v1866_v1  ;;  %v4266_v43 = vsel %vm4851_vm14, %v1882_v60, %v1868_v30 }
 0x30e   : > { %v1914_v39 = vunpack.c.h.b16 %v1881_v34  ;;  %v1915_v40 = vunpack.c.l.b16 %v4266_v43  ;;  %v1913_v48 = vunpack.c.l.b16 %v1881_v34 }
 0x310   : > { %v4268_v0 = vpack.c.b16 %v1914_v39, %v1914_v39  ;;  %2059 = vrot.lane.b32.xlu2 %v4236_v57, %s2962_s25  ;;  %v4277_v8 = vpack.c.b16 %v1915_v40, %v1915_v40  ;;  %v4322_v61 = vpack.c.b16 %v1913_v48, %v1913_v48 }
 0x312   : > { %2069 = vrot.lane.b32.xlu1 %v4268_v0, %s2962_s25  ;;  %2127 = vrot.lane.b32.xlu0 %v4268_v0, %s2963_s26 }
 0x318   : > { %2071 = vrot.lane.b32.xlu2 %v4277_v8, %s2962_s25 }
 0x31a   : > { %2129 = vrot.lane.b32.xlu1 %v4277_v8, %s2963_s26  ;;  %2088 = vrot.lane.b32.xlu0 %v4236_v57, %s2964_s27 }
 0x320   : > { %v1870_v21 = vpop.permute.xlu0 %1869  ;;  %2005 = vrot.lane.b32.xlu2 %v4236_v57, %s2966_s29 }
 0x321   : > { %v1884_v23 = vsel %vm4851_vm14, %v1874_v54, %v1870_v21  ;;  %vm4908_vm14 = vcmask 769024  }
 0x322   : > { %1898 = vst.msk [vmem:[%s4193_s24 + $0x20] sm:$0xf] %vm4850_vm2, %v1884_v23  ;;  %2100 = vrot.lane.b32.xlu1 %v4277_v8, %s2964_s27  ;;  %2098 = vrot.lane.b32.xlu0 %v4268_v0, %s2964_s27  ;;  %vm4907_vm2 = vcmask 1031168  }
 0x328   : > { %2017 = vrot.lane.b32.xlu2 %v4277_v8, %s2966_s29 }
 0x329   : > { %v1903_v20 = vld [vmem:[%s4193_s24 + $0x20] sm:$0xff] }
 0x32a   : > { %2015 = vrot.lane.b32.xlu1 %v4268_v0, %s2966_s29  ;;  %2031 = vrot.lane.b32.xlu0 %v4236_v57, %s2965_s28  ;;  %v1917_v30 = vunpack.c.l.b16 %v1903_v20  ;;  %v2057_v1 = vunpack.c.h.b16 %v1903_v20 }
 0x32c   : > { %v4383_v54 = vpack.c.b16 %v1917_v30, %v1917_v30  ;;  %v2058_v63 = vpack.c.b16 %v2057_v1, %v2057_v1 }
 0x330   : > { %1953 = vrot.lane.b32.xlu2 %v4236_v57, %s2960_s20 }
 0x332   : > { %2043 = vrot.lane.b32.xlu1 %v4277_v8, %s2965_s28  ;;  %2041 = vrot.lane.b32.xlu0 %v4268_v0, %s2965_s28 }
 0x338   : > { %1965 = vrot.lane.b32.xlu2 %v4277_v8, %s2960_s20 }
 0x33a   : > { %v4308_v53 = vpop.permute.xlu2 %2090  ;;  %1963 = vrot.lane.b32.xlu1 %v4268_v0, %s2960_s20  ;;  %1979 = vrot.lane.b32.xlu0 %v4236_v57, %s2961_s21 }
 0x340   : > { %1927 = vrot.lane.b32.xlu2 %v4236_v57, %s2959_s19 }
 0x342   : > { %v4316_v2 = vpop.permute.xlu2 %1955  ;;  %1991 = vrot.lane.b32.xlu1 %v4277_v8, %s2961_s21  ;;  %1989 = vrot.lane.b32.xlu0 %v4268_v0, %s2961_s21 }
 0x348   : > { %1939 = vrot.lane.b32.xlu2 %v4277_v8, %s2959_s19 }
 0x34a   : > { %v4326_v11 = vpop.permute.xlu2 %2121  ;;  %1937 = vrot.lane.b32.xlu1 %v4268_v0, %s2959_s19  ;;  %2125 = vrot.lane.b32.xlu0 %v4322_v61, %s2963_s26 }
 0x350   : > { %2123 = vrot.lane.b32.xlu2 %v4333_v22, %s2963_s26 }
 0x352   : > { %v4337_v4 = vpop.permute.xlu2 %2009  ;;  %v4339_v14 = vpop.permute.xlu0 %2061  ;;  %2096 = vrot.lane.b32.xlu1 %v4322_v61, %s2964_s27  ;;  %2067 = vrot.lane.b32.xlu0 %v4322_v61, %s2962_s25 }
 0x353   : > { %v2120_v32 = vpop.permute.xlu1 %2119 }
 0x354   : > { %v2138_v41 = vsel %vm4856_vm0, %v2120_v32, %v4326_v11 }
 0x355   : > { %v2304_v29 = vsel %vm962_vm1, %v2138_v41, 0 }
 0x356   : > { %2343 = vmatpush.bf16.msra.mxu3 %v2304_v29 }
 0x358   : > { %2065 = vrot.lane.b32.xlu2 %v4333_v22, %s2962_s25 }
 0x35a   : > { %v4350_v13 = vpop.permute.xlu2 %1983  ;;  %v4352_v52 = vpop.permute.xlu0 %2033  ;;  %2039 = vrot.lane.b32.xlu1 %v4322_v61, %s2965_s28  ;;  %2013 = vrot.lane.b32.xlu0 %v4322_v61, %s2966_s29 }
 0x35b   : > { %v4358_v9 = vpop.permute.xlu1 %2007 }
 0x360   : > { %1987 = vrot.lane.b32.xlu2 %v4322_v61, %s2961_s21 }
 0x362   : > { %v4362_v42 = vpop.permute.xlu2 %1931  ;;  %v2118_v44 = vpop.permute.xlu0 %2117  ;;  %1961 = vrot.lane.b32.xlu1 %v4322_v61, %s2960_s20  ;;  %2094 = vrot.lane.b32.xlu0 %v4333_v22, %s2964_s27 }
 0x363   : > { %v2137_v58 = vsel %vm4856_vm0, %v2118_v44, %v2120_v32  ;;  %v4369_v19 = vpop.permute.xlu1 %1981 }
 0x364   : > { %v2301_v47 = vsel %vm962_vm1, %v2137_v58, 0  ;;  %v1998_v58 = vsel %vm4908_vm14, %v4369_v19, %v4350_v13  ;;  %vm4910_vm14 = vcmask 490496  }
 0x365   : > { %2330 = vmatpush.bf16.msra.mxu2 %v2301_v47 }
 0x368   : > { %1935 = vrot.lane.b32.xlu2 %v4322_v61, %s2959_s19 }
 0x36a   : > { %v2060_v38 = vpop.permute.xlu2 %2059  ;;  %2037 = vrot.lane.b32.xlu1 %v4333_v22, %s2965_s28  ;;  %2011 = vrot.lane.b32.xlu0 %v4333_v22, %s2966_s29  ;;  %v4385_v28 = vpop.permute.xlu0 %2092 }
 0x36b   : > { %v4379_v50 = vpop.permute.xlu1 %1929  ;;  %v2109_v39 = vsel %vm4903_vm4, %v4308_v53, %v4385_v28  ;;  %vm4905_vm4 = vcmask 760832  }
 0x36c   : > { %v2024_v32 = vsel %vm4905_vm4, %v4358_v9, %v4337_v4  ;;  %vm4909_vm4 = vcmask 1039360  }
 0x36d   : > { %v1946_v20 = vsel %vm4909_vm4, %v4379_v50, %v4362_v42  ;;  %vm4913_vm4 = vmmov %vm4910_vm14 }
 0x370   : > { %1959 = vrot.lane.b32.xlu2 %v4333_v22, %s2960_s20 }
 0x372   : > { %v4387_v60 = vpop.permute.xlu2 %2071  ;;  %2135 = vrot.lane.b32.xlu1 %v2058_v63, %s2963_s26  ;;  %2133 = vrot.lane.b32.xlu0 %v4383_v54, %s2963_s26  ;;  %v4406_v48 = vpop.permute.xlu0 %1957 }
 0x373   : > { %v4392_v34 = vpop.permute.xlu1 %2063  ;;  %v1972_v44 = vsel %vm4907_vm2, %v4316_v2, %v4406_v48  ;;  %vm4911_vm2 = vcmask 482304  }
 0x374   : > { %v2080_v40 = vsel %vm4904_vm13, %v4339_v14, %v4392_v34  ;;  %vm4906_vm13 = vcmask 752640   ;;  %v2188_v47 = vsel %vm962_vm1, %v1972_v44, %v1998_v58 }
 0x375   : > { %v2260_v21 = vsel %vm962_vm1, %v2080_v40, %v2109_v39  ;;  %v2152_v40 = vsel %vm962_vm1, %v4215_v25, %v1946_v20  ;;  %v2079_v25 = vsel %vm4910_vm14, %v2060_v38, %v4339_v14  ;;  %vm4914_vm14 = vmmov %vm4911_vm2 }
 0x376   : > { %2344 = vmatpush.bf16.msra.mxu3 %v2260_v21  ;;  %v1916_v21 = vunpack.c.h.b16 %v4266_v43 }
 0x378   : > { %2077 = vrot.lane.b32.xlu2 %v2058_v63, %s2962_s25 }
 0x37a   : > { %v2006_v23 = vpop.permute.xlu2 %2005  ;;  %2075 = vrot.lane.b32.xlu1 %v4383_v54, %s2962_s25  ;;  %1985 = vrot.lane.b32.xlu0 %v4333_v22, %s2961_s21 }
 0x37b   : > { %v4408_v55 = vpop.permute.xlu1 %2035 }
 0x37c   : > { %v2050_v41 = vsel %vm4906_vm13, %v4352_v52, %v4408_v55  ;;  %vm4912_vm13 = vcmask 588800  }
 0x37d   : > { %v2224_v29 = vsel %vm962_vm1, %v2024_v32, %v2050_v41  ;;  %v4443_v32 = vpack.c.b16 %v1916_v21, %v1916_v21 }
 0x37e   : > { %2345 = vmatpush.bf16.msra.mxu3 %v2224_v29 }
 0x380   : > { %1933 = vrot.lane.b32.xlu2 %v4333_v22, %s2959_s19 }
 0x382   : > { %2346 = vmatpush.bf16.msra.mxu3 %v2188_v47  ;;  %v4429_v30 = vpop.permute.xlu2 %2017  ;;  %2106 = vrot.lane.b32.xlu1 %v2058_v63, %s2964_s27 }
 0x383   : > { %2104 = vrot.lane.b32.xlu0 %v4383_v54, %s2964_s27 }
 0x384   : > { %v4434_v1 = vpop.permute.xlu0 %2127  ;;  %v4436_v39 = vpop.permute.xlu1 %2069 }
 0x386   : > { %2347 = vmatpush.bf16.msra.mxu3 %v2152_v40  ;;  %v2084_v40 = vsel %vm4913_vm4, %v4436_v39, %v4387_v60 }
 0x388   : > { %2047 = vrot.lane.b32.xlu2 %v4383_v54, %s2965_s28 }
 0x38a   : > { %v1954_v41 = vpop.permute.xlu2 %1953  ;;  %2021 = vrot.lane.b32.xlu1 %v4383_v54, %s2966_s29 }
 0x38b   : > { %2131 = vrot.lane.b32.xlu0 %v4443_v32, %s2963_s26 }
 0x38c   : > { %v2089_v63 = vpop.permute.xlu0 %2088  ;;  %v4449_v29 = vpop.permute.xlu1 %2129 }
 0x38d   : > { %v2108_v43 = vsel %vm4911_vm2, %v2089_v63, %v4308_v53  ;;  %v2142_v44 = vsel %vm4856_vm0, %v4434_v1, %v4449_v29  ;;  %v4471_v53 = vld [vmem:[%s4832_s5] sm:$0xf]  ;;  %vm4915_vm2 = vcmask 760832  }
 0x38e   : > { %v2316_v58 = vsel %vm962_vm1, %v2142_v44, 0  ;;  %v2256_v47 = vsel %vm962_vm1, %v2079_v25, %v2108_v43  ;;  %2901 = vmatmul.msk.bf16.vlgmr.msra.gmra.mxu3 %vm4912_vm13, %v4471_v53  ;;  %vm4916_vm13 = vcmask 752640   ;;  %vm4917_vm4 = vmmov %vm4915_vm2 }
 0x38f   : > { %2331 = vmatpush.bf16.msra.mxu2 %v2256_v47  ;;  %2395 = vmatpush.bf16.msrb.mxu3 %v2316_v58  ;;  %v2023_v58 = vsel %vm4915_vm2, %v2006_v23, %v4358_v9  ;;  %vm4919_vm2 = vcmask 1031168  }
 0x390   : > { %1969 = vrot.lane.b32.xlu2 %v4383_v54, %s2960_s20  ;;  %v1971_v7 = vsel %vm4919_vm2, %v1954_v41, %v4316_v2 }
 0x392   : > { %v4462_v20 = vpop.permute.xlu2 %1965  ;;  %2102 = vrot.lane.b32.xlu1 %v4443_v32, %s2964_s27 }
 0x393   : > { %2073 = vrot.lane.b32.xlu0 %v4443_v32, %s2962_s25 }
 0x394   : > { %v4473_v14 = vpop.permute.xlu0 %2098  ;;  %v4475_v38 = vpop.permute.xlu1 %2100 }
 0x395   : > { %v2113_v21 = vsel %vm4914_vm14, %v4473_v14, %v4475_v38  ;;  %vm4918_vm14 = vmmov %vm4916_vm13 }
 0x396   : > { %v2276_v63 = vsel %vm962_vm1, %v2084_v40, %v2113_v21 }
 0x397   : > { %2396 = vmatpush.bf16.msrb.mxu3 %v2276_v63 }
 0x398   : > { %2045 = vrot.lane.b32.xlu2 %v4443_v32, %s2965_s28 }
 0x39a   : > { %v1928_v25 = vpop.permute.xlu2 %1927  ;;  %2019 = vrot.lane.b32.xlu1 %v4443_v32, %s2966_s29 }
 0x39b   : > { %1995 = vrot.lane.b32.xlu0 %v4383_v54, %s2961_s21 }
 0x39c   : > { %v2032_v43 = vpop.permute.xlu0 %2031  ;;  %v4492_v44 = vpop.permute.xlu1 %2015 }
 0x39d   : > { %v2049_v47 = vsel %vm4916_vm13, %v2032_v43, %v4352_v52  ;;  %v2028_v52 = vsel %vm4917_vm4, %v4492_v44, %v4429_v30  ;;  %vm4920_vm13 = vcmask 769024   ;;  %vm4921_vm4 = vcmask 1039360  }
 0x39e   : > { %v2220_v40 = vsel %vm962_vm1, %v2023_v58, %v2049_v47 }
 0x39f   : > { %2332 = vmatpush.bf16.msra.mxu2 %v2220_v40 }
 0x3a0   : > { %1993 = vrot.lane.b32.xlu2 %v4443_v32, %s2961_s21 }
 0x3a2   : > { %v4501_v21 = vpop.permute.xlu2 %1939  ;;  %1967 = vrot.lane.b32.xlu1 %v4443_v32, %s2960_s20 }
 0x3a3   : > { %1943 = vrot.lane.b32.xlu0 %v4383_v54, %s2959_s19 }
 0x3a4   : > { %v2042_v63 = vpop.permute.xlu0 %2041  ;;  %v4507_v51 = vpop.permute.xlu1 %2043 }
 0x3a5   : > { %v2054_v9 = vsel %vm4918_vm14, %v2042_v63, %v4507_v51  ;;  %vm4922_vm14 = vmmov %vm4919_vm2 }
 0x3a6   : > { %v2240_v23 = vsel %vm962_vm1, %v2028_v52, %v2054_v9  ;;  %v1945_v9 = vsel %vm4921_vm4, %v1928_v25, %v4379_v50  ;;  %vm4923_vm2 = vmmov %vm4920_vm13 }
 0x3a7   : > { %2397 = vmatpush.bf16.msrb.mxu3 %v2240_v23 }
 0x3aa   : > { %v2124_v43 = vpop.permute.xlu2 %2123 }
 0x3ab   : > { %v2139_v58 = vsel %vm4856_vm0, %v4326_v11, %v2124_v43  ;;  %1941 = vrot.lane.b32.xlu0 %v4443_v32, %s2959_s19  ;;  %v2148_v11 = vsel %vm962_vm1, %v4236_v57, %v1945_v9 }
 0x3ac   : > { %v2307_v47 = vsel %vm962_vm1, %v2139_v58, 0  ;;  %v1980_v40 = vpop.permute.xlu0 %1979  ;;  %v1964_v6 = vpop.permute.xlu1 %1963 }
 0x3ad   : > { %2356 = vmatpush.bf16.msrb.mxu0 %v2307_v47  ;;  %v1997_v45 = vsel %vm4920_vm13, %v1980_v40, %v4369_v19  ;;  %v1976_v2 = vsel %vm4922_vm14, %v1964_v6, %v4462_v20  ;;  %vm4924_vm13 = vcmask 588800  }
 0x3ae   : > { %v2184_v52 = vsel %vm962_vm1, %v1971_v7, %v1997_v45  ;;  %vm4926_vm14 = vmmov %vm4924_vm13 }
 0x3af   : > { %2333 = vmatpush.bf16.msra.mxu2 %v2184_v52 }
 0x3b2   : > { %v2066_v7 = vpop.permute.xlu2 %2065 }
 0x3b3   : > { %2334 = vmatpush.bf16.msra.mxu2 %v2148_v11  ;;  %v4925_v11 = vld [vmem:[#allocation2_spill] sm:$0xff] }
 0x3b4   : > { %v1990_v23 = vpop.permute.xlu0 %1989  ;;  %v4529_v58 = vpop.permute.xlu1 %1991 }
 0x3b5   : > { %v2002_v41 = vsel %vm4923_vm2, %v1990_v23, %v4529_v58  ;;  %vm4928_vm2 = vcmask 490496  }
 0x3b6   : > { %v2204_v19 = vsel %vm962_vm1, %v1976_v2, %v2002_v41  ;;  %2900 = vmatmul.msk.bf16.vlgmr.msra.gmra.mxu2 %vm4924_vm13, %v4471_v53  ;;  %v2459_v2 = vsel %vm962_vm1, %v4925_v11, 0  ;;  %vm4929_vm13 = vcmask 482304  }
 0x3b7   : > { %2398 = vmatpush.bf16.msrb.mxu3 %v2204_v19 }
 0x3bc   : > { %v2126_v45 = vpop.permute.xlu0 %2125  ;;  %v1938_v50 = vpop.permute.xlu1 %1937 }
 0x3bd   : > { %v2140_v57 = vsel %vm4856_vm0, %v2124_v43, %v2126_v45  ;;  %v2141_v25 = vsel %vm4856_vm0, %v2126_v45, %v4434_v1  ;;  %v1950_v47 = vsel %vm4921_vm4, %v1938_v50, %v4501_v21  ;;  %v4549_v43 = vpop.permute.xlu2 %1987  ;;  %v4927_v1 = vld [vmem:[#allocation3_spill] sm:$0xff]  ;;  %vm4930_vm4 = vcmask 760832  }
 0x3be   : > { %v2310_v40 = vsel %vm962_vm1, %v2140_v57, 0  ;;  %v2313_v52 = vsel %vm962_vm1, %v2141_v25, 0  ;;  %v2168_v9 = vsel %vm962_vm1, %v4268_v0, %v1950_v47  ;;  %v2461_v41 = vsel %vm962_vm1, %v4927_v1, 0 }
 0x3bf   : > { %2369 = vmatpush.bf16.msrb.mxu1 %v2310_v40  ;;  %2382 = vmatpush.bf16.msrb.mxu2 %v2313_v52  ;;  %vm4935_vm0 = vcmask 482304  }
 0x3c0   : > { %2399 = vmatpush.bf16.msrb.mxu3 %v2168_v9  ;;  %vm4936_vm5 = vmmov %vm4935_vm0 }
 0x3c3   : > { %2905 = vmatmul.msk.bf16.vlgmr.msrb.gmra.mxu3 %vm4926_vm14, %v4471_v53  ;;  %vm4931_vm14 = vcmask 752640  }
 0x3c4   : > { %2484 = vmatpush.bf16.msra.mxu3 %v2459_v2  ;;  %v2068_v19 = vpop.permute.xlu0 %2067  ;;  %v2097_v45 = vpop.permute.xlu1 %2096 }
 0x3c5   : > { %v2083_v0 = vsel %vm4928_vm2, %v2068_v19, %v4436_v39  ;;  %v2112_v57 = vsel %vm4929_vm13, %v2097_v45, %v4473_v14  ;;  %v4560_v47 = vpop.permute.xlu2 %1935  ;;  %v4569_v39 = vld [vmem:[%s4835_s8] sm:$0xf]  ;;  %vm4858_vm2 = vcmask 64512   ;;  %v2469_v14 = vsel %vm962_vm1, %v3589_v56, 0 }
 0x3c6   : > { %v2272_v25 = vsel %vm962_vm1, %v2083_v0, %v2112_v57  ;;  %vm4932_vm13 = vcmask 490496  }
 0x3c7   : > { %2383 = vmatpush.bf16.msrb.mxu2 %v2272_v25 }
 0x3c8   : > { %2497 = vmatpush.bf16.msrb.mxu3 %v2461_v41 }
 0x3cc   : > { %v2014_v40 = vpop.permute.xlu0 %2013  ;;  %v2040_v52 = vpop.permute.xlu1 %2039 }
 0x3cd   : > { %v2027_v9 = vsel %vm4930_vm4, %v2014_v40, %v4492_v44  ;;  %v2053_v11 = vsel %vm4931_vm14, %v2040_v52, %v2042_v63  ;;  %v2081_v44 = vsel %vm4932_vm13, %v4392_v34, %v2066_v7  ;;  %vm4933_vm4 = vcmask 769024   ;;  %vm4934_vm14 = vmmov %vm4932_vm13 }
 0x3ce   : > { %v2236_v2 = vsel %vm962_vm1, %v2027_v9, %v2053_v11  ;;  %v2001_v63 = vsel %vm4933_vm4, %v4549_v43, %v1990_v23  ;;  %v2082_v0 = vsel %vm4934_vm14, %v2066_v7, %v2068_v19  ;;  %v1960_v11 = vpop.permute.xlu2 %1959  ;;  %vm4938_vm13 = vcmask 1039360  }
 0x3cf   : > { %2384 = vmatpush.bf16.msrb.mxu2 %v2236_v2  ;;  %v1949_v23 = vsel %vm4938_vm13, %v4560_v47, %v1938_v50  ;;  %vm4943_vm14 = vcmask 588800   ;;  %vm4944_vm13 = vcmask 64512  }
 0x3d3   : > { %2909 = vmatmul.msk.bf16.vlgmr.msra.gmra.mxu3 %vm4858_vm2, %v4569_v39  ;;  %vm4937_vm2 = vcmask 1031168  }
 0x3d4   : > { %2549 = vmatpush.bf16.msra.mxu3 %v2469_v14  ;;  %v2095_v1 = vpop.permute.xlu0 %2094  ;;  %v1962_v41 = vpop.permute.xlu1 %1961 }
 0x3d5   : > { %v2110_v57 = vsel %vm4935_vm0, %v4385_v28, %v2095_v1  ;;  %v2111_v25 = vsel %vm4936_vm5, %v2095_v1, %v2097_v45  ;;  %v1975_v9 = vsel %vm4937_vm2, %v1962_v41, %v1964_v6  ;;  %v2164_v28 = vsel %vm962_vm1, %v4322_v61, %v1949_v23  ;;  %v2291_v1 = vld [vmem:[%s4833_s6] sm:$0xff] }
 0x3d6   : > { %v2264_v56 = vsel %vm962_vm1, %v2081_v44, %v2110_v57  ;;  %v2268_v34 = vsel %vm962_vm1, %v2082_v0, %v2111_v25  ;;  %v2200_v2 = vsel %vm962_vm1, %v1975_v9, %v2001_v63  ;;  %vm4939_vm0 = vcmask 760832   ;;  %v2078_v61 = vpop.permute.xlu2 %2077  ;;  %2294 = vperm.xlu1 %2949, %v2291_v1   ;;  %v4647_v1 = vld [vmem:[%s4834_s7] sm:$0xf] }
 0x3d7   : > { %2357 = vmatpush.bf16.msrb.mxu0 %v2264_v56  ;;  %2370 = vmatpush.bf16.msrb.mxu1 %v2268_v34  ;;  %vm4940_vm5 = vmmov %vm4939_vm0  ;;  %vm4941_vm2 = vcmask 752640  }
 0x3d8   : > { %2385 = vmatpush.bf16.msrb.mxu2 %v2200_v2  ;;  %vm4942_vm4 = vmmov %vm4941_vm2 }
 0x3dc   : > { %2386 = vmatpush.bf16.msrb.mxu2 %v2164_v28  ;;  %v2012_v7 = vpop.permute.xlu0 %2011  ;;  %v2038_v19 = vpop.permute.xlu1 %2037 }
 0x3dd   : > { %v2025_v6 = vsel %vm4939_vm0, %v4337_v4, %v2012_v7  ;;  %v2026_v45 = vsel %vm4940_vm5, %v2012_v7, %v2014_v40  ;;  %v2051_v14 = vsel %vm4941_vm2, %v4408_v55, %v2038_v19  ;;  %v2052_v44 = vsel %vm4942_vm4, %v2038_v19, %v2040_v52 }
 0x3de   : > { %v2228_v63 = vsel %vm962_vm1, %v2025_v6, %v2051_v14  ;;  %v2232_v50 = vsel %vm962_vm1, %v2026_v45, %v2052_v44  ;;  %v2597_v4 = vsel %vm962_vm1, %v3796_v16, 0  ;;  %vm4945_vm0 = vcmask 474112   ;;  %v1934_v57 = vpop.permute.xlu2 %1933 }
 0x3df   : > { %2358 = vmatpush.bf16.msrb.mxu0 %v2228_v63  ;;  %2371 = vmatpush.bf16.msrb.mxu1 %v2232_v50  ;;  %vm4946_vm5 = vcmask 1031168   ;;  %vm4948_vm4 = vcmask 769024  }
 0x3e0   : > { %2904 = vmatmul.msk.bf16.vlgmr.msrb.gmra.mxu2 %vm4943_vm14, %v4471_v53  ;;  %v1973_v56 = vsel %vm4946_vm5, %v4406_v48, %v1960_v11  ;;  %vm4947_vm2 = vmmov %vm4946_vm5  ;;  %vm4952_vm5 = vcmask 64512  }
 0x3e1   : > { %v1974_v34 = vsel %vm4947_vm2, %v1960_v11, %v1962_v41  ;;  %vm4949_vm14 = vmmov %vm4948_vm4  ;;  %vm4953_vm2 = vcmask 490496  }
 0x3e3   : > { %2910 = vmatmul.msk.bf16.vlgmr.msrb.gmra.mxu3 %vm4944_vm13, %v4569_v39  ;;  %vm4950_vm13 = vcmask 1039360  }
 0x3e4   : > { %2622 = vmatpush.bf16.msrb.mxu3 %v2597_v4  ;;  %v2134_v55 = vpop.permute.xlu0 %2133  ;;  %v2136_v40 = vpop.permute.xlu1 %2135  ;;  %v1947_v7 = vsel %vm4950_vm13, %v4362_v42, %v1934_v57 }
 0x3e5   : > { %v2145_v52 = vsel %vm4945_vm0, %v2134_v55, %v2136_v40  ;;  %vm4951_vm0 = vmmov %vm4950_vm13  ;;  %v2156_v41 = vsel %vm962_vm1, %v4234_v17, %v1947_v7 }
 0x3e6   : > { %v2325_v0 = vsel %vm962_vm1, %v2145_v52, 0  ;;  %v1948_v48 = vsel %vm4951_vm0, %v1934_v57, %v4560_v47  ;;  %v2048_v11 = vpop.permute.xlu2 %2047  ;;  %vm4957_vm0 = vcmask 474112  }
 0x3e7   : > { %2434 = vmatpush.bf16.msra.mxu2 %v2325_v0 }
 0x3ec   : > { %v1986_v25 = vpop.permute.xlu0 %1985  ;;  %v2076_v9 = vpop.permute.xlu1 %2075 }
 0x3ed   : > { %v1999_v16 = vsel %vm4948_vm4, %v4350_v13, %v1986_v25  ;;  %v2000_v2 = vsel %vm4949_vm14, %v1986_v25, %v4549_v43  ;;  %v2605_v13 = vsel %vm962_vm1, %v3855_v27, 0  ;;  %v2160_v43 = vsel %vm962_vm1, %v4333_v22, %v1948_v48 }
 0x3ee   : > { %v2192_v23 = vsel %vm962_vm1, %v1973_v56, %v1999_v16  ;;  %v2196_v28 = vsel %vm962_vm1, %v1974_v34, %v2000_v2  ;;  %v2087_v47 = vsel %vm4953_vm2, %v2076_v9, %v2078_v61  ;;  %vm4954_vm4 = vcmask 482304   ;;  %v1970_v14 = vpop.permute.xlu2 %1969 }
 0x3ef   : > { %2359 = vmatpush.bf16.msrb.mxu0 %v2192_v23  ;;  %2372 = vmatpush.bf16.msrb.mxu1 %v2196_v28  ;;  %vm4955_vm14 = vcmask 588800   ;;  %vm4959_vm2 = vcmask 64512  }
 0x3f0   : > { %vm4956_vm13 = vmmov %vm4955_vm14 }
 0x3f3   : > { %2914 = vmatmul.msk.bf16.vlgmr.msra.gmra.mxu3 %vm4952_vm5, %v4569_v39  ;;  %2360 = vmatpush.bf16.msrb.mxu0 %v2156_v41  ;;  %vm4958_vm5 = vmmov %vm4957_vm0 }
 0x3f4   : > { %2674 = vmatpush.bf16.msra.mxu3 %v2605_v13  ;;  %2373 = vmatpush.bf16.msrb.mxu1 %v2160_v43  ;;  %v2107_v42 = vpop.permute.xlu1 %2106 }
 0x3f5   : > { %v2105_v19 = vpop.permute.xlu0 %2104 }
 0x3f6   : > { %v2116_v6 = vsel %vm4954_vm4, %v2105_v19, %v2107_v42  ;;  %2902 = vmatmul.msk.bf16.vlgmr.msrb.gmra.mxu0 %vm4955_vm14, %v4471_v53  ;;  %vm4960_vm14 = vmmov %vm4954_vm4  ;;  %v2046_v34 = vpop.permute.xlu2 %2045 }
 0x3f7   : > { %v2288_v27 = vsel %vm962_vm1, %v2087_v47, %v2116_v6  ;;  %2903 = vmatmul.msk.bf16.vlgmr.msrb.gmra.mxu1 %vm4956_vm13, %v4471_v53  ;;  %vm4961_vm13 = vcmask 490496  }
 0x3f8   : > { %2435 = vmatpush.bf16.msra.mxu2 %v2288_v27 }
 0x3fc   : > { %v2022_v17 = vpop.permute.xlu1 %2021 }
 0x3fd   : > { %v2132_v22 = vpop.permute.xlu0 %2131  ;;  %v2252_v45 = vsel %vm962_vm1, %v2022_v17, %v2048_v11 }
 0x3fe   : > { %v2143_v44 = vsel %vm4957_vm0, %v4449_v29, %v2132_v22  ;;  %v2144_v63 = vsel %vm4958_vm5, %v2132_v22, %v2134_v55  ;;  %2436 = vmatpush.bf16.msra.mxu2 %v2252_v45  ;;  %v2613_v29 = vsel %vm962_vm1, %v3925_v18, 0  ;;  %vm4962_vm0 = vmmov %vm4961_vm13  ;;  %v2732_v18 = vld [vmem:[%s4836_s9] sm:$0xff]  ;;  %vm4963_vm5 = vcmask 752640   ;;  %v1994_v41 = vpop.permute.xlu2 %1993 }
 0x3ff   : > { %v2319_v50 = vsel %vm962_vm1, %v2143_v44, 0  ;;  %v2322_v61 = vsel %vm962_vm1, %v2144_v63, 0  ;;  %2735 = vperm.xlu2 %2950, %v2732_v18   ;;  %v4975_v44 = vld [vmem:[#allocation4_spill] sm:$0xff] }
 0x400   : > { %2408 = vmatpush.bf16.msra.mxu0 %v2319_v50  ;;  %2421 = vmatpush.bf16.msra.mxu1 %v2322_v61  ;;  %v2463_v63 = vsel %vm962_vm1, %v4975_v44, 0 }
 0x403   : > { %2918 = vmatmul.msk.bf16.vlgmr.msrb.gmra.mxu3 %vm4959_vm2, %v4647_v1  ;;  %vm4964_vm2 = vmmov %vm4963_vm5 }
 0x404   : > { %2726 = vmatpush.bf16.msrb.mxu3 %v2613_v29  ;;  %v2103_v4 = vpop.permute.xlu1 %2102 }
 0x405   : > { %v2074_v55 = vpop.permute.xlu0 %2073  ;;  %v2114_v40 = vsel %vm4954_vm4, %v4475_v38, %v2103_v4  ;;  %v2115_v52 = vsel %vm4960_vm14, %v2103_v4, %v2105_v19  ;;  %v2055_v38 = vsel %vm4963_vm5, %v4507_v51, %v2046_v34  ;;  %vm4965_vm4 = vcmask 760832  }
 0x406   : > { %v2085_v0 = vsel %vm4961_vm13, %v4387_v60, %v2074_v55  ;;  %v2086_v57 = vsel %vm4962_vm0, %v2074_v55, %v2076_v9  ;;  %v2056_v60 = vsel %vm4964_vm2, %v2046_v34, %v2048_v11  ;;  %vm4966_vm14 = vmmov %vm4965_vm4  ;;  %vm4967_vm13 = vcmask 64512  }
 0x407   : > { %v2280_v25 = vsel %vm962_vm1, %v2085_v0, %v2114_v40  ;;  %v2284_v56 = vsel %vm962_vm1, %v2086_v57, %v2115_v52  ;;  %vm4968_vm0 = vcmask 769024   ;;  %vm4970_vm2 = vcmask 1031168  }
 0x408   : > { %2409 = vmatpush.bf16.msra.mxu0 %v2280_v25  ;;  %2422 = vmatpush.bf16.msra.mxu1 %v2284_v56  ;;  %v2003_v13 = vsel %vm4968_vm0, %v4529_v58, %v1994_v41  ;;  %vm4969_vm5 = vmmov %vm4968_vm0  ;;  %v2467_v58 = vsel %vm962_vm1, %v3459_v33, 0 }
 0x40c   : > { %v2020_v16 = vpop.permute.xlu1 %2019 }
 0x40d   : > { %v1996_v2 = vpop.permute.xlu0 %1995  ;;  %v2029_v9 = vsel %vm4965_vm4, %v4429_v30, %v2020_v16  ;;  %v2030_v23 = vsel %vm4966_vm14, %v2020_v16, %v2022_v17  ;;  %vm4971_vm4 = vmmov %vm4970_vm2  ;;  %vm4972_vm14 = vcmask 588800  }
 0x40e   : > { %v2216_v28 = vsel %vm962_vm1, %v1970_v14, %v1996_v2  ;;  %v2244_v7 = vsel %vm962_vm1, %v2029_v9, %v2055_v38  ;;  %v2248_v48 = vsel %vm962_vm1, %v2030_v23, %v2056_v60  ;;  %v2004_v30 = vsel %vm4969_vm5, %v1994_v41, %v1996_v2  ;;  %vm4977_vm5 = vmmov %vm4972_vm14 }
 0x40f   : > { %2437 = vmatpush.bf16.msra.mxu2 %v2216_v28  ;;  %2410 = vmatpush.bf16.msra.mxu0 %v2244_v7 }
 0x410   : > { %2423 = vmatpush.bf16.msra.mxu1 %v2248_v48 }
 0x411   : > { %v4687_v27 = vpop.f32.mrf.mxu3 }
 0x413   : > { %2922 = vmatmul.msk.bf16.vlgmr.msra.gmra.mxu3 %vm4967_vm13, %v4647_v1  ;;  %vm4973_vm13 = vcmask 1039360  }
 0x414   : > { %v1968_v51 = vpop.permute.xlu1 %1967  ;;  %vm4974_vm0 = vmmov %vm4973_vm13 }
 0x415   : > { %v1944_v43 = vpop.permute.xlu0 %1943  ;;  %v1977_v11 = vsel %vm4970_vm2, %v4462_v20, %v1968_v51  ;;  %v1978_v42 = vsel %vm4971_vm4, %v1968_v51, %v1970_v14  ;;  %v2475_v20 = vsel %vm962_vm1, %v3585_v36, 0  ;;  %v4976_v36 = vld [vmem:[#allocation5_spill] sm:$0xff]  ;;  %vm4978_vm2 = vmmov %vm4977_vm5  ;;  %vm4979_vm4 = vcmask 64512  }
 0x416   : > { %v2180_v19 = vsel %vm962_vm1, %v4383_v54, %v1944_v43  ;;  %v2208_v47 = vsel %vm962_vm1, %v1977_v11, %v2003_v13  ;;  %v2212_v6 = vsel %vm962_vm1, %v1978_v42, %v2004_v30  ;;  %v2465_v50 = vsel %vm962_vm1, %v4976_v36, 0 }
 0x417   : > { %2438 = vmatpush.bf16.msra.mxu2 %v2180_v19  ;;  %2411 = vmatpush.bf16.msra.mxu0 %v2208_v47 }
 0x418   : > { %2424 = vmatpush.bf16.msra.mxu1 %v2212_v6 }
 0x419   : > { %v2351_v14 = vpop.f32.mrf.mxu3 }
 0x41a   : > { %2908 = vmatmul.msk.bf16.vlgmr.msra.gmra.mxu2 %vm4972_vm14, %v4471_v53  ;;  %vm4980_vm14 = vmmov %vm4979_vm4 }
 0x41b   : > { %2536 = vmatpush.bf16.msrb.mxu2 %v2467_v58 }
 0x41d   : > { %v1942_v54 = vpop.permute.xlu0 %1941 }
 0x41e   : > { %v1951_v17 = vsel %vm4973_vm13, %v4501_v21, %v1942_v54  ;;  %v1952_v22 = vsel %vm4974_vm0, %v1942_v54, %v1944_v43  ;;  %v2603_v21 = vsel %vm962_vm1, %v3816_v59, 0  ;;  %vm4981_vm13 = vmmov %vm4979_vm4 }
 0x41f   : > { %2588 = vmatpush.bf16.msra.mxu2 %v2475_v20  ;;  %v2172_v33 = vsel %vm962_vm1, %v4277_v8, %v1951_v17  ;;  %v2176_v45 = vsel %vm962_vm1, %v4443_v32, %v1952_v22  ;;  %v2471_v8 = vsel %vm962_vm1, %v3595_v62, 0  ;;  %v2473_v32 = vsel %vm962_vm1, %v3615_v10, 0  ;;  %vm4982_vm0 = vmmov %vm4979_vm4 }
 0x420   : > { %2412 = vmatpush.bf16.msra.mxu0 %v2172_v33  ;;  %2425 = vmatpush.bf16.msra.mxu1 %v2176_v45  ;;  %v2601_v62 = vsel %vm962_vm1, %v3734_v5, 0  ;;  %v2611_v10 = vsel %vm962_vm1, %v3931_v12, 0  ;;  %v2609_v5 = vsel %vm962_vm1, %v3886_v35, 0 }
 0x423   : > { %2906 = vmatmul.msk.bf16.vlgmr.msra.gmra.mxu0 %vm4977_vm5, %v4471_v53  ;;  %2907 = vmatmul.msk.bf16.vlgmr.msra.gmra.mxu1 %vm4978_vm2, %v4471_v53  ;;  %v2599_v53 = vsel %vm962_vm1, %v3730_v26, 0  ;;  %vm4983_vm5 = vmmov %vm4982_vm0  ;;  %v2607_v26 = vsel %vm962_vm1, %v3883_v46, 0 }
 0x424   : > { %2510 = vmatpush.bf16.msrb.mxu0 %v2463_v63  ;;  %2523 = vmatpush.bf16.msrb.mxu1 %v2465_v50  ;;  %vm4984_vm2 = vmmov %vm4982_vm0 }
 0x425   : > { %2926 = vmatmul.msk.bf16.vlgmr.msrb.gmra.mxu3 %vm4979_vm4, %v4647_v1  ;;  %vm4985_vm4 = vmmov %vm4982_vm0 }
 0x428   : > { %2562 = vmatpush.bf16.msra.mxu0 %v2471_v8  ;;  %2575 = vmatpush.bf16.msra.mxu1 %v2473_v32 }
 0x42a   : > { %2913 = vmatmul.msk.bf16.vlgmr.msrb.gmra.mxu2 %vm4980_vm14, %v4569_v39  ;;  %vm4986_vm14 = vmmov %vm4982_vm0 }
 0x42b   : > { %2661 = vmatpush.bf16.msrb.mxu2 %v2603_v21 }
 0x433   : > { %2911 = vmatmul.msk.bf16.vlgmr.msrb.gmra.mxu0 %vm4981_vm13, %v4569_v39  ;;  %2912 = vmatmul.msk.bf16.vlgmr.msrb.gmra.mxu1 %vm4982_vm0, %v4569_v39  ;;  %vm4987_vm13 = vmmov %vm4982_vm0 }
 0x434   : > { %2635 = vmatpush.bf16.msrb.mxu0 %v2599_v53  ;;  %2648 = vmatpush.bf16.msrb.mxu1 %v2601_v62 }
 0x439   : > { %v2336_v35 = vpop.f32.mrf.mxu2 }
 0x43a   : > { %2917 = vmatmul.msk.bf16.vlgmr.msra.gmra.mxu2 %vm4983_vm5, %v4569_v39  ;;  %vm4988_vm5 = vmmov %vm4982_vm0 }
 0x43b   : > { %2713 = vmatpush.bf16.msra.mxu2 %v2611_v10 }
 0x441   : > { %v2338_v61 = vpop.f32.mrf.mxu2 }
 0x443   : > { %2915 = vmatmul.msk.bf16.vlgmr.msra.gmra.mxu0 %vm4984_vm2, %v4569_v39  ;;  %2916 = vmatmul.msk.bf16.vlgmr.msra.gmra.mxu1 %vm4985_vm4, %v4569_v39  ;;  %vm4989_vm2 = vmmov %vm4982_vm0 }
 0x444   : > { %2687 = vmatpush.bf16.msra.mxu0 %v2607_v26  ;;  %2700 = vmatpush.bf16.msra.mxu1 %v2609_v5  ;;  %vm4990_vm4 = vmmov %vm4982_vm0 }
 0x446   : > { %v4738_v59 = vpop.f32.mrf.mxu3 }
 0x448   : > { %v4754_v18 = vpop.permute.xlu1 %2294 }
 0x449   : > { %v2337_v16 = vadd.f32 %v2336_v35, %v4754_v18  ;;  %v2350_v5 = vadd.f32 %v4687_v27, %v4754_v18  ;;  %v2402_v15 = vadd.f32 %v4738_v59, %v4754_v18 }
 0x44a   : > { %2921 = vmatmul.msk.bf16.vlgmr.msrb.gmra.mxu2 %vm4986_vm14, %v4647_v1 }
 0x44e   : > { %v2403_v12 = vpop.f32.mrf.mxu3 }
 0x453   : > { %2919 = vmatmul.msk.bf16.vlgmr.msrb.gmra.mxu0 %vm4987_vm13, %v4647_v1  ;;  %2920 = vmatmul.msk.bf16.vlgmr.msrb.gmra.mxu1 %vm4982_vm0, %v4647_v1 }
 0x456   : > { %v2486_v46 = vpop.f32.mrf.mxu3 }
 0x459   : > { %v4757_v60 = vpop.permute.xlu2 %2735 }
 0x45a   : > { %2925 = vmatmul.msk.bf16.vlgmr.msra.gmra.mxu2 %vm4988_vm5, %v4647_v1 }
 0x45e   : > { %v2488_v39 = vpop.f32.mrf.mxu3 }
 0x463   : > { %2923 = vmatmul.msk.bf16.vlgmr.msra.gmra.mxu0 %vm4989_vm2, %v4647_v1  ;;  %2924 = vmatmul.msk.bf16.vlgmr.msra.gmra.mxu1 %vm4990_vm4, %v4647_v1  ;;  %v2388_v4 = vpop.f32.mrf.mxu2  ;;  %v2444_v1 = vmax.f32 %v2337_v16, 0.0 }
 0x464   : > { %v2389_v19 = vadd.f32 %v2388_v4, %v4754_v18 }
 0x466   : > { %v2499_v29 = vpop.f32.mrf.mxu3  ;;  %v2448_v58 = vmax.f32 %v2389_v19, 0.0 }
 0x46b   : > { %v2390_v40 = vpop.f32.mrf.mxu2 }
 0x46e   : > { %v2501_v55 = vpop.f32.mrf.mxu3 }
 0x473   : > { %v2362_v52 = vpop.f32.mrf.mxu0 }
 0x474   : > { %v2375_v0 = vpop.f32.mrf.mxu1  ;;  %v2363_v10 = vadd.f32 %v2362_v52, %v4754_v18 }
 0x475   : > { %v2376_v53 = vadd.f32 %v2375_v0, %v4754_v18 }
 0x476   : > { %v4752_v57 = vpop.f32.mrf.mxu3  ;;  %v2446_v40 = vmax.f32 %v2363_v10, 0.0 }
 0x477   : > { %v2447_v39 = vmax.f32 %v2376_v53, 0.0 }
 0x47b   : > { %v2364_v25 = vpop.f32.mrf.mxu0 }
 0x47c   : > { %v2377_v56 = vpop.f32.mrf.mxu1  ;;  %v2445_v25 = vmax.f32 %v2350_v5, 0.0 }
 0x47e   : > { %v2553_v34 = vpop.f32.mrf.mxu3 }
 0x486   : > { %v2624_v38 = vpop.f32.mrf.mxu3 }
 0x487   : > { %v2625_v2 = vadd.f32 %v2624_v38, %v2486_v46 }
 0x489   : > { %v2738_v9 = vadd.f32 %v4757_v60, %v2625_v2 }
 0x48b   : > { %v2747_v23 = vadd.f32 %v2738_v9, %v2444_v1 }
 0x48d   : > { %v2756_v1 = vsel %vm4037_vm11, %v2747_v23, 0.0 }
 0x48e   : > { %v2626_v28 = vpop.f32.mrf.mxu3 }
 0x496   : > { %v2676_v7 = vpop.f32.mrf.mxu3 }
 0x49d   : > { %v2440_v48 = vpop.f32.mrf.mxu2 }
 0x49e   : > { %v2678_v41 = vpop.f32.mrf.mxu3  ;;  %v2441_v56 = vadd.f32 %v2440_v48, %v4754_v18 }
 0x4a0   : > { %v4760_v51 = vpop.f32.mrf.mxu0  ;;  %v2427_v13 = vpop.f32.mrf.mxu1  ;;  %v2452_v9 = vmax.f32 %v2441_v56, 0.0 }
 0x4a1   : > { %v2428_v31 = vadd.f32 %v2427_v13, %v4754_v18 }
 0x4a5   : > { %v2442_v30 = vpop.f32.mrf.mxu2 }
 0x4a8   : > { %v2416_v43 = vpop.f32.mrf.mxu0  ;;  %v2429_v11 = vpop.f32.mrf.mxu1 }
 0x4a9   : > { %v2728_v42 = vpop.f32.mrf.mxu3 }
 0x4ad   : > { %v2538_v47 = vpop.f32.mrf.mxu2 }
 0x4ae   : > { %v2677_v6 = vadd.f32 %v2676_v7, %v2538_v47 }
 0x4b0   : > { %v2742_v20 = vadd.f32 %v4757_v60, %v2677_v6  ;;  %v2512_v54 = vpop.f32.mrf.mxu0  ;;  %v2525_v17 = vpop.f32.mrf.mxu1 }
 0x4b1   : > { %v2730_v22 = vpop.f32.mrf.mxu3 }
 0x4b2   : > { %v4764_v33 = vadd.f32 %v2742_v20, %v2448_v58  ;;  %v2451_v20 = vmax.f32 %v2428_v31, 0.0 }
 0x4b5   : > { %v2540_v45 = vpop.f32.mrf.mxu2 }
 0x4b8   : > { %v2514_v14 = vpop.f32.mrf.mxu0  ;;  %v2527_v44 = vpop.f32.mrf.mxu1 }
 0x4b9   : > { %v2760_v44 = vsel %vm4147_vm7, %v4764_v33, 0.0 }
 0x4bd   : > { %v2590_v63 = vpop.f32.mrf.mxu2 }
 0x4be   : > { %v2729_v61 = vadd.f32 %v2728_v42, %v2590_v63  ;;  %v2415_v42 = vadd.f32 %v4760_v51, %v4754_v18 }
 0x4c0   : > { %v2564_v36 = vpop.f32.mrf.mxu0  ;;  %v2577_v50 = vpop.f32.mrf.mxu1  ;;  %v2746_v16 = vadd.f32 %v4757_v60, %v2729_v61  ;;  %v2450_v3 = vmax.f32 %v2415_v42, 0.0 }
 0x4c2   : > { %v2755_v11 = vadd.f32 %v2746_v16, %v2452_v9 }
 0x4c4   : > { %v2764_v37 = vsel %vm4199_vm3, %v2755_v11, 0.0  ;;  %vm4994_vm3 = vcmask 285696  }
 0x4c5   : > { %v2592_v8 = vpop.f32.mrf.mxu2  ;;  %v2769_v19 = vpack.c.bf16 %v2764_v37, %v2764_v37  ;;  %vm4995_vm11 = vmmov %vm4994_vm3 }
 0x4c6   : > { %vm5000_vm7 = vmmov %vm4994_vm3 }
 0x4c8   : > { %v2566_v32 = vpop.f32.mrf.mxu0  ;;  %v2579_v21 = vpop.f32.mrf.mxu1 }
 0x4cd   : > { %v2663_v62 = vpop.f32.mrf.mxu2 }
 0x4ce   : > { %v2664_v26 = vadd.f32 %v2663_v62, %v2525_v17  ;;  %v2449_v17 = vmax.f32 %v2402_v15, 0.0 }
 0x4d0   : > { %v2741_v12 = vadd.f32 %v4757_v60, %v2664_v26  ;;  %v2637_v46 = vpop.f32.mrf.mxu0  ;;  %v2650_v35 = vpop.f32.mrf.mxu1 }
 0x4d1   : > { %v2638_v4 = vadd.f32 %v2637_v46, %v2499_v29  ;;  %v2651_v55 = vadd.f32 %v2650_v35, %v2512_v54 }
 0x4d2   : > { %v2750_v0 = vadd.f32 %v2741_v12, %v2447_v39 }
 0x4d3   : > { %v2739_v34 = vadd.f32 %v4757_v60, %v2638_v4  ;;  %v2740_v52 = vadd.f32 %v4757_v60, %v2651_v55  ;;  %v4997_v55 = vld [vmem:[#allocation9_spill] sm:$0xff] }
 0x4d4   : > { %v2759_v29 = vsel %vm4082_vm8, %v2750_v0, 0.0  ;;  %vm4999_vm8 = vmmov %vm4994_vm3 }
 0x4d5   : > { %v2748_v27 = vadd.f32 %v2739_v34, %v2445_v25  ;;  %v2749_v38 = vadd.f32 %v2740_v52, %v2446_v40  ;;  %v2665_v2 = vpop.f32.mrf.mxu2 }
 0x4d7   : > { %v2757_v28 = vsel %vm4041_vm10, %v2748_v27, 0.0  ;;  %v2758_v7 = vsel %vm4078_vm9, %v2749_v38, 0.0  ;;  %vm4996_vm10 = vmmov %vm4994_vm3  ;;  %vm4998_vm9 = vnez %v4997_v55 }
 0x4d8   : > { %v2639_v48 = vpop.f32.mrf.mxu0  ;;  %v2652_v41 = vpop.f32.mrf.mxu1  ;;  %v2766_v30 = vpack.c.bf16 %v2759_v29, %v2758_v7  ;;  %v2765_v43 = vpack.c.bf16 %v2757_v28, %v2756_v1 }
 0x4da   : > { %2777 = vrot.lane.b32.xlu1 %v2766_v30, %s2968_s18  ;;  %2775 = vrot.lane.b32.xlu0 %v2765_v43, %s2968_s18 }
 0x4dd   : > { %v2715_v23 = vpop.f32.mrf.mxu2 }
 0x4de   : > { %v2716_v49 = vadd.f32 %v2715_v23, %v2577_v50 }
 0x4e0   : > { %v2745_v47 = vadd.f32 %v4757_v60, %v2716_v49  ;;  %v2689_v6 = vpop.f32.mrf.mxu0  ;;  %v2702_v58 = vpop.f32.mrf.mxu1 }
 0x4e1   : > { %v2690_v54 = vadd.f32 %v2689_v6, %v4752_v57  ;;  %v2703_v13 = vadd.f32 %v2702_v58, %v2564_v36 }
 0x4e2   : > { %2783 = vrot.lane.b32.xlu1 %v2769_v19, %s2968_s18  ;;  %v2754_v22 = vadd.f32 %v2745_v47, %v2451_v20 }
 0x4e3   : > { %v2743_v45 = vadd.f32 %v4757_v60, %v2690_v54  ;;  %v2744_v59 = vadd.f32 %v4757_v60, %v2703_v13 }
 0x4e4   : > { %v2763_v57 = vsel %vm4179_vm12, %v2754_v22, 0.0 }
 0x4e5   : > { %v2752_v14 = vadd.f32 %v2743_v45, %v2449_v17  ;;  %v2753_v18 = vadd.f32 %v2744_v59, %v2450_v3  ;;  %v2717_v51 = vpop.f32.mrf.mxu2 }
 0x4e7   : > { %v2761_v50 = vsel %vm4151_vm6, %v2752_v14, 0.0  ;;  %v2762_v32 = vsel %vm4175_vm15, %v2753_v18, 0.0  ;;  %vm5001_vm6 = vcmask 805888  }
 0x4e8   : > { %v2704_v21 = vpop.f32.mrf.mxu1  ;;  %v2767_v53 = vpack.c.bf16 %v2761_v50, %v2760_v44  ;;  %v2768_v60 = vpack.c.bf16 %v2763_v57, %v2762_v32  ;;  %v2691_v62 = vpop.f32.mrf.mxu0 }
 0x4ea   : > { %2779 = vrot.lane.b32.xlu2 %v2767_v53, %s2968_s18  ;;  %2781 = vrot.lane.b32.xlu0 %v2768_v60, %s2968_s18 }
 0x544   : > { %v2780_v24 = vpop.permute.xlu2 %2779 }
 0x545   : > { %v2787_v26 = vrot.slane %v2780_v24, 4 }
 0x54c   : > { %v2778_v33 = vpop.permute.xlu1 %2777  ;;  %v2776_v10 = vpop.permute.xlu0 %2775 }
 0x54d   : > { %v2786_v5 = vrot.slane %v2778_v33, 4  ;;  %v2785_v12 = vrot.slane %v2776_v10, 4 }
 0x54f   : > { %v2792_v46 = vsel %vm962_vm1, %v2786_v5, %v2787_v26  ;;  %v2789_v35 = vsel %vm4994_vm3, %v2785_v12, %v2776_v10  ;;  %v2790_v39 = vsel %vm962_vm1, %v2785_v12, %v2786_v5 }
 0x550   : > { %v2793_v61 = vsel %vm4995_vm11, %v2792_v46, %v2780_v24  ;;  %v2791_v4 = vsel %vm4996_vm10, %v2790_v39, %v2778_v33  ;;  %2802 = vst.msk [vmem:[%s4193_s24] sm:$0xff] %vm4998_vm9, %v2789_v35 }
 0x551   : > { %2804 = vst [vmem:[%s4193_s24 + $0x10] sm:$0xff] %v2793_v61 }
 0x552   : > { %2803 = vst [vmem:[%s4193_s24 + $0x8] sm:$0xff] %v2791_v4 }
 0x554   : > { %v2784_v56 = vpop.permute.xlu1 %2783 }
 0x55c   : > { %v2782_v40 = vpop.permute.xlu0 %2781 }
 0x55d   : > { %v2788_v25 = vrot.slane %v2782_v40, 4 }
 0x55f   : > { %v2794_v0 = vsel %vm962_vm1, %v2787_v26, %v2788_v25  ;;  %v2796_v34 = vsel %vm4999_vm8, %v2788_v25, %v2784_v56 }
 0x560   : > { %v2795_v52 = vsel %vm5000_vm7, %v2794_v0, %v2782_v40  ;;  %2806 = vst.msk [vmem:[%s4193_s24 + $0x20] sm:$0xf] %vm5001_vm6, %v2796_v34 }
 0x561   : > { %2805 = vst [vmem:[%s4193_s24 + $0x18] sm:$0xff] %v2795_v52 }
 0x562 PF: > { %s20_s13 = sadd.s32 1, %s2957_s13  }
 0x563   : > { %p17_p4 = scmp.ge.s32.totalorder %s20_s13, 4  }
 0x565   :  { %19 = sbr.rel (!%p17_p4) target bundleno = 1 (0x1), region = 93 }

// kernel: _lambda_.11
= control target key start
LH: loop header
LB: loop body
LE: loop exit
PB: predicated region body
PF: predicated region fallthrough
CT: control target
= control target key end

     0   :  { %s2040_s18 = smov 0   ;;  %s3133_s0 = inlined_call_operand.vmem [shape: bf16[2,8,1190], index: 0, kind: input, shape index: {}]   ;;  %s3134_s1 = inlined_call_operand.vmem [shape: bf16[8,72], index: 1, kind: input, shape index: {}]   ;;  %s3135_s2 = inlined_call_operand.vmem [shape: f32[8,1], index: 2, kind: input, shape index: {}]   ;;  %s3136_s3 = inlined_call_operand.vmem [shape: bf16[8,72], index: 3, kind: input, shape index: {}]   ;;  %s3137_s4 = inlined_call_operand.vmem [shape: f32[8,1], index: 4, kind: input, shape index: {}]   ;;  %s3138_s5 = inlined_call_operand.vmem [shape: bf16[2,8,1190], index: 5, kind: output, shape index: {}]  }
   0x1 LB: > { %s1919_s19 = sadd.s32 4294967295, %s1998_s18   ;;  %p1923_p0 = scmp.ge.s32.totalorder %s1998_s18, 1  ;;  %s1998_s18 = sphi %s2040_s18, %s15_s18  }
   0x2   : > { %p187_p1 = scmp.lt.s32.totalorder %s1998_s18, 3 }
   0x4   : > { %p188_p2 = pnand %p1923_p0, %p187_p1 }
   0x5   : > { %p215_p3 = scmp.lt.s32.totalorder (!%p188_p2), %s1919_s19, 1  ;;  %s2000_s24 = smov (!%p188_p2), 58  }
   0x6   : > { %191 = sbr.rel (%p188_p2) target bundleno = 1064 (0x428), region = 40  ;;  %s2001_s25 = smov (!%p188_p2), 60  }
   0x7   : > { %s2002_s26 = smov (!%p188_p2), 59   ;;  %s2003_s27 = smov (!%p188_p2), 93  }
   0x8   : > { %s2004_s28 = smov (!%p188_p2), 92   ;;  %s2005_s29 = smov (!%p188_p2), 126  }
   0x9   : > { %s2006_s30 = smov (!%p188_p2), 94   ;;  %s2007_s6 = smov (!%p188_p2), 127  }
   0xa   : > { %s2009_s11 = smov (!%p188_p2), 35  }
   0xb   : > { %s3262_s19 = smov (!%p215_p3, %s1919_s19), 1  ;;  %vm3147_vm0 = vcmask 474112   ;;  %vm807_vm1 = vcmask 1043456   ;;  %vm3146_vm2 = vcmask 490496   ;;  %vm3145_vm3 = vcmask 482304  }
   0xc   : > { %s1946_s20 = smul.u32 40, %s3262_s19  ;;  %vm3144_vm4 = vcmask 760832   ;;  %vm3143_vm5 = vcmask 752640   ;;  %vm3142_vm6 = vcmask 1031168   ;;  %vm3141_vm7 = vcmask 769024  }
   0xd   : > { %vm3140_vm8 = vcmask 1039360   ;;  %vm3139_vm9 = vcmask 588800  }
   0xe   : > { %s2056_s23 = scalar_lea.vmem %s3133_s0, %s1946_s20  ;;  %s2627_s14 = scalar_lea.vmem %s3138_s5, %s1946_s20 }
   0xf   : > { %v552_v0 = vld [vmem:[%s2056_s23 + $0x8] sm:$0xff]  ;;  %v551_v1 = vld [vmem:[%s2056_s23] sm:$0xff]  ;;  %v553_v8 = vld [vmem:[%s2056_s23 + $0x10] sm:$0xff] }
  0x10   : > { %v564_v2 = vunpack.c.l.b16 %v552_v0  ;;  %v563_v3 = vunpack.c.h.b16 %v551_v1  ;;  %v562_v4 = vunpack.c.l.b16 %v551_v1  ;;  %v566_v9 = vunpack.c.l.b16 %v553_v8  ;;  %v554_v16 = vld [vmem:[%s2056_s23 + $0x18] sm:$0xff]  ;;  %v2165_v21 = vld [vmem:[%s2056_s23 + $0x20] sm:$0xff] }
  0x11   : > { %v565_v10 = vunpack.c.h.b16 %v552_v0  ;;  %v567_v13 = vunpack.c.h.b16 %v553_v8  ;;  %v568_v17 = vunpack.c.l.b16 %v554_v16  ;;  %v570_v22 = vunpack.c.l.b16 %v2165_v21 }
  0x12   : > { %v2060_v5 = vpack.c.b16 %v564_v2, %v564_v2  ;;  %v2062_v6 = vpack.c.b16 %v563_v3, %v563_v3  ;;  %v2064_v7 = vpack.c.b16 %v562_v4, %v562_v4  ;;  %v2085_v11 = vpack.c.b16 %v566_v9, %v566_v9 }
  0x13   : > { %v2087_v12 = vpack.c.b16 %v565_v10, %v565_v10  ;;  %v2143_v15 = vpack.c.b16 %v567_v13, %v567_v13  ;;  %v2154_v19 = vpack.c.b16 %v568_v17, %v568_v17  ;;  %v569_v23 = vunpack.c.h.b16 %v554_v16 }
  0x14   : > { %781 = vrot.lane.b32.xlu1 %v2060_v5, %s2000_s24  ;;  %719 = vrot.lane.b32.xlu2 %v2062_v6, %s2001_s25  ;;  %v2174_v27 = vpack.c.b16 %v570_v22, %v570_v22 }
  0x15   : > { %777 = vrot.lane.b32.xlu0 %v2064_v7, %s2000_s24  ;;  %v2176_v28 = vpack.c.b16 %v569_v23, %v569_v23 }
  0x1c   : > { %721 = vrot.lane.b32.xlu2 %v2060_v5, %s2001_s25  ;;  %717 = vrot.lane.b32.xlu1 %v2064_v7, %s2001_s25 }
  0x1d   : > { %779 = vrot.lane.b32.xlu0 %v2062_v6, %s2000_s24 }
  0x24   : > { %751 = vrot.lane.b32.xlu2 %v2060_v5, %s2002_s26  ;;  %749 = vrot.lane.b32.xlu1 %v2062_v6, %s2002_s26 }
  0x25   : > { %747 = vrot.lane.b32.xlu0 %v2064_v7, %s2002_s26 }
  0x2c   : > { %661 = vrot.lane.b32.xlu2 %v2064_v7, %s2003_s27  ;;  %785 = vrot.lane.b32.xlu1 %v2085_v11, %s2000_s24 }
  0x2d   : > { %783 = vrot.lane.b32.xlu0 %v2087_v12, %s2000_s24 }
  0x34   : > { %688 = vrot.lane.b32.xlu2 %v2064_v7, %s2004_s28  ;;  %665 = vrot.lane.b32.xlu1 %v2060_v5, %s2003_s27 }
  0x35   : > { %663 = vrot.lane.b32.xlu0 %v2062_v6, %s2003_s27 }
  0x3c   : > { %723 = vrot.lane.b32.xlu2 %v2087_v12, %s2001_s25  ;;  %692 = vrot.lane.b32.xlu1 %v2060_v5, %s2004_s28 }
  0x3d   : > { %690 = vrot.lane.b32.xlu0 %v2062_v6, %s2004_s28 }
  0x44   : > { %755 = vrot.lane.b32.xlu2 %v2085_v11, %s2002_s26  ;;  %753 = vrot.lane.b32.xlu1 %v2087_v12, %s2002_s26 }
  0x45   : > { %725 = vrot.lane.b32.xlu0 %v2085_v11, %s2001_s25 }
  0x4c   : > { %611 = vrot.lane.b32.xlu2 %v2060_v5, %s2005_s29  ;;  %609 = vrot.lane.b32.xlu1 %v2062_v6, %s2005_s29 }
  0x4d   : > { %607 = vrot.lane.b32.xlu0 %v2064_v7, %s2005_s29 }
  0x54   : > { %638 = vrot.lane.b32.xlu2 %v2060_v5, %s2006_s30  ;;  %636 = vrot.lane.b32.xlu1 %v2062_v6, %s2006_s30 }
  0x55   : > { %634 = vrot.lane.b32.xlu0 %v2064_v7, %s2006_s30 }
  0x5c   : > { %694 = vrot.lane.b32.xlu2 %v2087_v12, %s2004_s28  ;;  %669 = vrot.lane.b32.xlu1 %v2085_v11, %s2003_s27 }
  0x5d   : > { %667 = vrot.lane.b32.xlu0 %v2087_v12, %s2003_s27 }
  0x64   : > { %582 = vrot.lane.b32.xlu2 %v2062_v6, %s2007_s6  ;;  %580 = vrot.lane.b32.xlu1 %v2064_v7, %s2007_s6 }
  0x65   : > { %696 = vrot.lane.b32.xlu0 %v2085_v11, %s2004_s28 }
  0x6c   : > { %615 = vrot.lane.b32.xlu2 %v2085_v11, %s2005_s29  ;;  %613 = vrot.lane.b32.xlu1 %v2087_v12, %s2005_s29 }
  0x6d   : > { %584 = vrot.lane.b32.xlu0 %v2060_v5, %s2007_s6 }
  0x6e   : > { %v720_v14 = vpop.permute.xlu2 %719 }
  0x74   : > { %787 = vrot.lane.b32.xlu2 %v2143_v15, %s2000_s24  ;;  %642 = vrot.lane.b32.xlu1 %v2085_v11, %s2006_s30 }
  0x75   : > { %640 = vrot.lane.b32.xlu0 %v2087_v12, %s2006_s30 }
  0x76   : > { %v2152_v18 = vpop.permute.xlu2 %721 }
  0x77   : > { %v739_v39 = vsel %vm3146_vm2, %v720_v14, %v2152_v18 }
  0x7c   : > { %588 = vrot.lane.b32.xlu2 %v2085_v11, %s2007_s6  ;;  %586 = vrot.lane.b32.xlu1 %v2087_v12, %s2007_s6 }
  0x7d   : > { %789 = vrot.lane.b32.xlu0 %v2154_v19, %s2000_s24 }
  0x7e   : > { %v2162_v20 = vpop.permute.xlu2 %751 }
  0x84   : > { %757 = vrot.lane.b32.xlu2 %v2143_v15, %s2002_s26  ;;  %729 = vrot.lane.b32.xlu1 %v2154_v19, %s2001_s25 }
  0x85   : > { %727 = vrot.lane.b32.xlu0 %v2143_v15, %s2001_s25 }
  0x86   : > { %v782_v24 = vpop.permute.xlu1 %781  ;;  %v662_v25 = vpop.permute.xlu2 %661 }
  0x87   : > { %v778_v26 = vpop.permute.xlu0 %777 }
  0x8c   : > { %793 = vrot.lane.b32.xlu2 %v2174_v27, %s2000_s24  ;;  %791 = vrot.lane.b32.xlu1 %v2176_v28, %s2000_s24 }
  0x8d   : > { %759 = vrot.lane.b32.xlu0 %v2154_v19, %s2002_s26 }
  0x8e   : > { %v689_v29 = vpop.permute.xlu2 %688  ;;  %v718_v30 = vpop.permute.xlu1 %717 }
  0x8f   : > { %v780_v31 = vpop.permute.xlu0 %779  ;;  %v738_v41 = vsel %vm3146_vm2, %v718_v30, %v720_v14 }
  0x90   : > { %v798_v32 = vsel %vm3147_vm0, %v778_v26, %v780_v31  ;;  %v799_v33 = vsel %vm3147_vm0, %v780_v31, %v782_v24 }
  0x91   : > { %v963_v34 = vsel %vm807_vm1, %v798_v32, 0  ;;  %v966_v35 = vsel %vm807_vm1, %v799_v33, 0  ;;  %v2008_v32 = vmov 0  }
  0x92   : > { %992 = vmatpush.bf16.msra.mxu0 %v963_v34  ;;  %1005 = vmatpush.bf16.msra.mxu1 %v966_v35 }
  0x93   : > { %1965 = vset.pattern.permute.xlu0 %v2008_v32  ;;  %1966 = vset.pattern.permute.xlu1 %v2008_v32 }
  0x94   : > { %698 = vrot.lane.b32.xlu2 %v2143_v15, %s2004_s28  ;;  %673 = vrot.lane.b32.xlu1 %v2154_v19, %s2003_s27 }
  0x95   : > { %671 = vrot.lane.b32.xlu0 %v2143_v15, %s2003_s27 }
  0x96   : > { %v724_v36 = vpop.permute.xlu2 %723  ;;  %v750_v37 = vpop.permute.xlu1 %749 }
  0x97   : > { %v748_v38 = vpop.permute.xlu0 %747  ;;  %v769_v40 = vsel %vm3145_vm3, %v750_v37, %v2162_v20  ;;  %v740_v3 = vsel %vm3146_vm2, %v2152_v18, %v724_v36  ;;  %v715_v18 = vunpack.c.h.b16 %v2165_v21 }
  0x98   : > { %v768_v42 = vsel %vm3145_vm3, %v748_v38, %v750_v37  ;;  %v922_v43 = vsel %vm807_vm1, %v739_v39, %v769_v40 }
  0x99   : > { %v918_v44 = vsel %vm807_vm1, %v738_v41, %v768_v42  ;;  %1006 = vmatpush.bf16.msra.mxu1 %v922_v43  ;;  %v716_v21 = vpack.c.b16 %v715_v18, %v715_v18 }
  0x9a   : > { %993 = vmatpush.bf16.msra.mxu0 %v918_v44 }
  0x9c   : > { %733 = vrot.lane.b32.xlu2 %v2174_v27, %s2001_s25  ;;  %731 = vrot.lane.b32.xlu1 %v2176_v28, %s2001_s25 }
  0x9d   : > { %700 = vrot.lane.b32.xlu0 %v2154_v19, %s2004_s28 }
  0x9e   : > { %v2208_v45 = vpop.permute.xlu2 %755  ;;  %v2210_v46 = vpop.permute.xlu1 %785 }
  0x9f   : > { %v784_v47 = vpop.permute.xlu0 %783 }
  0xa0   : > { %v800_v48 = vsel %vm3147_vm0, %v782_v24, %v784_v47  ;;  %v801_v49 = vsel %vm3147_vm0, %v784_v47, %v2210_v46 }
  0xa1   : > { %v969_v50 = vsel %vm807_vm1, %v800_v48, 0  ;;  %v972_v51 = vsel %vm807_vm1, %v801_v49, 0 }
  0xa2   : > { %1018 = vmatpush.bf16.msra.mxu2 %v969_v50  ;;  %1031 = vmatpush.bf16.msra.mxu3 %v972_v51  ;;  %v952_v51 = vld [vmem:[%s3135_s2] sm:$0xff] }
  0xa4   : > { %617 = vrot.lane.b32.xlu2 %v2143_v15, %s2005_s29  ;;  %763 = vrot.lane.b32.xlu1 %v2174_v27, %s2002_s26 }
  0xa5   : > { %761 = vrot.lane.b32.xlu0 %v2176_v28, %s2002_s26 }
  0xa6   : > { %v2223_v52 = vpop.permute.xlu2 %611  ;;  %v2225_v53 = vpop.permute.xlu1 %665 }
  0xa7   : > { %v664_v54 = vpop.permute.xlu0 %663 }
  0xa8   : > { %v680_v58 = vsel %vm3144_vm4, %v662_v25, %v664_v54  ;;  %v681_v60 = vsel %vm3144_vm4, %v664_v54, %v2225_v53 }
  0xac   : > { %646 = vrot.lane.b32.xlu2 %v2154_v19, %s2006_s30  ;;  %644 = vrot.lane.b32.xlu1 %v2143_v15, %s2006_s30 }
  0xad   : > { %619 = vrot.lane.b32.xlu0 %v2154_v19, %s2005_s29 }
  0xae   : > { %v2233_v55 = vpop.permute.xlu2 %638  ;;  %v693_v56 = vpop.permute.xlu1 %692 }
  0xaf   : > { %v691_v57 = vpop.permute.xlu0 %690 }
  0xb0   : > { %v707_v59 = vsel %vm3143_vm5, %v689_v29, %v691_v57  ;;  %v708_v61 = vsel %vm3143_vm5, %v691_v57, %v693_v56 }
  0xb1   : > { %v882_v62 = vsel %vm807_vm1, %v680_v58, %v707_v59  ;;  %v886_v63 = vsel %vm807_vm1, %v681_v60, %v708_v61 }
  0xb2   : > { %994 = vmatpush.bf16.msra.mxu0 %v882_v62  ;;  %1007 = vmatpush.bf16.msra.mxu1 %v886_v63 }
  0xb4   : > { %702 = vrot.lane.b32.xlu2 %v2176_v28, %s2004_s28  ;;  %677 = vrot.lane.b32.xlu1 %v2174_v27, %s2003_s27 }
  0xb5   : > { %675 = vrot.lane.b32.xlu0 %v2176_v28, %s2003_s27 }
  0xb6   : > { %v695_v0 = vpop.permute.xlu2 %694  ;;  %v754_v1 = vpop.permute.xlu1 %753 }
  0xb7   : > { %v2248_v2 = vpop.permute.xlu0 %725  ;;  %v770_v4 = vsel %vm3145_vm3, %v2162_v20, %v754_v1  ;;  %v771_v8 = vsel %vm3145_vm3, %v754_v1, %v2208_v45 }
  0xb8   : > { %v741_v9 = vsel %vm3146_vm2, %v724_v36, %v2248_v2  ;;  %v926_v10 = vsel %vm807_vm1, %v740_v3, %v770_v4  ;;  %v709_v36 = vsel %vm3143_vm5, %v693_v56, %v695_v0 }
  0xb9   : > { %1019 = vmatpush.bf16.msra.mxu2 %v926_v10  ;;  %v930_v13 = vsel %vm807_vm1, %v741_v9, %v771_v8 }
  0xba   : > { %1032 = vmatpush.bf16.msra.mxu3 %v930_v13 }
  0xbc   : > { %592 = vrot.lane.b32.xlu2 %v2154_v19, %s2007_s6  ;;  %590 = vrot.lane.b32.xlu1 %v2143_v15, %s2007_s6 }
  0xbd   : > { %704 = vrot.lane.b32.xlu0 %v2174_v27, %s2004_s28 }
  0xbe   : > { %v583_v14 = vpop.permute.xlu2 %582  ;;  %v610_v16 = vpop.permute.xlu1 %609 }
  0xbf   : > { %v608_v17 = vpop.permute.xlu0 %607  ;;  %v627_v20 = vsel %vm3142_vm6, %v610_v16, %v2223_v52 }
  0xc0   : > { %v626_v26 = vsel %vm3142_vm6, %v608_v17, %v610_v16 }
  0xc4   : > { %648 = vrot.lane.b32.xlu2 %v2176_v28, %s2006_s30  ;;  %623 = vrot.lane.b32.xlu1 %v2174_v27, %s2005_s29 }
  0xc5   : > { %621 = vrot.lane.b32.xlu0 %v2176_v28, %s2005_s29 }
  0xc6   : > { %v2275_v22 = vpop.permute.xlu2 %615  ;;  %v637_v23 = vpop.permute.xlu1 %636 }
  0xc7   : > { %v654_v24 = vsel %vm3141_vm7, %v637_v23, %v2233_v55  ;;  %v635_v25 = vpop.permute.xlu0 %634 }
  0xc8   : > { %v653_v29 = vsel %vm3141_vm7, %v635_v25, %v637_v23  ;;  %v850_v30 = vsel %vm807_vm1, %v627_v20, %v654_v24 }
  0xc9   : > { %v846_v31 = vsel %vm807_vm1, %v626_v26, %v653_v29  ;;  %1008 = vmatpush.bf16.msra.mxu1 %v850_v30 }
  0xca   : > { %995 = vmatpush.bf16.msra.mxu0 %v846_v31 }
  0xcc   : > { %594 = vrot.lane.b32.xlu2 %v2176_v28, %s2007_s6  ;;  %795 = vrot.lane.b32.xlu1 %v716_v21, %s2000_s24 }
  0xcd   : > { %650 = vrot.lane.b32.xlu0 %v2174_v27, %s2006_s30 }
  0xce   : > { %v788_v33 = vpop.permute.xlu2 %787  ;;  %v2290_v34 = vpop.permute.xlu1 %669 }
  0xcf   : > { %v668_v35 = vpop.permute.xlu0 %667  ;;  %v802_v41 = vsel %vm3147_vm0, %v2210_v46, %v788_v33  ;;  %v2318_v46 = vld [vmem:[%s3134_s1] sm:$0xf] }
  0xd0   : > { %v682_v37 = vsel %vm3144_vm4, %v2225_v53, %v668_v35  ;;  %v683_v44 = vsel %vm3144_vm4, %v668_v35, %v2290_v34  ;;  %v975_v50 = vsel %vm807_vm1, %v802_v41, 0 }
  0xd1   : > { %v890_v38 = vsel %vm807_vm1, %v682_v37, %v709_v36 }
  0xd2   : > { %1020 = vmatpush.bf16.msra.mxu2 %v890_v38 }
  0xd4   : > { %765 = vrot.lane.b32.xlu2 %v716_v21, %s2002_s26  ;;  %735 = vrot.lane.b32.xlu1 %v716_v21, %s2001_s25 }
  0xd5   : > { %596 = vrot.lane.b32.xlu0 %v2174_v27, %s2007_s6 }
  0xd6   : > { %v2300_v39 = vpop.permute.xlu2 %588  ;;  %v581_v40 = vpop.permute.xlu1 %580 }
  0xd7   : > { %v599_v42 = vsel %vm3140_vm8, %v581_v40, %v583_v14  ;;  %v2305_v43 = vpop.permute.xlu0 %696 }
  0xd8   : > { %v710_v47 = vsel %vm3143_vm5, %v695_v0, %v2305_v43  ;;  %v810_v48 = vsel %vm807_vm1, %v2064_v7, %v599_v42 }
  0xd9   : > { %996 = vmatpush.bf16.msra.mxu0 %v810_v48  ;;  %v894_v49 = vsel %vm807_vm1, %v683_v44, %v710_v47 }
  0xda   : > { %1033 = vmatpush.bf16.msra.mxu3 %v894_v49 }
  0xdc   : > { %1926 = vmatmul.msk.bf16.vlgmr.msra.gmra.mxu0 %vm3139_vm9, %v2318_v46 }
  0xdd   : > { %1044 = vmatpush.bf16.msrb.mxu0 %v975_v50  ;;  %955 = vperm.xlu0 %1965, %v952_v51  }
  0xde   : > { %v614_v7 = vpop.permute.xlu1 %613  ;;  %v758_v53 = vpop.permute.xlu2 %757 }
  0xdf   : > { %v585_v54 = vpop.permute.xlu0 %584  ;;  %v629_v58 = vsel %vm3142_vm6, %v614_v7, %v2275_v22  ;;  %v628_v61 = vsel %vm3142_vm6, %v2223_v52, %v614_v7 }
  0xe0   : > { %v600_v56 = vsel %vm3140_vm8, %v583_v14, %v585_v54 }
  0xe1   : > { %v814_v57 = vsel %vm807_vm1, %v2062_v6, %v600_v56 }
  0xe2   : > { %1009 = vmatpush.bf16.msra.mxu1 %v814_v57 }
  0xe5   : > { %1927 = vmatmul.msk.bf16.vlgmr.msra.gmra.mxu1 %vm3139_vm9, %v2318_v46 }
  0xe6   : > { %v2332_v59 = vpop.permute.xlu1 %642  ;;  %v2340_v6 = vpop.permute.xlu2 %793 }
  0xe7   : > { %v641_v60 = vpop.permute.xlu0 %640 }
  0xe8   : > { %v655_v62 = vsel %vm3141_vm7, %v2233_v55, %v641_v60  ;;  %v656_v63 = vsel %vm3141_vm7, %v641_v60, %v2332_v59 }
  0xe9   : > { %v854_v0 = vsel %vm807_vm1, %v628_v61, %v655_v62  ;;  %v858_v1 = vsel %vm807_vm1, %v629_v58, %v656_v63 }
  0xea   : > { %1021 = vmatpush.bf16.msra.mxu2 %v854_v0  ;;  %1034 = vmatpush.bf16.msra.mxu3 %v858_v1 }
  0xee   : > { %v587_v3 = vpop.permute.xlu1 %586  ;;  %v699_v14 = vpop.permute.xlu2 %698 }
  0xef   : > { %v601_v4 = vsel %vm3140_vm8, %v585_v54, %v587_v3  ;;  %v602_v52 = vsel %vm3140_vm8, %v587_v3, %v2300_v39  ;;  %v790_v8 = vpop.permute.xlu0 %789  ;;  %v711_v36 = vsel %vm3143_vm5, %v2305_v43, %v699_v14 }
  0xf0   : > { %v818_v55 = vsel %vm807_vm1, %v2060_v5, %v601_v4  ;;  %v822_v9 = vsel %vm807_vm1, %v2087_v12, %v602_v52  ;;  %v803_v10 = vsel %vm3147_vm0, %v788_v33, %v790_v8  ;;  %v772_v5 = vsel %vm3145_vm3, %v2208_v45, %v758_v53 }
  0xf1   : > { %1022 = vmatpush.bf16.msra.mxu2 %v818_v55  ;;  %1035 = vmatpush.bf16.msra.mxu3 %v822_v9  ;;  %v978_v13 = vsel %vm807_vm1, %v803_v10, 0 }
  0xf2   : > { %1057 = vmatpush.bf16.msrb.mxu1 %v978_v13 }
  0xf4   : > { %1928 = vmatmul.msk.bf16.vlgmr.msra.gmra.mxu2 %vm3139_vm9, %v2318_v46  ;;  %1929 = vmatmul.msk.bf16.vlgmr.msra.gmra.mxu3 %vm3139_vm9, %v2318_v46 }
  0xf6   : > { %v730_v16 = vpop.permute.xlu1 %729  ;;  %v2362_v20 = vpop.permute.xlu2 %733 }
  0xf7   : > { %v728_v17 = vpop.permute.xlu0 %727 }
  0xf8   : > { %v742_v12 = vsel %vm3146_vm2, %v2248_v2, %v728_v17  ;;  %v743_v23 = vsel %vm3146_vm2, %v728_v17, %v730_v16 }
  0xf9   : > { %v934_v18 = vsel %vm807_vm1, %v742_v12, %v772_v5 }
  0xfa   : > { %1045 = vmatpush.bf16.msrb.mxu0 %v934_v18 }
  0xfe   : > { %v792_v24 = vpop.permute.xlu1 %791  ;;  %v618_v33 = vpop.permute.xlu2 %617 }
  0xff   : > { %v760_v25 = vpop.permute.xlu0 %759  ;;  %v804_v26 = vsel %vm3147_vm0, %v790_v8, %v792_v24  ;;  %v805_v29 = vsel %vm3147_vm0, %v792_v24, %v2340_v6  ;;  %v630_v58 = vsel %vm3142_vm6, %v2275_v22, %v618_v33  ;;  %v226_v22 = vlaneseq }
 0x100   : > { %v773_v30 = vsel %vm3145_vm3, %v758_v53, %v760_v25  ;;  %v981_v45 = vsel %vm807_vm1, %v804_v26, 0  ;;  %v984_v2 = vsel %vm807_vm1, %v805_v29, 0 }
 0x101   : > { %v938_v21 = vsel %vm807_vm1, %v743_v23, %v773_v30  ;;  %1070 = vmatpush.bf16.msrb.mxu2 %v981_v45  ;;  %1083 = vmatpush.bf16.msrb.mxu3 %v984_v2  ;;  %v2406_v9 = vand.u32 127, %v226_v22 }
 0x102   : > { %1058 = vmatpush.bf16.msrb.mxu1 %v938_v21 }
 0x103   : > { %v2409_v10 = vadd.s32 128, %v2406_v9  ;;  %v239_v13 = vand.u32 65535, %v2406_v9  ;;  %v240_v24 = vshrl.u32 %v2406_v9, 16 }
 0x105   : > { %v268_v17 = vand.u32 65535, %v2409_v10  ;;  %v243_v45 = vmul.u32 61680, %v239_v13  ;;  %v2428_v2 = vmul.u32 61681, %v240_v24  ;;  %v269_v21 = vshrl.u32 %v2409_v10, 16 }
 0x106   : > { %v674_v31 = vpop.permute.xlu1 %673  ;;  %v2379_v47 = vpop.permute.xlu2 %646 }
 0x107   : > { %v672_v35 = vpop.permute.xlu0 %671 }
 0x108   : > { %v684_v37 = vsel %vm3144_vm4, %v2290_v34, %v672_v35  ;;  %v685_v40 = vsel %vm3144_vm4, %v672_v35, %v674_v31 }
 0x109   : > { %v898_v38 = vsel %vm807_vm1, %v684_v37, %v711_v36  ;;  %v248_v37 = vshll.u32 %v2428_v2, 16 }
 0x10a   : > { %1046 = vmatpush.bf16.msrb.mxu0 %v898_v38 }
 0x10e   : > { %v732_v41 = vpop.permute.xlu1 %731  ;;  %v703_v56 = vpop.permute.xlu2 %702 }
 0x10f   : > { %v701_v42 = vpop.permute.xlu0 %700  ;;  %v745_v43 = vsel %vm3146_vm2, %v732_v41, %v2362_v20  ;;  %v744_v50 = vsel %vm3146_vm2, %v730_v16, %v732_v41 }
 0x110   : > { %v712_v44 = vsel %vm3143_vm5, %v699_v14, %v701_v42  ;;  %v713_v8 = vsel %vm3143_vm5, %v701_v42, %v703_v56 }
 0x111   : > { %v902_v48 = vsel %vm807_vm1, %v685_v40, %v712_v44  ;;  %v245_v44 = vmul.u32 61680, %v240_v24 }
 0x112   : > { %1059 = vmatpush.bf16.msrb.mxu1 %v902_v48 }
 0x116   : > { %v2384_v49 = vpop.permute.xlu1 %763  ;;  %v593_v3 = vpop.permute.xlu2 %592 }
 0x117   : > { %v762_v34 = vpop.permute.xlu0 %761 }
 0x118   : > { %v774_v51 = vsel %vm3145_vm3, %v760_v25, %v762_v34  ;;  %v775_v7 = vsel %vm3145_vm3, %v762_v34, %v2384_v49 }
 0x119   : > { %v942_v53 = vsel %vm807_vm1, %v744_v50, %v774_v51  ;;  %v946_v54 = vsel %vm807_vm1, %v745_v43, %v775_v7 }
 0x11a   : > { %1071 = vmatpush.bf16.msrb.mxu2 %v942_v53  ;;  %1084 = vmatpush.bf16.msrb.mxu3 %v946_v54  ;;  %v274_v53 = vmul.u32 61680, %v269_v21 }
 0x11e   : > { %v645_v57 = vpop.permute.xlu1 %644  ;;  %v649_v5 = vpop.permute.xlu2 %648 }
 0x11f   : > { %v657_v60 = vsel %vm3141_vm7, %v2332_v59, %v645_v57  ;;  %v658_v61 = vsel %vm3141_vm7, %v645_v57, %v2379_v47  ;;  %v620_v62 = vpop.permute.xlu0 %619  ;;  %v659_v41 = vsel %vm3141_vm7, %v2379_v47, %v649_v5 }
 0x120   : > { %v631_v63 = vsel %vm3142_vm6, %v618_v33, %v620_v62  ;;  %v862_v0 = vsel %vm807_vm1, %v630_v58, %v657_v60  ;;  %v246_v33 = vshll.u32 %v243_v45, 16 }
 0x121   : > { %1047 = vmatpush.bf16.msrb.mxu0 %v862_v0  ;;  %v866_v1 = vsel %vm807_vm1, %v631_v63, %v658_v61  ;;  %v247_v63 = vshrl.u32 %v243_v45, 16 }
 0x122   : > { %1060 = vmatpush.bf16.msrb.mxu1 %v866_v1 }
 0x126   : > { %v2401_v4 = vpop.permute.xlu1 %677  ;;  %v595_v43 = vpop.permute.xlu2 %594 }
 0x127   : > { %v676_v52 = vpop.permute.xlu0 %675  ;;  %v605_v7 = vsel %vm3140_vm8, %v593_v3, %v595_v43 }
 0x128   : > { %v686_v59 = vsel %vm3144_vm4, %v674_v31, %v676_v52  ;;  %v687_v14 = vsel %vm3144_vm4, %v676_v52, %v2401_v4  ;;  %v272_v31 = vmul.u32 61680, %v268_v17 }
 0x129   : > { %v906_v55 = vsel %vm807_vm1, %v686_v59, %v713_v8  ;;  %v2462_v8 = vadd.s32 256, %v2406_v9 }
 0x12a   : > { %1072 = vmatpush.bf16.msrb.mxu2 %v906_v55  ;;  %v275_v35 = vshll.u32 %v272_v31, 16  ;;  %v276_v55 = vshrl.u32 %v272_v31, 16 }
 0x12e   : > { %v591_v16 = vpop.permute.xlu1 %590  ;;  %v766_v59 = vpop.permute.xlu2 %765 }
 0x12f   : > { %v603_v12 = vsel %vm3140_vm8, %v2300_v39, %v591_v16  ;;  %v604_v18 = vsel %vm3140_vm8, %v591_v16, %v593_v3  ;;  %v2418_v23 = vpop.permute.xlu0 %704  ;;  %v242_v39 = vmul.u32 61681, %v239_v13  ;;  %v249_v16 = vshrl.u32 %v2428_v2, 16 }
 0x130   : > { %v714_v25 = vsel %vm3143_vm5, %v703_v56, %v2418_v23  ;;  %v826_v26 = vsel %vm807_vm1, %v2085_v11, %v603_v12  ;;  %v830_v29 = vsel %vm807_vm1, %v2143_v15, %v604_v18  ;;  %v271_v11 = vmul.u32 61681, %v268_v17 }
 0x131   : > { %1048 = vmatpush.bf16.msrb.mxu0 %v826_v26  ;;  %1061 = vmatpush.bf16.msrb.mxu1 %v830_v29  ;;  %v910_v30 = vsel %vm807_vm1, %v687_v14, %v714_v25  ;;  %vm250_vm10 = vc.u32 %v242_v39, %v246_v33  ;;  %v2435_v15 = vmul.u32 61681, %v269_v21  ;;  %v252_v38 = vadd.s32 %v246_v33, %v242_v39 }
 0x132   : > { %1085 = vmatpush.bf16.msrb.mxu3 %v910_v30  ;;  %v251_v48 = vsel %vm250_vm10, 1, %v2008_v32  ;;  %vm279_vm11 = vc.u32 %v271_v11, %v275_v35  ;;  %v281_v51 = vadd.s32 %v275_v35, %v271_v11  ;;  %v834_v56 = vsel %vm807_vm1, %v2154_v19, %v605_v7 }
 0x133   : > { %v277_v50 = vshll.u32 %v2435_v15, 16  ;;  %vm254_vm12 = vc.u32 %v252_v38, %v248_v37  ;;  %v253_v54 = vadd.s32 %v251_v48, %v245_v44  ;;  %v280_v47 = vsel %vm279_vm11, 1, %v2008_v32 }
 0x134   : > { %1930 = vmatmul.msk.bf16.vlgmr.msrb.gmra.mxu0 %vm3139_vm9, %v2318_v46  ;;  %1931 = vmatmul.msk.bf16.vlgmr.msrb.gmra.mxu1 %vm3139_vm9, %v2318_v46  ;;  %v255_v57 = vsel %vm254_vm12, 1, %v2008_v32  ;;  %v282_v0 = vadd.s32 %v280_v47, %v274_v53  ;;  %v297_v14 = vand.u32 65535, %v2462_v8  ;;  %v776_v18 = vsel %vm3145_vm3, %v2384_v49, %v766_v59 }
 0x135   : > { %vm283_vm13 = vc.u32 %v281_v51, %v277_v50  ;;  %v257_v52 = vadd.s32 %v255_v57, %v253_v54  ;;  %v278_v30 = vshrl.u32 %v2435_v15, 16 }
 0x136   : > { %v2437_v36 = vpop.permute.xlu1 %623  ;;  %v284_v19 = vsel %vm283_vm13, 1, %v2008_v32  ;;  %v2473_v25 = vmul.u32 61680, %v297_v14  ;;  %v300_v33 = vmul.u32 61681, %v297_v14 }
 0x137   : > { %v622_v40 = vpop.permute.xlu0 %621  ;;  %v286_v13 = vadd.s32 %v284_v19, %v282_v0  ;;  %v258_v17 = vadd.s32 %v257_v52, %v247_v63 }
 0x138   : > { %v632_v42 = vsel %vm3142_vm6, %v620_v62, %v622_v40  ;;  %v633_v58 = vsel %vm3142_vm6, %v622_v40, %v2437_v36  ;;  %v914_v40 = vsel %vm807_vm1, %v2401_v4, %v2418_v23 }
 0x139   : > { %v870_v34 = vsel %vm807_vm1, %v632_v42, %v659_v41  ;;  %v287_v39 = vadd.s32 %v286_v13, %v276_v55  ;;  %v259_v31 = vadd.s32 %v258_v17, %v249_v16 }
 0x13a   : > { %1073 = vmatpush.bf16.msrb.mxu2 %v870_v34 }
 0x13b   : > { %v288_v37 = vadd.s32 %v287_v39, %v278_v30  ;;  %v260_v41 = vshrl.u32 %v259_v31, 5 }
 0x13d   : > { %v261_v23 = vmul.u32 34, %v260_v41 }
 0x13e   : > { %1074 = vmatpush.bf16.msrb.mxu2 %v834_v56  ;;  %v796_v60 = vpop.permute.xlu1 %795 }
 0x13f   : > { %v806_v61 = vsel %vm3147_vm0, %v2340_v6, %v796_v60  ;;  %v651_v62 = vpop.permute.xlu0 %650  ;;  %v2465_v6 = vadd.s32 384, %v2406_v9 }
 0x140   : > { %v987_v1 = vsel %vm807_vm1, %v806_v61, 0  ;;  %v660_v3 = vsel %vm3141_vm7, %v649_v5, %v651_v62  ;;  %v298_v5 = vshrl.u32 %v2462_v8, 16  ;;  %v878_v51 = vsel %vm807_vm1, %v2437_v36, %v651_v62 }
 0x141   : > { %1932 = vmatmul.msk.bf16.vlgmr.msrb.gmra.mxu2 %vm3139_vm9, %v2318_v46  ;;  %1096 = vmatpush.bf16.msra.mxu0 %v987_v1  ;;  %v874_v22 = vsel %vm807_vm1, %v633_v58, %v660_v3  ;;  %v326_v12 = vand.u32 65535, %v2465_v6  ;;  %v327_v45 = vshrl.u32 %v2465_v6, 16  ;;  %v262_v36 = vsub.s32 %v2406_v9, %v261_v23 }
 0x142   : > { %1086 = vmatpush.bf16.msrb.mxu3 %v874_v22  ;;  %v302_v11 = vmul.u32 61681, %v298_v5  ;;  %v303_v34 = vmul.u32 61680, %v298_v5  ;;  %v305_v62 = vshrl.u32 %v2473_v25, 16 }
 0x143   : > { %v330_v35 = vmul.u32 61680, %v326_v12  ;;  %v329_v15 = vmul.u32 61681, %v326_v12  ;;  %v331_v38 = vmul.u32 61681, %v327_v45  ;;  %v332_v4 = vmul.u32 61680, %v327_v45 }
 0x144   : > { %vm497_vm12 = vcmp.ne.s32.totalorder %v262_v36, 0  ;;  %vm506_vm13 = vcmp.lt.s32.totalorder %v262_v36, 0  ;;  %v524_v52 = vadd.s32 34, %v262_v36  ;;  %v307_v19 = vshrl.u32 %v302_v11, 16 }
 0x145   : > { %v333_v44 = vshll.u32 %v330_v35, 16  ;;  %v335_v48 = vshll.u32 %v331_v38, 16 }
 0x146   : > { %v736_v24 = vpop.permute.xlu1 %735 }
 0x147   : > { %v746_v26 = vsel %vm3146_vm2, %v2362_v20, %v736_v24  ;;  %v597_v29 = vpop.permute.xlu0 %596  ;;  %v304_v20 = vshll.u32 %v2473_v25, 16  ;;  %vm337_vm15 = vc.u32 %v329_v15, %v333_v44  ;;  %v339_v50 = vadd.s32 %v333_v44, %v329_v15 }
 0x148   : > { %v606_v2 = vsel %vm3140_vm8, %v595_v43, %v597_v29  ;;  %v950_v21 = vsel %vm807_vm1, %v746_v26, %v776_v18  ;;  %v289_v43 = vshrl.u32 %v288_v37, 5  ;;  %v338_v53 = vsel %vm337_vm15, 1, %v2008_v32 }
 0x149   : > { %v838_v49 = vsel %vm807_vm1, %v2176_v28, %v606_v2  ;;  %1097 = vmatpush.bf16.msra.mxu0 %v950_v21  ;;  %v306_v28 = vshll.u32 %v302_v11, 16  ;;  %vm308_vm14 = vc.u32 %v300_v33, %v304_v20  ;;  %v310_v42 = vadd.s32 %v304_v20, %v300_v33 }
 0x14a   : > { %1087 = vmatpush.bf16.msrb.mxu3 %v838_v49  ;;  %v309_v7 = vsel %vm308_vm14, 1, %v2008_v32  ;;  %v842_v54 = vsel %vm807_vm1, %v2174_v27, %v597_v29  ;;  %vm341_vm11 = vc.u32 %v339_v50, %v335_v48  ;;  %v290_v47 = vmul.u32 34, %v289_v43 }
 0x14b   : > { %vm312_vm10 = vc.u32 %v310_v42, %v306_v28  ;;  %v311_v56 = vadd.s32 %v309_v7, %v303_v34  ;;  %v340_v58 = vadd.s32 %v338_v53, %v332_v4  ;;  %v342_v60 = vsel %vm341_vm11, 1, %v2008_v32 }
 0x14c   : > { %v313_v57 = vsel %vm312_vm10, 1, %v2008_v32  ;;  %v291_v61 = vsub.s32 %v2409_v10, %v290_v47  ;;  %v334_v27 = vshrl.u32 %v330_v35, 16  ;;  %vm515_vm10 = vmand %vm506_vm13, %vm497_vm12  ;;  %v336_v10 = vshrl.u32 %v331_v38, 16 }
 0x14d   : > { %1933 = vmatmul.msk.bf16.vlgmr.msrb.gmra.mxu3 %vm3139_vm9, %v2318_v46  ;;  %1098 = vmatpush.bf16.msra.mxu0 %v914_v40  ;;  %v315_v63 = vadd.s32 %v313_v57, %v311_v56  ;;  %v344_v0 = vadd.s32 %v342_v60, %v340_v58  ;;  %v2522_v40 = vadd.s32 512, %v2406_v9  ;;  %v2536_v50 = vadd.s32 640, %v2406_v9 }
 0x14e   : > { %vm498_vm14 = vcmp.ne.s32.totalorder %v291_v61, 0  ;;  %vm507_vm15 = vcmp.lt.s32.totalorder %v291_v61, 0  ;;  %v525_v55 = vadd.s32 34, %v291_v61 }
 0x14f   : > { %v2502_v3 = vpop.permute.xlu0 %955  ;;  %v316_v22 = vadd.s32 %v315_v63, %v305_v62  ;;  %v345_v59 = vadd.s32 %v344_v0, %v334_v27  ;;  %vm516_vm11 = vmand %vm507_vm15, %vm498_vm14  ;;  %v355_v34 = vand.u32 65535, %v2522_v40  ;;  %v384_v23 = vand.u32 65535, %v2536_v50 }
 0x150   : > { %v534_v5 = vsel %vm516_vm11, %v525_v55, %v291_v61  ;;  %v356_v53 = vshrl.u32 %v2522_v40, 16  ;;  %v385_v57 = vshrl.u32 %v2536_v50, 16 }
 0x151   : > { %1099 = vmatpush.bf16.msra.mxu0 %v878_v51  ;;  %v317_v14 = vadd.s32 %v316_v22, %v307_v19  ;;  %v346_v16 = vadd.s32 %v345_v59, %v336_v10  ;;  %vm2510_vm12 = vcmp.lt.s32.totalorder %v534_v5, 32  ;;  %v388_v58 = vmul.u32 61680, %v384_v23 }
 0x152   : > { %v360_v60 = vmul.u32 61681, %v356_v53  ;;  %v387_v62 = vmul.u32 61681, %v384_v23  ;;  %v389_v63 = vmul.u32 61681, %v385_v57  ;;  %v361_v22 = vmul.u32 61680, %v356_v53 }
 0x153   : > { %v318_v26 = vshrl.u32 %v317_v14, 5  ;;  %v347_v30 = vshrl.u32 %v346_v16, 5  ;;  %v391_v27 = vshll.u32 %v388_v58, 16  ;;  %v390_v10 = vmul.u32 61680, %v385_v57 }
 0x154   : > { %v364_v0 = vshll.u32 %v360_v60, 16 }
 0x155   : > { %1100 = vmatpush.bf16.msra.mxu0 %v842_v54  ;;  %v319_v21 = vmul.u32 34, %v318_v26  ;;  %v348_v49 = vmul.u32 34, %v347_v30  ;;  %v359_v54 = vmul.u32 61680, %v355_v34  ;;  %v397_v19 = vadd.s32 %v391_v27, %v387_v62 }
 0x156   : > { %v394_v30 = vshrl.u32 %v389_v63, 16 }
 0x157   : > { %v320_v11 = vsub.s32 %v2462_v8, %v319_v21  ;;  %v349_v35 = vsub.s32 %v2465_v6, %v348_v49  ;;  %v362_v61 = vshll.u32 %v359_v54, 16 }
 0x158   : > { %1934 = vmatmul.msk.bf16.vlgmr.msra.gmra.mxu0 %vm3139_vm9, %v2318_v46  ;;  %v533_v46 = vsel %vm515_vm10, %v524_v52, %v262_v36  ;;  %v358_v36 = vmul.u32 61681, %v355_v34  ;;  %v393_v52 = vshll.u32 %v389_v63, 16 }
 0x159   : > { %v998_v1 = vpop.f32.mrf.mxu0  ;;  %vm2505_vm9 = vcmp.lt.s32.totalorder %v533_v46, 32  ;;  %vm499_vm13 = vcmp.ne.s32.totalorder %v320_v11, 0  ;;  %vm508_vm14 = vcmp.lt.s32.totalorder %v320_v11, 0  ;;  %vm500_vm15 = vcmp.ne.s32.totalorder %v349_v35, 0 }
 0x15a   : > { %v999_v13 = vadd.f32 %v998_v1, %v2502_v3  ;;  %vm509_vm10 = vcmp.lt.s32.totalorder %v349_v35, 0  ;;  %vm517_vm11 = vmand %vm508_vm14, %vm499_vm13  ;;  %v526_v20 = vadd.s32 34, %v320_v11  ;;  %v527_v37 = vadd.s32 34, %v349_v35 }
 0x15b   : > { %vm518_vm8 = vmand %vm509_vm10, %vm500_vm15  ;;  %v368_v1 = vadd.s32 %v362_v61, %v358_v36  ;;  %vm395_vm13 = vc.u32 %v387_v62, %v391_v27  ;;  %vm399_vm15 = vc.u32 %v397_v19, %v393_v52 }
 0x15c   : > { %v1106_v12 = vmax.f32 %v999_v13, 0.0  ;;  %v535_v15 = vsel %vm517_vm11, %v526_v20, %v320_v11  ;;  %v536_v38 = vsel %vm518_vm8, %v527_v37, %v349_v35  ;;  %vm366_vm8 = vc.u32 %v358_v36, %v362_v61 }
 0x15d   : > { %vm2526_vm7 = vcmp.lt.s32.totalorder %v535_v15, 32  ;;  %vm2530_vm6 = vcmp.lt.s32.totalorder %v536_v38, 32  ;;  %v367_v59 = vsel %vm366_vm8, 1, %v2008_v32  ;;  %v396_v55 = vsel %vm395_vm13, 1, %v2008_v32 }
 0x15e   : > { %v1133_v45 = vsel %vm2505_vm9, %v1106_v12, 0.0  ;;  %vm370_vm14 = vc.u32 %v368_v1, %v364_v0  ;;  %v369_v13 = vadd.s32 %v367_v59, %v361_v22  ;;  %v398_v46 = vadd.s32 %v396_v55, %v390_v10 }
 0x15f   : > { %v371_v14 = vsel %vm370_vm14, 1, %v2008_v32  ;;  %v400_v16 = vsel %vm399_vm15, 1, %v2008_v32  ;;  %v392_v12 = vshrl.u32 %v388_v58, 16 }
 0x160   : > { %v373_v5 = vadd.s32 %v371_v14, %v369_v13 }
 0x161   : > { %v1000_v17 = vpop.f32.mrf.mxu0 }
 0x162   : > { %v1011_v18 = vpop.f32.mrf.mxu1  ;;  %v363_v17 = vshrl.u32 %v359_v54, 16 }
 0x163   : > { %v1012_v25 = vadd.f32 %v1011_v18, %v2502_v3  ;;  %v402_v18 = vadd.s32 %v400_v16, %v398_v46 }
 0x164   : > { %v374_v26 = vadd.s32 %v373_v5, %v363_v17 }
 0x165   : > { %v1107_v39 = vmax.f32 %v1012_v25, 0.0  ;;  %v365_v25 = vshrl.u32 %v360_v60, 16 }
 0x167   : > { %v1134_v2 = vsel %vm2510_vm12, %v1107_v39, 0.0  ;;  %v403_v39 = vadd.s32 %v402_v18, %v392_v12 }
 0x168   : > { %v1142_v31 = vpack.c.bf16 %v1134_v2, %v1133_v45  ;;  %v2551_v45 = vadd.s32 768, %v2406_v9  ;;  %v375_v2 = vadd.s32 %v374_v26, %v365_v25 }
 0x169   : > { %v404_v21 = vadd.s32 %v403_v39, %v394_v30 }
 0x16a   : > { %v1013_v33 = vpop.f32.mrf.mxu1  ;;  %1158 = vrot.lane.b32.xlu1 %v1142_v31, %s2009_s11  ;;  %v2554_v31 = vadd.s32 896, %v2406_v9  ;;  %v413_v49 = vand.u32 65535, %v2551_v45  ;;  %v376_v11 = vshrl.u32 %v375_v2, 5  ;;  %v414_v20 = vshrl.u32 %v2551_v45, 16 }
 0x16b   : > { %v405_v35 = vshrl.u32 %v404_v21, 5 }
 0x16c   : > { %v442_v33 = vand.u32 65535, %v2554_v31  ;;  %v2559_v37 = vmul.u32 61680, %v413_v49  ;;  %v443_v15 = vshrl.u32 %v2554_v31, 16  ;;  %v419_v36 = vmul.u32 61680, %v414_v20 }
 0x16e   : > { %v2562_v38 = vmul.u32 61680, %v442_v33  ;;  %v448_v63 = vmul.u32 61680, %v443_v15  ;;  %v421_v5 = vshrl.u32 %v2559_v37, 16 }
 0x170   : > { %v450_v26 = vshrl.u32 %v2562_v38, 16 }
 0x177   : > { %v1024_v41 = vpop.f32.mrf.mxu2  ;;  %v1037_v28 = vpop.f32.mrf.mxu3 }
 0x178   : > { %v1025_v42 = vadd.f32 %v1024_v41, %v2502_v3  ;;  %v1038_v8 = vadd.f32 %v1037_v28, %v2502_v3  ;;  %v2565_v41 = vadd.s32 1024, %v2406_v9  ;;  %v377_v28 = vmul.u32 34, %v376_v11 }
 0x17a   : > { %v1108_v48 = vmax.f32 %v1025_v42, 0.0  ;;  %v1109_v43 = vmax.f32 %v1038_v8, 0.0  ;;  %v406_v42 = vmul.u32 34, %v405_v35  ;;  %v416_v8 = vmul.u32 61681, %v413_v49 }
 0x17b   : > { %v471_v34 = vand.u32 65535, %v2565_v41  ;;  %v472_v23 = vshrl.u32 %v2565_v41, 16  ;;  %v378_v9 = vsub.s32 %v2522_v40, %v377_v28 }
 0x17c   : > { %v1135_v51 = vsel %vm2526_vm7, %v1108_v48, 0.0  ;;  %v1136_v7 = vsel %vm2530_vm6, %v1109_v43, 0.0  ;;  %v2567_v48 = vmul.u32 61681, %v414_v20  ;;  %v420_v43 = vshll.u32 %v2559_v37, 16 }
 0x17d   : > { %v1143_v4 = vpack.c.bf16 %v1136_v7, %v1135_v51  ;;  %v445_v51 = vmul.u32 61681, %v442_v33  ;;  %v2571_v7 = vmul.u32 61681, %v443_v15  ;;  %v2575_v53 = vmul.u32 61680, %v471_v34 }
 0x17e   : > { %v407_v54 = vsub.s32 %v2536_v50, %v406_v42  ;;  %vm424_vm10 = vc.u32 %v416_v8, %v420_v43  ;;  %v474_v60 = vmul.u32 61681, %v471_v34  ;;  %v2581_v61 = vmul.u32 61681, %v472_v23 }
 0x17f   : > { %1160 = vrot.lane.b32.xlu2 %v1143_v4, %s2009_s11  ;;  %v1026_v47 = vpop.f32.mrf.mxu2  ;;  %v1039_v56 = vpop.f32.mrf.mxu3  ;;  %v449_v4 = vshll.u32 %v2562_v38, 16  ;;  %v451_v57 = vshll.u32 %v2571_v7, 16  ;;  %v478_v62 = vshll.u32 %v2575_v53, 16  ;;  %vm501_vm8 = vcmp.ne.s32.totalorder %v378_v9, 0 }
 0x180   : > { %v422_v47 = vshll.u32 %v2567_v48, 16  ;;  %v426_v56 = vadd.s32 %v420_v43, %v416_v8  ;;  %vm510_vm13 = vcmp.lt.s32.totalorder %v378_v9, 0  ;;  %v425_v40 = vsel %vm424_vm10, 1, %v2008_v32 }
 0x181   : > { %vm453_vm11 = vc.u32 %v445_v51, %v449_v4  ;;  %v455_v58 = vadd.s32 %v449_v4, %v445_v51  ;;  %vm502_vm14 = vcmp.ne.s32.totalorder %v407_v54, 0  ;;  %vm511_vm15 = vcmp.lt.s32.totalorder %v407_v54, 0  ;;  %vm2586_vm3 = vmand %vm510_vm13, %vm501_vm8 }
 0x182   : > { %vm428_vm5 = vc.u32 %v426_v56, %v422_v47  ;;  %v454_v50 = vsel %vm453_vm11, 1, %v2008_v32  ;;  %v528_v27 = vadd.s32 34, %v378_v9  ;;  %v529_v0 = vadd.s32 34, %v407_v54  ;;  %vm2591_vm0 = vmand %vm511_vm15, %vm502_vm14 }
 0x183   : > { %vm457_vm4 = vc.u32 %v455_v58, %v451_v57  ;;  %v427_v52 = vadd.s32 %v425_v40, %v419_v36  ;;  %v480_v19 = vshll.u32 %v2581_v61, 16  ;;  %vm482_vm2 = vc.u32 %v474_v60, %v478_v62 }
 0x184   : > { %v484_v22 = vadd.s32 %v478_v62, %v474_v60  ;;  %v429_v59 = vsel %vm428_vm5, 1, %v2008_v32  ;;  %v456_v55 = vadd.s32 %v454_v50, %v448_v63  ;;  %v458_v13 = vsel %vm457_vm4, 1, %v2008_v32 }
 0x185   : > { %v477_v46 = vmul.u32 61680, %v472_v23  ;;  %v537_v14 = vsel %vm2586_vm3, %v528_v27, %v378_v9  ;;  %v483_v16 = vsel %vm482_vm2, 1, %v2008_v32  ;;  %v538_v17 = vsel %vm2591_vm0, %v529_v0, %v407_v54 }
 0x186   : > { %v431_v12 = vadd.s32 %v429_v59, %v427_v52  ;;  %vm486_vm10 = vc.u32 %v484_v22, %v480_v19  ;;  %v460_v30 = vadd.s32 %v458_v13, %v456_v55  ;;  %vm2606_vm3 = vcmp.lt.s32.totalorder %v537_v14, 32 }
 0x187   : > { %v485_v21 = vadd.s32 %v483_v16, %v477_v46  ;;  %vm2610_vm0 = vcmp.lt.s32.totalorder %v538_v17, 32  ;;  %v487_v11 = vsel %vm486_vm10, 1, %v2008_v32  ;;  %v423_v37 = vshrl.u32 %v2567_v48, 16 }
 0x188   : > { %v432_v15 = vadd.s32 %v431_v12, %v421_v5  ;;  %v452_v38 = vshrl.u32 %v2571_v7, 16  ;;  %v461_v28 = vadd.s32 %v460_v30, %v450_v26  ;;  %v479_v43 = vshrl.u32 %v2575_v53, 16 }
 0x189   : > { %v489_v34 = vadd.s32 %v487_v11, %v485_v21  ;;  %v481_v9 = vshrl.u32 %v2581_v61, 16  ;;  %vm1147_vm2 = vcmask 281600  }
 0x18a   : > { %v433_v4 = vadd.s32 %v432_v15, %v423_v37  ;;  %v462_v23 = vadd.s32 %v461_v28, %v452_v38  ;;  %1148 = vst.msk [vmem:[%s2627_s14] sm:$0xf] %vm1147_vm2, %v2008_v32 }
 0x18b   : > { %v490_v54 = vadd.s32 %v489_v34, %v479_v43 }
 0x18c   : > { %v434_v53 = vshrl.u32 %v433_v4, 5  ;;  %v463_v47 = vshrl.u32 %v462_v23, 5 }
 0x18d   : > { %v491_v56 = vadd.s32 %v490_v54, %v481_v9 }
 0x18e   : > { %v435_v57 = vmul.u32 34, %v434_v53  ;;  %v464_v58 = vmul.u32 34, %v463_v47 }
 0x18f   : > { %v492_v36 = vshrl.u32 %v491_v56, 5 }
 0x190   : > { %v436_v60 = vsub.s32 %v2551_v45, %v435_v57  ;;  %v465_v40 = vsub.s32 %v2554_v31, %v464_v58 }
 0x191   : > { %v493_v63 = vmul.u32 34, %v492_v36 }
 0x192   : > { %vm503_vm4 = vcmp.ne.s32.totalorder %v436_v60, 0  ;;  %vm512_vm5 = vcmp.lt.s32.totalorder %v436_v60, 0  ;;  %vm504_vm11 = vcmp.ne.s32.totalorder %v465_v40, 0  ;;  %vm513_vm8 = vcmp.lt.s32.totalorder %v465_v40, 0 }
 0x193   : > { %v494_v61 = vsub.s32 %v2565_v41, %v493_v63  ;;  %vm2636_vm13 = vmand %vm512_vm5, %vm503_vm4  ;;  %v530_v27 = vadd.s32 34, %v436_v60  ;;  %v531_v0 = vadd.s32 34, %v465_v40 }
 0x194   : > { %vm522_vm14 = vmand %vm513_vm8, %vm504_vm11  ;;  %vm1187_vm8 = vcmask 1043736  }
 0x195   : > { %vm505_vm15 = vcmp.ne.s32.totalorder %v494_v61, 0  ;;  %vm514_vm10 = vcmp.lt.s32.totalorder %v494_v61, 0  ;;  %v539_v31 = vsel %vm2636_vm13, %v530_v27, %v436_v60  ;;  %v540_v52 = vsel %vm522_vm14, %v531_v0, %v465_v40 }
 0x196   : > { %v532_v22 = vadd.s32 34, %v494_v61  ;;  %vm523_vm2 = vmand %vm514_vm10, %vm505_vm15  ;;  %vm2644_vm4 = vcmp.lt.s32.totalorder %v539_v31, 32  ;;  %vm2648_vm5 = vcmp.lt.s32.totalorder %v540_v52, 32  ;;  %vm1188_vm13 = vcmask 1047556  }
 0x197   : > { %vm3149_vm14 = vcmask 285696   ;;  %vm2664_vm15 = vmor %vm1188_vm13, %vm1187_vm8  ;;  %vm1149_vm10 = vcmask 1044248   ;;  %vm3148_vm13 = vcmask 805888  }
 0x198   : > { %v541_v46 = vsel %vm523_vm2, %v532_v22, %v494_v61  ;;  %vm1150_vm2 = vcmask 310276  }
 0x199   : > { %vm2657_vm11 = vcmp.lt.s32.totalorder %v541_v46, 32  ;;  %vm1151_vm8 = vmor %vm1150_vm2, %vm1149_vm10  ;;  %vm3176_vm10 = vcmask 474112   ;;  %vm3177_vm2 = vcmask 490496  }
 0x19a   : > { %1152 = vst.msk [vmem:[%s2627_s14 + $0x20] sm:$0xff] %vm1151_vm8, %v2008_v32  ;;  %vm3178_vm8 = vcmask 482304  }
 0x1b1   : > { %v1050_v18 = vpop.f32.mrf.mxu0  ;;  %v1063_v25 = vpop.f32.mrf.mxu1 }
 0x1b2   : > { %v1051_v39 = vadd.f32 %v1050_v18, %v2502_v3  ;;  %v1064_v2 = vadd.f32 %v1063_v25, %v2502_v3 }
 0x1b4   : > { %v1110_v35 = vmax.f32 %v1051_v39, 0.0  ;;  %v1111_v20 = vmax.f32 %v1064_v2, 0.0 }
 0x1b6   : > { %v1137_v42 = vsel %vm2606_vm3, %v1110_v35, 0.0  ;;  %v1138_v8 = vsel %vm2610_vm0, %v1111_v20, 0.0 }
 0x1b7   : > { %v1144_v51 = vpack.c.bf16 %v1138_v8, %v1137_v42 }
 0x1b9   : > { %1162 = vrot.lane.b32.xlu1 %v1144_v51, %s2009_s11  ;;  %v1052_v48 = vpop.f32.mrf.mxu0  ;;  %v1065_v7 = vpop.f32.mrf.mxu1 }
 0x1c4   : > { %v1076_v62 = vpop.f32.mrf.mxu2 }
 0x1c5   : > { %v1077_v45 = vadd.f32 %v1076_v62, %v2502_v3 }
 0x1c7   : > { %v1112_v10 = vmax.f32 %v1077_v45, 0.0 }
 0x1c9   : > { %v1139_v14 = vsel %vm2644_vm4, %v1112_v10, 0.0 }
 0x1cc   : > { %v1078_v1 = vpop.f32.mrf.mxu2 }
 0x1d0   : > { %v1089_v19 = vpop.f32.mrf.mxu3 }
 0x1d1   : > { %v1090_v41 = vadd.f32 %v1089_v19, %v2502_v3 }
 0x1d3   : > { %v1113_v13 = vmax.f32 %v1090_v41, 0.0 }
 0x1d5   : > { %v1140_v16 = vsel %vm2648_vm5, %v1113_v13, 0.0  ;;  %v1102_v17 = vpop.f32.mrf.mxu0 }
 0x1d6   : > { %v1103_v5 = vadd.f32 %v1102_v17, %v2502_v3  ;;  %v1145_v12 = vpack.c.bf16 %v1140_v16, %v1139_v14 }
 0x1d8   : > { %v1114_v25 = vmax.f32 %v1103_v5, 0.0  ;;  %1164 = vrot.lane.b32.xlu2 %v1145_v12, %s2009_s11  ;;  %v1091_v26 = vpop.f32.mrf.mxu3 }
 0x1d9   : > { %v1161_v42 = vpop.permute.xlu2 %1160 }
 0x1da   : > { %v1141_v30 = vsel %vm2657_vm11, %v1114_v25, 0.0  ;;  %v1169_v8 = vrot.slane %v1161_v42, 4 }
 0x1db   : > { %v1146_v39 = vpack.c.bf16 %v1141_v30, %v1141_v30 }
 0x1dc   : > { %v1159_v2 = vpop.permute.xlu1 %1158 }
 0x1dd   : > { %v1168_v21 = vrot.slane %v1159_v2, 4  ;;  %1166 = vrot.lane.b32.xlu0 %v1146_v39, %s2009_s11  ;;  %v1104_v11 = vpop.f32.mrf.mxu0 }
 0x1df   : > { %v1173_v35 = vsel %vm3149_vm14, %v1168_v21, %v1159_v2  ;;  %v1175_v43 = vsel %vm807_vm1, %v1168_v21, %v1169_v8 }
 0x1e0   : > { %1190 = vst.msk [vmem:[%s2627_s14] sm:$0xff] %vm2664_vm15, %v1173_v35  ;;  %v1176_v34 = vsel %vm3149_vm14, %v1175_v43, %v1161_v42 }
 0x1e1   : > { %v1208_v51 = vunpack.c.l.b16 %v1176_v34  ;;  %v1209_v48 = vunpack.c.h.b16 %v1176_v34 }
 0x1e3   : > { %v2704_v4 = vpack.c.b16 %v1208_v51, %v1208_v51  ;;  %v2718_v7 = vpack.c.b16 %v1209_v48, %v1209_v48 }
 0x1e7   : > { %v1196_v20 = vld [vmem:[%s2627_s14] sm:$0xff] }
 0x1e8   : > { %v1206_v37 = vunpack.c.l.b16 %v1196_v20  ;;  %v1207_v15 = vunpack.c.h.b16 %v1196_v20 }
 0x1ea   : > { %v2674_v38 = vpack.c.b16 %v1207_v15, %v1207_v15  ;;  %v2676_v28 = vpack.c.b16 %v1206_v37, %v1206_v37 }
 0x1ec   : > { %1226 = vrot.lane.b32.xlu2 %v2674_v38, %s2007_s6  ;;  %1414 = vrot.lane.b32.xlu0 %v2676_v28, %s2000_s24 }
 0x1ed   : > { %1224 = vrot.lane.b32.xlu1 %v2676_v28, %s2007_s6 }
 0x1f4   : > { %1356 = vrot.lane.b32.xlu2 %v2676_v28, %s2001_s25  ;;  %1358 = vrot.lane.b32.xlu0 %v2674_v38, %s2001_s25 }
 0x1f5   : > { %1416 = vrot.lane.b32.xlu1 %v2674_v38, %s2000_s24 }
 0x1fc   : > { %1387 = vrot.lane.b32.xlu2 %v2674_v38, %s2002_s26  ;;  %1304 = vrot.lane.b32.xlu0 %v2674_v38, %s2003_s27 }
 0x1fd   : > { %1385 = vrot.lane.b32.xlu1 %v2676_v28, %s2002_s26 }
 0x204   : > { %1302 = vrot.lane.b32.xlu2 %v2676_v28, %s2003_s27  ;;  %1276 = vrot.lane.b32.xlu0 %v2676_v28, %s2006_s30 }
 0x205   : > { %1328 = vrot.lane.b32.xlu1 %v2676_v28, %s2004_s28 }
 0x20c   : > { %1330 = vrot.lane.b32.xlu2 %v2674_v38, %s2004_s28  ;;  %1418 = vrot.lane.b32.xlu0 %v2704_v4, %s2000_s24 }
 0x20d   : > { %1250 = vrot.lane.b32.xlu1 %v2676_v28, %s2005_s29 }
 0x214   : > { %1252 = vrot.lane.b32.xlu2 %v2674_v38, %s2005_s29  ;;  %1360 = vrot.lane.b32.xlu0 %v2704_v4, %s2001_s25 }
 0x215   : > { %1278 = vrot.lane.b32.xlu1 %v2674_v38, %s2006_s30 }
 0x21c   : > { %1389 = vrot.lane.b32.xlu2 %v2704_v4, %s2002_s26  ;;  %1391 = vrot.lane.b32.xlu0 %v2718_v7, %s2002_s26 }
 0x21d   : > { %1420 = vrot.lane.b32.xlu1 %v2718_v7, %s2000_s24 }
 0x224   : > { %1332 = vrot.lane.b32.xlu2 %v2704_v4, %s2004_s28  ;;  %1306 = vrot.lane.b32.xlu0 %v2704_v4, %s2003_s27 }
 0x225   : > { %1362 = vrot.lane.b32.xlu1 %v2718_v7, %s2001_s25 }
 0x22b   : > { %v1163_v23 = vpop.permute.xlu1 %1162 }
 0x22c   : > { %1256 = vrot.lane.b32.xlu2 %v2718_v7, %s2005_s29  ;;  %1334 = vrot.lane.b32.xlu0 %v2718_v7, %s2004_s28  ;;  %v1170_v9 = vrot.slane %v1163_v23, 4 }
 0x22d   : > { %1308 = vrot.lane.b32.xlu1 %v2718_v7, %s2003_s27 }
 0x22e   : > { %v1177_v54 = vsel %vm807_vm1, %v1169_v8, %v1170_v9 }
 0x22f   : > { %v1178_v53 = vsel %vm3149_vm14, %v1177_v54, %v1163_v23 }
 0x230   : > { %v1210_v47 = vunpack.c.l.b16 %v1178_v53  ;;  %v1211_v32 = vunpack.c.h.b16 %v1178_v53 }
 0x232   : > { %v2742_v56 = vpack.c.b16 %v1210_v47, %v1210_v47  ;;  %v1165_v57 = vpop.permute.xlu2 %1164  ;;  %v2756_v58 = vpack.c.b16 %v1211_v32, %v1211_v32 }
 0x233   : > { %v1171_v60 = vrot.slane %v1165_v57, 4 }
 0x234   : > { %1280 = vrot.lane.b32.xlu0 %v2704_v4, %s2006_s30  ;;  %1422 = vrot.lane.b32.xlu2 %v2742_v56, %s2000_s24 }
 0x235   : > { %1254 = vrot.lane.b32.xlu1 %v2704_v4, %s2005_s29  ;;  %v1179_v50 = vsel %vm807_vm1, %v1170_v9, %v1171_v60 }
 0x236   : > { %v1180_v27 = vsel %vm3149_vm14, %v1179_v50, %v1165_v57 }
 0x237   : > { %v1213_v0 = vunpack.c.h.b16 %v1180_v27  ;;  %v1212_v19 = vunpack.c.l.b16 %v1180_v27 }
 0x239   : > { %v2789_v52 = vpack.c.b16 %v1213_v0, %v1213_v0  ;;  %v2801_v14 = vpack.c.b16 %v1212_v19, %v1212_v19 }
 0x23c   : > { %1228 = vrot.lane.b32.xlu0 %v2704_v4, %s2007_s6  ;;  %1364 = vrot.lane.b32.xlu2 %v2742_v56, %s2001_s25 }
 0x23d   : > { %1282 = vrot.lane.b32.xlu1 %v2718_v7, %s2006_s30 }
 0x244   : > { %1393 = vrot.lane.b32.xlu0 %v2742_v56, %s2002_s26  ;;  %1366 = vrot.lane.b32.xlu2 %v2756_v58, %s2001_s25 }
 0x245   : > { %1230 = vrot.lane.b32.xlu1 %v2718_v7, %s2007_s6 }
 0x246   : > { %v2764_v36 = vpop.permute.xlu2 %1226 }
 0x24c   : > { %1395 = vrot.lane.b32.xlu0 %v2756_v58, %s2002_s26  ;;  %1336 = vrot.lane.b32.xlu2 %v2742_v56, %s2004_s28 }
 0x24d   : > { %1424 = vrot.lane.b32.xlu1 %v2756_v58, %s2000_s24 }
 0x24e   : > { %v1357_v62 = vpop.permute.xlu2 %1356 }
 0x24f   : > { %v1167_v40 = vpop.permute.xlu0 %1166 }
 0x250   : > { %v1181_v63 = vsel %vm3149_vm14, %v1171_v60, %v1167_v40  ;;  %vm3186_vm14 = vcmask 1039360  }
 0x251   : > { %1195 = vst.msk [vmem:[%s2627_s14 + $0x20] sm:$0xf] %vm3148_vm13, %v1181_v63  ;;  %vm3185_vm13 = vcmask 769024  }
 0x254   : > { %1258 = vrot.lane.b32.xlu0 %v2742_v56, %s2005_s29  ;;  %1338 = vrot.lane.b32.xlu2 %v2756_v58, %s2004_s28 }
 0x255   : > { %1310 = vrot.lane.b32.xlu1 %v2742_v56, %s2003_s27 }
 0x256   : > { %v1388_v61 = vpop.permute.xlu2 %1387 }
 0x258   : > { %v1200_v57 = vld [vmem:[%s2627_s14 + $0x20] sm:$0xff] }
 0x25c   : > { %1260 = vrot.lane.b32.xlu0 %v2756_v58, %s2005_s29  ;;  %1232 = vrot.lane.b32.xlu2 %v2742_v56, %s2007_s6 }
 0x25d   : > { %1312 = vrot.lane.b32.xlu1 %v2756_v58, %s2003_s27 }
 0x25e   : > { %v1303_v1 = vpop.permute.xlu2 %1302  ;;  %v1415_v45 = vpop.permute.xlu0 %1414 }
 0x25f   : > { %v1225_v31 = vpop.permute.xlu1 %1224 }
 0x260   : > { %v1242_v32 = vsel %vm3186_vm14, %v1225_v31, %v2764_v36  ;;  %vm3187_vm14 = vcmask 474112   ;;  %v1354_v31 = vunpack.c.h.b16 %v1200_v57 }
 0x261   : > { %v1445_v60 = vsel %vm807_vm1, %v2676_v28, %v1242_v32 }
 0x264   : > { %1428 = vrot.lane.b32.xlu0 %v2789_v52, %s2000_s24  ;;  %1234 = vrot.lane.b32.xlu2 %v2756_v58, %s2007_s6 }
 0x265   : > { %1284 = vrot.lane.b32.xlu1 %v2742_v56, %s2006_s30 }
 0x266   : > { %v2797_v22 = vpop.permute.xlu2 %1330  ;;  %v1359_v10 = vpop.permute.xlu0 %1358 }
 0x267   : > { %v1417_v41 = vpop.permute.xlu1 %1416  ;;  %v1376_v12 = vsel %vm3177_vm2, %v1357_v62, %v1359_v10  ;;  %vm3180_vm2 = vcmask 752640   ;;  %v1214_v62 = vunpack.c.l.b16 %v1200_v57 }
 0x268   : > { %v1434_v13 = vsel %vm3176_vm10, %v1415_v45, %v1417_v41  ;;  %vm3179_vm10 = vcmask 760832  }
 0x269   : > { %v1598_v46 = vsel %vm807_vm1, %v1434_v13, 0  ;;  %v2870_v45 = vpack.c.b16 %v1214_v62, %v1214_v62 }
 0x26a   : > { %1627 = vmatpush.bf16.msra.mxu1 %v1598_v46 }
 0x26c   : > { %1370 = vrot.lane.b32.xlu0 %v2789_v52, %s2001_s25  ;;  %1426 = vrot.lane.b32.xlu2 %v2801_v14, %s2000_s24 }
 0x26d   : > { %1286 = vrot.lane.b32.xlu1 %v2756_v58, %s2006_s30 }
 0x26e   : > { %v2809_v16 = vpop.permute.xlu2 %1252  ;;  %v2811_v17 = vpop.permute.xlu0 %1304 }
 0x26f   : > { %v1386_v5 = vpop.permute.xlu1 %1385  ;;  %v1320_v21 = vsel %vm3179_vm10, %v1303_v1, %v2811_v17  ;;  %vm3182_vm10 = vcmask 482304  }
 0x270   : > { %v1405_v25 = vsel %vm3178_vm8, %v1386_v5, %v1388_v61  ;;  %vm3181_vm8 = vcmask 474112  }
 0x271   : > { %v1553_v26 = vsel %vm807_vm1, %v1376_v12, %v1405_v25 }
 0x272   : > { %1628 = vmatpush.bf16.msra.mxu1 %v1553_v26  ;;  %v1355_v26 = vpack.c.b16 %v1354_v31, %v1354_v31 }
 0x274   : > { %1340 = vrot.lane.b32.xlu0 %v2801_v14, %s2004_s28  ;;  %1368 = vrot.lane.b32.xlu2 %v2801_v14, %s2001_s25 }
 0x275   : > { %1397 = vrot.lane.b32.xlu1 %v2801_v14, %s2002_s26 }
 0x276   : > { %v1390_v30 = vpop.permute.xlu2 %1389  ;;  %v1277_v39 = vpop.permute.xlu0 %1276 }
 0x277   : > { %v1329_v2 = vpop.permute.xlu1 %1328  ;;  %v1406_v51 = vsel %vm3182_vm10, %v1388_v61, %v1390_v30  ;;  %vm3189_vm10 = vcmask 752640  }
 0x278   : > { %v1346_v11 = vsel %vm3180_vm2, %v1329_v2, %v2797_v22  ;;  %vm3183_vm2 = vcmask 490496  }
 0x279   : > { %v1517_v35 = vsel %vm807_vm1, %v1320_v21, %v1346_v11 }
 0x27a   : > { %1629 = vmatpush.bf16.msra.mxu1 %v1517_v35 }
 0x27c   : > { %1262 = vrot.lane.b32.xlu0 %v2801_v14, %s2005_s29  ;;  %1399 = vrot.lane.b32.xlu2 %v2789_v52, %s2002_s26 }
 0x27d   : > { %1314 = vrot.lane.b32.xlu1 %v2801_v14, %s2003_s27 }
 0x27e   : > { %v1333_v20 = vpop.permute.xlu2 %1332  ;;  %v1419_v37 = vpop.permute.xlu0 %1418 }
 0x27f   : > { %v1435_v15 = vsel %vm3181_vm8, %v1417_v41, %v1419_v37  ;;  %v1251_v42 = vpop.permute.xlu1 %1250  ;;  %vm3184_vm8 = vcmask 1031168  }
 0x280   : > { %v1601_v8 = vsel %vm807_vm1, %v1435_v15, 0  ;;  %v1268_v9 = vsel %vm3184_vm8, %v1251_v42, %v2809_v16  ;;  %vm3191_vm8 = vcmask 482304  }
 0x281   : > { %1640 = vmatpush.bf16.msra.mxu2 %v1601_v8 }
 0x284   : > { %1290 = vrot.lane.b32.xlu0 %v2789_v52, %s2006_s30  ;;  %1316 = vrot.lane.b32.xlu2 %v2789_v52, %s2003_s27 }
 0x285   : > { %1342 = vrot.lane.b32.xlu1 %v2789_v52, %s2004_s28 }
 0x286   : > { %v2841_v43 = vpop.permute.xlu2 %1256  ;;  %v1361_v34 = vpop.permute.xlu0 %1360 }
 0x287   : > { %v1377_v48 = vsel %vm3183_vm2, %v1359_v10, %v1361_v34  ;;  %v1279_v23 = vpop.permute.xlu1 %1278  ;;  %v1347_v10 = vsel %vm3189_vm10, %v2797_v22, %v1333_v20  ;;  %vm3190_vm2 = vcmask 760832  }
 0x288   : > { %v1294_v54 = vsel %vm3185_vm13, %v1277_v39, %v1279_v23  ;;  %v1557_v53 = vsel %vm807_vm1, %v1377_v48, %v1406_v51  ;;  %vm3188_vm13 = vmmov %vm3187_vm14 }
 0x289   : > { %v1481_v47 = vsel %vm807_vm1, %v1268_v9, %v1294_v54  ;;  %1641 = vmatpush.bf16.msra.mxu2 %v1557_v53 }
 0x28a   : > { %1630 = vmatpush.bf16.msra.mxu1 %v1481_v47 }
 0x28c   : > { %1238 = vrot.lane.b32.xlu0 %v2789_v52, %s2007_s6  ;;  %1288 = vrot.lane.b32.xlu2 %v2801_v14, %s2006_s30 }
 0x28d   : > { %1264 = vrot.lane.b32.xlu1 %v2789_v52, %s2005_s29 }
 0x28e   : > { %1631 = vmatpush.bf16.msra.mxu1 %v1445_v60  ;;  %v2861_v40 = vpop.permute.xlu0 %1391  ;;  %v2863_v63 = vpop.permute.xlu2 %1422 }
 0x28f   : > { %v1421_v61 = vpop.permute.xlu1 %1420  ;;  %v1407_v46 = vsel %vm3191_vm8, %v1390_v30, %v2861_v40  ;;  %vm3196_vm8 = vcmask 1031168  }
 0x290   : > { %v1436_v50 = vsel %vm3187_vm14, %v1419_v37, %v1421_v61  ;;  %v1437_v27 = vsel %vm3188_vm13, %v1421_v61, %v2863_v63  ;;  %vm3192_vm14 = vcmask 490496   ;;  %vm3193_vm13 = vmmov %vm3189_vm10 }
 0x291   : > { %v1604_v0 = vsel %vm807_vm1, %v1436_v50, 0  ;;  %v1607_v1 = vsel %vm807_vm1, %v1437_v27, 0  ;;  %vm3194_vm10 = vmmov %vm3190_vm2 }
 0x292   : > { %1653 = vmatpush.bf16.msra.mxu3 %v1604_v0  ;;  %1666 = vmatpush.bf16.msrb.mxu0 %v1607_v1 }
 0x294   : > { %1430 = vrot.lane.b32.xlu0 %v2870_v45, %s2000_s24  ;;  %1236 = vrot.lane.b32.xlu2 %v2801_v14, %s2007_s6 }
 0x295   : > { %1372 = vrot.lane.b32.xlu1 %v2870_v45, %s2001_s25 }
 0x296   : > { %v1307_v28 = vpop.permute.xlu0 %1306  ;;  %v1365_v19 = vpop.permute.xlu2 %1364 }
 0x297   : > { %v1321_v41 = vsel %vm3190_vm2, %v2811_v17, %v1307_v28  ;;  %v1363_v13 = vpop.permute.xlu1 %1362  ;;  %vm3195_vm2 = vcmask 769024  }
 0x298   : > { %v1378_v5 = vsel %vm3192_vm14, %v1361_v34, %v1363_v13  ;;  %v1521_v12 = vsel %vm807_vm1, %v1321_v41, %v1347_v10  ;;  %vm3197_vm14 = vcmask 1039360  }
 0x299   : > { %1642 = vmatpush.bf16.msra.mxu2 %v1521_v12  ;;  %v1561_v25 = vsel %vm807_vm1, %v1378_v5, %v1407_v46 }
 0x29a   : > { %1654 = vmatpush.bf16.msra.mxu3 %v1561_v25 }
 0x29c   : > { %1432 = vrot.lane.b32.xlu0 %v1355_v26, %s2000_s24  ;;  %1401 = vrot.lane.b32.xlu2 %v2870_v45, %s2002_s26 }
 0x29d   : > { %1374 = vrot.lane.b32.xlu1 %v1355_v26, %s2001_s25 }
 0x29e   : > { %v1335_v22 = vpop.permute.xlu0 %1334  ;;  %v2891_v17 = vpop.permute.xlu2 %1366 }
 0x29f   : > { %v1348_v30 = vsel %vm3193_vm13, %v1333_v20, %v1335_v22  ;;  %v1309_v39 = vpop.permute.xlu1 %1308  ;;  %vm3198_vm13 = vmmov %vm3196_vm8 }
 0x2a0   : > { %v1322_v2 = vsel %vm3194_vm10, %v1307_v28, %v1309_v39  ;;  %vm3199_vm10 = vmmov %vm3195_vm2 }
 0x2a1   : > { %v1525_v21 = vsel %vm807_vm1, %v1322_v2, %v1348_v30 }
 0x2a2   : > { %1655 = vmatpush.bf16.msra.mxu3 %v1525_v21 }
 0x2a4   : > { %1318 = vrot.lane.b32.xlu0 %v2870_v45, %s2003_s27  ;;  %1403 = vrot.lane.b32.xlu2 %v1355_v26, %s2002_s26 }
 0x2a5   : > { %1344 = vrot.lane.b32.xlu1 %v2870_v45, %s2004_s28 }
 0x2a6   : > { %v1281_v11 = vpop.permute.xlu0 %1280  ;;  %v1337_v35 = vpop.permute.xlu2 %1336 }
 0x2a7   : > { %v1295_v37 = vsel %vm3195_vm2, %v1279_v23, %v1281_v11  ;;  %v1255_v15 = vpop.permute.xlu1 %1254  ;;  %vm3200_vm2 = vcmask 490496  }
 0x2a8   : > { %v1269_v20 = vsel %vm3196_vm8, %v2809_v16, %v1255_v15  ;;  %v1270_v16 = vsel %vm3198_vm13, %v1255_v15, %v2841_v43  ;;  %v1379_v32 = vsel %vm3200_vm2, %v1363_v13, %v1365_v19  ;;  %vm3201_vm8 = vcmask 482304  }
 0x2a9   : > { %v1485_v42 = vsel %vm807_vm1, %v1269_v20, %v1295_v37  ;;  %vm3202_vm13 = vcmask 474112   ;;  %v1380_v28 = vsel %vm3200_vm2, %v1365_v19, %v2891_v17  ;;  %v2948_v19 = vld [vmem:[%s3136_s3] sm:$0xf] }
 0x2aa   : > { %1643 = vmatpush.bf16.msra.mxu2 %v1485_v42 }
 0x2ac   : > { %1240 = vrot.lane.b32.xlu0 %v2870_v45, %s2007_s6  ;;  %1292 = vrot.lane.b32.xlu2 %v2870_v45, %s2006_s30 }
 0x2ad   : > { %1266 = vrot.lane.b32.xlu1 %v2870_v45, %s2005_s29 }
 0x2ae   : > { %v1229_v8 = vpop.permute.xlu0 %1228  ;;  %v2911_v34 = vpop.permute.xlu2 %1338 }
 0x2af   : > { %v1243_v51 = vsel %vm3197_vm14, %v2764_v36, %v1229_v8  ;;  %v1283_v48 = vpop.permute.xlu1 %1282 }
 0x2b0   : > { %v1296_v23 = vsel %vm3199_vm10, %v1281_v11, %v1283_v48  ;;  %v1449_v9 = vsel %vm807_vm1, %v2674_v38, %v1243_v51  ;;  %vm3203_vm10 = vmmov %vm3201_vm8 }
 0x2b1   : > { %1644 = vmatpush.bf16.msra.mxu2 %v1449_v9  ;;  %v1489_v54 = vsel %vm807_vm1, %v1270_v16, %v1296_v23 }
 0x2b2   : > { %1656 = vmatpush.bf16.msra.mxu3 %v1489_v54 }
 0x2b6   : > { %v1394_v53 = vpop.permute.xlu0 %1393  ;;  %v1233_v47 = vpop.permute.xlu2 %1232 }
 0x2b7   : > { %v1408_v36 = vsel %vm3201_vm8, %v2861_v40, %v1394_v53  ;;  %v1231_v57 = vpop.permute.xlu1 %1230  ;;  %vm3204_vm8 = vmmov %vm3202_vm13 }
 0x2b8   : > { %v1244_v60 = vsel %vm3197_vm14, %v1229_v8, %v1231_v57  ;;  %v1565_v62 = vsel %vm807_vm1, %v1379_v32, %v1408_v36  ;;  %vm3205_vm14 = vcmask 752640  }
 0x2b9   : > { %v1453_v61 = vsel %vm807_vm1, %v2704_v4, %v1244_v60  ;;  %1667 = vmatpush.bf16.msrb.mxu0 %v1565_v62  ;;  %v1349_v46 = vsel %vm3205_vm14, %v1335_v22, %v1337_v35  ;;  %v1350_v30 = vsel %vm3205_vm14, %v1337_v35, %v2911_v34  ;;  %vm3213_vm14 = vcmask 1039360   ;;  %v1987_v60 = vld [vmem:[%s2056_s23 + $0x8] sm:$0xff] }
 0x2ba   : > { %1657 = vmatpush.bf16.msra.mxu3 %v1453_v61  ;;  %v1245_v51 = vsel %vm3213_vm14, %v1231_v57, %v1233_v47  ;;  %v1588_v57 = vld [vmem:[%s3137_s4] sm:$0xff]  ;;  %v1752_v62 = vunpack.c.l.bf16 %v1987_v60  ;;  %v1753_v61 = vunpack.c.h.bf16 %v1987_v60 }
 0x2bb   : > { %v1457_v16 = vsel %vm807_vm1, %v2718_v7, %v1245_v51  ;;  %1591 = vperm.xlu1 %1966, %v1588_v57  }
 0x2be   : > { %v2928_v38 = vpop.permute.xlu0 %1395  ;;  %v2930_v50 = vpop.permute.xlu2 %1234 }
 0x2bf   : > { %v1425_v27 = vpop.permute.xlu1 %1424  ;;  %v1409_v1 = vsel %vm3203_vm10, %v1394_v53, %v2928_v38  ;;  %vm3207_vm10 = vcmask 588800  }
 0x2c0   : > { %v1438_v0 = vsel %vm3202_vm13, %v2863_v63, %v1425_v27  ;;  %v1569_v4 = vsel %vm807_vm1, %v1380_v28, %v1409_v1  ;;  %vm3206_vm13 = vcmask 760832   ;;  %1936 = vmatmul.msk.bf16.vlgmr.msra.gmra.mxu2 %vm3207_vm10, %v2948_v19  ;;  %vm3208_vm2 = vmmov %vm3207_vm10  ;;  %vm3210_vm10 = vcmask 474112  }
 0x2c1   : > { %v1610_v40 = vsel %vm807_vm1, %v1438_v0, 0  ;;  %1935 = vmatmul.msk.bf16.vlgmr.msra.gmra.mxu1 %vm3208_vm2, %v2948_v19  ;;  %v1972_v1 = vpack.i.bf16 %v1753_v61, %v1752_v62 }
 0x2c2   : > { %1679 = vmatpush.bf16.msrb.mxu1 %v1610_v40 }
 0x2c3   : > { %1973 = vrot.lane.b32.xlu0 %v1972_v1, %s2003_s27 }
 0x2c6   : > { %1680 = vmatpush.bf16.msrb.mxu1 %v1569_v4  ;;  %v1259_v31 = vpop.permute.xlu0 %1258  ;;  %v1427_v10 = vpop.permute.xlu2 %1426 }
 0x2c7   : > { %v1311_v41 = vpop.permute.xlu1 %1310  ;;  %v1439_v13 = vsel %vm3204_vm8, %v1425_v27, %v1427_v10  ;;  %vm3209_vm8 = vmmov %vm3208_vm2  ;;  %vm3211_vm2 = vcmask 1031168  }
 0x2c8   : > { %v1323_v63 = vsel %vm3206_vm13, %v1309_v39, %v1311_v41  ;;  %v1613_v5 = vsel %vm807_vm1, %v1439_v13, 0  ;;  %1937 = vmatmul.msk.bf16.vlgmr.msra.gmra.mxu3 %vm3209_vm8, %v2948_v19  ;;  %v1271_v20 = vsel %vm3211_vm2, %v2841_v43, %v1259_v31  ;;  %vm3212_vm8 = vcmask 769024  }
 0x2c9   : > { %v1529_v12 = vsel %vm807_vm1, %v1323_v63, %v1349_v46  ;;  %1692 = vmatpush.bf16.msrb.mxu2 %v1613_v5 }
 0x2ca   : > { %1668 = vmatpush.bf16.msrb.mxu0 %v1529_v12 }
 0x2ce   : > { %v1261_v25 = vpop.permute.xlu0 %1260  ;;  %v1369_v26 = vpop.permute.xlu2 %1368 }
 0x2cf   : > { %v1313_v22 = vpop.permute.xlu1 %1312 }
 0x2d0   : > { %v1324_v39 = vsel %vm3206_vm13, %v1311_v41, %v1313_v22  ;;  %vm3214_vm13 = vmmov %vm3211_vm2  ;;  %vm3216_vm2 = vcmask 588800  }
 0x2d1   : > { %v1533_v2 = vsel %vm807_vm1, %v1324_v39, %v1350_v30  ;;  %v1272_v43 = vsel %vm3214_vm13, %v1259_v31, %v1261_v25 }
 0x2d2   : > { %1681 = vmatpush.bf16.msrb.mxu1 %v1533_v2 }
 0x2d6   : > { %v2960_v21 = vpop.permute.xlu0 %1428  ;;  %v2962_v11 = vpop.permute.xlu2 %1399 }
 0x2d7   : > { %v1440_v37 = vsel %vm3210_vm10, %v1427_v10, %v2960_v21  ;;  %v1285_v15 = vpop.permute.xlu1 %1284  ;;  %vm3215_vm10 = vmmov %vm3212_vm8 }
 0x2d8   : > { %v1616_v42 = vsel %vm807_vm1, %v1440_v37, 0  ;;  %v1297_v35 = vsel %vm3212_vm8, %v1283_v48, %v1285_v15  ;;  %vm3217_vm8 = vmmov %vm3213_vm14  ;;  %vm3218_vm14 = vcmask 490496  }
 0x2d9   : > { %v1493_v8 = vsel %vm807_vm1, %v1271_v20, %v1297_v35  ;;  %1705 = vmatpush.bf16.msrb.mxu3 %v1616_v42  ;;  %v1246_v32 = vsel %vm3217_vm8, %v1233_v47, %v2930_v50  ;;  %v1381_v27 = vsel %vm3218_vm14, %v2891_v17, %v1369_v26  ;;  %vm3219_vm13 = vmmov %vm3218_vm14  ;;  %vm3222_vm8 = vcmask 588800   ;;  %v1988_v17 = vld [vmem:[%s2056_s23 + $0x10] sm:$0xff]  ;;  %v1989_v35 = vld [vmem:[%s2056_s23] sm:$0xff] }
 0x2da   : > { %1669 = vmatpush.bf16.msrb.mxu0 %v1493_v8  ;;  %v1461_v7 = vsel %vm807_vm1, %v2742_v56, %v1246_v32  ;;  %v1754_v10 = vunpack.c.l.bf16 %v1988_v17  ;;  %v1755_v41 = vunpack.c.h.bf16 %v1988_v17  ;;  %vm3223_vm14 = vcmask 752640   ;;  %v1990_v32 = vld [vmem:[%s2056_s23 + $0x18] sm:$0xff] }
 0x2db   : > { %v1750_v8 = vunpack.c.l.bf16 %v1989_v35  ;;  %v1751_v51 = vunpack.c.h.bf16 %v1989_v35 }
 0x2de   : > { %1670 = vmatpush.bf16.msrb.mxu0 %v1457_v16  ;;  %v2974_v23 = vpop.permute.xlu0 %1370  ;;  %v2976_v54 = vpop.permute.xlu2 %1316 }
 0x2df   : > { %v1287_v9 = vpop.permute.xlu1 %1286  ;;  %v1382_v47 = vsel %vm3219_vm13, %v1369_v26, %v2974_v23  ;;  %vm3224_vm13 = vcmask 760832  }
 0x2e0   : > { %v1298_v48 = vsel %vm3215_vm10, %v1285_v15, %v1287_v9  ;;  %vm3220_vm10 = vcmask 482304  }
 0x2e1   : > { %v1497_v53 = vsel %vm807_vm1, %v1272_v43, %v1298_v48  ;;  %1938 = vmatmul.msk.bf16.vlgmr.msrb.gmra.mxu0 %vm3216_vm2, %v2948_v19  ;;  %vm3221_vm2 = vmmov %vm3220_vm10 }
 0x2e2   : > { %1682 = vmatpush.bf16.msrb.mxu1 %v1497_v53 }
 0x2e6   : > { %1683 = vmatpush.bf16.msrb.mxu1 %v1461_v7  ;;  %v1341_v36 = vpop.permute.xlu0 %1340  ;;  %v1289_v31 = vpop.permute.xlu2 %1288  ;;  %v1756_v7 = vunpack.c.l.bf16 %v1990_v32 }
 0x2e7   : > { %v1398_v0 = vpop.permute.xlu1 %1397  ;;  %v1351_v63 = vsel %vm3223_vm14, %v2911_v34, %v1341_v36  ;;  %vm3228_vm14 = vmmov %vm3224_vm13 }
 0x2e8   : > { %v1410_v56 = vsel %vm3220_vm10, %v2928_v38, %v1398_v0  ;;  %v1411_v40 = vsel %vm3221_vm2, %v1398_v0, %v2962_v11  ;;  %v1977_v38 = vpack.i.bf16 %v1755_v41, %v1754_v10  ;;  %vm3225_vm10 = vcmask 1031168  }
 0x2e9   : > { %v1573_v28 = vsel %vm807_vm1, %v1381_v27, %v1410_v56  ;;  %v1577_v4 = vsel %vm807_vm1, %v1382_v47, %v1411_v40  ;;  %1939 = vmatmul.msk.bf16.vlgmr.msrb.gmra.mxu1 %vm3222_vm8, %v2948_v19  ;;  %vm3226_vm2 = vcmask 769024   ;;  %vm3227_vm8 = vcmask 1039360  }
 0x2ea   : > { %1693 = vmatpush.bf16.msrb.mxu2 %v1573_v28  ;;  %1706 = vmatpush.bf16.msrb.mxu3 %v1577_v4  ;;  %v1299_v39 = vsel %vm3226_vm2, %v1287_v9, %v1289_v31 }
 0x2eb   : > { %1978 = vrot.lane.b32.xlu1 %v1977_v38, %s2003_s27 }
 0x2ee   : > { %v1263_v13 = vpop.permute.xlu0 %1262  ;;  %v1237_v30 = vpop.permute.xlu2 %1236 }
 0x2ef   : > { %v1315_v46 = vpop.permute.xlu1 %1314  ;;  %v1273_v26 = vsel %vm3225_vm10, %v1261_v25, %v1263_v13  ;;  %v1247_v15 = vsel %vm3227_vm8, %v2930_v50, %v1237_v30  ;;  %vm3230_vm10 = vcmask 588800   ;;  %v1967_v50 = vpack.i.bf16 %v1751_v51, %v1750_v8 }
 0x2f0   : > { %v1325_v5 = vsel %vm3224_vm13, %v1313_v22, %v1315_v46  ;;  %v1501_v2 = vsel %vm807_vm1, %v1273_v26, %v1299_v39  ;;  %v1326_v22 = vsel %vm3228_vm14, %v1315_v46, %v2976_v54  ;;  %vm3229_vm13 = vcmask 752640  }
 0x2f1   : > { %v1537_v12 = vsel %vm807_vm1, %v1325_v5, %v1351_v63  ;;  %v1465_v42 = vsel %vm807_vm1, %v2756_v58, %v1247_v15  ;;  %1968 = vrot.lane.b32.xlu2 %v1967_v50, %s2003_s27  ;;  %vm3231_vm8 = vcmask 1031168   ;;  %vm3232_vm14 = vcmask 1039360  }
 0x2f2   : > { %1694 = vmatpush.bf16.msrb.mxu2 %v1537_v12 }
 0x2f6   : > { %1695 = vmatpush.bf16.msrb.mxu2 %v1501_v2  ;;  %v3013_v37 = vpop.permute.xlu0 %1290  ;;  %v1402_v62 = vpop.permute.xlu2 %1401 }
 0x2f7   : > { %v1343_v34 = vpop.permute.xlu1 %1342  ;;  %v1300_v43 = vsel %vm3226_vm2, %v1289_v31, %v3013_v37  ;;  %vm3235_vm2 = vcmask 588800  }
 0x2f8   : > { %v1352_v20 = vsel %vm3229_vm13, %v1341_v36, %v1343_v34  ;;  %v1757_v36 = vunpack.c.h.bf16 %v1990_v32  ;;  %vm3233_vm13 = vcmask 474112  }
 0x2f9   : > { %v1541_v25 = vsel %vm807_vm1, %v1326_v22, %v1352_v20 }
 0x2fa   : > { %1707 = vmatpush.bf16.msrb.mxu3 %v1541_v25  ;;  %1696 = vmatpush.bf16.msrb.mxu2 %v1465_v42  ;;  %v1982_v60 = vpack.i.bf16 %v1757_v36, %v1756_v7 }
 0x2fc   : > { %1983 = vrot.lane.b32.xlu2 %v1982_v60, %s2003_s27 }
 0x2fd   : > { %1940 = vmatmul.msk.bf16.vlgmr.msrb.gmra.mxu2 %vm3230_vm10, %v2948_v19  ;;  %vm3234_vm10 = vcmask 490496  }
 0x2fe   : > { %v1239_v16 = vpop.permute.xlu0 %1238  ;;  %v1404_v17 = vpop.permute.xlu2 %1403 }
 0x2ff   : > { %v1265_v9 = vpop.permute.xlu1 %1264  ;;  %v1248_v53 = vsel %vm3232_vm14, %v1237_v30, %v1239_v16  ;;  %vm3237_vm14 = vmmov %vm3233_vm13 }
 0x300   : > { %v1274_v48 = vsel %vm3231_vm8, %v1263_v13, %v1265_v9  ;;  %v1469_v57 = vsel %vm807_vm1, %v2801_v14, %v1248_v53  ;;  %v1991_v14 = vld [vmem:[%s2056_s23 + $0x20] sm:$0xff]  ;;  %vm3236_vm8 = vcmask 482304  }
 0x301   : > { %v1505_v58 = vsel %vm807_vm1, %v1274_v48, %v1300_v43  ;;  %v1758_v40 = vunpack.c.l.bf16 %v1991_v14  ;;  %v1412_v1 = vsel %vm3236_vm8, %v2962_v11, %v1402_v62 }
 0x302   : > { %1708 = vmatpush.bf16.msrb.mxu3 %v1505_v58 }
 0x303   : > { %1784 = vrot.lane.b32.xlu0 %v1758_v40, %s2003_s27 }
 0x306   : > { %1709 = vmatpush.bf16.msrb.mxu3 %v1469_v57  ;;  %v1431_v61 = vpop.permute.xlu0 %1430  ;;  %v1293_v26 = vpop.permute.xlu2 %1292 }
 0x307   : > { %v1441_v27 = vsel %vm3233_vm13, %v2960_v21, %v1431_v61  ;;  %v1373_v0 = vpop.permute.xlu1 %1372  ;;  %vm3238_vm13 = vmmov %vm3234_vm10 }
 0x308   : > { %v1619_v47 = vsel %vm807_vm1, %v1441_v27, 0  ;;  %v1383_v56 = vsel %vm3234_vm10, %v2974_v23, %v1373_v0  ;;  %vm3239_vm10 = vmmov %vm3236_vm8  ;;  %vm3241_vm8 = vcmask 752640  }
 0x309   : > { %1718 = vmatpush.bf16.msra.mxu0 %v1619_v47  ;;  %1941 = vmatmul.msk.bf16.vlgmr.msrb.gmra.mxu3 %vm3235_vm2, %v2948_v19  ;;  %v1581_v21 = vsel %vm807_vm1, %v1383_v56, %v1412_v1  ;;  %v1413_v41 = vsel %vm3239_vm10, %v1402_v62, %v1404_v17  ;;  %vm3240_vm2 = vcmask 760832   ;;  %vm3244_vm10 = vcmask 1039360  }
 0x30d   : > { %1719 = vmatpush.bf16.msra.mxu0 %v1581_v21 }
 0x30e   : > { %v1433_v28 = vpop.permute.xlu0 %1432 }
 0x30f   : > { %v1442_v4 = vsel %vm3237_vm14, %v1431_v61, %v1433_v28  ;;  %v1375_v31 = vpop.permute.xlu1 %1374  ;;  %vm3242_vm14 = vcmask 769024  }
 0x310   : > { %v1622_v23 = vsel %vm807_vm1, %v1442_v4, 0  ;;  %v1384_v10 = vsel %vm3238_vm13, %v1373_v0, %v1375_v31  ;;  %v1301_v2 = vsel %vm3242_vm14, %v3013_v37, %v1293_v26  ;;  %vm3243_vm13 = vcmask 1031168  }
 0x311   : > { %1731 = vmatpush.bf16.msra.mxu1 %v1622_v23  ;;  %v1585_v38 = vsel %vm807_vm1, %v1384_v10, %v1413_v41  ;;  %vm3247_vm14 = vcmask 760832  }
 0x315   : > { %1732 = vmatpush.bf16.msra.mxu1 %v1585_v38 }
 0x316   : > { %v1319_v11 = vpop.permute.xlu0 %1318 }
 0x317   : > { %v1327_v13 = vsel %vm3240_vm2, %v2976_v54, %v1319_v11  ;;  %v1345_v46 = vpop.permute.xlu1 %1344  ;;  %vm3245_vm2 = vcmask 588800  }
 0x318   : > { %v1353_v63 = vsel %vm3241_vm8, %v1343_v34, %v1345_v46  ;;  %v1549_v5 = vsel %vm807_vm1, %v1319_v11, %v1345_v46  ;;  %vm3246_vm8 = vmmov %vm3245_vm2 }
 0x319   : > { %v1545_v12 = vsel %vm807_vm1, %v1327_v13, %v1353_v63  ;;  %1733 = vmatpush.bf16.msra.mxu1 %v1549_v5 }
 0x31a   : > { %1720 = vmatpush.bf16.msra.mxu0 %v1545_v12 }
 0x31e   : > { %v1241_v30 = vpop.permute.xlu0 %1240 }
 0x31f   : > { %v1267_v39 = vpop.permute.xlu1 %1266  ;;  %v1249_v34 = vsel %vm3244_vm10, %v1239_v16, %v1241_v30  ;;  %v1477_v20 = vsel %vm807_vm1, %v2870_v45, %v1241_v30 }
 0x320   : > { %v1275_v15 = vsel %vm3243_vm13, %v1265_v9, %v1267_v39  ;;  %v1513_v22 = vsel %vm807_vm1, %v1267_v39, %v1293_v26  ;;  %v1473_v25 = vsel %vm807_vm1, %v2789_v52, %v1249_v34  ;;  %vm3248_vm13 = vmmov %vm3247_vm14 }
 0x321   : > { %1734 = vmatpush.bf16.msra.mxu1 %v1513_v22  ;;  %v1509_v54 = vsel %vm807_vm1, %v1275_v15, %v1301_v2  ;;  %vm3249_vm10 = vmmov %vm3248_vm13 }
 0x322   : > { %1721 = vmatpush.bf16.msra.mxu0 %v1509_v54 }
 0x325   : > { %1735 = vmatpush.bf16.msra.mxu1 %v1477_v20 }
 0x326   : > { %1722 = vmatpush.bf16.msra.mxu0 %v1473_v25 }
 0x328   : > { %1943 = vmatmul.msk.bf16.vlgmr.msra.gmra.mxu1 %vm3245_vm2, %v2948_v19  ;;  %vm3250_vm2 = vmmov %vm3249_vm10 }
 0x329   : > { %1942 = vmatmul.msk.bf16.vlgmr.msra.gmra.mxu0 %vm3246_vm8, %v2948_v19 }
 0x32d   : > { %v3072_v50 = vpop.permute.xlu1 %1591 }
 0x335   : > { %v1974_v48 = vpop.permute.xlu0 %1973 }
 0x336   : > { %v1975_v53 = vunpack.i.l.bf16 %v1974_v48  ;;  %v1976_v0 = vunpack.i.h.bf16 %v1974_v48 }
 0x338   : > { %v1789_v21 = vsel %vm3249_vm10, %v1975_v53, %v1976_v0 }
 0x33e   : > { %v1633_v37 = vpop.f32.mrf.mxu1 }
 0x33f   : > { %v1634_v52 = vadd.f32 %v1633_v37, %v3072_v50 }
 0x341   : > { %v1741_v32 = vmax.f32 %v1634_v52, 0.0 }
 0x343   : > { %v1646_v42 = vpop.f32.mrf.mxu2 }
 0x344   : > { %v1647_v9 = vadd.f32 %v1646_v42, %v3072_v50 }
 0x346   : > { %v1635_v35 = vpop.f32.mrf.mxu1  ;;  %v1742_v58 = vmax.f32 %v1647_v9, 0.0 }
 0x34b   : > { %v1648_v8 = vpop.f32.mrf.mxu2  ;;  %v1969_v51 = vpop.permute.xlu2 %1968 }
 0x34c   : > { %v1971_v16 = vunpack.i.h.bf16 %v1969_v51  ;;  %v1970_v45 = vunpack.i.l.bf16 %v1969_v51  ;;  %v1659_v56 = vpop.f32.mrf.mxu3 }
 0x34d   : > { %v1660_v40 = vadd.f32 %v1659_v56, %v3072_v50 }
 0x34e   : > { %v1787_v43 = vsel %vm3247_vm14, %v1970_v45, %v1971_v16  ;;  %v1788_v19 = vsel %vm3248_vm13, %v1971_v16, %v1975_v53 }
 0x34f   : > { %v1804_v7 = vadd.f32 %v1787_v43, %v1741_v32  ;;  %v1805_v36 = vadd.f32 %v1788_v19, %v1742_v58  ;;  %v1743_v28 = vmax.f32 %v1660_v40, 0.0 }
 0x351   : > { %v1813_v57 = vsel %vm2505_vm9, %v1804_v7, 0.0  ;;  %v1814_v60 = vsel %vm2510_vm12, %v1805_v36, 0.0  ;;  %v1806_v31 = vadd.f32 %v1789_v21, %v1743_v28  ;;  %vm3251_vm9 = vmmov %vm3250_vm2 }
 0x352   : > { %v1822_v62 = vpack.c.bf16 %v1814_v60, %v1813_v57  ;;  %vm3254_vm12 = vmmov %vm3250_vm2 }
 0x353   : > { %v1815_v23 = vsel %vm2526_vm7, %v1806_v31, 0.0  ;;  %vm3252_vm7 = vmmov %vm3250_vm2 }
 0x354   : > { %1832 = vrot.lane.b32.xlu1 %v1822_v62, %s2009_s11  ;;  %v1661_v38 = vpop.f32.mrf.mxu3 }
 0x356   : > { %v1984_v63 = vpop.permute.xlu2 %1983 }
 0x357   : > { %v1985_v12 = vunpack.i.l.bf16 %v1984_v63  ;;  %v1986_v35 = vunpack.i.h.bf16 %v1984_v63 }
 0x35d   : > { %v1979_v27 = vpop.permute.xlu1 %1978 }
 0x35e   : > { %v1980_v47 = vunpack.i.l.bf16 %v1979_v27  ;;  %v1672_v14 = vpop.f32.mrf.mxu0  ;;  %v1981_v46 = vunpack.i.h.bf16 %v1979_v27 }
 0x35f   : > { %v1673_v1 = vadd.f32 %v1672_v14, %v3072_v50 }
 0x360   : > { %v1790_v24 = vsel %vm3250_vm2, %v1976_v0, %v1980_v47  ;;  %v1791_v26 = vsel %vm3251_vm9, %v1980_v47, %v1981_v46  ;;  %v1792_v44 = vsel %vm3252_vm7, %v1981_v46, %v1985_v12 }
 0x361   : > { %v1744_v29 = vmax.f32 %v1673_v1, 0.0 }
 0x363   : > { %v1807_v17 = vadd.f32 %v1790_v24, %v1744_v29 }
 0x365   : > { %v1816_v10 = vsel %vm2530_vm6, %v1807_v17, 0.0  ;;  %vm3253_vm6 = vmmov %vm3250_vm2 }
 0x366   : > { %v1685_v61 = vpop.f32.mrf.mxu1  ;;  %v1823_v41 = vpack.c.bf16 %v1816_v10, %v1815_v23  ;;  %v1674_v11 = vpop.f32.mrf.mxu0  ;;  %v1793_v45 = vsel %vm3253_vm6, %v1985_v12, %v1986_v35 }
 0x367   : > { %v1686_v13 = vadd.f32 %v1685_v61, %v3072_v50 }
 0x368   : > { %1834 = vrot.lane.b32.xlu2 %v1823_v41, %s2009_s11 }
 0x369   : > { %v1745_v5 = vmax.f32 %v1686_v13, 0.0 }
 0x36b   : > { %v1808_v39 = vadd.f32 %v1791_v26, %v1745_v5 }
 0x36d   : > { %v1817_v22 = vsel %vm2606_vm3, %v1808_v39, 0.0  ;;  %vm3255_vm3 = vcmask 285696  }
 0x36e   : > { %v1687_v4 = vpop.f32.mrf.mxu1 }
 0x375   : > { %v1785_v16 = vpop.permute.xlu0 %1784 }
 0x376   : > { %v1794_v43 = vsel %vm3254_vm12, %v1986_v35, %v1785_v16 }
 0x380   : > { %v1698_v30 = vpop.f32.mrf.mxu2 }
 0x381   : > { %v1699_v6 = vadd.f32 %v1698_v30, %v3072_v50 }
 0x383   : > { %v1746_v2 = vmax.f32 %v1699_v6, 0.0 }
 0x385   : > { %v1809_v15 = vadd.f32 %v1792_v44, %v1746_v2 }
 0x387   : > { %v1818_v54 = vsel %vm2610_vm0, %v1809_v15, 0.0  ;;  %vm3256_vm0 = vmmov %vm3255_vm3 }
 0x388   : > { %v1824_v34 = vpack.c.bf16 %v1818_v54, %v1817_v22  ;;  %v1700_v20 = vpop.f32.mrf.mxu2 }
 0x38a   : > { %1836 = vrot.lane.b32.xlu0 %v1824_v34, %s2009_s11 }
 0x38c   : > { %v1711_v25 = vpop.f32.mrf.mxu3 }
 0x38d   : > { %v1712_v42 = vadd.f32 %v1711_v25, %v3072_v50 }
 0x38f   : > { %v1747_v8 = vmax.f32 %v1712_v42, 0.0 }
 0x391   : > { %v1810_v48 = vadd.f32 %v1793_v45, %v1747_v8 }
 0x393   : > { %v1819_v7 = vsel %vm2644_vm4, %v1810_v48, 0.0  ;;  %vm3257_vm4 = vmmov %vm3256_vm0 }
 0x394   : > { %v1713_v37 = vpop.f32.mrf.mxu3 }
 0x3a5   : > { %v1737_v51 = vpop.f32.mrf.mxu1 }
 0x3a6   : > { %v1738_v49 = vadd.f32 %v1737_v51, %v3072_v50  ;;  %v1724_v9 = vpop.f32.mrf.mxu0 }
 0x3a7   : > { %v1725_v33 = vadd.f32 %v1724_v9, %v3072_v50 }
 0x3a8   : > { %v1749_v52 = vmax.f32 %v1738_v49, 0.0 }
 0x3a9   : > { %v1748_v58 = vmax.f32 %v1725_v33, 0.0 }
 0x3aa   : > { %v1812_v53 = vadd.f32 %v1785_v16, %v1749_v52 }
 0x3ab   : > { %v1811_v32 = vadd.f32 %v1794_v43, %v1748_v58 }
 0x3ac   : > { %v1821_v19 = vsel %vm2657_vm11, %v1812_v53, 0.0  ;;  %vm3259_vm11 = vmmov %vm3256_vm0 }
 0x3ad   : > { %v1820_v36 = vsel %vm2648_vm5, %v1811_v32, 0.0  ;;  %v1826_v57 = vpack.c.bf16 %v1821_v19, %v1821_v19  ;;  %v1739_v50 = vpop.f32.mrf.mxu1  ;;  %vm3258_vm5 = vmmov %vm3256_vm0 }
 0x3ae   : > { %v1825_v60 = vpack.c.bf16 %v1820_v36, %v1819_v7  ;;  %v1726_v62 = vpop.f32.mrf.mxu0 }
 0x3af   : > { %1840 = vrot.lane.b32.xlu2 %v1826_v57, %s2009_s11 }
 0x3b0   : > { %1838 = vrot.lane.b32.xlu1 %v1825_v60, %s2009_s11 }
 0x3c2   : > { %v1835_v61 = vpop.permute.xlu2 %1834 }
 0x3c3   : > { %v1843_v18 = vrot.slane %v1835_v61, 4 }
 0x3c6   : > { %v1833_v27 = vpop.permute.xlu1 %1832 }
 0x3c7   : > { %v1842_v0 = vrot.slane %v1833_v27, 4 }
 0x3c9   : > { %v1846_v59 = vsel %vm3255_vm3, %v1842_v0, %v1833_v27  ;;  %v1847_v55 = vsel %vm807_vm1, %v1842_v0, %v1843_v18 }
 0x3ca   : > { %1859 = vst.msk [vmem:[%s2627_s14] sm:$0xff] %vm2664_vm15, %v1846_v59  ;;  %v1848_v47 = vsel %vm3256_vm0, %v1847_v55, %v1835_v61  ;;  %vm3260_vm15 = vcmask 805888  }
 0x3cb   : > { %1860 = vst [vmem:[%s2627_s14 + $0x8] sm:$0xff] %v1848_v47 }
 0x3fc   : > { %v1837_v56 = vpop.permute.xlu0 %1836 }
 0x3fd   : > { %v1844_v14 = vrot.slane %v1837_v56, 4 }
 0x3ff   : > { %v1849_v40 = vsel %vm807_vm1, %v1843_v18, %v1844_v14 }
 0x400   : > { %v1850_v1 = vsel %vm3257_vm4, %v1849_v40, %v1837_v56 }
 0x401   : > { %1861 = vst [vmem:[%s2627_s14 + $0x10] sm:$0xff] %v1850_v1 }
 0x409   : > { %v1841_v28 = vpop.permute.xlu2 %1840 }
 0x422   : > { %v1839_v21 = vpop.permute.xlu1 %1838 }
 0x423   : > { %v1845_v24 = vrot.slane %v1839_v21, 4 }
 0x425   : > { %v1851_v29 = vsel %vm807_vm1, %v1844_v14, %v1845_v24  ;;  %v1853_v4 = vsel %vm3258_vm5, %v1845_v24, %v1841_v28 }
 0x426   : > { %v1852_v3 = vsel %vm3259_vm11, %v1851_v29, %v1839_v21  ;;  %1863 = vst.msk [vmem:[%s2627_s14 + $0x20] sm:$0xf] %vm3260_vm15, %v1853_v4 }
 0x427   : > { %1862 = vst [vmem:[%s2627_s14 + $0x18] sm:$0xff] %v1852_v3 }
 0x428 PF: > { %s15_s18 = sadd.s32 1, %s1998_s18  }
 0x429   : > { %p12_p4 = scmp.ge.s32.totalorder %s15_s18, 4  }
 0x42b   :  { %14 = sbr.rel (!%p12_p4) target bundleno = 1 (0x1), region = 70 }

</bundles_post_ra>
